<compile_context>
chip_gen: v6e
topology: v6e:2x2x1
jax: 0.10.0
libtpu: 0.0.40
codegen_flags: <defaults>
</compile_context>

<pallas_src>
import math
import functools

import jax
import jax.numpy as jnp
from jax import lax
from jax.experimental import pallas as pl
from jax.experimental.pallas import tpu as pltpu


def _pick_tile(m, target=256):
    """Largest divisor of m that is <= target and a multiple of 8 (else m itself)."""
    if m <= target:
        return m
    for t in range(min(target, m), 7, -1):
        if m % t == 0 and t % 8 == 0:
            return t
    return m


# ----------------------------------------------------------------------------
# Pallas kernel 1: pairwise negative squared distance (the matmul behind knn)
# ----------------------------------------------------------------------------
def _neg_sqdist_small_kernel(x_ref, xt_ref, o_ref):
    # xyz call (C<=8): a padded MXU contraction is ~2% utilization; do C broadcast
    # FMAs on the VPU instead. xt is pre-transposed in XLA (no in-kernel relayout).
    x = x_ref[0].astype(jnp.float32)                           # (N, C)
    xt = xt_ref[0].astype(jnp.float32)                         # (C, N)
    sq = jnp.sum(x * x, axis=-1, keepdims=True)                # (N, 1)
    inner = x[:, 0:1] * xt[0:1, :]
    for c in range(1, x.shape[1]):
        inner = inner + x[:, c:c + 1] * xt[c:c + 1, :]
    o_ref[0] = 2.0 * inner - sq - sq.T                         # -||xi-xj||^2


def _neg_sqdist_kernel(x_ref, o_ref):
    # feature-space call (C=64): bf16 operands on the MXU, f32 accumulation.
    x = x_ref[0]                                               # (N, C) bf16
    xf = x.astype(jnp.float32)
    sq = jnp.sum(xf * xf, axis=-1, keepdims=True)              # (N, 1) f32
    inner = lax.dot_general(x, x, (((1,), (1,)), ((), ())),
                            preferred_element_type=jnp.float32)  # (N, N)
    o_ref[0] = 2.0 * inner - sq - sq.T


def pairwise_neg_sqdist(x):
    # TODO(synk): tile over output columns (2-D grid) for N >= 2048 so the (1,N,N)
    # f32 block does not blow v7x's 64 MiB VMEM; also prerequisite for a fused
    # running top-k.
    B, N, C = x.shape
    if C <= 8:
        xt = jnp.transpose(x, (0, 2, 1))
        return pl.pallas_call(
            _neg_sqdist_small_kernel,
            out_shape=jax.ShapeDtypeStruct((B, N, N), jnp.float32),
            grid=(B,),
            in_specs=[pl.BlockSpec((1, N, C), lambda b: (b, 0, 0)),
                      pl.BlockSpec((1, C, N), lambda b: (b, 0, 0))],
            out_specs=pl.BlockSpec((1, N, N), lambda b: (b, 0, 0)),
            compiler_params=pltpu.CompilerParams(dimension_semantics=("parallel",)),
        )(x, xt)
    return pl.pallas_call(
        _neg_sqdist_kernel,
        out_shape=jax.ShapeDtypeStruct((B, N, N), jnp.float32),
        grid=(B,),
        in_specs=[pl.BlockSpec((1, N, C), lambda b: (b, 0, 0))],
        out_specs=pl.BlockSpec((1, N, N), lambda b: (b, 0, 0)),
        compiler_params=pltpu.CompilerParams(dimension_semantics=("parallel",)),
    )(x.astype(jnp.bfloat16))


# ----------------------------------------------------------------------------
# Pallas kernel 2: neighborhood attention, tiled over the point axis
#   - graph-feature concat folded into split weights (nbrs @ W_top + cen @ (W_bot-W_top))
#   - q/k kept at the true dim D; only v/output is lane-dense (Dp=128)
#   - fused bf16 MXU projection, f32 softmax, bf16 output store
# ----------------------------------------------------------------------------
def _attention_kernel(nbr_ref, cen_ref, pos_ref, wn_ref, wc_ref, b_ref,
                      wp_ref, bp_ref, o_ref, *, d, dp, small_c):
    _, TN, K, C = nbr_ref.shape
    wout = wn_ref.shape[1]                                     # 2*d + dp
    P = pos_ref.shape[2]

    nb = nbr_ref[0].reshape(TN * K, C)                         # (TN*K, C) bf16
    cen = cen_ref[0]                                           # (TN, C)   bf16

    if small_c:
        # layer 1 (C=3): avoid a 3->128 padded MXU contraction; use VPU FMAs.
        # TODO(synk): on v5e (no f32 FMA on the VPU) benchmark a padded MXU matmul here.
        nbf = nb.astype(jnp.float32)
        cef = cen.astype(jnp.float32)
        wn = wn_ref[...].astype(jnp.float32)
        wc = wc_ref[...].astype(jnp.float32)
        qkv_n = nbf[:, 0:1] * wn[0:1, :]
        qkv_c = cef[:, 0:1] * wc[0:1, :] + b_ref[...]
        for c in range(1, C):
            qkv_n = qkv_n + nbf[:, c:c + 1] * wn[c:c + 1, :]
            qkv_c = qkv_c + cef[:, c:c + 1] * wc[c:c + 1, :]
    else:
        qkv_n = jnp.dot(nb, wn_ref[...],
                        preferred_element_type=jnp.float32)    # (TN*K, wout)
        qkv_c = jnp.dot(cen, wc_ref[...],
                        preferred_element_type=jnp.float32) + b_ref[...]  # (TN, wout)

    qkv = qkv_n.reshape(TN, K, wout) + qkv_c[:, None, :]       # (TN, K, wout)
    q = qkv[:, :, 0:d]                                         # (TN, K, d)
    kk = qkv[:, :, d:2 * d]                                    # (TN, K, d)
    v = qkv[:, :, 2 * d:2 * d + dp]                            # (TN, K, dp)

    # Positional encoding: contraction dim is 3 -> VPU FMAs, keep the MXU free.
    p = pos_ref[0].astype(jnp.float32)                         # (TN, P)
    pe = p[:, 0:1] * wp_ref[0:1, :] + bp_ref[...]
    for c in range(1, P):
        pe = pe + p[:, c:c + 1] * wp_ref[c:c + 1, :]           # (TN, dp)

    kk = kk + pe[:, 0:d][:, None, :]
    v = v + pe[:, None, :]

    # Scalar attention over the K neighbors (f32; 1/sqrt(d) folded into wq/bq).
    logits = jnp.sum(q * kk, axis=-1)                          # (TN, K)
    logits = logits - jnp.max(logits, axis=-1, keepdims=True)
    e = jnp.exp(logits)
    attn = e * pl.reciprocal(jnp.sum(e, axis=-1, keepdims=True), approx=True)

    out = jnp.sum(attn[:, :, None] * v, axis=1)                # (TN, dp) f32
    o_ref[0] = out.astype(o_ref.dtype)                         # bf16 lane-dense store


def attention_forward(nbrs, cen, pos, params, *, tile=256):
    """nbrs: (B, M, K, C) bf16, cen: (B, M, C) bf16, pos: (B, M, 3) f32
    -> (B, M, Dp) bf16 (Dp = max(D,128); columns beyond D are zero)."""
    B, M, K, C = nbrs.shape
    D = params["wq"].shape[1]
    P = pos.shape[-1]
    Dp = max(D, 128)
    scale = 1.0 / math.sqrt(D)

    def pad_cols(w, width):
        if w.shape[1] == width:
            return w
        return jnp.concatenate(
            [w, jnp.zeros((w.shape[0], width - w.shape[1]), w.dtype)], axis=1)

    # Split each (2C, D) weight into the part applied to the gathered neighbors
    # (W_top, acting on nbrs) and the part applied to the center (W_bot - W_top),
    # because [nbrs - cen, cen] @ W == nbrs @ W_top + cen @ (W_bot - W_top).
    def split(w):
        return w[:C], w[C:]

    wq_t, wq_b = split(params["wq"] * scale)
    wk_t, wk_b = split(params["wk"])
    wv_t, wv_b = split(params["wv"])

    w_n = jnp.concatenate(
        [wq_t, wk_t, pad_cols(wv_t, Dp)], axis=1).astype(jnp.bfloat16)       # (C, 2D+Dp)
    w_c = jnp.concatenate(
        [wq_b - wq_t, wk_b - wk_t, pad_cols(wv_b - wv_t, Dp)],
        axis=1).astype(jnp.bfloat16)                                          # (C, 2D+Dp)
    b_all = jnp.concatenate(
        [params["bq"] * scale, params["bk"], pad_cols(params["bv"], Dp)],
        axis=1)                                                               # (1, 2D+Dp)
    w_p = pad_cols(params["wp"], Dp)                                          # (P, Dp)
    b_p = pad_cols(params["bp"], Dp)                                          # (1, Dp)

    wout = 2 * D + Dp
    TN = _pick_tile(M, tile)
    kernel = functools.partial(_attention_kernel, d=D, dp=Dp, small_c=(C <= 8))

    return pl.pallas_call(
        kernel,
        out_shape=jax.ShapeDtypeStruct((B, M, Dp), jnp.bfloat16),
        grid=(B, M // TN),
        in_specs=[
            pl.BlockSpec((1, TN, K, C), lambda b, n: (b, n, 0, 0)),
            pl.BlockSpec((1, TN, C), lambda b, n: (b, n, 0)),
            pl.BlockSpec((1, TN, P), lambda b, n: (b, n, 0)),
            pl.BlockSpec((C, wout), lambda b, n: (0, 0)),
            pl.BlockSpec((C, wout), lambda b, n: (0, 0)),
            pl.BlockSpec((1, wout), lambda b, n: (0, 0)),
            pl.BlockSpec((P, Dp), lambda b, n: (0, 0)),
            pl.BlockSpec((1, Dp), lambda b, n: (0, 0)),
        ],
        out_specs=pl.BlockSpec((1, TN, Dp), lambda b, n: (b, n, 0)),
        compiler_params=pltpu.CompilerParams(
            dimension_semantics=("parallel", "parallel"),
            vmem_limit_bytes=32 * 1024 * 1024),
    )(nbrs.astype(jnp.bfloat16), cen.astype(jnp.bfloat16), pos,
      w_n, w_c, b_all, w_p, b_p)


# ----------------------------------------------------------------------------
# Pallas kernel 3: fused concat + global max/avg pooling (no (B,M,256) round trip)
#   outputs a (B, 2, 256) block: row 0 = max-pool, row 1 = avg-pool
# ----------------------------------------------------------------------------
def _pool_cat_kernel(x1_ref, x2_ref, x3_ref, o_ref, *, d1, d2):
    x1 = x1_ref[0][:, :d1].astype(jnp.float32)                 # (M, d1)
    x2 = x2_ref[0][:, :d2].astype(jnp.float32)                 # (M, d2)
    x3 = x3_ref[0].astype(jnp.float32)                         # (M, d3)
    inv_n = 1.0 / float(x1.shape[0])
    mx = jnp.concatenate(
        [jnp.max(x1, axis=0, keepdims=True),
         jnp.max(x2, axis=0, keepdims=True),
         jnp.max(x3, axis=0, keepdims=True)], axis=-1)         # (1, C)
    av = jnp.concatenate(
        [jnp.sum(x1, axis=0, keepdims=True),
         jnp.sum(x2, axis=0, keepdims=True),
         jnp.sum(x3, axis=0, keepdims=True)], axis=-1) * inv_n  # (1, C)
    o_ref[0] = jnp.concatenate([mx, av], axis=0)               # one lane-dense store


def global_pool_concat(x1p, x2p, x3p, *, d1, d2):
    B, M, c1 = x1p.shape
    c2 = x2p.shape[-1]
    d3 = x3p.shape[-1]
    C = d1 + d2 + d3
    kernel = functools.partial(_pool_cat_kernel, d1=d1, d2=d2)
    pooled = pl.pallas_call(
        kernel,
        out_shape=jax.ShapeDtypeStruct((B, 2, C), jnp.float32),
        grid=(B,),
        in_specs=[pl.BlockSpec((1, M, c1), lambda b: (b, 0, 0)),
                  pl.BlockSpec((1, M, c2), lambda b: (b, 0, 0)),
                  pl.BlockSpec((1, M, d3), lambda b: (b, 0, 0))],
        out_specs=pl.BlockSpec((1, 2, C), lambda b: (b, 0, 0)),
        compiler_params=pltpu.CompilerParams(dimension_semantics=("parallel",)),
    )(x1p, x2p, x3p)
    return pooled                                              # (B, 2, C)


# ----------------------------------------------------------------------------
# Plain-JAX glue: FPS (sequential, data-dependent), knn selection, neighbor gather
# ----------------------------------------------------------------------------
def fps_subsample(points, n_samples):
    # points: (B, N, 3) -> (B, n_samples, 3); first sample = point 0 (deterministic)
    # TODO(synk): FPS is an inherently sequential data-dependent selection; an
    # in-VMEM Pallas loop would cut per-iteration latency at real sizes.
    def one(pts):
        N = pts.shape[0]

        def body(i, state):
            dist, idxs, last = state
            d = jnp.sum((pts - pts[last]) ** 2, axis=-1)
            dist = jnp.minimum(dist, d)
            nxt = jnp.argmax(dist).astype(jnp.int32)
            return dist, idxs.at[i].set(nxt), nxt

        dist0 = jnp.full((N,), 1e10, jnp.float32)
        idxs0 = jnp.zeros((n_samples,), jnp.int32)
        _, idxs, _ = lax.fori_loop(1, n_samples, body, (dist0, idxs0, jnp.int32(0)))
        return pts[idxs]

    return jax.vmap(one)(points)


def knn_neighbors(x, k):
    """x: (B, N, C) -> (nbrs (B, N, k, C) bf16, center (B, N, C) bf16).

    The DGCNN graph feature [nbrs - center, center] is NOT materialized; the
    attention kernel folds the concat into split projection weights."""
    neg_d = pairwise_neg_sqdist(x)                             # (B, N, N)  [Pallas]
    if x.shape[1] > 256:
        _, idx = lax.approx_max_k(neg_d, k, recall_target=0.95)
    else:
        _, idx = lax.top_k(neg_d, k)                           # exact for small N
    # TODO(synk): replace the XLA row gather with an in-kernel DMA gather
    # (PrefetchScalarGridSpec + scalar-prefetched idx) or a one-hot bf16 MXU matmul.
    nbrs = jax.vmap(lambda xb, ib: xb[ib])(x, idx)             # (B, N, k, C)
    return nbrs.astype(jnp.bfloat16), x.astype(jnp.bfloat16)


# ----------------------------------------------------------------------------
# EAEF forward
# ----------------------------------------------------------------------------
def eaef_forward(x, params, *, fps_num, k, tile=256):
    # x: (B, N_in, 3)
    B = x.shape[0]
    partial_bnc = fps_subsample(x, fps_num)                    # (B, M, 3) f32

    d1 = params["t1"]["wq"].shape[1]                           # 64
    d2 = params["t2"]["wq"].shape[1]                           # 64

    nbrs, cen = knn_neighbors(partial_bnc, k)                  # C=3
    x1p = attention_forward(nbrs, cen, partial_bnc, params["t1"], tile=tile)  # (B,M,128) bf16
    x1 = x1p[..., :d1]                                         # (B, M, 64) bf16

    nbrs, cen = knn_neighbors(x1, k)                           # C=64
    x2p = attention_forward(nbrs, cen, partial_bnc, params["t2"], tile=tile)  # (B,M,128) bf16
    x2 = x2p[..., :d2]                                         # (B, M, 64) bf16

    nbrs, cen = knn_neighbors(x2, k)                           # C=64
    x3p = attention_forward(nbrs, cen, partial_bnc, params["t3"], tile=tile)  # (B,M,128) bf16

    # fused concat + max/avg pool over the point axis [Pallas]
    pooled = global_pool_concat(x1p, x2p, x3p, d1=d1, d2=d2)   # (B, 2, 256) f32
    global_feature = pooled.reshape(B, -1)                     # (B, 512) = [max | avg]

    partial = jnp.transpose(partial_bnc, (0, 2, 1))            # (B, 3, M) as in PyTorch
    x3 = x3p.astype(jnp.float32)                               # (B, M, 128)
    return global_feature, x3, partial


def init_attention_params(key, c_in, pos_dim, dim):
    ks = jax.random.split(key, 4)

    def lin(kk, fan_in, fan_out):
        return jax.random.normal(kk, (fan_in, fan_out), jnp.float32) / math.sqrt(fan_in)

    return {
        "wq": lin(ks[0], c_in, dim), "bq": jnp.zeros((1, dim), jnp.float32),
        "wk": lin(ks[1], c_in, dim), "bk": jnp.zeros((1, dim), jnp.float32),
        "wv": lin(ks[2], c_in, dim), "bv": jnp.zeros((1, dim), jnp.float32),
        "wp": lin(ks[3], pos_dim, dim), "bp": jnp.zeros((1, dim), jnp.float32),
    }


if __name__ == "__main__":
    key = jax.random.PRNGKey(0)
    k_x, k1, k2, k3 = jax.random.split(key, 4)

    B, N_in = 2, 64
    FPS_NUM, KNN_K = 32, 8   # small versions of the module defaults (512, 16)

    x = jax.random.normal(k_x, (B, N_in, 3), jnp.float32)
    params = {
        "t1": init_attention_params(k1, 6, 3, 64),     # Attention(6,  pos=3, dim=64)
        "t2": init_attention_params(k2, 128, 3, 64),   # Attention(128, pos=3, dim=64)
        "t3": init_attention_params(k3, 128, 3, 128),  # Attention(128, pos=3, dim=128)
    }

    fwd = jax.jit(functools.partial(eaef_forward, fps_num=FPS_NUM, k=KNN_K))
    global_feature, x3, partial = fwd(x, params)
    jax.block_until_ready((global_feature, x3, partial))

    assert global_feature.shape == (B, 2 * (64 + 64 + 128))
    assert x3.shape == (B, FPS_NUM, 128)
    assert partial.shape == (B, 3, FPS_NUM)
    assert bool(jnp.all(jnp.isfinite(global_feature)))
    assert bool(jnp.all(jnp.isfinite(x3)))
    print("KERNEL_OK")
</pallas_src>

<mosaic_0001>
module attributes {stable_mosaic.version = 11 : i64} {
  func.func @_neg_sqdist_small_kernel(%arg0: i32, %arg1: memref<1x32x3xf32, #tpu.memory_space<vmem>>, %arg2: memref<1x3x32xf32, #tpu.memory_space<vmem>>, %arg3: memref<1x32x32xf32, #tpu.memory_space<vmem>>) attributes {dimension_semantics = [#tpu.dimension_semantics<parallel>], iteration_bounds = array<i64: 2>, scalar_prefetch = 0 : i64, scratch_operands = 0 : i64, tpu.core_type = #tpu.core_type<tc>, window_params = [{transform_indices = @transform_0, window_bounds = array<i64: 1, 32, 3>}, {transform_indices = @transform_1, window_bounds = array<i64: 1, 3, 32>}, {transform_indices = @transform_2, window_bounds = array<i64: 1, 32, 32>}]} {
    %c0 = arith.constant 0 : index
    %c0_0 = arith.constant 0 : index
    %c0_1 = arith.constant 0 : index
    %0 = vector.load %arg1[%c0, %c0_0, %c0_1] : memref<1x32x3xf32, #tpu.memory_space<vmem>>, vector<1x32x3xf32>
    %1 = vector.shape_cast %0 : vector<1x32x3xf32> to vector<32x3xf32>
    %c0_2 = arith.constant 0 : index
    %c0_3 = arith.constant 0 : index
    %c0_4 = arith.constant 0 : index
    %2 = vector.load %arg2[%c0_2, %c0_3, %c0_4] : memref<1x3x32xf32, #tpu.memory_space<vmem>>, vector<1x3x32xf32>
    %3 = vector.shape_cast %2 : vector<1x3x32xf32> to vector<3x32xf32>
    %4 = arith.mulf %1, %1 : vector<32x3xf32>
    %cst = arith.constant dense<0.000000e+00> : vector<32xf32>
    %5 = vector.multi_reduction <add>, %4, %cst [1] : vector<32x3xf32> to vector<32xf32>
    %6 = vector.shape_cast %5 : vector<32xf32> to vector<32x1xf32>
    %7 = vector.extract_strided_slice %1 {offsets = [0, 0], sizes = [32, 1], strides = [1, 1]} : vector<32x3xf32> to vector<32x1xf32>
    %8 = vector.extract_strided_slice %3 {offsets = [0, 0], sizes = [1, 32], strides = [1, 1]} : vector<3x32xf32> to vector<1x32xf32>
    %9 = vector.broadcast %7 : vector<32x1xf32> to vector<32x32xf32>
    %10 = vector.broadcast %8 : vector<1x32xf32> to vector<32x32xf32>
    %11 = arith.mulf %9, %10 : vector<32x32xf32>
    %12 = vector.extract_strided_slice %1 {offsets = [0, 1], sizes = [32, 1], strides = [1, 1]} : vector<32x3xf32> to vector<32x1xf32>
    %13 = vector.extract_strided_slice %3 {offsets = [1, 0], sizes = [1, 32], strides = [1, 1]} : vector<3x32xf32> to vector<1x32xf32>
    %14 = vector.broadcast %12 : vector<32x1xf32> to vector<32x32xf32>
    %15 = vector.broadcast %13 : vector<1x32xf32> to vector<32x32xf32>
    %16 = arith.mulf %14, %15 : vector<32x32xf32>
    %17 = arith.addf %11, %16 : vector<32x32xf32>
    %18 = vector.extract_strided_slice %1 {offsets = [0, 2], sizes = [32, 1], strides = [1, 1]} : vector<32x3xf32> to vector<32x1xf32>
    %19 = vector.extract_strided_slice %3 {offsets = [2, 0], sizes = [1, 32], strides = [1, 1]} : vector<3x32xf32> to vector<1x32xf32>
    %20 = vector.broadcast %18 : vector<32x1xf32> to vector<32x32xf32>
    %21 = vector.broadcast %19 : vector<1x32xf32> to vector<32x32xf32>
    %22 = arith.mulf %20, %21 : vector<32x32xf32>
    %23 = arith.addf %17, %22 : vector<32x32xf32>
    %cst_5 = arith.constant 2.000000e+00 : f32
    %24 = vector.broadcast %cst_5 : f32 to vector<32x32xf32>
    %25 = arith.mulf %24, %23 : vector<32x32xf32>
    %26 = vector.broadcast %6 : vector<32x1xf32> to vector<32x32xf32>
    %27 = arith.subf %25, %26 : vector<32x32xf32>
    %28 = tpu.transpose %6, [1, 0] : vector<32x1xf32> -> vector<1x32xf32>
    %29 = vector.broadcast %28 : vector<1x32xf32> to vector<32x32xf32>
    %30 = arith.subf %27, %29 : vector<32x32xf32>
    %c0_6 = arith.constant 0 : index
    %c0_7 = arith.constant 0 : index
    %c0_8 = arith.constant 0 : index
    %31 = vector.load %arg3[%c0_6, %c0_7, %c0_8] : memref<1x32x32xf32, #tpu.memory_space<vmem>>, vector<1x32x32xf32>
    %32 = vector.shape_cast %31 : vector<1x32x32xf32> to vector<32x32xf32>
    %33 = vector.shape_cast %30 : vector<32x32xf32> to vector<1x32x32xf32>
    tpu.vector_store %arg3[%c0_6, %c0_7, %c0_8], %33 {strides = array<i32>} : memref<1x32x32xf32, #tpu.memory_space<vmem>>, vector<1x32x32xf32>,
    return
  }
  func.func @transform_0(%arg0: i32) -> (i32, i32, i32) {
    %c0_i32 = arith.constant 0 : i32
    %c0_i32_0 = arith.constant 0 : i32
    %c0_i32_1 = arith.constant 0 : i32
    return %arg0, %c0_i32, %c0_i32_0 : i32, i32, i32
  }
  func.func @transform_1(%arg0: i32) -> (i32, i32, i32) {
    %c0_i32 = arith.constant 0 : i32
    %c0_i32_0 = arith.constant 0 : i32
    %c0_i32_1 = arith.constant 0 : i32
    return %arg0, %c0_i32, %c0_i32_0 : i32, i32, i32
  }
  func.func @transform_2(%arg0: i32) -> (i32, i32, i32) {
    %c0_i32 = arith.constant 0 : i32
    %c0_i32_0 = arith.constant 0 : i32
    %c0_i32_1 = arith.constant 0 : i32
    return %arg0, %c0_i32, %c0_i32_0 : i32, i32, i32
  }
}

module attributes {stable_mosaic.version = 11 : i64} {
  func.func @_neg_sqdist_kernel(%arg0: i32, %arg1: memref<1x32x64xbf16, #tpu.memory_space<vmem>>, %arg2: memref<1x32x32xf32, #tpu.memory_space<vmem>>) attributes {dimension_semantics = [#tpu.dimension_semantics<parallel>], iteration_bounds = array<i64: 2>, scalar_prefetch = 0 : i64, scratch_operands = 0 : i64, tpu.core_type = #tpu.core_type<tc>, window_params = [{transform_indices = @transform_0, window_bounds = array<i64: 1, 32, 64>}, {transform_indices = @transform_1, window_bounds = array<i64: 1, 32, 32>}]} {
    %c0 = arith.constant 0 : index
    %c0_0 = arith.constant 0 : index
    %c0_1 = arith.constant 0 : index
    %0 = vector.load %arg1[%c0, %c0_0, %c0_1] : memref<1x32x64xbf16, #tpu.memory_space<vmem>>, vector<1x32x64xbf16>
    %1 = vector.shape_cast %0 : vector<1x32x64xbf16> to vector<32x64xbf16>
    %2 = arith.extf %1 : vector<32x64xbf16> to vector<32x64xf32>
    %3 = arith.mulf %2, %2 : vector<32x64xf32>
    %cst = arith.constant dense<0.000000e+00> : vector<32xf32>
    %4 = vector.multi_reduction <add>, %3, %cst [1] : vector<32x64xf32> to vector<32xf32>
    %5 = vector.shape_cast %4 : vector<32xf32> to vector<32x1xf32>
    %cst_2 = arith.constant dense<0.000000e+00> : vector<32x32xf32>
    %6 = tpu.matmul %1, %1, %cst_2 {dimension_numbers = #tpu.dot_dimension_numbers<[1], [1], [0], [0], [0, 0, 1, 0], [], []>} : vector<32x64xbf16>, vector<32x64xbf16>, vector<32x32xf32> -> vector<32x32xf32>
    %cst_3 = arith.constant 2.000000e+00 : f32
    %7 = vector.broadcast %cst_3 : f32 to vector<32x32xf32>
    %8 = arith.mulf %7, %6 : vector<32x32xf32>
    %9 = vector.broadcast %5 : vector<32x1xf32> to vector<32x32xf32>
    %10 = arith.subf %8, %9 : vector<32x32xf32>
    %11 = tpu.transpose %5, [1, 0] : vector<32x1xf32> -> vector<1x32xf32>
    %12 = vector.broadcast %11 : vector<1x32xf32> to vector<32x32xf32>
    %13 = arith.subf %10, %12 : vector<32x32xf32>
    %c0_4 = arith.constant 0 : index
    %c0_5 = arith.constant 0 : index
    %c0_6 = arith.constant 0 : index
    %14 = vector.load %arg2[%c0_4, %c0_5, %c0_6] : memref<1x32x32xf32, #tpu.memory_space<vmem>>, vector<1x32x32xf32>
    %15 = vector.shape_cast %14 : vector<1x32x32xf32> to vector<32x32xf32>
    %16 = vector.shape_cast %13 : vector<32x32xf32> to vector<1x32x32xf32>
    tpu.vector_store %arg2[%c0_4, %c0_5, %c0_6], %16 {strides = array<i32>} : memref<1x32x32xf32, #tpu.memory_space<vmem>>, vector<1x32x32xf32>,
    return
  }
  func.func @transform_0(%arg0: i32) -> (i32, i32, i32) {
    %c0_i32 = arith.constant 0 : i32
    %c0_i32_0 = arith.constant 0 : i32
    %c0_i32_1 = arith.constant 0 : i32
    return %arg0, %c0_i32, %c0_i32_0 : i32, i32, i32
  }
  func.func @transform_1(%arg0: i32) -> (i32, i32, i32) {
    %c0_i32 = arith.constant 0 : i32
    %c0_i32_0 = arith.constant 0 : i32
    %c0_i32_1 = arith.constant 0 : i32
    return %arg0, %c0_i32, %c0_i32_0 : i32, i32, i32
  }
}

module attributes {stable_mosaic.version = 11 : i64} {
  func.func @_attention_kernel(%arg0: i32, %arg1: i32, %arg2: memref<1x32x8x3xbf16, #tpu.memory_space<vmem>>, %arg3: memref<1x32x3xbf16, #tpu.memory_space<vmem>>, %arg4: memref<1x32x3xf32, #tpu.memory_space<vmem>>, %arg5: memref<3x256xbf16, #tpu.memory_space<vmem>>, %arg6: memref<3x256xbf16, #tpu.memory_space<vmem>>, %arg7: memref<1x256xf32, #tpu.memory_space<vmem>>, %arg8: memref<3x128xf32, #tpu.memory_space<vmem>>, %arg9: memref<1x128xf32, #tpu.memory_space<vmem>>, %arg10: memref<1x32x128xbf16, #tpu.memory_space<vmem>>) attributes {dimension_semantics = [#tpu.dimension_semantics<parallel>, #tpu.dimension_semantics<parallel>], iteration_bounds = array<i64: 2, 1>, scalar_prefetch = 0 : i64, scratch_operands = 0 : i64, tpu.core_type = #tpu.core_type<tc>, window_params = [{transform_indices = @transform_0, window_bounds = array<i64: 1, 32, 8, 3>}, {transform_indices = @transform_1, window_bounds = array<i64: 1, 32, 3>}, {transform_indices = @transform_2, window_bounds = array<i64: 1, 32, 3>}, {pipeline_mode = #tpu.pipeline_mode<synchronous>, transform_indices = @transform_3, window_bounds = array<i64: 3, 256>}, {pipeline_mode = #tpu.pipeline_mode<synchronous>, transform_indices = @transform_4, window_bounds = array<i64: 3, 256>}, {pipeline_mode = #tpu.pipeline_mode<synchronous>, transform_indices = @transform_5, window_bounds = array<i64: 1, 256>}, {pipeline_mode = #tpu.pipeline_mode<synchronous>, transform_indices = @transform_6, window_bounds = array<i64: 3, 128>}, {pipeline_mode = #tpu.pipeline_mode<synchronous>, transform_indices = @transform_7, window_bounds = array<i64: 1, 128>}, {transform_indices = @transform_8, window_bounds = array<i64: 1, 32, 128>}]} {
    %c0 = arith.constant 0 : index
    %c0_0 = arith.constant 0 : index
    %c0_1 = arith.constant 0 : index
    %c0_2 = arith.constant 0 : index
    %0 = vector.load %arg2[%c0, %c0_0, %c0_1, %c0_2] : memref<1x32x8x3xbf16, #tpu.memory_space<vmem>>, vector<1x32x8x3xbf16>
    %1 = vector.shape_cast %0 : vector<1x32x8x3xbf16> to vector<32x8x3xbf16>
    %2 = vector.shape_cast %1 : vector<32x8x3xbf16> to vector<256x3xbf16>
    %c0_3 = arith.constant 0 : index
    %c0_4 = arith.constant 0 : index
    %c0_5 = arith.constant 0 : index
    %3 = vector.load %arg3[%c0_3, %c0_4, %c0_5] : memref<1x32x3xbf16, #tpu.memory_space<vmem>>, vector<1x32x3xbf16>
    %4 = vector.shape_cast %3 : vector<1x32x3xbf16> to vector<32x3xbf16>
    %5 = arith.extf %2 : vector<256x3xbf16> to vector<256x3xf32>
    %6 = arith.extf %4 : vector<32x3xbf16> to vector<32x3xf32>
    %c0_6 = arith.constant 0 : index
    %c0_7 = arith.constant 0 : index
    %7 = vector.load %arg5[%c0_6, %c0_7] : memref<3x256xbf16, #tpu.memory_space<vmem>>, vector<3x256xbf16>
    %8 = arith.extf %7 : vector<3x256xbf16> to vector<3x256xf32>
    %c0_8 = arith.constant 0 : index
    %c0_9 = arith.constant 0 : index
    %9 = vector.load %arg6[%c0_8, %c0_9] : memref<3x256xbf16, #tpu.memory_space<vmem>>, vector<3x256xbf16>
    %10 = arith.extf %9 : vector<3x256xbf16> to vector<3x256xf32>
    %11 = vector.extract_strided_slice %5 {offsets = [0, 0], sizes = [256, 1], strides = [1, 1]} : vector<256x3xf32> to vector<256x1xf32>
    %12 = vector.extract_strided_slice %8 {offsets = [0, 0], sizes = [1, 256], strides = [1, 1]} : vector<3x256xf32> to vector<1x256xf32>
    %13 = vector.broadcast %11 : vector<256x1xf32> to vector<256x256xf32>
    %14 = vector.broadcast %12 : vector<1x256xf32> to vector<256x256xf32>
    %15 = arith.mulf %13, %14 : vector<256x256xf32>
    %16 = vector.extract_strided_slice %6 {offsets = [0, 0], sizes = [32, 1], strides = [1, 1]} : vector<32x3xf32> to vector<32x1xf32>
    %17 = vector.extract_strided_slice %10 {offsets = [0, 0], sizes = [1, 256], strides = [1, 1]} : vector<3x256xf32> to vector<1x256xf32>
    %18 = vector.broadcast %16 : vector<32x1xf32> to vector<32x256xf32>
    %19 = vector.broadcast %17 : vector<1x256xf32> to vector<32x256xf32>
    %20 = arith.mulf %18, %19 : vector<32x256xf32>
    %c0_10 = arith.constant 0 : index
    %c0_11 = arith.constant 0 : index
    %21 = vector.load %arg7[%c0_10, %c0_11] : memref<1x256xf32, #tpu.memory_space<vmem>>, vector<1x256xf32>
    %22 = vector.broadcast %21 : vector<1x256xf32> to vector<32x256xf32>
    %23 = arith.addf %20, %22 : vector<32x256xf32>
    %24 = vector.extract_strided_slice %5 {offsets = [0, 1], sizes = [256, 1], strides = [1, 1]} : vector<256x3xf32> to vector<256x1xf32>
    %25 = vector.extract_strided_slice %8 {offsets = [1, 0], sizes = [1, 256], strides = [1, 1]} : vector<3x256xf32> to vector<1x256xf32>
    %26 = vector.broadcast %24 : vector<256x1xf32> to vector<256x256xf32>
    %27 = vector.broadcast %25 : vector<1x256xf32> to vector<256x256xf32>
    %28 = arith.mulf %26, %27 : vector<256x256xf32>
    %29 = arith.addf %15, %28 : vector<256x256xf32>
    %30 = vector.extract_strided_slice %6 {offsets = [0, 1], sizes = [32, 1], strides = [1, 1]} : vector<32x3xf32> to vector<32x1xf32>
    %31 = vector.extract_strided_slice %10 {offsets = [1, 0], sizes = [1, 256], strides = [1, 1]} : vector<3x256xf32> to vector<1x256xf32>
    %32 = vector.broadcast %30 : vector<32x1xf32> to vector<32x256xf32>
    %33 = vector.broadcast %31 : vector<1x256xf32> to vector<32x256xf32>
    %34 = arith.mulf %32, %33 : vector<32x256xf32>
    %35 = arith.addf %23, %34 : vector<32x256xf32>
    %36 = vector.extract_strided_slice %5 {offsets = [0, 2], sizes = [256, 1], strides = [1, 1]} : vector<256x3xf32> to vector<256x1xf32>
    %37 = vector.extract_strided_slice %8 {offsets = [2, 0], sizes = [1, 256], strides = [1, 1]} : vector<3x256xf32> to vector<1x256xf32>
    %38 = vector.broadcast %36 : vector<256x1xf32> to vector<256x256xf32>
    %39 = vector.broadcast %37 : vector<1x256xf32> to vector<256x256xf32>
    %40 = arith.mulf %38, %39 : vector<256x256xf32>
    %41 = arith.addf %29, %40 : vector<256x256xf32>
    %42 = vector.extract_strided_slice %6 {offsets = [0, 2], sizes = [32, 1], strides = [1, 1]} : vector<32x3xf32> to vector<32x1xf32>
    %43 = vector.extract_strided_slice %10 {offsets = [2, 0], sizes = [1, 256], strides = [1, 1]} : vector<3x256xf32> to vector<1x256xf32>
    %44 = vector.broadcast %42 : vector<32x1xf32> to vector<32x256xf32>
    %45 = vector.broadcast %43 : vector<1x256xf32> to vector<32x256xf32>
    %46 = arith.mulf %44, %45 : vector<32x256xf32>
    %47 = arith.addf %35, %46 : vector<32x256xf32>
    %48 = vector.shape_cast %41 : vector<256x256xf32> to vector<32x8x256xf32>
    %49 = vector.shape_cast %47 : vector<32x256xf32> to vector<32x1x256xf32>
    %50 = vector.broadcast %49 : vector<32x1x256xf32> to vector<32x8x256xf32>
    %51 = arith.addf %48, %50 : vector<32x8x256xf32>
    %52 = vector.extract_strided_slice %51 {offsets = [0, 0, 0], sizes = [32, 8, 64], strides = [1, 1, 1]} : vector<32x8x256xf32> to vector<32x8x64xf32>
    %53 = vector.extract_strided_slice %51 {offsets = [0, 0, 64], sizes = [32, 8, 64], strides = [1, 1, 1]} : vector<32x8x256xf32> to vector<32x8x64xf32>
    %54 = vector.extract_strided_slice %51 {offsets = [0, 0, 128], sizes = [32, 8, 128], strides = [1, 1, 1]} : vector<32x8x256xf32> to vector<32x8x128xf32>
    %c0_12 = arith.constant 0 : index
    %c0_13 = arith.constant 0 : index
    %c0_14 = arith.constant 0 : index
    %55 = vector.load %arg4[%c0_12, %c0_13, %c0_14] : memref<1x32x3xf32, #tpu.memory_space<vmem>>, vector<1x32x3xf32>
    %56 = vector.shape_cast %55 : vector<1x32x3xf32> to vector<32x3xf32>
    %57 = vector.extract_strided_slice %56 {offsets = [0, 0], sizes = [32, 1], strides = [1, 1]} : vector<32x3xf32> to vector<32x1xf32>
    %c0_15 = arith.constant 0 : index
    %c0_16 = arith.constant 0 : index
    %58 = vector.load %arg8[%c0_15, %c0_16] : memref<3x128xf32, #tpu.memory_space<vmem>>, vector<1x128xf32>
    %59 = vector.broadcast %57 : vector<32x1xf32> to vector<32x128xf32>
    %60 = vector.broadcast %58 : vector<1x128xf32> to vector<32x128xf32>
    %61 = arith.mulf %59, %60 : vector<32x128xf32>
    %c0_17 = arith.constant 0 : index
    %c0_18 = arith.constant 0 : index
    %62 = vector.load %arg9[%c0_17, %c0_18] : memref<1x128xf32, #tpu.memory_space<vmem>>, vector<1x128xf32>
    %63 = vector.broadcast %62 : vector<1x128xf32> to vector<32x128xf32>
    %64 = arith.addf %61, %63 : vector<32x128xf32>
    %65 = vector.extract_strided_slice %56 {offsets = [0, 1], sizes = [32, 1], strides = [1, 1]} : vector<32x3xf32> to vector<32x1xf32>
    %c1 = arith.constant 1 : index
    %c0_19 = arith.constant 0 : index
    %66 = vector.load %arg8[%c1, %c0_19] : memref<3x128xf32, #tpu.memory_space<vmem>>, vector<1x128xf32>
    %67 = vector.broadcast %65 : vector<32x1xf32> to vector<32x128xf32>
    %68 = vector.broadcast %66 : vector<1x128xf32> to vector<32x128xf32>
    %69 = arith.mulf %67, %68 : vector<32x128xf32>
    %70 = arith.addf %64, %69 : vector<32x128xf32>
    %71 = vector.extract_strided_slice %56 {offsets = [0, 2], sizes = [32, 1], strides = [1, 1]} : vector<32x3xf32> to vector<32x1xf32>
    %c2 = arith.constant 2 : index
    %c0_20 = arith.constant 0 : index
    %72 = vector.load %arg8[%c2, %c0_20] : memref<3x128xf32, #tpu.memory_space<vmem>>, vector<1x128xf32>
    %73 = vector.broadcast %71 : vector<32x1xf32> to vector<32x128xf32>
    %74 = vector.broadcast %72 : vector<1x128xf32> to vector<32x128xf32>
    %75 = arith.mulf %73, %74 : vector<32x128xf32>
    %76 = arith.addf %70, %75 : vector<32x128xf32>
    %77 = vector.extract_strided_slice %76 {offsets = [0, 0], sizes = [32, 64], strides = [1, 1]} : vector<32x128xf32> to vector<32x64xf32>
    %78 = vector.shape_cast %77 : vector<32x64xf32> to vector<32x1x64xf32>
    %79 = vector.broadcast %78 : vector<32x1x64xf32> to vector<32x8x64xf32>
    %80 = arith.addf %53, %79 : vector<32x8x64xf32>
    %81 = vector.shape_cast %76 : vector<32x128xf32> to vector<32x1x128xf32>
    %82 = vector.broadcast %81 : vector<32x1x128xf32> to vector<32x8x128xf32>
    %83 = arith.addf %54, %82 : vector<32x8x128xf32>
    %84 = arith.mulf %52, %80 : vector<32x8x64xf32>
    %cst = arith.constant dense<0.000000e+00> : vector<32x8xf32>
    %85 = vector.multi_reduction <add>, %84, %cst [2] : vector<32x8x64xf32> to vector<32x8xf32>
    %cst_21 = arith.constant dense<0xFF800000> : vector<32xf32>
    %86 = vector.multi_reduction <maximumf>, %85, %cst_21 [1] : vector<32x8xf32> to vector<32xf32>
    %87 = vector.shape_cast %86 : vector<32xf32> to vector<32x1xf32>
    %88 = vector.broadcast %87 : vector<32x1xf32> to vector<32x8xf32>
    %89 = arith.subf %85, %88 : vector<32x8xf32>
    %90 = math.exp %89 : vector<32x8xf32>
    %cst_22 = arith.constant dense<0.000000e+00> : vector<32xf32>
    %91 = vector.multi_reduction <add>, %90, %cst_22 [1] : vector<32x8xf32> to vector<32xf32>
    %92 = vector.shape_cast %91 : vector<32xf32> to vector<32x1xf32>
    %93 = tpu.reciprocal %92 {approx = true} : vector<32x1xf32> -> vector<32x1xf32>
    %94 = vector.broadcast %93 : vector<32x1xf32> to vector<32x8xf32>
    %95 = arith.mulf %90, %94 : vector<32x8xf32>
    %96 = vector.shape_cast %95 : vector<32x8xf32> to vector<32x8x1xf32>
    %97 = vector.broadcast %96 : vector<32x8x1xf32> to vector<32x8x128xf32>
    %98 = arith.mulf %97, %83 : vector<32x8x128xf32>
    %cst_23 = arith.constant dense<0.000000e+00> : vector<32x128xf32>
    %99 = vector.multi_reduction <add>, %98, %cst_23 [1] : vector<32x8x128xf32> to vector<32x128xf32>
    %100 = arith.truncf %99 : vector<32x128xf32> to vector<32x128xbf16>
    %c0_24 = arith.constant 0 : index
    %c0_25 = arith.constant 0 : index
    %c0_26 = arith.constant 0 : index
    %101 = vector.load %arg10[%c0_24, %c0_25, %c0_26] : memref<1x32x128xbf16, #tpu.memory_space<vmem>>, vector<1x32x128xbf16>
    %102 = vector.shape_cast %101 : vector<1x32x128xbf16> to vector<32x128xbf16>
    %103 = vector.shape_cast %100 : vector<32x128xbf16> to vector<1x32x128xbf16>
    tpu.vector_store %arg10[%c0_24, %c0_25, %c0_26], %103 {strides = array<i32>} : memref<1x32x128xbf16, #tpu.memory_space<vmem>>, vector<1x32x128xbf16>,
    return
  }
  func.func @transform_0(%arg0: i32, %arg1: i32) -> (i32, i32, i32, i32) {
    %c0_i32 = arith.constant 0 : i32
    %c0_i32_0 = arith.constant 0 : i32
    %c0_i32_1 = arith.constant 0 : i32
    return %arg0, %arg1, %c0_i32, %c0_i32_0 : i32, i32, i32, i32
  }
  func.func @transform_1(%arg0: i32, %arg1: i32) -> (i32, i32, i32) {
    %c0_i32 = arith.constant 0 : i32
    %c0_i32_0 = arith.constant 0 : i32
    return %arg0, %arg1, %c0_i32 : i32, i32, i32
  }
  func.func @transform_2(%arg0: i32, %arg1: i32) -> (i32, i32, i32) {
    %c0_i32 = arith.constant 0 : i32
    %c0_i32_0 = arith.constant 0 : i32
    return %arg0, %arg1, %c0_i32 : i32, i32, i32
  }
  func.func @transform_3(%arg0: i32, %arg1: i32) -> (i32, i32) {
    %c0_i32 = arith.constant 0 : i32
    %c0_i32_0 = arith.constant 0 : i32
    %c0_i32_1 = arith.constant 0 : i32
    return %c0_i32, %c0_i32_0 : i32, i32
  }
  func.func @transform_4(%arg0: i32, %arg1: i32) -> (i32, i32) {
    %c0_i32 = arith.constant 0 : i32
    %c0_i32_0 = arith.constant 0 : i32
    %c0_i32_1 = arith.constant 0 : i32
    return %c0_i32, %c0_i32_0 : i32, i32
  }
  func.func @transform_5(%arg0: i32, %arg1: i32) -> (i32, i32) {
    %c0_i32 = arith.constant 0 : i32
    %c0_i32_0 = arith.constant 0 : i32
    %c0_i32_1 = arith.constant 0 : i32
    return %c0_i32, %c0_i32_0 : i32, i32
  }
  func.func @transform_6(%arg0: i32, %arg1: i32) -> (i32, i32) {
    %c0_i32 = arith.constant 0 : i32
    %c0_i32_0 = arith.constant 0 : i32
    %c0_i32_1 = arith.constant 0 : i32
    return %c0_i32, %c0_i32_0 : i32, i32
  }
  func.func @transform_7(%arg0: i32, %arg1: i32) -> (i32, i32) {
    %c0_i32 = arith.constant 0 : i32
    %c0_i32_0 = arith.constant 0 : i32
    %c0_i32_1 = arith.constant 0 : i32
    return %c0_i32, %c0_i32_0 : i32, i32
  }
  func.func @transform_8(%arg0: i32, %arg1: i32) -> (i32, i32, i32) {
    %c0_i32 = arith.constant 0 : i32
    %c0_i32_0 = arith.constant 0 : i32
    return %arg0, %arg1, %c0_i32 : i32, i32, i32
  }
}

module attributes {stable_mosaic.version = 11 : i64} {
  func.func @_attention_kernel(%arg0: i32, %arg1: i32, %arg2: memref<1x32x8x64xbf16, #tpu.memory_space<vmem>>, %arg3: memref<1x32x64xbf16, #tpu.memory_space<vmem>>, %arg4: memref<1x32x3xf32, #tpu.memory_space<vmem>>, %arg5: memref<64x256xbf16, #tpu.memory_space<vmem>>, %arg6: memref<64x256xbf16, #tpu.memory_space<vmem>>, %arg7: memref<1x256xf32, #tpu.memory_space<vmem>>, %arg8: memref<3x128xf32, #tpu.memory_space<vmem>>, %arg9: memref<1x128xf32, #tpu.memory_space<vmem>>, %arg10: memref<1x32x128xbf16, #tpu.memory_space<vmem>>) attributes {dimension_semantics = [#tpu.dimension_semantics<parallel>, #tpu.dimension_semantics<parallel>], iteration_bounds = array<i64: 2, 1>, scalar_prefetch = 0 : i64, scratch_operands = 0 : i64, tpu.core_type = #tpu.core_type<tc>, window_params = [{transform_indices = @transform_0, window_bounds = array<i64: 1, 32, 8, 64>}, {transform_indices = @transform_1, window_bounds = array<i64: 1, 32, 64>}, {transform_indices = @transform_2, window_bounds = array<i64: 1, 32, 3>}, {pipeline_mode = #tpu.pipeline_mode<synchronous>, transform_indices = @transform_3, window_bounds = array<i64: 64, 256>}, {pipeline_mode = #tpu.pipeline_mode<synchronous>, transform_indices = @transform_4, window_bounds = array<i64: 64, 256>}, {pipeline_mode = #tpu.pipeline_mode<synchronous>, transform_indices = @transform_5, window_bounds = array<i64: 1, 256>}, {pipeline_mode = #tpu.pipeline_mode<synchronous>, transform_indices = @transform_6, window_bounds = array<i64: 3, 128>}, {pipeline_mode = #tpu.pipeline_mode<synchronous>, transform_indices = @transform_7, window_bounds = array<i64: 1, 128>}, {transform_indices = @transform_8, window_bounds = array<i64: 1, 32, 128>}]} {
    %c0 = arith.constant 0 : index
    %c0_0 = arith.constant 0 : index
    %c0_1 = arith.constant 0 : index
    %c0_2 = arith.constant 0 : index
    %0 = vector.load %arg2[%c0, %c0_0, %c0_1, %c0_2] : memref<1x32x8x64xbf16, #tpu.memory_space<vmem>>, vector<1x32x8x64xbf16>
    %1 = vector.shape_cast %0 : vector<1x32x8x64xbf16> to vector<32x8x64xbf16>
    %2 = vector.shape_cast %1 : vector<32x8x64xbf16> to vector<256x64xbf16>
    %c0_3 = arith.constant 0 : index
    %c0_4 = arith.constant 0 : index
    %c0_5 = arith.constant 0 : index
    %3 = vector.load %arg3[%c0_3, %c0_4, %c0_5] : memref<1x32x64xbf16, #tpu.memory_space<vmem>>, vector<1x32x64xbf16>
    %4 = vector.shape_cast %3 : vector<1x32x64xbf16> to vector<32x64xbf16>
    %c0_6 = arith.constant 0 : index
    %c0_7 = arith.constant 0 : index
    %5 = vector.load %arg5[%c0_6, %c0_7] : memref<64x256xbf16, #tpu.memory_space<vmem>>, vector<64x256xbf16>
    %cst = arith.constant dense<0.000000e+00> : vector<256x256xf32>
    %6 = tpu.matmul %2, %5, %cst {dimension_numbers = #tpu.dot_dimension_numbers<[1], [0], [0], [1], [0, 0, 1, 1], [], []>} : vector<256x64xbf16>, vector<64x256xbf16>, vector<256x256xf32> -> vector<256x256xf32>
    %c0_8 = arith.constant 0 : index
    %c0_9 = arith.constant 0 : index
    %7 = vector.load %arg6[%c0_8, %c0_9] : memref<64x256xbf16, #tpu.memory_space<vmem>>, vector<64x256xbf16>
    %cst_10 = arith.constant dense<0.000000e+00> : vector<32x256xf32>
    %8 = tpu.matmul %4, %7, %cst_10 {dimension_numbers = #tpu.dot_dimension_numbers<[1], [0], [0], [1], [0, 0, 1, 1], [], []>} : vector<32x64xbf16>, vector<64x256xbf16>, vector<32x256xf32> -> vector<32x256xf32>
    %c0_11 = arith.constant 0 : index
    %c0_12 = arith.constant 0 : index
    %9 = vector.load %arg7[%c0_11, %c0_12] : memref<1x256xf32, #tpu.memory_space<vmem>>, vector<1x256xf32>
    %10 = vector.broadcast %9 : vector<1x256xf32> to vector<32x256xf32>
    %11 = arith.addf %8, %10 : vector<32x256xf32>
    %12 = vector.shape_cast %6 : vector<256x256xf32> to vector<32x8x256xf32>
    %13 = vector.shape_cast %11 : vector<32x256xf32> to vector<32x1x256xf32>
    %14 = vector.broadcast %13 : vector<32x1x256xf32> to vector<32x8x256xf32>
    %15 = arith.addf %12, %14 : vector<32x8x256xf32>
    %16 = vector.extract_strided_slice %15 {offsets = [0, 0, 0], sizes = [32, 8, 64], strides = [1, 1, 1]} : vector<32x8x256xf32> to vector<32x8x64xf32>
    %17 = vector.extract_strided_slice %15 {offsets = [0, 0, 64], sizes = [32, 8, 64], strides = [1, 1, 1]} : vector<32x8x256xf32> to vector<32x8x64xf32>
    %18 = vector.extract_strided_slice %15 {offsets = [0, 0, 128], sizes = [32, 8, 128], strides = [1, 1, 1]} : vector<32x8x256xf32> to vector<32x8x128xf32>
    %c0_13 = arith.constant 0 : index
    %c0_14 = arith.constant 0 : index
    %c0_15 = arith.constant 0 : index
    %19 = vector.load %arg4[%c0_13, %c0_14, %c0_15] : memref<1x32x3xf32, #tpu.memory_space<vmem>>, vector<1x32x3xf32>
    %20 = vector.shape_cast %19 : vector<1x32x3xf32> to vector<32x3xf32>
    %21 = vector.extract_strided_slice %20 {offsets = [0, 0], sizes = [32, 1], strides = [1, 1]} : vector<32x3xf32> to vector<32x1xf32>
    %c0_16 = arith.constant 0 : index
    %c0_17 = arith.constant 0 : index
    %22 = vector.load %arg8[%c0_16, %c0_17] : memref<3x128xf32, #tpu.memory_space<vmem>>, vector<1x128xf32>
    %23 = vector.broadcast %21 : vector<32x1xf32> to vector<32x128xf32>
    %24 = vector.broadcast %22 : vector<1x128xf32> to vector<32x128xf32>
    %25 = arith.mulf %23, %24 : vector<32x128xf32>
    %c0_18 = arith.constant 0 : index
    %c0_19 = arith.constant 0 : index
    %26 = vector.load %arg9[%c0_18, %c0_19] : memref<1x128xf32, #tpu.memory_space<vmem>>, vector<1x128xf32>
    %27 = vector.broadcast %26 : vector<1x128xf32> to vector<32x128xf32>
    %28 = arith.addf %25, %27 : vector<32x128xf32>
    %29 = vector.extract_strided_slice %20 {offsets = [0, 1], sizes = [32, 1], strides = [1, 1]} : vector<32x3xf32> to vector<32x1xf32>
    %c1 = arith.constant 1 : index
    %c0_20 = arith.constant 0 : index
    %30 = vector.load %arg8[%c1, %c0_20] : memref<3x128xf32, #tpu.memory_space<vmem>>, vector<1x128xf32>
    %31 = vector.broadcast %29 : vector<32x1xf32> to vector<32x128xf32>
    %32 = vector.broadcast %30 : vector<1x128xf32> to vector<32x128xf32>
    %33 = arith.mulf %31, %32 : vector<32x128xf32>
    %34 = arith.addf %28, %33 : vector<32x128xf32>
    %35 = vector.extract_strided_slice %20 {offsets = [0, 2], sizes = [32, 1], strides = [1, 1]} : vector<32x3xf32> to vector<32x1xf32>
    %c2 = arith.constant 2 : index
    %c0_21 = arith.constant 0 : index
    %36 = vector.load %arg8[%c2, %c0_21] : memref<3x128xf32, #tpu.memory_space<vmem>>, vector<1x128xf32>
    %37 = vector.broadcast %35 : vector<32x1xf32> to vector<32x128xf32>
    %38 = vector.broadcast %36 : vector<1x128xf32> to vector<32x128xf32>
    %39 = arith.mulf %37, %38 : vector<32x128xf32>
    %40 = arith.addf %34, %39 : vector<32x128xf32>
    %41 = vector.extract_strided_slice %40 {offsets = [0, 0], sizes = [32, 64], strides = [1, 1]} : vector<32x128xf32> to vector<32x64xf32>
    %42 = vector.shape_cast %41 : vector<32x64xf32> to vector<32x1x64xf32>
    %43 = vector.broadcast %42 : vector<32x1x64xf32> to vector<32x8x64xf32>
    %44 = arith.addf %17, %43 : vector<32x8x64xf32>
    %45 = vector.shape_cast %40 : vector<32x128xf32> to vector<32x1x128xf32>
    %46 = vector.broadcast %45 : vector<32x1x128xf32> to vector<32x8x128xf32>
    %47 = arith.addf %18, %46 : vector<32x8x128xf32>
    %48 = arith.mulf %16, %44 : vector<32x8x64xf32>
    %cst_22 = arith.constant dense<0.000000e+00> : vector<32x8xf32>
    %49 = vector.multi_reduction <add>, %48, %cst_22 [2] : vector<32x8x64xf32> to vector<32x8xf32>
    %cst_23 = arith.constant dense<0xFF800000> : vector<32xf32>
    %50 = vector.multi_reduction <maximumf>, %49, %cst_23 [1] : vector<32x8xf32> to vector<32xf32>
    %51 = vector.shape_cast %50 : vector<32xf32> to vector<32x1xf32>
    %52 = vector.broadcast %51 : vector<32x1xf32> to vector<32x8xf32>
    %53 = arith.subf %49, %52 : vector<32x8xf32>
    %54 = math.exp %53 : vector<32x8xf32>
    %cst_24 = arith.constant dense<0.000000e+00> : vector<32xf32>
    %55 = vector.multi_reduction <add>, %54, %cst_24 [1] : vector<32x8xf32> to vector<32xf32>
    %56 = vector.shape_cast %55 : vector<32xf32> to vector<32x1xf32>
    %57 = tpu.reciprocal %56 {approx = true} : vector<32x1xf32> -> vector<32x1xf32>
    %58 = vector.broadcast %57 : vector<32x1xf32> to vector<32x8xf32>
    %59 = arith.mulf %54, %58 : vector<32x8xf32>
    %60 = vector.shape_cast %59 : vector<32x8xf32> to vector<32x8x1xf32>
    %61 = vector.broadcast %60 : vector<32x8x1xf32> to vector<32x8x128xf32>
    %62 = arith.mulf %61, %47 : vector<32x8x128xf32>
    %cst_25 = arith.constant dense<0.000000e+00> : vector<32x128xf32>
    %63 = vector.multi_reduction <add>, %62, %cst_25 [1] : vector<32x8x128xf32> to vector<32x128xf32>
    %64 = arith.truncf %63 : vector<32x128xf32> to vector<32x128xbf16>
    %c0_26 = arith.constant 0 : index
    %c0_27 = arith.constant 0 : index
    %c0_28 = arith.constant 0 : index
    %65 = vector.load %arg10[%c0_26, %c0_27, %c0_28] : memref<1x32x128xbf16, #tpu.memory_space<vmem>>, vector<1x32x128xbf16>
    %66 = vector.shape_cast %65 : vector<1x32x128xbf16> to vector<32x128xbf16>
    %67 = vector.shape_cast %64 : vector<32x128xbf16> to vector<1x32x128xbf16>
    tpu.vector_store %arg10[%c0_26, %c0_27, %c0_28], %67 {strides = array<i32>} : memref<1x32x128xbf16, #tpu.memory_space<vmem>>, vector<1x32x128xbf16>,
    return
  }
  func.func @transform_0(%arg0: i32, %arg1: i32) -> (i32, i32, i32, i32) {
    %c0_i32 = arith.constant 0 : i32
    %c0_i32_0 = arith.constant 0 : i32
    %c0_i32_1 = arith.constant 0 : i32
    return %arg0, %arg1, %c0_i32, %c0_i32_0 : i32, i32, i32, i32
  }
  func.func @transform_1(%arg0: i32, %arg1: i32) -> (i32, i32, i32) {
    %c0_i32 = arith.constant 0 : i32
    %c0_i32_0 = arith.constant 0 : i32
    return %arg0, %arg1, %c0_i32 : i32, i32, i32
  }
  func.func @transform_2(%arg0: i32, %arg1: i32) -> (i32, i32, i32) {
    %c0_i32 = arith.constant 0 : i32
    %c0_i32_0 = arith.constant 0 : i32
    return %arg0, %arg1, %c0_i32 : i32, i32, i32
  }
  func.func @transform_3(%arg0: i32, %arg1: i32) -> (i32, i32) {
    %c0_i32 = arith.constant 0 : i32
    %c0_i32_0 = arith.constant 0 : i32
    %c0_i32_1 = arith.constant 0 : i32
    return %c0_i32, %c0_i32_0 : i32, i32
  }
  func.func @transform_4(%arg0: i32, %arg1: i32) -> (i32, i32) {
    %c0_i32 = arith.constant 0 : i32
    %c0_i32_0 = arith.constant 0 : i32
    %c0_i32_1 = arith.constant 0 : i32
    return %c0_i32, %c0_i32_0 : i32, i32
  }
  func.func @transform_5(%arg0: i32, %arg1: i32) -> (i32, i32) {
    %c0_i32 = arith.constant 0 : i32
    %c0_i32_0 = arith.constant 0 : i32
    %c0_i32_1 = arith.constant 0 : i32
    return %c0_i32, %c0_i32_0 : i32, i32
  }
  func.func @transform_6(%arg0: i32, %arg1: i32) -> (i32, i32) {
    %c0_i32 = arith.constant 0 : i32
    %c0_i32_0 = arith.constant 0 : i32
    %c0_i32_1 = arith.constant 0 : i32
    return %c0_i32, %c0_i32_0 : i32, i32
  }
  func.func @transform_7(%arg0: i32, %arg1: i32) -> (i32, i32) {
    %c0_i32 = arith.constant 0 : i32
    %c0_i32_0 = arith.constant 0 : i32
    %c0_i32_1 = arith.constant 0 : i32
    return %c0_i32, %c0_i32_0 : i32, i32
  }
  func.func @transform_8(%arg0: i32, %arg1: i32) -> (i32, i32, i32) {
    %c0_i32 = arith.constant 0 : i32
    %c0_i32_0 = arith.constant 0 : i32
    return %arg0, %arg1, %c0_i32 : i32, i32, i32
  }
}

module attributes {stable_mosaic.version = 11 : i64} {
  func.func @_attention_kernel(%arg0: i32, %arg1: i32, %arg2: memref<1x32x8x64xbf16, #tpu.memory_space<vmem>>, %arg3: memref<1x32x64xbf16, #tpu.memory_space<vmem>>, %arg4: memref<1x32x3xf32, #tpu.memory_space<vmem>>, %arg5: memref<64x384xbf16, #tpu.memory_space<vmem>>, %arg6: memref<64x384xbf16, #tpu.memory_space<vmem>>, %arg7: memref<1x384xf32, #tpu.memory_space<vmem>>, %arg8: memref<3x128xf32, #tpu.memory_space<vmem>>, %arg9: memref<1x128xf32, #tpu.memory_space<vmem>>, %arg10: memref<1x32x128xbf16, #tpu.memory_space<vmem>>) attributes {dimension_semantics = [#tpu.dimension_semantics<parallel>, #tpu.dimension_semantics<parallel>], iteration_bounds = array<i64: 2, 1>, scalar_prefetch = 0 : i64, scratch_operands = 0 : i64, tpu.core_type = #tpu.core_type<tc>, window_params = [{transform_indices = @transform_0, window_bounds = array<i64: 1, 32, 8, 64>}, {transform_indices = @transform_1, window_bounds = array<i64: 1, 32, 64>}, {transform_indices = @transform_2, window_bounds = array<i64: 1, 32, 3>}, {pipeline_mode = #tpu.pipeline_mode<synchronous>, transform_indices = @transform_3, window_bounds = array<i64: 64, 384>}, {pipeline_mode = #tpu.pipeline_mode<synchronous>, transform_indices = @transform_4, window_bounds = array<i64: 64, 384>}, {pipeline_mode = #tpu.pipeline_mode<synchronous>, transform_indices = @transform_5, window_bounds = array<i64: 1, 384>}, {pipeline_mode = #tpu.pipeline_mode<synchronous>, transform_indices = @transform_6, window_bounds = array<i64: 3, 128>}, {pipeline_mode = #tpu.pipeline_mode<synchronous>, transform_indices = @transform_7, window_bounds = array<i64: 1, 128>}, {transform_indices = @transform_8, window_bounds = array<i64: 1, 32, 128>}]} {
    %c0 = arith.constant 0 : index
    %c0_0 = arith.constant 0 : index
    %c0_1 = arith.constant 0 : index
    %c0_2 = arith.constant 0 : index
    %0 = vector.load %arg2[%c0, %c0_0, %c0_1, %c0_2] : memref<1x32x8x64xbf16, #tpu.memory_space<vmem>>, vector<1x32x8x64xbf16>
    %1 = vector.shape_cast %0 : vector<1x32x8x64xbf16> to vector<32x8x64xbf16>
    %2 = vector.shape_cast %1 : vector<32x8x64xbf16> to vector<256x64xbf16>
    %c0_3 = arith.constant 0 : index
    %c0_4 = arith.constant 0 : index
    %c0_5 = arith.constant 0 : index
    %3 = vector.load %arg3[%c0_3, %c0_4, %c0_5] : memref<1x32x64xbf16, #tpu.memory_space<vmem>>, vector<1x32x64xbf16>
    %4 = vector.shape_cast %3 : vector<1x32x64xbf16> to vector<32x64xbf16>
    %c0_6 = arith.constant 0 : index
    %c0_7 = arith.constant 0 : index
    %5 = vector.load %arg5[%c0_6, %c0_7] : memref<64x384xbf16, #tpu.memory_space<vmem>>, vector<64x384xbf16>
    %cst = arith.constant dense<0.000000e+00> : vector<256x384xf32>
    %6 = tpu.matmul %2, %5, %cst {dimension_numbers = #tpu.dot_dimension_numbers<[1], [0], [0], [1], [0, 0, 1, 1], [], []>} : vector<256x64xbf16>, vector<64x384xbf16>, vector<256x384xf32> -> vector<256x384xf32>
    %c0_8 = arith.constant 0 : index
    %c0_9 = arith.constant 0 : index
    %7 = vector.load %arg6[%c0_8, %c0_9] : memref<64x384xbf16, #tpu.memory_space<vmem>>, vector<64x384xbf16>
    %cst_10 = arith.constant dense<0.000000e+00> : vector<32x384xf32>
    %8 = tpu.matmul %4, %7, %cst_10 {dimension_numbers = #tpu.dot_dimension_numbers<[1], [0], [0], [1], [0, 0, 1, 1], [], []>} : vector<32x64xbf16>, vector<64x384xbf16>, vector<32x384xf32> -> vector<32x384xf32>
    %c0_11 = arith.constant 0 : index
    %c0_12 = arith.constant 0 : index
    %9 = vector.load %arg7[%c0_11, %c0_12] : memref<1x384xf32, #tpu.memory_space<vmem>>, vector<1x384xf32>
    %10 = vector.broadcast %9 : vector<1x384xf32> to vector<32x384xf32>
    %11 = arith.addf %8, %10 : vector<32x384xf32>
    %12 = vector.shape_cast %6 : vector<256x384xf32> to vector<32x8x384xf32>
    %13 = vector.shape_cast %11 : vector<32x384xf32> to vector<32x1x384xf32>
    %14 = vector.broadcast %13 : vector<32x1x384xf32> to vector<32x8x384xf32>
    %15 = arith.addf %12, %14 : vector<32x8x384xf32>
    %16 = vector.extract_strided_slice %15 {offsets = [0, 0, 0], sizes = [32, 8, 128], strides = [1, 1, 1]} : vector<32x8x384xf32> to vector<32x8x128xf32>
    %17 = vector.extract_strided_slice %15 {offsets = [0, 0, 128], sizes = [32, 8, 128], strides = [1, 1, 1]} : vector<32x8x384xf32> to vector<32x8x128xf32>
    %18 = vector.extract_strided_slice %15 {offsets = [0, 0, 256], sizes = [32, 8, 128], strides = [1, 1, 1]} : vector<32x8x384xf32> to vector<32x8x128xf32>
    %c0_13 = arith.constant 0 : index
    %c0_14 = arith.constant 0 : index
    %c0_15 = arith.constant 0 : index
    %19 = vector.load %arg4[%c0_13, %c0_14, %c0_15] : memref<1x32x3xf32, #tpu.memory_space<vmem>>, vector<1x32x3xf32>
    %20 = vector.shape_cast %19 : vector<1x32x3xf32> to vector<32x3xf32>
    %21 = vector.extract_strided_slice %20 {offsets = [0, 0], sizes = [32, 1], strides = [1, 1]} : vector<32x3xf32> to vector<32x1xf32>
    %c0_16 = arith.constant 0 : index
    %c0_17 = arith.constant 0 : index
    %22 = vector.load %arg8[%c0_16, %c0_17] : memref<3x128xf32, #tpu.memory_space<vmem>>, vector<1x128xf32>
    %23 = vector.broadcast %21 : vector<32x1xf32> to vector<32x128xf32>
    %24 = vector.broadcast %22 : vector<1x128xf32> to vector<32x128xf32>
    %25 = arith.mulf %23, %24 : vector<32x128xf32>
    %c0_18 = arith.constant 0 : index
    %c0_19 = arith.constant 0 : index
    %26 = vector.load %arg9[%c0_18, %c0_19] : memref<1x128xf32, #tpu.memory_space<vmem>>, vector<1x128xf32>
    %27 = vector.broadcast %26 : vector<1x128xf32> to vector<32x128xf32>
    %28 = arith.addf %25, %27 : vector<32x128xf32>
    %29 = vector.extract_strided_slice %20 {offsets = [0, 1], sizes = [32, 1], strides = [1, 1]} : vector<32x3xf32> to vector<32x1xf32>
    %c1 = arith.constant 1 : index
    %c0_20 = arith.constant 0 : index
    %30 = vector.load %arg8[%c1, %c0_20] : memref<3x128xf32, #tpu.memory_space<vmem>>, vector<1x128xf32>
    %31 = vector.broadcast %29 : vector<32x1xf32> to vector<32x128xf32>
    %32 = vector.broadcast %30 : vector<1x128xf32> to vector<32x128xf32>
    %33 = arith.mulf %31, %32 : vector<32x128xf32>
    %34 = arith.addf %28, %33 : vector<32x128xf32>
    %35 = vector.extract_strided_slice %20 {offsets = [0, 2], sizes = [32, 1], strides = [1, 1]} : vector<32x3xf32> to vector<32x1xf32>
    %c2 = arith.constant 2 : index
    %c0_21 = arith.constant 0 : index
    %36 = vector.load %arg8[%c2, %c0_21] : memref<3x128xf32, #tpu.memory_space<vmem>>, vector<1x128xf32>
    %37 = vector.broadcast %35 : vector<32x1xf32> to vector<32x128xf32>
    %38 = vector.broadcast %36 : vector<1x128xf32> to vector<32x128xf32>
    %39 = arith.mulf %37, %38 : vector<32x128xf32>
    %40 = arith.addf %34, %39 : vector<32x128xf32>
    %41 = vector.shape_cast %40 : vector<32x128xf32> to vector<32x1x128xf32>
    %42 = vector.broadcast %41 : vector<32x1x128xf32> to vector<32x8x128xf32>
    %43 = arith.addf %17, %42 : vector<32x8x128xf32>
    %44 = vector.shape_cast %40 : vector<32x128xf32> to vector<32x1x128xf32>
    %45 = vector.broadcast %44 : vector<32x1x128xf32> to vector<32x8x128xf32>
    %46 = arith.addf %18, %45 : vector<32x8x128xf32>
    %47 = arith.mulf %16, %43 : vector<32x8x128xf32>
    %cst_22 = arith.constant dense<0.000000e+00> : vector<32x8xf32>
    %48 = vector.multi_reduction <add>, %47, %cst_22 [2] : vector<32x8x128xf32> to vector<32x8xf32>
    %cst_23 = arith.constant dense<0xFF800000> : vector<32xf32>
    %49 = vector.multi_reduction <maximumf>, %48, %cst_23 [1] : vector<32x8xf32> to vector<32xf32>
    %50 = vector.shape_cast %49 : vector<32xf32> to vector<32x1xf32>
    %51 = vector.broadcast %50 : vector<32x1xf32> to vector<32x8xf32>
    %52 = arith.subf %48, %51 : vector<32x8xf32>
    %53 = math.exp %52 : vector<32x8xf32>
    %cst_24 = arith.constant dense<0.000000e+00> : vector<32xf32>
    %54 = vector.multi_reduction <add>, %53, %cst_24 [1] : vector<32x8xf32> to vector<32xf32>
    %55 = vector.shape_cast %54 : vector<32xf32> to vector<32x1xf32>
    %56 = tpu.reciprocal %55 {approx = true} : vector<32x1xf32> -> vector<32x1xf32>
    %57 = vector.broadcast %56 : vector<32x1xf32> to vector<32x8xf32>
    %58 = arith.mulf %53, %57 : vector<32x8xf32>
    %59 = vector.shape_cast %58 : vector<32x8xf32> to vector<32x8x1xf32>
    %60 = vector.broadcast %59 : vector<32x8x1xf32> to vector<32x8x128xf32>
    %61 = arith.mulf %60, %46 : vector<32x8x128xf32>
    %cst_25 = arith.constant dense<0.000000e+00> : vector<32x128xf32>
    %62 = vector.multi_reduction <add>, %61, %cst_25 [1] : vector<32x8x128xf32> to vector<32x128xf32>
    %63 = arith.truncf %62 : vector<32x128xf32> to vector<32x128xbf16>
    %c0_26 = arith.constant 0 : index
    %c0_27 = arith.constant 0 : index
    %c0_28 = arith.constant 0 : index
    %64 = vector.load %arg10[%c0_26, %c0_27, %c0_28] : memref<1x32x128xbf16, #tpu.memory_space<vmem>>, vector<1x32x128xbf16>
    %65 = vector.shape_cast %64 : vector<1x32x128xbf16> to vector<32x128xbf16>
    %66 = vector.shape_cast %63 : vector<32x128xbf16> to vector<1x32x128xbf16>
    tpu.vector_store %arg10[%c0_26, %c0_27, %c0_28], %66 {strides = array<i32>} : memref<1x32x128xbf16, #tpu.memory_space<vmem>>, vector<1x32x128xbf16>,
    return
  }
  func.func @transform_0(%arg0: i32, %arg1: i32) -> (i32, i32, i32, i32) {
    %c0_i32 = arith.constant 0 : i32
    %c0_i32_0 = arith.constant 0 : i32
    %c0_i32_1 = arith.constant 0 : i32
    return %arg0, %arg1, %c0_i32, %c0_i32_0 : i32, i32, i32, i32
  }
  func.func @transform_1(%arg0: i32, %arg1: i32) -> (i32, i32, i32) {
    %c0_i32 = arith.constant 0 : i32
    %c0_i32_0 = arith.constant 0 : i32
    return %arg0, %arg1, %c0_i32 : i32, i32, i32
  }
  func.func @transform_2(%arg0: i32, %arg1: i32) -> (i32, i32, i32) {
    %c0_i32 = arith.constant 0 : i32
    %c0_i32_0 = arith.constant 0 : i32
    return %arg0, %arg1, %c0_i32 : i32, i32, i32
  }
  func.func @transform_3(%arg0: i32, %arg1: i32) -> (i32, i32) {
    %c0_i32 = arith.constant 0 : i32
    %c0_i32_0 = arith.constant 0 : i32
    %c0_i32_1 = arith.constant 0 : i32
    return %c0_i32, %c0_i32_0 : i32, i32
  }
  func.func @transform_4(%arg0: i32, %arg1: i32) -> (i32, i32) {
    %c0_i32 = arith.constant 0 : i32
    %c0_i32_0 = arith.constant 0 : i32
    %c0_i32_1 = arith.constant 0 : i32
    return %c0_i32, %c0_i32_0 : i32, i32
  }
  func.func @transform_5(%arg0: i32, %arg1: i32) -> (i32, i32) {
    %c0_i32 = arith.constant 0 : i32
    %c0_i32_0 = arith.constant 0 : i32
    %c0_i32_1 = arith.constant 0 : i32
    return %c0_i32, %c0_i32_0 : i32, i32
  }
  func.func @transform_6(%arg0: i32, %arg1: i32) -> (i32, i32) {
    %c0_i32 = arith.constant 0 : i32
    %c0_i32_0 = arith.constant 0 : i32
    %c0_i32_1 = arith.constant 0 : i32
    return %c0_i32, %c0_i32_0 : i32, i32
  }
  func.func @transform_7(%arg0: i32, %arg1: i32) -> (i32, i32) {
    %c0_i32 = arith.constant 0 : i32
    %c0_i32_0 = arith.constant 0 : i32
    %c0_i32_1 = arith.constant 0 : i32
    return %c0_i32, %c0_i32_0 : i32, i32
  }
  func.func @transform_8(%arg0: i32, %arg1: i32) -> (i32, i32, i32) {
    %c0_i32 = arith.constant 0 : i32
    %c0_i32_0 = arith.constant 0 : i32
    return %arg0, %arg1, %c0_i32 : i32, i32, i32
  }
}

module attributes {stable_mosaic.version = 11 : i64} {
  func.func @_pool_cat_kernel(%arg0: i32, %arg1: memref<1x32x128xbf16, #tpu.memory_space<vmem>>, %arg2: memref<1x32x128xbf16, #tpu.memory_space<vmem>>, %arg3: memref<1x32x128xbf16, #tpu.memory_space<vmem>>, %arg4: memref<1x2x256xf32, #tpu.memory_space<vmem>>) attributes {dimension_semantics = [#tpu.dimension_semantics<parallel>], iteration_bounds = array<i64: 2>, scalar_prefetch = 0 : i64, scratch_operands = 0 : i64, tpu.core_type = #tpu.core_type<tc>, window_params = [{transform_indices = @transform_0, window_bounds = array<i64: 1, 32, 128>}, {transform_indices = @transform_1, window_bounds = array<i64: 1, 32, 128>}, {transform_indices = @transform_2, window_bounds = array<i64: 1, 32, 128>}, {transform_indices = @transform_3, window_bounds = array<i64: 1, 2, 256>}]} {
    %c0 = arith.constant 0 : index
    %c0_0 = arith.constant 0 : index
    %c0_1 = arith.constant 0 : index
    %0 = vector.load %arg1[%c0, %c0_0, %c0_1] : memref<1x32x128xbf16, #tpu.memory_space<vmem>>, vector<1x32x128xbf16>
    %1 = vector.shape_cast %0 : vector<1x32x128xbf16> to vector<32x128xbf16>
    %2 = vector.extract_strided_slice %1 {offsets = [0, 0], sizes = [32, 64], strides = [1, 1]} : vector<32x128xbf16> to vector<32x64xbf16>
    %3 = arith.extf %2 : vector<32x64xbf16> to vector<32x64xf32>
    %c0_2 = arith.constant 0 : index
    %c0_3 = arith.constant 0 : index
    %c0_4 = arith.constant 0 : index
    %4 = vector.load %arg2[%c0_2, %c0_3, %c0_4] : memref<1x32x128xbf16, #tpu.memory_space<vmem>>, vector<1x32x128xbf16>
    %5 = vector.shape_cast %4 : vector<1x32x128xbf16> to vector<32x128xbf16>
    %6 = vector.extract_strided_slice %5 {offsets = [0, 0], sizes = [32, 64], strides = [1, 1]} : vector<32x128xbf16> to vector<32x64xbf16>
    %7 = arith.extf %6 : vector<32x64xbf16> to vector<32x64xf32>
    %c0_5 = arith.constant 0 : index
    %c0_6 = arith.constant 0 : index
    %c0_7 = arith.constant 0 : index
    %8 = vector.load %arg3[%c0_5, %c0_6, %c0_7] : memref<1x32x128xbf16, #tpu.memory_space<vmem>>, vector<1x32x128xbf16>
    %9 = vector.shape_cast %8 : vector<1x32x128xbf16> to vector<32x128xbf16>
    %10 = arith.extf %9 : vector<32x128xbf16> to vector<32x128xf32>
    %cst = arith.constant dense<0xFF800000> : vector<64xf32>
    %11 = vector.multi_reduction <maximumf>, %3, %cst [0] : vector<32x64xf32> to vector<64xf32>
    %12 = vector.shape_cast %11 : vector<64xf32> to vector<1x64xf32>
    %cst_8 = arith.constant dense<0xFF800000> : vector<64xf32>
    %13 = vector.multi_reduction <maximumf>, %7, %cst_8 [0] : vector<32x64xf32> to vector<64xf32>
    %14 = vector.shape_cast %13 : vector<64xf32> to vector<1x64xf32>
    %cst_9 = arith.constant dense<0xFF800000> : vector<128xf32>
    %15 = vector.multi_reduction <maximumf>, %10, %cst_9 [0] : vector<32x128xf32> to vector<128xf32>
    %16 = vector.shape_cast %15 : vector<128xf32> to vector<1x128xf32>
    %17 = tpu.concatenate %12, %14, %16 in 1 : vector<1x64xf32>, vector<1x64xf32>, vector<1x128xf32> -> vector<1x256xf32>
    %cst_10 = arith.constant dense<0.000000e+00> : vector<64xf32>
    %18 = vector.multi_reduction <add>, %3, %cst_10 [0] : vector<32x64xf32> to vector<64xf32>
    %19 = vector.shape_cast %18 : vector<64xf32> to vector<1x64xf32>
    %cst_11 = arith.constant dense<0.000000e+00> : vector<64xf32>
    %20 = vector.multi_reduction <add>, %7, %cst_11 [0] : vector<32x64xf32> to vector<64xf32>
    %21 = vector.shape_cast %20 : vector<64xf32> to vector<1x64xf32>
    %cst_12 = arith.constant dense<0.000000e+00> : vector<128xf32>
    %22 = vector.multi_reduction <add>, %10, %cst_12 [0] : vector<32x128xf32> to vector<128xf32>
    %23 = vector.shape_cast %22 : vector<128xf32> to vector<1x128xf32>
    %24 = tpu.concatenate %19, %21, %23 in 1 : vector<1x64xf32>, vector<1x64xf32>, vector<1x128xf32> -> vector<1x256xf32>
    %cst_13 = arith.constant 3.125000e-02 : f32
    %25 = vector.broadcast %cst_13 : f32 to vector<1x256xf32>
    %26 = arith.mulf %24, %25 : vector<1x256xf32>
    %27 = tpu.concatenate %17, %26 in 0 : vector<1x256xf32>, vector<1x256xf32> -> vector<2x256xf32>
    %c0_14 = arith.constant 0 : index
    %c0_15 = arith.constant 0 : index
    %c0_16 = arith.constant 0 : index
    %28 = vector.load %arg4[%c0_14, %c0_15, %c0_16] : memref<1x2x256xf32, #tpu.memory_space<vmem>>, vector<1x2x256xf32>
    %29 = vector.shape_cast %28 : vector<1x2x256xf32> to vector<2x256xf32>
    %30 = vector.shape_cast %27 : vector<2x256xf32> to vector<1x2x256xf32>
    tpu.vector_store %arg4[%c0_14, %c0_15, %c0_16], %30 {strides = array<i32>} : memref<1x2x256xf32, #tpu.memory_space<vmem>>, vector<1x2x256xf32>,
    return
  }
  func.func @transform_0(%arg0: i32) -> (i32, i32, i32) {
    %c0_i32 = arith.constant 0 : i32
    %c0_i32_0 = arith.constant 0 : i32
    %c0_i32_1 = arith.constant 0 : i32
    return %arg0, %c0_i32, %c0_i32_0 : i32, i32, i32
  }
  func.func @transform_1(%arg0: i32) -> (i32, i32, i32) {
    %c0_i32 = arith.constant 0 : i32
    %c0_i32_0 = arith.constant 0 : i32
    %c0_i32_1 = arith.constant 0 : i32
    return %arg0, %c0_i32, %c0_i32_0 : i32, i32, i32
  }
  func.func @transform_2(%arg0: i32) -> (i32, i32, i32) {
    %c0_i32 = arith.constant 0 : i32
    %c0_i32_0 = arith.constant 0 : i32
    %c0_i32_1 = arith.constant 0 : i32
    return %arg0, %c0_i32, %c0_i32_0 : i32, i32, i32
  }
  func.func @transform_3(%arg0: i32) -> (i32, i32, i32) {
    %c0_i32 = arith.constant 0 : i32
    %c0_i32_0 = arith.constant 0 : i32
    %c0_i32_1 = arith.constant 0 : i32
    return %arg0, %c0_i32, %c0_i32_0 : i32, i32, i32
  }
}

</mosaic_0001>

<bundles_post_ra>
// kernel: custom-call.10
= control target key start
LH: loop header
LB: loop body
LE: loop exit
PB: predicated region body
PF: predicated region fallthrough
CT: control target
= control target key end

     0   :  { %s6_s0 = inlined_call_operand.vmem [shape: f32[2,64], index: 0, kind: output, shape index: {}]  }

// kernel: eaef_forward.7
= control target key start
LH: loop header
LB: loop body
LE: loop exit
PB: predicated region body
PF: predicated region fallthrough
CT: control target
= control target key end

     0   :  { %s444_s9 = smov 0   ;;  %s484_s0 = inlined_call_operand.vmem [shape: f32[2,32,3], index: 0, kind: input, shape index: {}]   ;;  %s485_s1 = inlined_call_operand.vmem [shape: f32[2,3,32], index: 1, kind: input, shape index: {}]   ;;  %s486_s2 = inlined_call_operand.vmem [shape: f32[2,32,32], index: 2, kind: output, shape index: {}]  }
   0x1 LB: > { %s387_s10 = sadd.s32 4294967295, %s424_s9   ;;  %p391_p0 = scmp.ge.s32.totalorder %s424_s9, 1  ;;  %s424_s9 = sphi %s444_s9, %s12_s9  }
   0x2   : > { %p121_p1 = scmp.lt.s32.totalorder %s424_s9, 3 }
   0x4   : > { %p122_p2 = pnand %p391_p0, %p121_p1 }
   0x5   : > { %p147_p3 = scmp.lt.s32.totalorder (!%p122_p2), %s387_s10, 1 }
   0x6   : > { %125 = sbr.rel (%p122_p2) target bundleno = 287 (0x11f), region = 28 }
   0xb   : > { %v426_v0 = vmov 0   ;;  %s488_s10 = smov (!%p147_p3, %s387_s10), 1  ;;  %vm170_vm0 = vcmask 23552   ;;  %v427_v13 = vmov 2   ;;  %v428_v14 = vmov 1  }
   0xc   : > { %414 = vset.pattern.permute.xlu1 %v426_v0  ;;  %413 = vset.pattern.permute.xlu0 %v426_v0  ;;  %s399_s11 = sshll.u32 %s488_s10, 5  ;;  %v203_v19 = vlaneseq  ;;  %s394_s15 = sshll.u32 %s488_s10, 2  ;;  %vm315_vm1 = vcmask 261120  }
   0xd   : > { %s151_s14 = scalar_lea.vmem %s484_s0, %s399_s11  ;;  %s155_s18 = scalar_lea.vmem %s485_s1, %s394_s15 }
   0xe   : > { %v163_v1 = vld [vmem:[%s151_s14 + $0x10] sm:$0xff]  ;;  %v161_v2 = vld [vmem:[%s151_s14] sm:$0xff]  ;;  %v164_v3 = vld [vmem:[%s151_s14 + $0x18] sm:$0xff]  ;;  %v204_v21 = vshrl.u32 %v203_v19, 7  ;;  %s160_s21 = scalar_lea.vmem %s486_s2, %s399_s11 }
   0xf   : > { %v168_v4 = vmul.f32 %v163_v1, %v163_v1  ;;  %v166_v5 = vmul.f32 %v161_v2, %v161_v2  ;;  %v169_v6 = vmul.f32 %v164_v3, %v164_v3  ;;  %v162_v7 = vld [vmem:[%s151_s14 + $0x8] sm:$0xff]  ;;  %v165_v24 = vld [vmem:[%s155_s18] sm:$0x7] }
  0x10   : > { %v167_v8 = vmul.f32 %v162_v7, %v162_v7  ;;  %v205_v23 = vsub.s32 0, %v204_v21  ;;  %v229_v27 = vsub.s32 1, %v204_v21  ;;  %v257_v28 = vsub.s32 2, %v204_v21 }
  0x11   : > { %v177_v9 = vsel %vm170_vm0, %v168_v4, 0.0  ;;  %v171_v10 = vsel %vm170_vm0, %v166_v5, 0.0  ;;  %v180_v11 = vsel %vm170_vm0, %v169_v6, 0.0 }
  0x12   : > { %178 = vadd.xlane.f32.xlu1 %v177_v9  ;;  %172 = vadd.xlane.f32.xlu0 %v171_v10  ;;  %v174_v12 = vsel %vm170_vm0, %v167_v8, 0.0  ;;  %v206_v29 = vrot.slane %v165_v24, %v205_v23  ;;  %v230_v31 = vrot.slane %v165_v24, %v229_v27  ;;  %v258_v32 = vrot.slane %v165_v24, %v257_v28 }
  0x16   : > { %181 = vadd.xlane.f32.xlu1 %v180_v11  ;;  %175 = vadd.xlane.f32.xlu0 %v174_v12 }
  0x27   : > { %190 = vperm.xlu1 %414, %v162_v7  }
  0x2b   : > { %195 = vperm.xlu1 %414, %v163_v1  }
  0x2c   : > { %185 = vperm.xlu0 %413, %v161_v2  }
  0x2f   : > { %200 = vperm.xlu1 %414, %v164_v3  }
  0x30   : > { %417 = vset.pattern.permute.xlu0 %v427_v13 }
  0x31   : > { %244 = vperm.xlu0 %417, %v162_v7  }
  0x33   : > { %415 = vset.pattern.permute.xlu1 %v428_v14 }
  0x34   : > { %212 = vperm.xlu1 %415, %v161_v2  }
  0x38   : > { %216 = vperm.xlu1 %415, %v162_v7  }
  0x3c   : > { %220 = vperm.xlu1 %415, %v163_v1  }
  0x40   : > { %224 = vperm.xlu1 %415, %v164_v3  }
  0x44   : > { %416 = vset.pattern.permute.xlu1 %v427_v13 }
  0x45   : > { %240 = vperm.xlu1 %416, %v161_v2  }
  0x49   : > { %248 = vperm.xlu1 %416, %v163_v1  }
  0x4d   : > { %252 = vperm.xlu1 %416, %v164_v3  }
  0x9b   : > { %v460_v15 = vpop.xlane.xlu1 %178  ;;  %v462_v16 = vpop.xlane.xlu0 %172 }
  0x9c   : > { %275 = vxpose.xlu0.b32.start [1/4] (short) (narrow) %v462_v16, 8 }
  0x9f   : > { %v465_v17 = vpop.xlane.xlu1 %181  ;;  %v176_v18 = vpop.xlane.xlu0 %175 }
  0xa0   : > { %276 = vxpose.xlu0.b32.cont [2/4] (short) (narrow) %v176_v18, 8 }
  0xa3   : > { %v191_v20 = vpop.permute.xlu1 %190 }
  0xa4   : > { %277 = vxpose.xlu0.b32.cont [3/4] (short) (narrow) %v460_v15, 8  ;;  %v208_v34 = vmul.f32 %v206_v29, %v191_v20 }
  0xa7   : > { %v196_v22 = vpop.permute.xlu1 %195  ;;  %v186_v26 = vpop.permute.xlu0 %185 }
  0xa8   : > { %278 = vxpose.xlu0.b32.end [4/4] (short) (narrow) %v465_v17, 8  ;;  %v207_v43 = vmul.f32 %v206_v29, %v186_v26  ;;  %v209_v46 = vmul.f32 %v206_v29, %v196_v22 }
  0xab   : > { %v201_v25 = vpop.permute.xlu1 %200 }
  0xac   : > { %v245_v33 = vpop.permute.xlu0 %244  ;;  %v210_v51 = vmul.f32 %v206_v29, %v201_v25 }
  0xad   : > { %v260_v37 = vmul.f32 %v258_v32, %v245_v33 }
  0xaf   : > { %v213_v30 = vpop.permute.xlu1 %212 }
  0xb0   : > { %v231_v42 = vmul.f32 %v230_v31, %v213_v30 }
  0xb2   : > { %v235_v47 = vadd.f32 %v231_v42, %v207_v43 }
  0xb3   : > { %v217_v35 = vpop.permute.xlu1 %216 }
  0xb4   : > { %v232_v36 = vmul.f32 %v230_v31, %v217_v35 }
  0xb6   : > { %v236_v38 = vadd.f32 %v232_v36, %v208_v34 }
  0xb7   : > { %v221_v39 = vpop.permute.xlu1 %220 }
  0xb8   : > { %v264_v40 = vadd.f32 %v260_v37, %v236_v38  ;;  %v233_v48 = vmul.f32 %v230_v31, %v221_v39 }
  0xba   : > { %v268_v41 = vmul.f32 2.0, %v264_v40  ;;  %v237_v52 = vadd.f32 %v233_v48, %v209_v46 }
  0xbb   : > { %v225_v44 = vpop.permute.xlu1 %224 }
  0xbc   : > { %v272_v45 = vsub.f32 %v268_v41, %v176_v18  ;;  %v234_v53 = vmul.f32 %v230_v31, %v225_v44 }
  0xbe   : > { %v238_v58 = vadd.f32 %v234_v53, %v210_v51 }
  0xc0   : > { %v241_v49 = vpop.permute.xlu1 %240 }
  0xc1   : > { %v259_v50 = vmul.f32 %v258_v32, %v241_v49 }
  0xc3   : > { %v263_v54 = vadd.f32 %v259_v50, %v235_v47 }
  0xc4   : > { %v249_v55 = vpop.permute.xlu1 %248 }
  0xc5   : > { %v267_v56 = vmul.f32 2.0, %v263_v54  ;;  %v261_v57 = vmul.f32 %v258_v32, %v249_v55 }
  0xc7   : > { %v271_v59 = vsub.f32 %v267_v56, %v462_v16  ;;  %v265_v60 = vadd.f32 %v261_v57, %v237_v52 }
  0xc8   : > { %v253_v61 = vpop.permute.xlu1 %252 }
  0xc9   : > { %v269_v62 = vmul.f32 2.0, %v265_v60  ;;  %v262_v63 = vmul.f32 %v258_v32, %v253_v61 }
  0xcb   : > { %v273_v0 = vsub.f32 %v269_v62, %v460_v15  ;;  %v266_v1 = vadd.f32 %v262_v63, %v238_v58 }
  0xcd   : > { %v270_v2 = vmul.f32 2.0, %v266_v1 }
  0xcf   : > { %v274_v3 = vsub.f32 %v270_v2, %v465_v17 }
 0x118   : > { %v291_v4 = vpop.trf.xlu0 }
 0x119   : > { %v310_v5 = vrot.slane %v291_v4, %v205_v23 }
 0x11b   : > { %v311_v6 = vsub.f32 %v271_v59, %v310_v5  ;;  %v312_v7 = vsub.f32 %v272_v45, %v310_v5  ;;  %v313_v8 = vsub.f32 %v273_v0, %v310_v5  ;;  %v314_v9 = vsub.f32 %v274_v3, %v310_v5 }
 0x11d   : > { %316 = vst.msk [vmem:[%s160_s21] sm:$0xff] %vm315_vm1, %v311_v6  ;;  %317 = vst.msk [vmem:[%s160_s21 + $0x8] sm:$0xff] %vm315_vm1, %v312_v7 }
 0x11e   : > { %318 = vst.msk [vmem:[%s160_s21 + $0x10] sm:$0xff] %vm315_vm1, %v313_v8  ;;  %319 = vst.msk [vmem:[%s160_s21 + $0x18] sm:$0xff] %vm315_vm1, %v314_v9 }
 0x11f PF: > { %s12_s9 = sadd.s32 1, %s424_s9  }
 0x120   : > { %p9_p4 = scmp.ge.s32.totalorder %s12_s9, 4  }
 0x122   :  { %11 = sbr.rel (!%p9_p4) target bundleno = 1 (0x1), region = 61 }

// kernel: eaef_forward.9
= control target key start
LH: loop header
LB: loop body
LE: loop exit
PB: predicated region body
PF: predicated region fallthrough
CT: control target
= control target key end

     0   :  { %s378_s6 = smov 0   ;;  %s409_s0 = inlined_call_operand.vmem [shape: bf16[2,32,64], index: 0, kind: input, shape index: {}]   ;;  %s410_s1 = inlined_call_operand.vmem [shape: f32[2,32,32], index: 1, kind: output, shape index: {}]  }
   0x1 LB: > { %s316_s7 = sadd.s32 4294967295, %s366_s6   ;;  %p320_p0 = scmp.ge.s32.totalorder %s366_s6, 1  ;;  %s366_s6 = sphi %s378_s6, %s11_s6  }
   0x2   : > { %p87_p1 = scmp.lt.s32.totalorder %s366_s6, 3 }
   0x4   : > { %p88_p2 = pnand %p320_p0, %p87_p1 }
   0x5   : > { %p107_p3 = scmp.lt.s32.totalorder (!%p88_p2), %s316_s7, 1 }
   0x6   : > { %91 = sbr.rel (%p88_p2) target bundleno = 289 (0x121), region = 24 }
   0xb   : > { %s412_s7 = smov (!%p107_p3, %s316_s7), 1  ;;  %vm130_vm0 = vcmask 523264   ;;  %v248_v22 = vlaneseq  ;;  %vm256_vm1 = vcmask 261120  }
   0xc   : > { %s331_s8 = sshll.u32 %s412_s7, 4  ;;  %s332_s12 = sshll.u32 %s412_s7, 5 }
   0xd   : > { %s111_s11 = scalar_lea.vmem %s409_s0, %s331_s8  ;;  %v249_v24 = vshrl.u32 %v248_v22, 7  ;;  %s116_s15 = scalar_lea.vmem %s410_s1, %s332_s12 }
   0xe   : > { %v120_v0 = vld [vmem:[%s111_s11 + $0x8] sm:$0xff]   ;;  %v118_v1 = vld [vmem:[%s111_s11] sm:$0xff]  }
   0xf   : > { %v122_v2 = vunpack.c.l.bf16 %v118_v1  ;;  %v123_v3 = vunpack.c.h.bf16 %v118_v1  ;;  %v124_v4 = vunpack.c.l.bf16 %v120_v0  ;;  %v125_v5 = vunpack.c.h.bf16 %v120_v0  ;;  %345 = vmatprep.subr.msk.bf16.mxu0 %vm130_vm0, %v120_v0  ;;  %341 = vmatprep.mubr.msk.bf16.mxu0 %vm130_vm0, %v118_v1 }
  0x10   : > { %v157_v6 = vsel %vm130_vm0, %v120_v0, 0  ;;  %v154_v15 = vsel %vm130_vm0, %v118_v1, 0  ;;  %v250_v30 = vsub.s32 0, %v249_v24 }
  0x11   : > { %v126_v7 = vmul.f32 %v122_v2, %v122_v2  ;;  %v127_v8 = vmul.f32 %v123_v3, %v123_v3  ;;  %338 = vmatpush3.bf16.xpose.msra.mxu0 %v157_v6  ;;  %v128_v9 = vmul.f32 %v124_v4, %v124_v4  ;;  %v129_v10 = vmul.f32 %v125_v5, %v125_v5 }
  0x12   : > { %346 = vmatprep.subr.msk.bf16.mxu0 %vm130_vm0, %v118_v1 }
  0x13   : > { %v131_v11 = vsel %vm130_vm0, %v126_v7, 0.0  ;;  %v137_v12 = vsel %vm130_vm0, %v128_v9, 0.0  ;;  %v134_v13 = vsel %vm130_vm0, %v127_v8, 0.0  ;;  %v140_v14 = vsel %vm130_vm0, %v129_v10, 0.0 }
  0x14   : > { %132 = vadd.xlane.f32.xlu0 %v131_v11  ;;  %138 = vadd.xlane.f32.xlu1 %v137_v12 }
  0x18   : > { %135 = vadd.xlane.f32.xlu0 %v134_v13  ;;  %141 = vadd.xlane.f32.xlu1 %v140_v14 }
  0x19   : > { %340 = vmatpush3.bf16.xpose.msra.mxu0 %v154_v15 }
  0x20   : > { %342 = vmatmul.mubr.msk.bf16.vlgmr.msra.gmra.mxu0 %vm130_vm0, %v120_v0 }
  0x9d   : > { %v133_v16 = vpop.xlane.xlu0 %132  ;;  %v139_v18 = vpop.xlane.xlu1 %138 }
  0x9e   : > { %216 = vxpose.xlu0.b32.start [1/4] (short) (narrow) %v133_v16, 8 }
  0xa1   : > { %v136_v17 = vpop.xlane.xlu0 %135  ;;  %v142_v19 = vpop.xlane.xlu1 %141 }
  0xa2   : > { %217 = vxpose.xlu0.b32.cont [2/4] (short) (narrow) %v136_v17, 8 }
  0xa6   : > { %218 = vxpose.xlu0.b32.cont [3/4] (short) (narrow) %v139_v18, 8 }
  0xaa   : > { %219 = vxpose.xlu0.b32.end [4/4] (short) (narrow) %v142_v19, 8 }
  0xe0   : > { %v343_v20 = vpop.f32.mrf.mxu0 }
  0xe1   : > { %v210_v26 = vmul.f32 2.0, %v343_v20 }
  0xe2   : > { %v193_v21 = vpop.f32.mrf.mxu0 }
  0xe3   : > { %v208_v27 = vmul.f32 2.0, %v193_v21  ;;  %v214_v31 = vsub.f32 %v210_v26, %v139_v18 }
  0xe4   : > { %v344_v23 = vpop.f32.mrf.mxu0 }
  0xe5   : > { %v211_v28 = vmul.f32 2.0, %v344_v23  ;;  %v212_v33 = vsub.f32 %v208_v27, %v133_v16 }
  0xe6   : > { %v196_v25 = vpop.f32.mrf.mxu0 }
  0xe7   : > { %v209_v29 = vmul.f32 2.0, %v196_v25  ;;  %v215_v34 = vsub.f32 %v211_v28, %v142_v19 }
  0xe9   : > { %v213_v35 = vsub.f32 %v209_v29, %v136_v17 }
 0x11a   : > { %v232_v32 = vpop.trf.xlu0 }
 0x11b   : > { %v251_v36 = vrot.slane %v232_v32, %v250_v30 }
 0x11d   : > { %v252_v37 = vsub.f32 %v212_v33, %v251_v36  ;;  %v253_v38 = vsub.f32 %v213_v35, %v251_v36  ;;  %v254_v39 = vsub.f32 %v214_v31, %v251_v36  ;;  %v255_v40 = vsub.f32 %v215_v34, %v251_v36 }
 0x11f   : > { %257 = vst.msk [vmem:[%s116_s15] sm:$0xff] %vm256_vm1, %v252_v37  ;;  %258 = vst.msk [vmem:[%s116_s15 + $0x8] sm:$0xff] %vm256_vm1, %v253_v38 }
 0x120   : > { %259 = vst.msk [vmem:[%s116_s15 + $0x10] sm:$0xff] %vm256_vm1, %v254_v39  ;;  %260 = vst.msk [vmem:[%s116_s15 + $0x18] sm:$0xff] %vm256_vm1, %v255_v40 }
 0x121 PF: > { %s11_s6 = sadd.s32 1, %s366_s6  }
 0x122   : > { %p8_p4 = scmp.ge.s32.totalorder %s11_s6, 4  }
 0x124   :  { %10 = sbr.rel (!%p8_p4) target bundleno = 1 (0x1), region = 54 }

// kernel: eaef_forward.8
= control target key start
LH: loop header
LB: loop body
LE: loop exit
PB: predicated region body
PF: predicated region fallthrough
CT: control target
= control target key end

     0   :  { %s5233_s27 = smov 0   ;;  %s5235_s28 = smov 0   ;;  %s7941_s0 = inlined_call_operand.vmem [shape: bf16[2,32,8,3], index: 0, kind: input, shape index: {}]   ;;  %s7942_s1 = inlined_call_operand.vmem [shape: bf16[2,32,3], index: 1, kind: input, shape index: {}]   ;;  %s7943_s2 = inlined_call_operand.vmem [shape: f32[2,32,3], index: 2, kind: input, shape index: {}]   ;;  %s7944_s3 = inlined_call_operand.vmem [shape: bf16[3,256], index: 3, kind: input, shape index: {}]   ;;  %s7945_s4 = inlined_call_operand.vmem [shape: bf16[3,256], index: 4, kind: input, shape index: {}]   ;;  %s7946_s5 = inlined_call_operand.vmem [shape: f32[1,256], index: 5, kind: input, shape index: {}]   ;;  %s7947_s6 = inlined_call_operand.vmem [shape: f32[3,128], index: 6, kind: input, shape index: {}]   ;;  %s7948_s7 = inlined_call_operand.vmem [shape: f32[1,128], index: 7, kind: input, shape index: {}]   ;;  %s7949_s8 = inlined_call_operand.vmem [shape: bf16[2,32,128], index: 8, kind: output, shape index: {}]  }
   0x1   :  { %s5237_s29 = smov 0  }
   0x2 LB: > { %s30_s30 = sadd.s32 1, %s5177_s28  ;;  %p4607_p0 = scmp.ge.s32.totalorder %s5181_s29, 1  ;;  %s5181_s29 = sphi %s5237_s29, %s18_s29   ;;  %s5177_s28 = sphi %s5235_s28, %s8671_s28   ;;  %s5173_s27 = sphi %s5233_s27, %s8670_s27  }
   0x3   : > { %p32_p1 = scmp.ge.s32.totalorder %s30_s30, 2  ;;  %p317_p2 = scmp.lt.s32.totalorder %s5181_s29, 3 }
   0x5   : > { %s8673_s30 = smov (%p32_p1, %s30_s30), 0  ;;  %p318_p3 = pnand %p4607_p0, %p317_p2 }
   0x7   : > { %321 = sbr.rel (%p318_p3) target bundleno = 1440 (0x5a0), region = 52 }
   0xc   : > { %p378_p4 = scmp.lt.s32.totalorder %s5173_s27, 1  ;;  %v5183_v0 = vmov 1   ;;  %v5184_v1 = vmov 0   ;;  %s5187_s18 = smov 64   ;;  %vm2825_vm0 = vcmask 523264   ;;  %vm3084_vm1 = vcmask 1041409  }
   0xd   : > { %4853 = vset.pattern.permute.xlu0 %v5183_v0  ;;  %4807 = vset.pattern.permute.xlu1 %v5184_v1  ;;  %vm3086_vm2 = vcmask 1042434   ;;  %vm3088_vm3 = vcmask 1043459   ;;  %vm3090_vm4 = vcmask 1044484   ;;  %vm3092_vm5 = vcmask 1045509  }
   0xe   : > { %s8675_s27 = smov (!%p378_p4, %s5173_s27), 1  ;;  %vm3094_vm6 = vcmask 1046534   ;;  %vm3096_vm7 = vcmask 1047559   ;;  %vm3123_vm8 = vcmask 64512  }
   0xf   : > { %s4654_s9 = sshll.u32 %s8675_s27, 7  ;;  %s4655_s13 = sshll.u32 %s8675_s27, 4 }
  0x10   : > { %s5259_s12 = scalar_lea.vmem %s7941_s0, %s4654_s9  ;;  %s395_s16 = scalar_lea.vmem %s7942_s1, %s4655_s13 }
  0x11   : > { %v4763_v2 = vld [vmem:[%s5259_s12 + $0x10] sm:$0xff]   ;;  %v4691_v3 = vld [vmem:[%s5259_s12] sm:$0xff]   ;;  %v4764_v4 = vld [vmem:[%s5259_s12 + $0x18] sm:$0xff]   ;;  %s4656_s17 = sshll.u32 %s8675_s27, 5  ;;  %s7877_s21 = scalar_lea.vmem %s7949_s8, %s4655_s13 }
  0x12   : > { %v4700_v5 = vunpack.c.l.bf16 %v4763_v2  ;;  %v4701_v6 = vunpack.c.h.bf16 %v4763_v2  ;;  %v4692_v7 = vunpack.c.l.bf16 %v4691_v3  ;;  %v4693_v8 = vunpack.c.h.bf16 %v4691_v3  ;;  %v4766_v11 = vld [vmem:[%s5259_s12 + $0x28] sm:$0xff]   ;;  %v4768_v17 = vld [vmem:[%s5259_s12 + $0x38] sm:$0xff]   ;;  %v4775_v30 = vld [vmem:[%s5259_s12 + $0x70] sm:$0xff]   ;;  %s5316_s20 = scalar_lea.vmem %s7943_s2, %s4656_s17 }
  0x13   : > { %v4704_v9 = vunpack.c.l.bf16 %v4764_v4  ;;  %v4705_v10 = vunpack.c.h.bf16 %v4764_v4  ;;  %v4712_v15 = vunpack.c.l.bf16 %v4766_v11  ;;  %v4713_v16 = vunpack.c.h.bf16 %v4766_v11  ;;  %v4770_v21 = vld [vmem:[%s5259_s12 + $0x48] sm:$0xff]   ;;  %v4772_v25 = vld [vmem:[%s5259_s12 + $0x58] sm:$0xff]   ;;  %v4755_v31 = vld [vmem:[%s395_s16] sm:$0xff]  }
  0x14   : > { %v5265_v12 = vpack.i.bf16 %v4701_v6, %v4700_v5  ;;  %v5267_v13 = vpack.i.bf16 %v4693_v8, %v4692_v7  ;;  %v4720_v19 = vunpack.c.l.bf16 %v4768_v17  ;;  %v4721_v20 = vunpack.c.h.bf16 %v4768_v17  ;;  %v4774_v29 = vld [vmem:[%s5259_s12 + $0x68] sm:$0xff]   ;;  %v4776_v35 = vld [vmem:[%s5259_s12 + $0x78] sm:$0xff]   ;;  %v5319_v53 = vld [vmem:[%s5316_s20] sm:$0xff] }
  0x15   : > { %v5271_v14 = vpack.i.bf16 %v4705_v10, %v4704_v9  ;;  %v5276_v18 = vpack.i.bf16 %v4713_v16, %v4712_v15  ;;  %v4728_v23 = vunpack.c.l.bf16 %v4770_v21  ;;  %v4729_v24 = vunpack.c.h.bf16 %v4770_v21  ;;  %v4777_v45 = vld [vmem:[%s395_s16 + $0x8] sm:$0xff]   ;;  %v4765_v55 = vld [vmem:[%s5259_s12 + $0x20] sm:$0xff]   ;;  %v5325_v56 = vld [vmem:[%s5316_s20 + $0x18] sm:$0xff] }
  0x16   : > { %4809 = vperm.xlu1 %4807, %v5265_v12   ;;  %4855 = vperm.xlu0 %4853, %v5267_v13   ;;  %v5281_v22 = vpack.i.bf16 %v4721_v20, %v4720_v19  ;;  %v4736_v27 = vunpack.c.l.bf16 %v4772_v25  ;;  %v4737_v28 = vunpack.c.h.bf16 %v4772_v25  ;;  %v4744_v32 = vunpack.c.l.bf16 %v4774_v29  ;;  %v4762_v49 = vld [vmem:[%s5259_s12 + $0x8] sm:$0xff]   ;;  %v4767_v59 = vld [vmem:[%s5259_s12 + $0x30] sm:$0xff]   ;;  %v4769_v63 = vld [vmem:[%s5259_s12 + $0x40] sm:$0xff]  }
  0x17   : > { %v5287_v26 = vpack.i.bf16 %v4729_v24, %v4728_v23  ;;  %v4745_v34 = vunpack.c.h.bf16 %v4774_v29  ;;  %v4748_v36 = vunpack.c.l.bf16 %v4775_v30  ;;  %v4749_v37 = vunpack.c.h.bf16 %v4775_v30  ;;  %v4771_v6 = vld [vmem:[%s5259_s12 + $0x50] sm:$0xff]   ;;  %v4773_v10 = vld [vmem:[%s5259_s12 + $0x60] sm:$0xff]   ;;  %v2044_v19 = vld [vmem:[%s5316_s20 + $0x8] sm:$0xff] }
  0x18   : > { %v5298_v33 = vpack.i.bf16 %v4737_v28, %v4736_v27  ;;  %v4756_v38 = vunpack.c.l.bf16 %v4755_v31  ;;  %v4757_v39 = vunpack.c.h.bf16 %v4755_v31  ;;  %v4752_v43 = vunpack.c.l.bf16 %v4776_v35 }
  0x19   : > { %v5303_v41 = vpack.i.bf16 %v4749_v37, %v4748_v36  ;;  %v5307_v42 = vpack.i.bf16 %v4745_v34, %v4744_v32  ;;  %v4753_v44 = vunpack.c.h.bf16 %v4776_v35  ;;  %v4760_v47 = vunpack.c.l.bf16 %v4777_v45 }
  0x1a   : > { %4814 = vperm.xlu1 %4807, %v5271_v14   ;;  %4871 = vperm.xlu0 %4853, %v5271_v14   ;;  %v5301_v40 = vpack.i.bf16 %v4757_v39, %v4756_v38  ;;  %v4761_v48 = vunpack.c.h.bf16 %v4777_v45  ;;  %v4696_v51 = vunpack.c.l.bf16 %v4762_v49  ;;  %v4697_v52 = vunpack.c.h.bf16 %v4762_v49 }
  0x1b   : > { %v4843_v46 = vpack.i.bf16 %v4753_v44, %v4752_v43  ;;  %v4708_v57 = vunpack.c.l.bf16 %v4765_v55  ;;  %v4709_v58 = vunpack.c.h.bf16 %v4765_v55  ;;  %v4716_v61 = vunpack.c.l.bf16 %v4767_v59 }
  0x1c   : > { %v4848_v50 = vpack.i.bf16 %v4761_v48, %v4760_v47  ;;  %v4860_v54 = vpack.i.bf16 %v4697_v52, %v4696_v51  ;;  %v4717_v62 = vunpack.c.h.bf16 %v4767_v59  ;;  %v5185_v2 = vmov 2  }
  0x1d   : > { %v4875_v60 = vpack.i.bf16 %v4709_v58, %v4708_v57  ;;  %v4724_v4 = vunpack.c.l.bf16 %v4769_v63  ;;  %v4725_v5 = vunpack.c.h.bf16 %v4769_v63  ;;  %v4732_v8 = vunpack.c.l.bf16 %v4771_v6 }
  0x1e   : > { %4819 = vperm.xlu1 %4807, %v5276_v18   ;;  %4881 = vperm.xlu0 %4853, %v5276_v18   ;;  %v4885_v3 = vpack.i.bf16 %v4717_v62, %v4716_v61  ;;  %v4733_v9 = vunpack.c.h.bf16 %v4771_v6  ;;  %v4740_v15 = vunpack.c.l.bf16 %v4773_v10  ;;  %v4741_v16 = vunpack.c.h.bf16 %v4773_v10 }
  0x1f   : > { %v4895_v7 = vpack.i.bf16 %v4725_v5, %v4724_v4 }
  0x20   : > { %v4905_v11 = vpack.i.bf16 %v4733_v9, %v4732_v8  ;;  %v4915_v17 = vpack.i.bf16 %v4741_v16, %v4740_v15 }
  0x22   : > { %4824 = vperm.xlu1 %4807, %v5281_v22   ;;  %4891 = vperm.xlu0 %4853, %v5281_v22  }
  0x26   : > { %4829 = vperm.xlu1 %4807, %v5287_v26   ;;  %4901 = vperm.xlu0 %4853, %v5287_v26  }
  0x2a   : > { %4834 = vperm.xlu1 %4807, %v5298_v33   ;;  %4911 = vperm.xlu0 %4853, %v5298_v33  }
  0x2e   : > { %4839 = vperm.xlu1 %4807, %v5307_v42   ;;  %4921 = vperm.xlu0 %4853, %v5307_v42  }
  0x32   : > { %4844 = vperm.xlu1 %4807, %v4843_v46   ;;  %4931 = vperm.xlu0 %4853, %v4843_v46  }
  0x36   : > { %4849 = vperm.xlu1 %4807, %v4848_v50   ;;  %4941 = vperm.xlu0 %4853, %v4848_v50  }
  0x3a   : > { %4859 = vset.pattern.permute.xlu1 %v5183_v0  ;;  %2089 = vperm.xlu0 %4853, %v5319_v53  }
  0x3b   : > { %4861 = vperm.xlu1 %4859, %v4860_v54  }
  0x3e   : > { %2101 = vperm.xlu0 %4853, %v5325_v56  }
  0x3f   : > { %4866 = vperm.xlu1 %4859, %v5265_v12  }
  0x42   : > { %4983 = vset.pattern.permute.xlu0 %v5185_v2 }
  0x43   : > { %4876 = vperm.xlu1 %4859, %v4875_v60   ;;  %4985 = vperm.xlu0 %4983, %v4860_v54  }
  0x47   : > { %4886 = vperm.xlu1 %4859, %v4885_v3   ;;  %4990 = vperm.xlu0 %4983, %v4875_v60  }
  0x4b   : > { %4896 = vperm.xlu1 %4859, %v4895_v7   ;;  %4995 = vperm.xlu0 %4983, %v4885_v3  }
  0x4f   : > { %4906 = vperm.xlu1 %4859, %v4905_v11   ;;  %5000 = vperm.xlu0 %4983, %v4895_v7  }
  0x53   : > { %4916 = vperm.xlu1 %4859, %v4915_v17   ;;  %5005 = vperm.xlu0 %4983, %v4905_v11  }
  0x57   : > { %4926 = vperm.xlu1 %4859, %v5303_v41   ;;  %5010 = vperm.xlu0 %4983, %v4915_v17  }
  0x5b   : > { %4936 = vperm.xlu1 %4859, %v5301_v40   ;;  %2122 = vperm.xlu0 %4983, %v2044_v19  }
  0x5f   : > { %4945 = vset.pattern.permute.xlu1 %v5185_v2  ;;  %5016 = vperm.xlu0 %4983, %v5307_v42  }
  0x60   : > { %4947 = vperm.xlu1 %4945, %v5267_v13  }
  0x63   : > { %5026 = vperm.xlu0 %4983, %v4848_v50  }
  0x64   : > { %4952 = vperm.xlu1 %4945, %v5265_v12   ;;  %v2045_v12 = vld [vmem:[%s5316_s20 + $0x10] sm:$0xff] }
  0x67   : > { %5036 = vperm.xlu0 %4983, %v4843_v46  }
  0x68   : > { %4957 = vperm.xlu1 %4945, %v5271_v14  }
  0x6b   : > { %5040 = vset.pattern.permute.xlu0 %v5184_v1 }
  0x6c   : > { %4962 = vperm.xlu1 %4945, %v5276_v18   ;;  %5042 = vperm.xlu0 %5040, %v5267_v13   ;;  %v7950_v13 = vlaneseq  ;;  %v489_v18 = vld [vmem:[%s7944_s3] sm:$0xf] }
  0x6d   : > { %v5361_v20 = vunpack.c.l.bf16 %v489_v18 }
  0x6e   : > { %v5355_v14 = vshrl.u32 %v7950_v13, 7 }
  0x6f   : > { %8156 = vst [vmem:[#allocation3_spill] sm:$0xff] %v5361_v20 }
  0x70   : > { %4967 = vperm.xlu1 %4945, %v5281_v22   ;;  %5047 = vperm.xlu0 %5040, %v4860_v54   ;;  %8155 = vst [vmem:[#allocation2_spill] sm:$0xff] %v5355_v14  ;;  %v5364_v21 = vsub.s32 4, %v5355_v14  ;;  %v5367_v22 = vsub.s32 5, %v5355_v14  ;;  %v5382_v27 = vsub.s32 1, %v5355_v14 }
  0x72   : > { %8157 = vst [vmem:[#allocation4_spill] sm:$0xff] %v5364_v21  ;;  %8158 = vst [vmem:[#allocation5_spill] sm:$0xff] %v5367_v22  ;;  %v938_v24 = vrot.slane %v5361_v20, %v5367_v22 }
  0x73   : > { %8162 = vst [vmem:[#allocation9_spill] sm:$0xff] %v5382_v27 }
  0x74   : > { %4972 = vperm.xlu1 %4945, %v5287_v26   ;;  %5052 = vperm.xlu0 %5040, %v4875_v60   ;;  %v5379_v26 = vsub.s32 0, %v5355_v14  ;;  %v5389_v29 = vrot.slane %v938_v24, %v5382_v27 }
  0x76   : > { %8161 = vst [vmem:[#allocation8_spill] sm:$0xff] %v5379_v26 }
  0x78   : > { %4977 = vperm.xlu1 %4945, %v5298_v33   ;;  %5057 = vperm.xlu0 %5040, %v4885_v3  }
  0x7c   : > { %4981 = vset.pattern.permute.xlu1 %v5184_v1  ;;  %5062 = vperm.xlu0 %5040, %v4895_v7  }
  0x7d   : > { %2050 = vperm.xlu1 %4981, %v5319_v53  }
  0x80   : > { %5067 = vperm.xlu0 %5040, %v4905_v11  }
  0x81   : > { %2060 = vperm.xlu1 %4981, %v2045_v12  }
  0x84   : > { %5072 = vperm.xlu0 %5040, %v4915_v17  }
  0x85   : > { %2065 = vperm.xlu1 %4981, %v5325_v56  }
  0x88   : > { %5077 = vperm.xlu0 %5040, %v5303_v41  }
  0x89   : > { %4982 = vset.pattern.permute.xlu1 %v5183_v0  ;;  %v661_v0 = vrot.slane %v5361_v20, %v5364_v21 }
  0x8a   : > { %2093 = vperm.xlu1 %4982, %v2044_v19  }
  0x8b   : > { %v5386_v28 = vrot.slane %v661_v0, %v5379_v26 }
  0x8c   : > { %5082 = vperm.xlu0 %5040, %v5301_v40  }
  0x8e   : > { %2097 = vperm.xlu1 %4982, %v2045_v12  }
  0x90   : > { %2055 = vperm.xlu0 %5040, %v2044_v19  }
  0x91   : > { %v5371_v23 = vpop.permute.xlu1 %4809  ;;  %v5375_v25 = vpop.permute.xlu0 %4855 }
  0x92   : > { %8159 = vst [vmem:[#allocation6_spill] sm:$0xff] %v5371_v23  ;;  %8160 = vst [vmem:[#allocation7_spill] sm:$0xff] %v5375_v25  ;;  %5014 = vset.pattern.permute.xlu1 %v5185_v2 }
  0x93   : > { %2118 = vperm.xlu1 %5014, %v5319_v53  }
  0x95   : > { %v5391_v30 = vpop.permute.xlu1 %4814  ;;  %v5393_v31 = vpop.permute.xlu0 %4871 }
  0x96   : > { %8163 = vst [vmem:[#allocation10_spill] sm:$0xff] %v5391_v30  ;;  %8164 = vst [vmem:[#allocation11_spill] sm:$0xff] %v5393_v31  ;;  %v7956_v32 = vunpack.i.h.bf16 %v5391_v30  ;;  %v7968_v33 = vunpack.i.l.bf16 %v5391_v30  ;;  %v7955_v34 = vunpack.i.h.bf16 %v5393_v31  ;;  %v7967_v35 = vunpack.i.l.bf16 %v5393_v31 }
  0x97   : > { %2126 = vperm.xlu1 %5014, %v2045_v12  }
  0x98   : > { %v687_v36 = vmul.f32 %v7956_v32, %v5386_v28  ;;  %v685_v37 = vmul.f32 %v7968_v33, %v5386_v28  ;;  %v964_v38 = vmul.f32 %v7955_v34, %v5389_v29  ;;  %v962_v39 = vmul.f32 %v7967_v35, %v5389_v29 }
  0x99   : > { %v5411_v42 = vpop.permute.xlu1 %4819  ;;  %v5413_v43 = vpop.permute.xlu0 %4881 }
  0x9a   : > { %8165 = vst [vmem:[#allocation12_spill] sm:$0xff] %v5411_v42  ;;  %8166 = vst [vmem:[#allocation13_spill] sm:$0xff] %v5413_v43  ;;  %v7973_v44 = vunpack.i.h.bf16 %v5411_v42  ;;  %v7982_v45 = vunpack.i.l.bf16 %v5411_v42  ;;  %v7972_v46 = vunpack.i.h.bf16 %v5413_v43  ;;  %v7981_v47 = vunpack.i.l.bf16 %v5413_v43 }
  0x9b   : > { %v5419_v48 = vadd.f32 %v964_v38, %v687_v36  ;;  %v5421_v49 = vadd.f32 %v962_v39, %v685_v37  ;;  %2130 = vperm.xlu1 %5014, %v5325_v56   ;;  %v8216_v42 = vunpack.i.h.bf16 %v5375_v25 }
  0x9c   : > { %v695_v50 = vmul.f32 %v7973_v44, %v5386_v28  ;;  %v693_v51 = vmul.f32 %v7982_v45, %v5386_v28  ;;  %v972_v52 = vmul.f32 %v7972_v46, %v5389_v29  ;;  %v970_v53 = vmul.f32 %v7981_v47, %v5389_v29 }
  0x9d   : > { %8167 = vst [vmem:[#allocation14_spill] sm:$0xff] %v5419_v48  ;;  %8168 = vst [vmem:[#allocation15_spill] sm:$0xff] %v5421_v49  ;;  %v5436_v54 = vpop.permute.xlu1 %4824  ;;  %v5438_v55 = vpop.permute.xlu0 %4891  ;;  %v5625_v47 = vsub.s32 2, %v5355_v14 }
  0x9e   : > { %8169 = vst [vmem:[#allocation16_spill] sm:$0xff] %v5436_v54  ;;  %8170 = vst [vmem:[#allocation17_spill] sm:$0xff] %v5438_v55  ;;  %v7954_v56 = vunpack.i.h.bf16 %v5436_v54  ;;  %v7963_v57 = vunpack.i.l.bf16 %v5436_v54  ;;  %v7953_v58 = vunpack.i.h.bf16 %v5438_v55  ;;  %v7959_v59 = vunpack.i.l.bf16 %v5438_v55 }
  0x9f   : > { %v5444_v60 = vadd.f32 %v972_v52, %v695_v50  ;;  %v5446_v61 = vadd.f32 %v970_v53, %v693_v51  ;;  %5021 = vperm.xlu1 %5014, %v5301_v40   ;;  %8206 = vst [vmem:[#allocation53_spill] sm:$0xff] %v5625_v47 }
  0xa0   : > { %v703_v62 = vmul.f32 %v7954_v56, %v5386_v28  ;;  %v701_v63 = vmul.f32 %v7963_v57, %v5386_v28  ;;  %v980_v2 = vmul.f32 %v7953_v58, %v5389_v29  ;;  %v978_v3 = vmul.f32 %v7959_v59, %v5389_v29 }
  0xa1   : > { %8171 = vst [vmem:[#allocation18_spill] sm:$0xff] %v5444_v60  ;;  %8172 = vst [vmem:[#allocation19_spill] sm:$0xff] %v5446_v61  ;;  %v5461_v4 = vpop.permute.xlu1 %4829  ;;  %v5463_v5 = vpop.permute.xlu0 %4901 }
  0xa2   : > { %8173 = vst [vmem:[#allocation20_spill] sm:$0xff] %v5461_v4  ;;  %8174 = vst [vmem:[#allocation21_spill] sm:$0xff] %v5463_v5  ;;  %v7970_v40 = vunpack.i.h.bf16 %v5461_v4  ;;  %v7980_v6 = vunpack.i.l.bf16 %v5461_v4  ;;  %v7969_v7 = vunpack.i.h.bf16 %v5463_v5  ;;  %v7979_v8 = vunpack.i.l.bf16 %v5463_v5 }
  0xa3   : > { %v5469_v9 = vadd.f32 %v980_v2, %v703_v62  ;;  %v5471_v10 = vadd.f32 %v978_v3, %v701_v63  ;;  %5031 = vperm.xlu1 %5014, %v5303_v41  }
  0xa4   : > { %v711_v11 = vmul.f32 %v7970_v40, %v5386_v28  ;;  %v709_v15 = vmul.f32 %v7980_v6, %v5386_v28  ;;  %v988_v16 = vmul.f32 %v7969_v7, %v5389_v29  ;;  %v986_v17 = vmul.f32 %v7979_v8, %v5389_v29 }
  0xa5   : > { %8175 = vst [vmem:[#allocation22_spill] sm:$0xff] %v5469_v9  ;;  %8176 = vst [vmem:[#allocation23_spill] sm:$0xff] %v5471_v10  ;;  %v5486_v19 = vpop.permute.xlu1 %4834  ;;  %v5488_v12 = vpop.permute.xlu0 %4911 }
  0xa6   : > { %8177 = vst [vmem:[#allocation24_spill] sm:$0xff] %v5486_v19  ;;  %8178 = vst [vmem:[#allocation25_spill] sm:$0xff] %v5488_v12  ;;  %v7952_v41 = vunpack.i.h.bf16 %v5486_v19  ;;  %v7958_v18 = vunpack.i.l.bf16 %v5486_v19  ;;  %v7951_v0 = vunpack.i.h.bf16 %v5488_v12  ;;  %v7957_v24 = vunpack.i.l.bf16 %v5488_v12 }
  0xa7   : > { %v5494_v36 = vadd.f32 %v988_v16, %v711_v11  ;;  %v5496_v37 = vadd.f32 %v986_v17, %v709_v15  ;;  %5086 = vset.pattern.permute.xlu1 %v5184_v1 }
  0xa8   : > { %v719_v38 = vmul.f32 %v7952_v41, %v5386_v28  ;;  %v717_v39 = vmul.f32 %v7958_v18, %v5386_v28  ;;  %v996_v50 = vmul.f32 %v7951_v0, %v5389_v29  ;;  %v994_v51 = vmul.f32 %v7957_v24, %v5389_v29 }
  0xa9   : > { %8179 = vst [vmem:[#allocation26_spill] sm:$0xff] %v5494_v36  ;;  %8180 = vst [vmem:[#allocation27_spill] sm:$0xff] %v5496_v37  ;;  %v5511_v52 = vpop.permute.xlu1 %4839  ;;  %v5513_v53 = vpop.permute.xlu0 %4921 }
  0xaa   : > { %8181 = vst [vmem:[#allocation28_spill] sm:$0xff] %v5511_v52  ;;  %8182 = vst [vmem:[#allocation29_spill] sm:$0xff] %v5513_v53  ;;  %v7966_v1 = vunpack.i.h.bf16 %v5511_v52  ;;  %v7978_v62 = vunpack.i.l.bf16 %v5511_v52  ;;  %v7964_v63 = vunpack.i.h.bf16 %v5513_v53  ;;  %v7976_v2 = vunpack.i.l.bf16 %v5513_v53 }
  0xab   : > { %v5519_v3 = vadd.f32 %v996_v50, %v719_v38  ;;  %v5521_v11 = vadd.f32 %v994_v51, %v717_v39 }
  0xac   : > { %v727_v15 = vmul.f32 %v7966_v1, %v5386_v28  ;;  %v725_v16 = vmul.f32 %v7978_v62, %v5386_v28  ;;  %v1004_v17 = vmul.f32 %v7964_v63, %v5389_v29  ;;  %v1002_v13 = vmul.f32 %v7976_v2, %v5389_v29 }
  0xad   : > { %8183 = vst [vmem:[#allocation30_spill] sm:$0xff] %v5519_v3  ;;  %8184 = vst [vmem:[#allocation31_spill] sm:$0xff] %v5521_v11  ;;  %v5535_v38 = vpop.permute.xlu1 %4844  ;;  %v5537_v39 = vpop.permute.xlu0 %4931  ;;  %v8217_v3 = vunpack.i.l.bf16 %v5375_v25 }
  0xae   : > { %8185 = vst [vmem:[#allocation32_spill] sm:$0xff] %v5535_v38  ;;  %8186 = vst [vmem:[#allocation33_spill] sm:$0xff] %v5537_v39  ;;  %v7960_v50 = vunpack.i.h.bf16 %v5535_v38  ;;  %v7961_v51 = vunpack.i.l.bf16 %v5535_v38  ;;  %v7962_v0 = vunpack.i.h.bf16 %v5537_v39  ;;  %v7965_v41 = vunpack.i.l.bf16 %v5537_v39 }
  0xaf   : > { %v1068_v58 = vadd.f32 %v1004_v17, %v727_v15  ;;  %v1066_v56 = vadd.f32 %v1002_v13, %v725_v16 }
  0xb0   : > { %v735_v34 = vmul.f32 %v7960_v50, %v5386_v28  ;;  %v733_v32 = vmul.f32 %v7961_v51, %v5386_v28  ;;  %v1012_v24 = vmul.f32 %v7962_v0, %v5389_v29  ;;  %v1010_v18 = vmul.f32 %v7965_v41, %v5389_v29 }
  0xb1   : > { %v5555_v59 = vpop.permute.xlu1 %4849  ;;  %v5557_v15 = vpop.permute.xlu0 %4941  ;;  %v7971_v51 = vunpack.i.h.bf16 %v5371_v23  ;;  %v7974_v0 = vunpack.i.l.bf16 %v5371_v23 }
  0xb2   : > { %v5559_v13 = vadd.f32 %v1012_v24, %v735_v34  ;;  %v5561_v16 = vadd.f32 %v1010_v18, %v733_v32 }
  0xb3   : > { %v683_v32 = vmul.f32 %v7971_v51, %v5386_v28  ;;  %v681_v34 = vmul.f32 %v7974_v0, %v5386_v28 }
  0xb4   : > { %8187 = vst [vmem:[#allocation34_spill] sm:$0xff] %v5559_v13  ;;  %8188 = vst [vmem:[#allocation35_spill] sm:$0xff] %v5561_v16 }
  0xb5   : > { %v5563_v17 = vpop.permute.xlu0 %2089 }
  0xb6   : > { %v5565_v50 = vpop.permute.xlu1 %4861 }
  0xb7   : > { %8189 = vst [vmem:[#allocation36_spill] sm:$0xff] %v5565_v50 }
  0xb9   : > { %v5569_v57 = vpop.permute.xlu0 %2101 }
  0xba   : > { %v5571_v63 = vpop.permute.xlu1 %4866 }
  0xbb   : > { %8190 = vst [vmem:[#allocation37_spill] sm:$0xff] %v5571_v63  ;;  %v7975_v41 = vunpack.i.h.bf16 %v5571_v63  ;;  %v7977_v1 = vunpack.i.l.bf16 %v5571_v63 }
  0xbd   : > { %v960_v18 = vmul.f32 %v7975_v41, %v5389_v29  ;;  %v958_v24 = vmul.f32 %v7977_v1, %v5389_v29 }
  0xbe   : > { %v5587_v35 = vpop.permute.xlu1 %4876  ;;  %v5589_v33 = vpop.permute.xlu0 %4985 }
  0xbf   : > { %8191 = vst [vmem:[#allocation38_spill] sm:$0xff] %v5587_v35  ;;  %8192 = vst [vmem:[#allocation39_spill] sm:$0xff] %v5589_v33  ;;  %v5591_v7 = vadd.f32 %v960_v18, %v683_v32  ;;  %v5593_v40 = vadd.f32 %v958_v24, %v681_v34  ;;  %v5616_v18 = vsub.s32 6, %v5355_v14 }
  0xc1   : > { %8193 = vst [vmem:[#allocation40_spill] sm:$0xff] %v5591_v7  ;;  %8194 = vst [vmem:[#allocation41_spill] sm:$0xff] %v5593_v40  ;;  %v1262_v6 = vrot.slane %v5361_v20, %v5616_v18  ;;  %v952_v20 = vmul.f32 %v8216_v42, %v5389_v29 }
  0xc2   : > { %v5595_v51 = vpop.permute.xlu1 %4886  ;;  %v5597_v46 = vpop.permute.xlu0 %4990  ;;  %8205 = vst [vmem:[#allocation52_spill] sm:$0xff] %v5616_v18 }
  0xc3   : > { %8195 = vst [vmem:[#allocation42_spill] sm:$0xff] %v5595_v51  ;;  %8196 = vst [vmem:[#allocation43_spill] sm:$0xff] %v5597_v46  ;;  %v5630_v39 = vrot.slane %v1262_v6, %v5625_v47  ;;  %v491_v6 = vld [vmem:[%s7945_s4] sm:$0xf] }
  0xc4   : > { %v492_v52 = vunpack.c.l.bf16 %v491_v6  ;;  %v5186_v6 = vmov 1966171168  }
  0xc6   : > { %v5599_v44 = vpop.permute.xlu1 %4896  ;;  %v5601_v0 = vpop.permute.xlu0 %4995  ;;  %v760_v5 = vrot.slane %v492_v52, %v5379_v26  ;;  %v1420_v36 = vrot.slane %v492_v52, %v5625_v47  ;;  %v1424_v60 = vrot.slane %v492_v52, %v5616_v18 }
  0xc7   : > { %8197 = vst [vmem:[#allocation44_spill] sm:$0xff] %v5599_v44  ;;  %8198 = vst [vmem:[#allocation45_spill] sm:$0xff] %v5601_v0 }
  0xca   : > { %v5603_v41 = vpop.permute.xlu1 %4906  ;;  %v5605_v2 = vpop.permute.xlu0 %5000 }
  0xcb   : > { %8199 = vst [vmem:[#allocation46_spill] sm:$0xff] %v5603_v41  ;;  %8200 = vst [vmem:[#allocation47_spill] sm:$0xff] %v5605_v2 }
  0xce   : > { %v5607_v1 = vpop.permute.xlu1 %4916  ;;  %v5609_v62 = vpop.permute.xlu0 %5005 }
  0xcf   : > { %8201 = vst [vmem:[#allocation48_spill] sm:$0xff] %v5607_v1  ;;  %8202 = vst [vmem:[#allocation49_spill] sm:$0xff] %v5609_v62 }
  0xd2   : > { %v5611_v32 = vpop.permute.xlu1 %4926  ;;  %v5613_v34 = vpop.permute.xlu0 %5010 }
  0xd3   : > { %8203 = vst [vmem:[#allocation50_spill] sm:$0xff] %v5611_v32  ;;  %8204 = vst [vmem:[#allocation51_spill] sm:$0xff] %v5613_v34 }
  0xd6   : > { %v5618_v24 = vpop.permute.xlu1 %4936  ;;  %v5620_v8 = vpop.permute.xlu0 %2122 }
  0xda   : > { %v5627_v45 = vpop.permute.xlu0 %5016 }
  0xdb   : > { %8207 = vst [vmem:[#allocation54_spill] sm:$0xff] %v5627_v45  ;;  %v8007_v38 = vunpack.i.h.bf16 %v5627_v45  ;;  %v8010_v12 = vunpack.i.l.bf16 %v5627_v45  ;;  %v5634_v19 = vpop.permute.xlu1 %4947  ;;  %v1462_v45 = vunpack.c.l.s4 %v5186_v6 }
  0xdc   : > { %8208 = vst [vmem:[#allocation55_spill] sm:$0xff] %v5634_v19 }
  0xdd   : > { %v1328_v55 = vmul.f32 %v8007_v38, %v5630_v39  ;;  %v1326_v54 = vmul.f32 %v8010_v12, %v5630_v39  ;;  %v1096_v12 = vrot.slane %v492_v52, %v5382_v27 }
  0xde   : > { %v5642_v31 = vpop.permute.xlu0 %5026 }
  0xdf   : > { %v5644_v30 = vpop.permute.xlu1 %4952  ;;  %v5649_v23 = vadd.f32 %v1326_v54, %v1066_v56  ;;  %v5651_v63 = vadd.f32 %v1328_v55, %v1068_v58  ;;  %v764_v54 = vrot.slane %v492_v52, %v5364_v21  ;;  %v783_v58 = vld [vmem:[%s7946_s5] sm:$0x3]  ;;  %v950_v21 = vmul.f32 %v8217_v3, %v5389_v29 }
  0xe0   : > { %8209 = vst [vmem:[#allocation56_spill] sm:$0xff] %v5644_v30  ;;  %v5678_v55 = vrot.slane %v760_v5, %v5379_v26  ;;  %v1100_v56 = vrot.slane %v492_v52, %v5367_v22  ;;  %v5697_v22 = vrot.slane %v783_v58, %v5379_v26  ;;  %v5702_v9 = vrot.slane %v783_v58, %v5382_v27 }
  0xe1   : > { %8210 = vst [vmem:[#allocation57_spill] sm:$0xff] %v5649_v23  ;;  %8211 = vst [vmem:[#allocation58_spill] sm:$0xff] %v5651_v63  ;;  %v5694_v5 = vrot.slane %v764_v54, %v5379_v26  ;;  %v1463_v63 = vunpack.c.0.s8 %v1462_v45  ;;  %v8224_v45 = vunpack.i.h.bf16 %v5565_v50  ;;  %v8230_v52 = vunpack.i.l.bf16 %v5587_v35 }
  0xe2   : > { %v5653_v53 = vpop.permute.xlu0 %5036  ;;  %v5731_v54 = vrot.slane %v1100_v56, %v5382_v27  ;;  %v8229_v56 = vunpack.i.h.bf16 %v5587_v35  ;;  %v8238_v35 = vunpack.i.h.bf16 %v5595_v51 }
  0xe3   : > { %8212 = vst [vmem:[#allocation59_spill] sm:$0xff] %v5653_v53  ;;  %v5655_v38 = vpop.permute.xlu1 %4957  ;;  %v966_v61 = vmul.f32 %v8230_v52, %v5389_v29  ;;  %v4944_v52 = vunpack.i.h.bf16 %v5557_v15 }
  0xe4   : > { %8213 = vst [vmem:[#allocation60_spill] sm:$0xff] %v5655_v38 }
  0xe7   : > { %v5660_v4 = vpop.permute.xlu1 %4962  ;;  %v5662_v43 = vpop.permute.xlu0 %5042 }
  0xe8   : > { %8214 = vst [vmem:[#allocation61_spill] sm:$0xff] %v5660_v4  ;;  %8215 = vst [vmem:[#allocation62_spill] sm:$0xff] %v5662_v43  ;;  %v8220_v42 = vunpack.i.h.bf16 %v5662_v43  ;;  %v8221_v3 = vunpack.i.l.bf16 %v5662_v43 }
  0xea   : > { %v675_v10 = vmul.f32 %v8220_v42, %v5386_v28  ;;  %v673_v25 = vmul.f32 %v8221_v3, %v5386_v28  ;;  %v5709_v3 = vrot.slane %v1096_v12, %v5382_v27 }
  0xeb   : > { %v5681_v13 = vpop.permute.xlu1 %4967  ;;  %v5683_v16 = vpop.permute.xlu0 %5047 }
  0xec   : > { %8218 = vst [vmem:[#allocation63_spill] sm:$0xff] %v5681_v13  ;;  %8219 = vst [vmem:[#allocation64_spill] sm:$0xff] %v5683_v16  ;;  %v5704_v23 = vadd.f32 %v950_v21, %v673_v25  ;;  %v5706_v42 = vadd.f32 %v952_v20, %v675_v10  ;;  %v956_v21 = vmul.f32 %v8224_v45, %v5389_v29  ;;  %v8225_v20 = vunpack.i.l.bf16 %v5565_v50 }
  0xed   : > { %v8226_v10 = vunpack.i.h.bf16 %v5683_v16  ;;  %v8227_v58 = vunpack.i.l.bf16 %v5683_v16  ;;  %v5737_v50 = vsub.s32 %v1463_v63, %v5355_v14  ;;  %v968_v16 = vmul.f32 %v8229_v56, %v5389_v29 }
  0xee   : > { %v954_v25 = vmul.f32 %v8225_v20, %v5389_v29  ;;  %v4852_v20 = vunpack.i.h.bf16 %v5555_v59  ;;  %v5752_v45 = vrot.slane %v1420_v36, %v5625_v47  ;;  %v5768_v36 = vrot.slane %v1424_v60, %v5625_v47 }
  0xef   : > { %v5714_v11 = vpop.permute.xlu1 %4972  ;;  %v5716_v6 = vpop.permute.xlu0 %5052  ;;  %v679_v12 = vmul.f32 %v8226_v10, %v5386_v28  ;;  %v677_v43 = vmul.f32 %v8227_v58, %v5386_v28  ;;  %v4851_v58 = vunpack.i.l.bf16 %v5555_v59  ;;  %v976_v14 = vmul.f32 %v8238_v35, %v5389_v29 }
  0xf0   : > { %8222 = vst [vmem:[#allocation65_spill] sm:$0xff] %v5714_v11  ;;  %8223 = vst [vmem:[#allocation66_spill] sm:$0xff] %v5716_v6  ;;  %v8233_v59 = vunpack.i.h.bf16 %v5716_v6 }
  0xf1   : > { %v5740_v37 = vadd.f32 %v956_v21, %v679_v12  ;;  %v5742_v10 = vadd.f32 %v954_v25, %v677_v43  ;;  %v8234_v12 = vunpack.i.l.bf16 %v5716_v6  ;;  %v781_v43 = vmul.f32 %v4852_v20, %v5678_v55 }
  0xf2   : > { %v691_v25 = vmul.f32 %v8233_v59, %v5386_v28  ;;  %v4943_v21 = vunpack.i.l.bf16 %v5557_v15  ;;  %v782_v6 = vmul.f32 %v4852_v20, %v5694_v5  ;;  %v8239_v15 = vunpack.i.l.bf16 %v5595_v51 }
  0xf3   : > { %8228 = vst [vmem:[#allocation67_spill] sm:$0xff] %v5742_v10  ;;  %v5754_v63 = vpop.permute.xlu1 %4977  ;;  %v5756_v18 = vpop.permute.xlu0 %5057  ;;  %v689_v56 = vmul.f32 %v8234_v12, %v5386_v28  ;;  %v779_v12 = vmul.f32 %v4851_v58, %v5678_v55  ;;  %v780_v60 = vmul.f32 %v4851_v58, %v5694_v5  ;;  %v8245_v58 = vunpack.i.l.bf16 %v5599_v44 }
  0xf4   : > { %8231 = vst [vmem:[#allocation68_spill] sm:$0xff] %v5754_v63  ;;  %8232 = vst [vmem:[#allocation69_spill] sm:$0xff] %v5756_v18  ;;  %v5774_v49 = vadd.f32 %v968_v16, %v691_v25  ;;  %v974_v16 = vmul.f32 %v8239_v15, %v5389_v29  ;;  %v8241_v25 = vunpack.i.l.bf16 %v5756_v18 }
  0xf5   : > { %v5776_v59 = vadd.f32 %v966_v61, %v689_v56  ;;  %v8240_v61 = vunpack.i.h.bf16 %v5756_v18  ;;  %v982_v7 = vmul.f32 %v8245_v58, %v5389_v29  ;;  %v802_v58 = vadd.f32 %v5702_v9, %v782_v6 }
  0xf6   : > { %8235 = vst [vmem:[#allocation70_spill] sm:$0xff] %v5774_v49  ;;  %v697_v56 = vmul.f32 %v8241_v25, %v5386_v28  ;;  %v8244_v25 = vunpack.i.h.bf16 %v5599_v44 }
  0xf7   : > { %8236 = vst [vmem:[#allocation71_spill] sm:$0xff] %v5776_v59  ;;  %v5782_v47 = vpop.permute.xlu0 %5062  ;;  %v699_v20 = vmul.f32 %v8240_v61, %v5386_v28  ;;  %v1117_v59 = vmul.f32 %v4944_v52, %v5709_v3 }
  0xf8   : > { %8237 = vst [vmem:[#allocation72_spill] sm:$0xff] %v5782_v47  ;;  %v5796_v48 = vpop.permute.xlu1 %2050  ;;  %v8049_v35 = vunpack.i.h.bf16 %v5782_v47  ;;  %v5806_v61 = vadd.f32 %v974_v16, %v697_v56  ;;  %v984_v18 = vmul.f32 %v8244_v25, %v5389_v29  ;;  %v8246_v15 = vunpack.i.l.bf16 %v5782_v47 }
  0xf9   : > { %v5804_v40 = vadd.f32 %v976_v14, %v699_v20  ;;  %v801_v16 = vadd.f32 %v5697_v22, %v781_v43  ;;  %v1118_v20 = vmul.f32 %v4944_v52, %v5731_v54  ;;  %v8250_v52 = vunpack.i.h.bf16 %v5603_v41 }
  0xfa   : > { %8243 = vst [vmem:[#allocation74_spill] sm:$0xff] %v5806_v61  ;;  %v707_v49 = vmul.f32 %v8049_v35, %v5386_v28  ;;  %v705_v51 = vmul.f32 %v8246_v15, %v5386_v28  ;;  %v799_v35 = vadd.f32 %v5697_v22, %v779_v12  ;;  %v5833_v15 = vld [vmem:[%s7947_s6 + $0x1] ss:$0 sm:$0xff]  ;;  %v8251_v25 = vunpack.i.l.bf16 %v5603_v41 }
  0xfb   : > { %8242 = vst [vmem:[#allocation73_spill] sm:$0xff] %v5804_v40  ;;  %v5820_v14 = vpop.permute.xlu0 %5067  ;;  %v992_v56 = vmul.f32 %v8250_v52, %v5389_v29  ;;  %v5860_v41 = vmul.f32 %v5833_v15, %v5563_v17 }
  0xfc   : > { %8247 = vst [vmem:[#allocation75_spill] sm:$0xff] %v5820_v14  ;;  %v5826_v44 = vpop.permute.xlu1 %2060  ;;  %v5835_v47 = vadd.f32 %v984_v18, %v707_v49  ;;  %v5837_v43 = vadd.f32 %v982_v7, %v705_v51  ;;  %v990_v40 = vmul.f32 %v8251_v25, %v5389_v29  ;;  %v8252_v6 = vunpack.i.h.bf16 %v5820_v14 }
  0xfd   : > { %v8253_v61 = vunpack.i.l.bf16 %v5820_v14  ;;  %v1115_v49 = vmul.f32 %v4943_v21, %v5709_v3  ;;  %v1116_v7 = vmul.f32 %v4943_v21, %v5731_v54  ;;  %v800_v25 = vadd.f32 %v5702_v9, %v780_v60 }
  0xfe   : > { %8248 = vst [vmem:[#allocation76_spill] sm:$0xff] %v5835_v47  ;;  %8249 = vst [vmem:[#allocation77_spill] sm:$0xff] %v5837_v43  ;;  %v715_v12 = vmul.f32 %v8252_v6, %v5386_v28  ;;  %v5866_v43 = vadd.f32 %v1117_v59, %v801_v16  ;;  %v5868_v21 = vadd.f32 %v1118_v20, %v802_v58  ;;  %v8258_v59 = vunpack.i.l.bf16 %v5607_v1 }
  0xff   : > { %v713_v10 = vmul.f32 %v8253_v61, %v5386_v28  ;;  %v5855_v52 = vpop.permute.xlu0 %5072  ;;  %v5872_v47 = vadd.f32 %v1115_v49, %v799_v35  ;;  %v8262_v49 = vunpack.i.h.bf16 %v5611_v32 }
 0x100   : > { %8254 = vst [vmem:[#allocation78_spill] sm:$0xff] %v5855_v52  ;;  %v5862_v6 = vadd.f32 %v992_v56, %v715_v12  ;;  %v2066_v61 = vpop.permute.xlu1 %2065  ;;  %v8056_v51 = vunpack.i.h.bf16 %v5855_v52  ;;  %v8057_v18 = vunpack.i.l.bf16 %v5855_v52  ;;  %v998_v16 = vmul.f32 %v8258_v59, %v5389_v29 }
 0x101   : > { %v5864_v14 = vadd.f32 %v990_v40, %v713_v10  ;;  %v8257_v40 = vunpack.i.h.bf16 %v5607_v1  ;;  %v1008_v12 = vmul.f32 %v8262_v49, %v5389_v29  ;;  %v8263_v52 = vunpack.i.l.bf16 %v5611_v32 }
 0x102   : > { %8255 = vst [vmem:[#allocation79_spill] sm:$0xff] %v5862_v6  ;;  %v723_v20 = vmul.f32 %v8056_v51, %v5386_v28  ;;  %v721_v35 = vmul.f32 %v8057_v18, %v5386_v28 }
 0x103   : > { %8256 = vst [vmem:[#allocation80_spill] sm:$0xff] %v5864_v14  ;;  %v1000_v10 = vmul.f32 %v8257_v40, %v5389_v29  ;;  %v5889_v58 = vpop.permute.xlu0 %5077  ;;  %v4616_v40 = vld [vmem:[%s7947_s6] ss:$0 sm:$0xff]  ;;  %v1006_v6 = vmul.f32 %v8263_v52, %v5389_v29 }
 0x104   : > { %8259 = vst [vmem:[#allocation81_spill] sm:$0xff] %v5889_v58  ;;  %v8062_v59 = vunpack.i.h.bf16 %v5889_v58  ;;  %v5902_v18 = vadd.f32 %v998_v16, %v721_v35  ;;  %v8264_v56 = vunpack.i.l.bf16 %v5889_v58  ;;  %v8073_v16 = vunpack.i.l.bf16 %v5601_v0 }
 0x105   : > { %v5900_v17 = vadd.f32 %v1000_v10, %v723_v20  ;;  %v2094_v1 = vpop.permute.xlu1 %2093  ;;  %v5916_v20 = vadd.f32 %v1116_v7, %v800_v25  ;;  %v2072_v49 = vmul.f32 %v4616_v40, %v5796_v48  ;;  %v2111_v7 = vmul.f32 %v5833_v15, %v5569_v57 }
 0x106   : > { %8261 = vst [vmem:[#allocation83_spill] sm:$0xff] %v5902_v18  ;;  %v731_v60 = vmul.f32 %v8062_v59, %v5386_v28  ;;  %v729_v10 = vmul.f32 %v8264_v56, %v5386_v28  ;;  %v4617_v59 = vld [vmem:[%s7948_s7] ss:$0 sm:$0xff]  ;;  %v8267_v48 = vunpack.i.h.bf16 %v5589_v33  ;;  %v8268_v35 = vunpack.i.l.bf16 %v5589_v33 }
 0x107   : > { %8260 = vst [vmem:[#allocation82_spill] sm:$0xff] %v5900_v17  ;;  %v5921_v51 = vpop.permute.xlu0 %5082  ;;  %v8270_v57 = vunpack.i.l.bf16 %v5597_v46  ;;  %v8274_v56 = vunpack.i.h.bf16 %v5605_v2  ;;  %v2083_v33 = vadd.f32 %v4617_v59, %v2072_v49  ;;  %v8281_v49 = vunpack.i.h.bf16 %v5613_v34 }
 0x108   : > { %v5928_v32 = vadd.f32 %v1008_v12, %v731_v60  ;;  %v5930_v28 = vadd.f32 %v1006_v6, %v729_v10  ;;  %v5937_v25 = vmul.f32 %v8267_v48, %v5630_v39  ;;  %v5944_v60 = vmul.f32 %v8268_v35, %v5630_v39 }
 0x109   : > { %v2098_v29 = vpop.permute.xlu1 %2097  ;;  %v8269_v6 = vunpack.i.h.bf16 %v5597_v46  ;;  %v5954_v10 = vmul.f32 %v8270_v57, %v5630_v39  ;;  %v8271_v48 = vunpack.i.h.bf16 %v5601_v0  ;;  %v5964_v35 = vmul.f32 %v8073_v16, %v5630_v39 }
 0x10a   : > { %8265 = vst [vmem:[#allocation84_spill] sm:$0xff] %v5928_v32  ;;  %8266 = vst [vmem:[#allocation85_spill] sm:$0xff] %v5930_v28  ;;  %v8275_v46 = vunpack.i.l.bf16 %v5605_v2  ;;  %v4939_v16 = vunpack.i.h.bf16 %v5618_v24  ;;  %v5991_v58 = vmul.f32 %v8281_v49, %v5630_v39  ;;  %v2074_v2 = vmul.f32 %v4616_v40, %v5826_v44 }
 0x10b   : > { %v5949_v12 = vmul.f32 %v8269_v6, %v5630_v39  ;;  %v5959_v52 = vmul.f32 %v8271_v48, %v5630_v39  ;;  %8273 = vst [vmem:[#allocation87_spill] sm:$0xff] %v5964_v35  ;;  %v5969_v6 = vmul.f32 %v8274_v56, %v5630_v39  ;;  %v2056_v57 = vpop.permute.xlu0 %2055  ;;  %v8277_v48 = vunpack.i.h.bf16 %v5609_v62 }
 0x10c   : > { %v5975_v32 = vmul.f32 %v8275_v46, %v5630_v39  ;;  %v2073_v28 = vmul.f32 %v4616_v40, %v2056_v57  ;;  %v8279_v56 = vunpack.i.l.bf16 %v5609_v62  ;;  %8282 = vst [vmem:[#allocation91_spill] sm:$0xff] %v5991_v58  ;;  %v4938_v46 = vunpack.i.l.bf16 %v5618_v24 }
 0x10d   : > { %8272 = vst [vmem:[#allocation86_spill] sm:$0xff] %v5959_v52  ;;  %v5980_v0 = vmul.f32 %v8277_v48, %v5630_v39  ;;  %v4619_v48 = vld [vmem:[%s7947_s6 + $0x2] ss:$0 sm:$0xff]  ;;  %v5028_v57 = vunpack.i.l.bf16 %v5642_v31  ;;  %v2109_v62 = vmul.f32 %v5833_v15, %v2094_v1  ;;  %v2110_v24 = vmul.f32 %v5833_v15, %v2098_v29 }
 0x10e   : > { %8276 = vst [vmem:[#allocation88_spill] sm:$0xff] %v5975_v32  ;;  %v5986_v52 = vmul.f32 %v8279_v56, %v5630_v39  ;;  %v2084_v56 = vadd.f32 %v4617_v59, %v2073_v28  ;;  %v2119_v35 = vpop.permute.xlu1 %2118  ;;  %v2112_v14 = vadd.f32 %v5860_v41, %v2083_v33  ;;  %v6008_v58 = vmul.f32 %v4939_v16, %v5709_v3 }
 0x10f   : > { %8278 = vst [vmem:[#allocation89_spill] sm:$0xff] %v5980_v0  ;;  %v2075_v0 = vmul.f32 %v4616_v40, %v2066_v61  ;;  %v2137_v18 = vmul.f32 %v4619_v48, %v2119_v35  ;;  %v2138_v44 = vmul.f32 %v4619_v48, %v5620_v8  ;;  %v5029_v61 = vunpack.i.h.bf16 %v5642_v31 }
 0x110   : > { %8280 = vst [vmem:[#allocation90_spill] sm:$0xff] %v5986_v52  ;;  %v8283_v52 = vunpack.i.l.bf16 %v5613_v34  ;;  %v2113_v1 = vadd.f32 %v2109_v62, %v2084_v56  ;;  %v6013_v40 = vmul.f32 %v4939_v16, %v5731_v54  ;;  %v6016_v28 = vmul.f32 %v4938_v46, %v5709_v3 }
 0x111   : > { %v6018_v34 = vadd.f32 %v2137_v18, %v2112_v14  ;;  %v1439_v33 = vmul.f32 %v5028_v57, %v5752_v45  ;;  %v1440_v41 = vmul.f32 %v5028_v57, %v5768_v36  ;;  %v2086_v15 = vadd.f32 %v4617_v59, %v2075_v0 }
 0x112   : > { %v6003_v49 = vmul.f32 %v8283_v52, %v5630_v39  ;;  %v2085_v52 = vadd.f32 %v4617_v59, %v2074_v2  ;;  %v6022_v29 = vadd.f32 %v2138_v44, %v2113_v1  ;;  %v2127_v8 = vpop.permute.xlu1 %2126  ;;  %v6025_v31 = vmul.f32 %v4938_v46, %v5731_v54 }
 0x113   : > { %v2156_v16 = vrot.slane %v6018_v34, %v5737_v50  ;;  %v2139_v3 = vmul.f32 %v4619_v48, %v2127_v8  ;;  %v8080_v2 = vunpack.i.h.bf16 %v5634_v19  ;;  %v1441_v14 = vmul.f32 %v5029_v61, %v5752_v45 }
 0x114   : > { %8284 = vst [vmem:[#allocation92_spill] sm:$0xff] %v6003_v49  ;;  %v2114_v62 = vadd.f32 %v2110_v24, %v2085_v52  ;;  %v1442_v18 = vmul.f32 %v5029_v61, %v5768_v36  ;;  %v2205_v0 = vrot.slane %v6022_v29, %v5737_v50  ;;  %v8081_v59 = vunpack.i.l.bf16 %v5634_v19 }
 0x115   : > { %v2164_v35 = vcombine.high %v2156_v16, %v2156_v16  ;;  %v6038_v54 = vrot.slane %v2156_v16, %v5737_v50  ;;  %v1447_v46 = vadd.f32 %v1439_v33, %v5872_v47  ;;  %v1448_v56 = vadd.f32 %v1440_v41, %v5916_v20 }
 0x116   : > { %v6035_v57 = vadd.f32 %v2139_v3, %v2114_v62  ;;  %v2131_v24 = vpop.permute.xlu1 %2130  ;;  %v2115_v44 = vadd.f32 %v2111_v7, %v2086_v15  ;;  %v2213_v1 = vcombine.high %v2205_v0, %v2205_v0  ;;  %v6049_v62 = vrot.slane %v2205_v0, %v5737_v50 }
 0x117   : > { %v2140_v52 = vmul.f32 %v4619_v48, %v2131_v24  ;;  %v6046_v8 = vrot.slane %v6038_v54, %v5379_v26  ;;  %v1449_v16 = vadd.f32 %v1441_v14, %v5866_v43  ;;  %v1450_v47 = vadd.f32 %v1442_v18, %v5868_v21 }
 0x118   : > { %v2254_v61 = vrot.slane %v6035_v57, %v5737_v50  ;;  %v8082_v20 = vunpack.i.h.bf16 %v5644_v30  ;;  %v6055_v7 = vrot.slane %v2164_v35, %v5737_v50  ;;  %v6060_v48 = vmul.f32 %v8080_v2, %v5630_v39 }
 0x119   : > { %v8083_v33 = vunpack.i.l.bf16 %v5644_v30  ;;  %v6064_v15 = vadd.f32 %v2140_v52, %v2115_v44  ;;  %2473 = vrot.lane.b32.xlu1 %v6046_v8, %s5187_s18  ;;  %v1559_v43 = vcombine.low %v1447_v46, %v1448_v56  ;;  %v6073_v14 = vrot.slane %v2213_v1, %v5737_v50 }
 0x11a   : > { %v2262_v21 = vcombine.high %v2254_v61, %v2254_v61  ;;  %v6070_v3 = vrot.slane %v6055_v7, %v5379_v26  ;;  %v6080_v35 = vrot.slane %v6049_v62, %v5379_v26  ;;  %v6083_v24 = vrot.slane %v2254_v61, %v5737_v50 }
 0x11b   : > { %v2303_v0 = vrot.slane %v6064_v15, %v5737_v50  ;;  %v6088_v44 = vmul.f32 %v8081_v59, %v5630_v39  ;;  %v1560_v52 = vcombine.high %v1447_v46, %v1448_v56  ;;  %v1609_v1 = vcombine.low %v1449_v16, %v1450_v47 }
 0x11c   : > { %8285 = vst [vmem:[#allocation93_spill] sm:$0xff] %v6080_v35  ;;  %v6093_v2 = vmul.f32 %v8082_v20, %v5630_v39  ;;  %2475 = vrot.lane.b32.xlu0 %v6070_v3, %s5187_s18  ;;  %v1610_v18 = vcombine.high %v1449_v16, %v1450_v47  ;;  %v6100_v61 = vmul.f32 %v8083_v33, %v5630_v39  ;;  %v8287_v47 = vunpack.i.h.bf16 %v5653_v53 }
 0x11d   : > { %2489 = vrot.lane.b32.xlu1 %v6080_v35, %s5187_s18  ;;  %v6107_v46 = vrot.slane %v1559_v43, %v5737_v50  ;;  %v2311_v56 = vcombine.high %v2303_v0, %v2303_v0  ;;  %v6111_v20 = vrot.slane %v6073_v14, %v5379_v26  ;;  %v6114_v16 = vrot.slane %v2262_v21, %v5737_v50 }
 0x11e   : > { %v6119_v33 = vmul.f32 %v8287_v47, %v5630_v39  ;;  %v8289_v59 = vunpack.i.l.bf16 %v5653_v53  ;;  %v6128_v43 = vrot.slane %v6083_v24, %v5379_v26  ;;  %v6131_v30 = vrot.slane %v2303_v0, %v5737_v50 }
 0x11f   : > { %8286 = vst [vmem:[#allocation94_spill] sm:$0xff] %v6111_v20  ;;  %v6134_v21 = vrot.slane %v1560_v52, %v5737_v50  ;;  %v6137_v19 = vrot.slane %v1609_v1, %v5737_v50  ;;  %v5085_v47 = vunpack.i.h.bf16 %v5921_v51  ;;  %v8292_v0 = vunpack.i.h.bf16 %v5655_v38 }
 0x120   : > { %8288 = vst [vmem:[#allocation95_spill] sm:$0xff] %v6119_v33  ;;  %v6124_v41 = vmul.f32 %v8289_v59, %v5630_v39  ;;  %8291 = vst [vmem:[#allocation97_spill] sm:$0xff] %v6128_v43  ;;  %v5084_v33 = vunpack.i.l.bf16 %v5921_v51  ;;  %2491 = vrot.lane.b32.xlu0 %v6111_v20, %s5187_s18  ;;  %v6144_v59 = vrot.slane %v1610_v18, %v5737_v50  ;;  %v8293_v52 = vunpack.i.l.bf16 %v5655_v38 }
 0x121   : > { %v6149_v53 = vmul.f32 %v8292_v0, %v5630_v39  ;;  %2505 = vrot.lane.b32.xlu1 %v6128_v43, %s5187_s18  ;;  %v6162_v18 = vrot.slane %v6114_v16, %v5379_v26  ;;  %v6165_v35 = vrot.slane %v2311_v56, %v5737_v50  ;;  %v6169_v0 = vrot.slane %v6107_v46, %v5737_v50 }
 0x122   : > { %8290 = vst [vmem:[#allocation96_spill] sm:$0xff] %v6124_v41  ;;  %v6154_v1 = vmul.f32 %v8293_v52, %v5630_v39  ;;  %v6174_v41 = vrot.slane %v6131_v30, %v5379_v26  ;;  %v2194_v51 = vcombine.high %v6038_v54, %v6038_v54  ;;  %v1575_v38 = vcombine.high %v6107_v46, %v6107_v46  ;;  %v5022_v52 = vpop.permute.xlu1 %5021 }
 0x123   : > { %8294 = vst [vmem:[#allocation98_spill] sm:$0xff] %v6162_v18  ;;  %v777_v56 = vmul.f32 %v5085_v47, %v5678_v55  ;;  %v775_v49 = vmul.f32 %v5084_v33, %v5678_v55  ;;  %v776_v20 = vmul.f32 %v5084_v33, %v5694_v5  ;;  %v6192_v54 = vrot.slane %v6137_v19, %v5737_v50 }
 0x124   : > { %8295 = vst [vmem:[#allocation99_spill] sm:$0xff] %v6174_v41  ;;  %2507 = vrot.lane.b32.xlu0 %v6162_v18, %s5187_s18  ;;  %v1625_v46 = vcombine.high %v6137_v19, %v6137_v19  ;;  %v8296_v55 = vunpack.i.h.bf16 %v5660_v4  ;;  %v778_v43 = vmul.f32 %v5085_v47, %v5694_v5  ;;  %v6204_v17 = vrot.slane %v6165_v35, %v5379_v26 }
 0x125   : > { %2521 = vrot.lane.b32.xlu1 %v6174_v41, %s5187_s18  ;;  %v2243_v41 = vcombine.high %v6049_v62, %v6049_v62  ;;  %v8298_v18 = vunpack.i.l.bf16 %v5660_v4  ;;  %v8300_v19 = vunpack.i.h.bf16 %v5681_v13  ;;  %v6219_v5 = vrot.slane %v2194_v51, %v5379_v26 }
 0x126   : > { %v6199_v33 = vmul.f32 %v8296_v55, %v5630_v39  ;;  %v2292_v47 = vcombine.high %v6083_v24, %v6083_v24  ;;  %v797_v4 = vadd.f32 %v5697_v22, %v777_v56  ;;  %v8304_v51 = vunpack.i.h.bf16 %v5714_v11 }
 0x127   : > { %v6211_v32 = vmul.f32 %v8298_v18, %v5630_v39  ;;  %v6216_v55 = vmul.f32 %v8300_v19, %v5630_v39  ;;  %v795_v18 = vadd.f32 %v5697_v22, %v775_v49  ;;  %v8305_v24 = vunpack.i.l.bf16 %v5714_v11 }
 0x128   : > { %8297 = vst [vmem:[#allocation100_spill] sm:$0xff] %v6199_v33  ;;  %v8302_v33 = vunpack.i.l.bf16 %v5681_v13  ;;  %2523 = vrot.lane.b32.xlu0 %v6204_v17, %s5187_s18  ;;  %v6236_v19 = vmul.f32 %v8304_v51, %v5630_v39  ;;  %v8103_v22 = vunpack.i.h.bf16 %v5754_v63  ;;  %v798_v49 = vadd.f32 %v5702_v9, %v778_v43 }
 0x129   : > { %8299 = vst [vmem:[#allocation101_spill] sm:$0xff] %v6211_v32  ;;  %8301 = vst [vmem:[#allocation102_spill] sm:$0xff] %v6216_v55  ;;  %v796_v32 = vadd.f32 %v5702_v9, %v776_v20  ;;  %v6241_v13 = vmul.f32 %v8305_v24, %v5630_v39  ;;  %v5023_v55 = vunpack.i.l.bf16 %v5022_v52  ;;  %2477 = vrot.lane.b32.xlu1 %v6219_v5, %s5187_s18 }
 0x12a   : > { %v6226_v62 = vmul.f32 %v8302_v33, %v5630_v39  ;;  %v5024_v33 = vunpack.i.h.bf16 %v5022_v52  ;;  %v6248_v20 = vrot.slane %v2243_v41, %v5379_v26  ;;  %v2341_v56 = vcombine.high %v6131_v30, %v6131_v30 }
 0x12b   : > { %v2149_v24 = vcombine.high %v6018_v34, %v6018_v34  ;;  %v6256_v52 = vrot.slane %v2292_v47, %v5379_v26  ;;  %v2196_v11 = vcombine.high %v6055_v7, %v6055_v7  ;;  %v2198_v9 = vcombine.high %v6022_v29, %v6022_v29 }
 0x12c   : > { %8303 = vst [vmem:[#allocation103_spill] sm:$0xff] %v6226_v62  ;;  %8306 = vst [vmem:[#allocation104_spill] sm:$0xff] %v6248_v20  ;;  %v1119_v41 = vadd.f32 %v6016_v28, %v795_v18  ;;  %v1120_v43 = vadd.f32 %v6025_v31, %v796_v32  ;;  %v1121_v30 = vadd.f32 %v6008_v58, %v797_v4  ;;  %2493 = vrot.lane.b32.xlu0 %v6248_v20, %s5187_s18 }
 0x12d   : > { %v1437_v34 = vmul.f32 %v5024_v33, %v5752_v45  ;;  %v1438_v47 = vmul.f32 %v5024_v33, %v5768_v36  ;;  %v1435_v51 = vmul.f32 %v5023_v55, %v5752_v45  ;;  %v1436_v7 = vmul.f32 %v5023_v55, %v5768_v36  ;;  %2509 = vrot.lane.b32.xlu1 %v6256_v52, %s5187_s18 }
 0x12e   : > { %v2247_v28 = vcombine.high %v6035_v57, %v6035_v57  ;;  %v1122_v32 = vadd.f32 %v6013_v40, %v798_v49  ;;  %v6277_v4 = vrot.slane %v2341_v56, %v5379_v26  ;;  %v2245_v58 = vcombine.high %v6073_v14, %v6073_v14 }
 0x12f   : > { %v2163_v29 = vrot.slane %v2149_v24, %v5737_v50  ;;  %v2296_v45 = vcombine.high %v6064_v15, %v6064_v15  ;;  %v6285_v36 = vrot.slane %v2196_v11, %v5379_v26  ;;  %v2294_v31 = vcombine.high %v6114_v16, %v6114_v16  ;;  %v6311_v24 = vpop.permute.xlu1 %5031 }
 0x130   : > { %8307 = vst [vmem:[#allocation105_spill] sm:$0xff] %v6277_v4  ;;  %v6292_v40 = vmul.f32 %v8103_v22, %v5630_v39  ;;  %2525 = vrot.lane.b32.xlu0 %v6277_v4, %s5187_s18  ;;  %v2212_v57 = vrot.slane %v2198_v9, %v5737_v50  ;;  %v6298_v14 = vrot.slane %v1575_v38, %v5737_v50  ;;  %v8309_v33 = vunpack.i.l.bf16 %v5754_v63 }
 0x131   : > { %v6301_v15 = vrot.slane %v1625_v46, %v5737_v50  ;;  %v1443_v11 = vadd.f32 %v1435_v51, %v1119_v41  ;;  %v1444_v55 = vadd.f32 %v1436_v7, %v1120_v43  ;;  %v1445_v18 = vadd.f32 %v1437_v34, %v1121_v30  ;;  %2479 = vrot.lane.b32.xlu1 %v6285_v36, %s5187_s18 }
 0x132   : > { %8308 = vst [vmem:[#allocation106_spill] sm:$0xff] %v6292_v40  ;;  %v1446_v16 = vadd.f32 %v1438_v47, %v1122_v32  ;;  %v6308_v49 = vmul.f32 %v8309_v33, %v5630_v39  ;;  %v2261_v56 = vrot.slane %v2247_v28, %v5737_v50  ;;  %8311 = vst [vmem:[#allocation108_spill] sm:$0xff] %v6311_v24 }
 0x133   : > { %v6314_v38 = vrot.slane %v2245_v58, %v5379_v26  ;;  %v2343_v46 = vcombine.high %v6165_v35, %v6165_v35  ;;  %v2310_v51 = vrot.slane %v2296_v45, %v5737_v50  ;;  %v6320_v9 = vrot.slane %v2294_v31, %v5379_v26 }
 0x134   : > { %8310 = vst [vmem:[#allocation107_spill] sm:$0xff] %v6308_v49  ;;  %v2179_v41 = vrot.slane %v2163_v29, %v5737_v50  ;;  %v2165_v43 = vcombine.high %v2163_v29, %v2163_v29  ;;  %v6327_v30 = vcombine.high %v6169_v0, %v6169_v0  ;;  %v6331_v34 = vcombine.high %v6192_v54, %v6192_v54 }
 0x135   : > { %8312 = vst [vmem:[#allocation109_spill] sm:$0xff] %v6314_v38  ;;  %8313 = vst [vmem:[#allocation110_spill] sm:$0xff] %v6320_v9  ;;  %2495 = vrot.lane.b32.xlu0 %v6314_v38, %s5187_s18  ;;  %v6335_v35 = vcombine.high %v6298_v14, %v6298_v14  ;;  %v6339_v47 = vcombine.high %v6301_v15, %v6301_v15  ;;  %v1459_v7 = vcombine.low %v1443_v11, %v1444_v55 }
 0x136   : > { %v1509_v28 = vcombine.low %v1445_v18, %v1446_v16  ;;  %2511 = vrot.lane.b32.xlu1 %v6320_v9, %s5187_s18  ;;  %v2228_v58 = vrot.slane %v2212_v57, %v5737_v50  ;;  %v6346_v29 = vrot.slane %v2343_v46, %v5379_v26  ;;  %v2277_v45 = vrot.slane %v2261_v56, %v5737_v50 }
 0x137   : > { %8314 = vst [vmem:[#allocation111_spill] sm:$0xff] %v6335_v35  ;;  %v2214_v31 = vcombine.high %v2212_v57, %v2212_v57  ;;  %v2263_v33 = vcombine.high %v2261_v56, %v2261_v56  ;;  %v6351_v63 = vrot.slane %v2179_v41, %v5379_v26  ;;  %v2193_v40 = vrot.slane %v2165_v43, %v5737_v50 }
 0x138   : > { %8315 = vst [vmem:[#allocation112_spill] sm:$0xff] %v6346_v29  ;;  %v2312_v32 = vcombine.high %v2310_v51, %v2310_v51  ;;  %v1460_v62 = vcombine.high %v1443_v11, %v1444_v55  ;;  %v1510_v49 = vcombine.high %v1445_v18, %v1446_v16  ;;  %v2326_v46 = vrot.slane %v2310_v51, %v5737_v50 }
 0x139   : > { %2527 = vrot.lane.b32.xlu0 %v6346_v29, %s5187_s18  ;;  %v2195_v9 = vcombine.high %v2179_v41, %v2179_v41  ;;  %v1467_v4 = vrot.slane %v1459_v7, %v5737_v50  ;;  %v1517_v57 = vrot.slane %v1509_v28, %v5737_v50  ;;  %v8316_v56 = vunpack.i.h.bf16 %v6311_v24 }
 0x13a   : > { %2481 = vrot.lane.b32.xlu1 %v6351_v63, %s5187_s18  ;;  %v2244_v11 = vcombine.high %v2228_v58, %v2228_v58  ;;  %v6367_v55 = vrot.slane %v2228_v58, %v5379_v26  ;;  %v2242_v18 = vrot.slane %v2214_v31, %v5737_v50  ;;  %v2291_v16 = vrot.slane %v2263_v33, %v5737_v50 }
 0x13b   : > { %v6362_v22 = vmul.f32 %v8316_v56, %v5630_v39  ;;  %v2293_v51 = vcombine.high %v2277_v45, %v2277_v45  ;;  %v8319_v41 = vunpack.i.l.bf16 %v6311_v24  ;;  %v6377_v7 = vrot.slane %v2277_v45, %v5379_v26 }
 0x13c   : > { %8318 = vst [vmem:[#allocation114_spill] sm:$0xff] %v6367_v55  ;;  %v2197_v28 = vcombine.high %v2193_v40, %v2193_v40  ;;  %v2340_v56 = vrot.slane %v2312_v32, %v5737_v50  ;;  %v1524_v58 = vrot.slane %v1510_v49, %v5737_v50  ;;  %v6385_v31 = vrot.slane %v2326_v46, %v5379_v26 }
 0x13d   : > { %8317 = vst [vmem:[#allocation113_spill] sm:$0xff] %v6362_v22  ;;  %v6374_v43 = vmul.f32 %v8319_v41, %v5630_v39  ;;  %8321 = vst [vmem:[#allocation116_spill] sm:$0xff] %v6377_v7  ;;  %v1474_v22 = vrot.slane %v1460_v62, %v5737_v50  ;;  %2497 = vrot.lane.b32.xlu0 %v6367_v55, %s5187_s18  ;;  %v6388_v33 = vrot.slane %v2195_v9, %v5379_v26 }
 0x13e   : > { %8322 = vst [vmem:[#allocation117_spill] sm:$0xff] %v6385_v31  ;;  %2513 = vrot.lane.b32.xlu1 %v6377_v7, %s5187_s18  ;;  %v6393_v39 = vrot.slane %v2193_v40, %v5379_v26  ;;  %v6396_v32 = vrot.slane %v2244_v11, %v5379_v26  ;;  %v1475_v62 = vcombine.high %v1467_v4, %v1467_v4 }
 0x13f   : > { %8320 = vst [vmem:[#allocation115_spill] sm:$0xff] %v6374_v43  ;;  %v1525_v49 = vcombine.high %v1517_v57, %v1517_v57  ;;  %v6399_v45 = vrot.slane %v2242_v18, %v5379_v26  ;;  %v2295_v41 = vcombine.high %v2291_v16, %v2291_v16  ;;  %v6402_v24 = vrot.slane %v2291_v16, %v5379_v26 }
 0x140   : > { %v6405_v9 = vrot.slane %v2293_v51, %v5379_v26  ;;  %v6408_v55 = vrot.slane %v2340_v56, %v5379_v26  ;;  %v2342_v40 = vcombine.high %v2326_v46, %v2326_v46  ;;  %v6411_v7 = vrot.slane %v2197_v28, %v5379_v26 }
 0x141   : > { %8323 = vst [vmem:[#allocation118_spill] sm:$0xff] %v6399_v45  ;;  %8324 = vst [vmem:[#allocation119_spill] sm:$0xff] %v6402_v24  ;;  %v2246_v11 = vcombine.high %v2242_v18, %v2242_v18  ;;  %2529 = vrot.lane.b32.xlu0 %v6385_v31, %s5187_s18  ;;  %v2344_v43 = vcombine.high %v2340_v56, %v2340_v56  ;;  %v6416_v29 = vrot.slane %v1467_v4, %v5737_v50 }
 0x142   : > { %8325 = vst [vmem:[#allocation120_spill] sm:$0xff] %v6408_v55  ;;  %v1476_v16 = vcombine.high %v1474_v22, %v1474_v22  ;;  %v1526_v38 = vcombine.high %v1524_v58, %v1524_v58  ;;  %2483 = vrot.lane.b32.xlu1 %v6393_v39, %s5187_s18  ;;  %v6421_v51 = vrot.slane %v1475_v62, %v5737_v50 }
 0x143   : > { %8326 = vst [vmem:[#allocation121_spill] sm:$0xff] %v6416_v29  ;;  %v6424_v46 = vrot.slane %v1517_v57, %v5737_v50  ;;  %v6427_v18 = vrot.slane %v1525_v49, %v5737_v50  ;;  %v1576_v28 = vcombine.high %v6134_v21, %v6134_v21  ;;  %v6432_v4 = vrot.slane %v2295_v41, %v5379_v26 }
 0x144   : > { %8327 = vst [vmem:[#allocation122_spill] sm:$0xff] %v6421_v51  ;;  %v6435_v56 = vrot.slane %v1474_v22, %v5737_v50  ;;  %v6438_v31 = vrot.slane %v1524_v58, %v5737_v50  ;;  %v1626_v62 = vcombine.high %v6144_v59, %v6144_v59  ;;  %v6443_v57 = vrot.slane %v2342_v40, %v5379_v26 }
 0x145   : > { %v6446_v49 = vrot.slane %v2246_v11, %v5379_v26  ;;  %v6450_v20 = vrot.slane %v6134_v21, %v5737_v50  ;;  %v6454_v22 = vrot.slane %v6144_v59, %v5737_v50  ;;  %2499 = vrot.lane.b32.xlu0 %v6399_v45, %s5187_s18  ;;  %v6459_v58 = vrot.slane %v2344_v43, %v5379_v26 }
 0x146   : > { %v6463_v41 = vcombine.high %v6416_v29, %v6416_v29  ;;  %v6466_v40 = vrot.slane %v1476_v16, %v5737_v50  ;;  %v6469_v21 = vrot.slane %v1526_v38, %v5737_v50  ;;  %2515 = vrot.lane.b32.xlu1 %v6402_v24, %s5187_s18  ;;  %v6475_v59 = vcombine.high %v6424_v46, %v6424_v46 }
 0x147   : > { %8328 = vst [vmem:[#allocation123_spill] sm:$0xff] %v6454_v22  ;;  %v6479_v43 = vcombine.high %v6421_v51, %v6421_v51  ;;  %v6483_v11 = vcombine.high %v6427_v18, %v6427_v18  ;;  %v6486_v16 = vrot.slane %v1576_v28, %v5737_v50  ;;  %v6489_v38 = vrot.slane %v1626_v62, %v5737_v50 }
 0x148   : > { %v6493_v26 = vcombine.high %v6435_v56, %v6435_v56  ;;  %v6497_v24 = vcombine.high %v6438_v31, %v6438_v31  ;;  %v1338_v45 = vadd.f32 %v6088_v44, %v5704_v23  ;;  %v6503_v35 = vcombine.high %v6450_v20, %v6450_v20 }
 0x149   : > { %8329 = vst [vmem:[#allocation124_spill] sm:$0xff] %v6479_v43  ;;  %v6507_v28 = vcombine.high %v6454_v22, %v6454_v22  ;;  %v1666_v50 = vrot.slane %v6416_v29, %v5382_v27  ;;  %v1340_v62 = vadd.f32 %v6060_v48, %v5706_v42  ;;  %2531 = vrot.lane.b32.xlu0 %v6408_v55, %s5187_s18  ;;  %v8336_v55 = vld [vmem:[#allocation67_spill] sm:$0xff] }
 0x14a   : > { %8330 = vst [vmem:[#allocation125_spill] sm:$0xff] %v6497_v24  ;;  %8331 = vst [vmem:[#allocation126_spill] sm:$0xff] %v6503_v35  ;;  %v6517_v23 = vcombine.high %v6466_v40, %v6466_v40  ;;  %v6521_v44 = vcombine.high %v6469_v21, %v6469_v21  ;;  %v1344_v29 = vadd.f32 %v5937_v25, %v5740_v37  ;;  %2485 = vrot.lane.b32.xlu1 %v6388_v33, %s5187_s18  ;;  %v8338_v25 = vld [vmem:[#allocation40_spill] sm:$0xff] }
 0x14b   : > { %8332 = vst [vmem:[#allocation127_spill] sm:$0xff] %v6507_v28  ;;  %v1674_v28 = vrot.slane %v6421_v51, %v5382_v27  ;;  %v6531_v42 = vcombine.high %v6486_v16, %v6486_v16  ;;  %v1980_v48 = vadd.f32 %v1666_v50, %v1338_v45  ;;  %v1690_v24 = vrot.slane %v6479_v43, %v5382_v27  ;;  %v8340_v43 = vld [vmem:[#allocation41_spill] sm:$0xff] }
 0x14c   : > { %8333 = vst [vmem:[#allocation128_spill] sm:$0xff] %v6517_v23  ;;  %8334 = vst [vmem:[#allocation129_spill] sm:$0xff] %v6521_v44  ;;  %v1342_v44 = vadd.f32 %v5944_v60, %v8336_v55  ;;  %v6539_v51 = vcombine.high %v6489_v38, %v6489_v38  ;;  %v1682_v37 = vrot.slane %v6463_v41, %v5382_v27 }
 0x14d   : > { %8335 = vst [vmem:[#allocation130_spill] sm:$0xff] %v6531_v42  ;;  %v1982_v35 = vadd.f32 %v1674_v28, %v1340_v62  ;;  %v1348_v22 = vadd.f32 %v6093_v2, %v8338_v25  ;;  %v6546_v42 = vadd.f32 %v6046_v8, %v1980_v48  ;;  %v1986_v45 = vadd.f32 %v1690_v24, %v1344_v29  ;;  %v8342_v62 = vld [vmem:[#allocation14_spill] sm:$0xff] }
 0x14e   : > { %8337 = vst [vmem:[#allocation67_spill] sm:$0xff] %v6539_v51  ;;  %v1706_v50 = vrot.slane %v6466_v40, %v5382_v27  ;;  %v1346_v60 = vadd.f32 %v6100_v61, %v8340_v43  ;;  %2501 = vrot.lane.b32.xlu0 %v6396_v32, %s5187_s18  ;;  %v1984_v28 = vadd.f32 %v1682_v37, %v1342_v44  ;;  %v8344_v43 = vld [vmem:[#allocation15_spill] sm:$0xff]  ;;  %v8346_v48 = vld [vmem:[#allocation70_spill] sm:$0xff] }
 0x14f   : > { %8339 = vst [vmem:[#allocation40_spill] sm:$0xff] %v6546_v42  ;;  %v6555_v55 = vadd.f32 %v6070_v3, %v1982_v35  ;;  %v1698_v2 = vrot.slane %v6435_v56, %v5382_v27  ;;  %v1352_v8 = vadd.f32 %v6149_v53, %v8342_v62  ;;  %2517 = vrot.lane.b32.xlu1 %v6405_v9, %s5187_s18  ;;  %v8352_v62 = vld [vmem:[#allocation77_spill] sm:$0xff] }
 0x150   : > { %v6564_v24 = vadd.f32 %v6285_v36, %v1986_v45  ;;  %v1990_v61 = vadd.f32 %v1706_v50, %v1348_v22  ;;  %v1722_v29 = vrot.slane %v6517_v23, %v5382_v27  ;;  %v1350_v3 = vadd.f32 %v6154_v1, %v8344_v43  ;;  %v8348_v45 = vld [vmem:[#allocation71_spill] sm:$0xff]  ;;  %v8355_v43 = vld [vmem:[#allocation82_spill] sm:$0xff] }
 0x151   : > { %8341 = vst [vmem:[#allocation41_spill] sm:$0xff] %v6555_v55  ;;  %v6571_v35 = vadd.f32 %v6219_v5, %v1984_v28  ;;  %v1988_v44 = vadd.f32 %v1698_v2, %v1346_v60  ;;  %v1714_v53 = vrot.slane %v6493_v26, %v5382_v27  ;;  %v1356_v37 = vadd.f32 %v5949_v12, %v8346_v48  ;;  %v8350_v60 = vld [vmem:[#allocation76_spill] sm:$0xff] }
 0x152   : > { %8343 = vst [vmem:[#allocation14_spill] sm:$0xff] %v6564_v24  ;;  %v6578_v36 = vadd.f32 %v6393_v39, %v1990_v61  ;;  %v1994_v22 = vadd.f32 %v1722_v29, %v1352_v8  ;;  %v1738_v25 = vrot.slane %v6427_v18, %v5382_v27  ;;  %v1354_v1 = vadd.f32 %v5954_v10, %v8348_v45 }
 0x153   : > { %8345 = vst [vmem:[#allocation15_spill] sm:$0xff] %v6571_v35  ;;  %2533 = vrot.lane.b32.xlu0 %v6443_v57, %s5187_s18  ;;  %v6587_v5 = vadd.f32 %v6351_v63, %v1988_v44  ;;  %v1992_v50 = vadd.f32 %v1714_v53, %v1350_v3  ;;  %v1730_v12 = vrot.slane %v6424_v46, %v5382_v27  ;;  %v8353_v63 = vld [vmem:[#allocation88_spill] sm:$0xff]  ;;  %v8356_v3 = vld [vmem:[#allocation91_spill] sm:$0xff]  ;;  %v8357_v53 = vld [vmem:[#allocation94_spill] sm:$0xff] }
 0x154   : > { %8347 = vst [vmem:[#allocation70_spill] sm:$0xff] %v6578_v36  ;;  %v1372_v39 = vadd.f32 %v5969_v6, %v8350_v60  ;;  %2487 = vrot.lane.b32.xlu1 %v6411_v7, %s5187_s18  ;;  %v6596_v28 = vadd.f32 %v6411_v7, %v1994_v22  ;;  %v1998_v10 = vadd.f32 %v1738_v25, %v1356_v37  ;;  %v8359_v22 = vld [vmem:[#allocation83_spill] sm:$0xff]  ;;  %v8360_v25 = vld [vmem:[#allocation92_spill] sm:$0xff] }
 0x155   : > { %8349 = vst [vmem:[#allocation71_spill] sm:$0xff] %v6587_v5  ;;  %v1802_v2 = vrot.slane %v6298_v14, %v5382_v27  ;;  %v1370_v8 = vadd.f32 %v8353_v63, %v8352_v62  ;;  %v6603_v61 = vadd.f32 %v6388_v33, %v1992_v50  ;;  %v1996_v29 = vadd.f32 %v1730_v12, %v1354_v1  ;;  %v8361_v33 = vld [vmem:[#allocation93_spill] sm:$0xff]  ;;  %v8363_v60 = vld [vmem:[#allocation27_spill] sm:$0xff] }
 0x156   : > { %8351 = vst [vmem:[#allocation76_spill] sm:$0xff] %v6596_v28  ;;  %v1794_v6 = vrot.slane %v6169_v0, %v5382_v27  ;;  %v1388_v44 = vadd.f32 %v8356_v3, %v8355_v43  ;;  %v6610_v7 = vadd.f32 %v8357_v53, %v1998_v10  ;;  %v1866_v37 = vrot.slane %v6301_v15, %v5382_v27  ;;  %v8366_v43 = vld [vmem:[#allocation19_spill] sm:$0xff] }
 0x157   : > { %8354 = vst [vmem:[#allocation77_spill] sm:$0xff] %v6603_v61  ;;  %v2014_v48 = vadd.f32 %v1802_v2, %v1372_v39  ;;  %v1386_v45 = vadd.f32 %v8360_v25, %v8359_v22  ;;  %2503 = vrot.lane.b32.xlu0 %v6446_v49, %s5187_s18  ;;  %v6619_v1 = vadd.f32 %v8361_v33, %v1996_v29  ;;  %v8364_v39 = vld [vmem:[#allocation98_spill] sm:$0xff]  ;;  %v8367_v29 = vld [vmem:[#allocation101_spill] sm:$0xff]  ;;  %v8371_v25 = vld [vmem:[#allocation100_spill] sm:$0xff] }
 0x158   : > { %8358 = vst [vmem:[#allocation88_spill] sm:$0xff] %v6610_v7  ;;  %v2012_v50 = vadd.f32 %v1794_v6, %v1370_v8  ;;  %v1858_v12 = vrot.slane %v6192_v54, %v5382_v27  ;;  %v1374_v10 = vadd.f32 %v6241_v13, %v8363_v60  ;;  %2519 = vrot.lane.b32.xlu1 %v6432_v4, %s5187_s18  ;;  %v8368_v8 = vld [vmem:[#allocation97_spill] sm:$0xff]  ;;  %v8370_v22 = vld [vmem:[#allocation18_spill] sm:$0xff]  ;;  %v8421_v7 = vld [vmem:[#allocation119_spill] sm:$0xff] }
 0x159   : > { %8362 = vst [vmem:[#allocation82_spill] sm:$0xff] %v6619_v1  ;;  %v6628_v2 = vadd.f32 %v8364_v39, %v2014_v48  ;;  %v2030_v62 = vadd.f32 %v1866_v37, %v1388_v44  ;;  %v1810_v63 = vrot.slane %v6327_v30, %v5382_v27  ;;  %v1358_v3 = vadd.f32 %v8367_v29, %v8366_v43  ;;  %v8375_v43 = vld [vmem:[#allocation26_spill] sm:$0xff]  ;;  %v8416_v1 = vld [vmem:[#allocation120_spill] sm:$0xff] }
 0x15a   : > { %v6635_v6 = vadd.f32 %v8368_v8, %v2012_v50  ;;  %v2028_v53 = vadd.f32 %v1858_v12, %v1386_v45  ;;  %v1746_v13 = vrot.slane %v6475_v59, %v5382_v27  ;;  %v1360_v33 = vadd.f32 %v8371_v25, %v8370_v22  ;;  %v8373_v45 = vld [vmem:[#allocation99_spill] sm:$0xff]  ;;  %v8379_v25 = vld [vmem:[#allocation104_spill] sm:$0xff] }
 0x15b   : > { %8365 = vst [vmem:[#allocation91_spill] sm:$0xff] %v6628_v2  ;;  %v6642_v48 = vadd.f32 %v6204_v17, %v2030_v62  ;;  %v2016_v44 = vadd.f32 %v1810_v63, %v1374_v10  ;;  %v1754_v37 = vrot.slane %v6483_v11, %v5382_v27  ;;  %v1874_v60 = vrot.slane %v6331_v34, %v5382_v27  ;;  %v8377_v63 = vld [vmem:[#allocation57_spill] sm:$0xff]  ;;  %v8378_v8 = vld [vmem:[#allocation111_spill] sm:$0xff] }
 0x15c   : > { %8369 = vst [vmem:[#allocation94_spill] sm:$0xff] %v6635_v6  ;;  %2535 = vrot.lane.b32.xlu0 %v6459_v58, %s5187_s18  ;;  %v6651_v50 = vadd.f32 %v8373_v45, %v2028_v53  ;;  %v2000_v12 = vadd.f32 %v1746_v13, %v1358_v3  ;;  %v1882_v39 = vrot.slane %v6339_v47, %v5382_v27  ;;  %v8381_v53 = vld [vmem:[#allocation58_spill] sm:$0xff]  ;;  %v8382_v13 = vld [vmem:[#allocation80_spill] sm:$0xff] }
 0x15d   : > { %8372 = vst [vmem:[#allocation83_spill] sm:$0xff] %v6642_v48  ;;  %v1376_v17 = vadd.f32 %v6236_v19, %v8375_v43  ;;  %v6658_v10 = vadd.f32 %v6256_v52, %v2016_v44  ;;  %v2002_v62 = vadd.f32 %v1754_v37, %v1360_v33  ;;  %v2032_v29 = vadd.f32 %v1874_v60, %v8377_v63  ;;  %v8383_v45 = vld [vmem:[#allocation90_spill] sm:$0xff]  ;;  %v8384_v43 = vld [vmem:[#allocation109_spill] sm:$0xff]  ;;  %v8389_v63 = vld [vmem:[#allocation87_spill] sm:$0xff] }
 0x15e   : > { %8374 = vst [vmem:[#allocation92_spill] sm:$0xff] %v6651_v50  ;;  %v1818_v22 = vrot.slane %v8378_v8, %v5382_v27  ;;  %v6664_v48 = vadd.f32 %v8379_v25, %v2000_v12  ;;  %v2034_v3 = vadd.f32 %v1882_v39, %v8381_v53  ;;  %v1378_v50 = vadd.f32 %v8383_v45, %v8382_v13  ;;  %v8386_v33 = vld [vmem:[#allocation105_spill] sm:$0xff]  ;;  %v8388_v60 = vld [vmem:[#allocation74_spill] sm:$0xff]  ;;  %v8390_v12 = vld [vmem:[#allocation112_spill] sm:$0xff] }
 0x15f   : > { %8376 = vst [vmem:[#allocation93_spill] sm:$0xff] %v6658_v10  ;;  %v1826_v19 = vrot.slane %v6450_v20, %v5382_v27  ;;  %v6672_v52 = vadd.f32 %v8384_v43, %v2002_v62  ;;  %v6675_v44 = vadd.f32 %v8386_v33, %v2032_v29  ;;  %v1362_v10 = vadd.f32 %v8389_v63, %v8388_v60  ;;  %v8392_v13 = vld [vmem:[#allocation73_spill] sm:$0xff]  ;;  %v8393_v45 = vld [vmem:[#allocation86_spill] sm:$0xff]  ;;  %v8398_v33 = vld [vmem:[#allocation123_spill] sm:$0xff] }
 0x160   : > { %8380 = vst [vmem:[#allocation27_spill] sm:$0xff] %v6664_v48  ;;  %v2018_v37 = vadd.f32 %v1818_v22, %v1376_v17  ;;  %v6680_v25 = vadd.f32 %v8390_v12, %v2034_v3  ;;  %v1762_v53 = vrot.slane %v6438_v31, %v5382_v27  ;;  %v1364_v48 = vadd.f32 %v8393_v45, %v8392_v13  ;;  %v8394_v6 = vld [vmem:[#allocation110_spill] sm:$0xff]  ;;  %v8396_v17 = vld [vmem:[#allocation85_spill] sm:$0xff]  ;;  %v8397_v22 = vld [vmem:[#allocation115_spill] sm:$0xff] }
 0x161   : > { %8385 = vst [vmem:[#allocation98_spill] sm:$0xff] %v6672_v52  ;;  %8387 = vst [vmem:[#allocation19_spill] sm:$0xff] %v6675_v44  ;;  %v2020_v39 = vadd.f32 %v1826_v19, %v1378_v50  ;;  %v1770_v29 = vrot.slane %v6469_v21, %v5382_v27  ;;  %v1394_v43 = vadd.f32 %v8397_v22, %v8396_v17  ;;  %v8399_v60 = vld [vmem:[#allocation116_spill] sm:$0xff]  ;;  %v8402_v12 = vld [vmem:[#allocation113_spill] sm:$0xff] }
 0x162   : > { %8391 = vst [vmem:[#allocation101_spill] sm:$0xff] %v6680_v25  ;;  %v6687_v62 = vadd.f32 %v8394_v6, %v2018_v37  ;;  %v1890_v3 = vrot.slane %v8398_v33, %v5382_v27  ;;  %v2004_v19 = vadd.f32 %v1762_v53, %v1362_v10  ;;  %v8401_v63 = vld [vmem:[#allocation84_spill] sm:$0xff]  ;;  %v1898_v6 = vrot.slane %v6489_v38, %v5382_v27  ;;  %v8403_v45 = vld [vmem:[#allocation79_spill] sm:$0xff]  ;;  %v8405_v22 = vld [vmem:[#allocation114_spill] sm:$0xff] }
 0x163   : > { %v6696_v50 = vadd.f32 %v8399_v60, %v2020_v39  ;;  %v1396_v25 = vadd.f32 %v8402_v12, %v8401_v63  ;;  %v2006_v37 = vadd.f32 %v1770_v29, %v1364_v48  ;;  %v1834_v17 = vrot.slane %v6486_v16, %v5382_v27  ;;  %v8407_v60 = vld [vmem:[#allocation31_spill] sm:$0xff]  ;;  %v8409_v63 = vld [vmem:[#allocation126_spill] sm:$0xff]  ;;  %v8412_v48 = vld [vmem:[#allocation117_spill] sm:$0xff] }
 0x164   : > { %8395 = vst [vmem:[#allocation97_spill] sm:$0xff] %v6687_v62  ;;  %v2036_v13 = vadd.f32 %v1890_v3, %v1394_v43  ;;  %v8404_v62 = vld [vmem:[#allocation89_spill] sm:$0xff]  ;;  %v6707_v52 = vadd.f32 %v8405_v22, %v2004_v19  ;;  %v8408_v10 = vld [vmem:[#allocation107_spill] sm:$0xff]  ;;  %v1842_v12 = vrot.slane %v8409_v63, %v5382_v27 }
 0x165   : > { %8400 = vst [vmem:[#allocation18_spill] sm:$0xff] %v6696_v50  ;;  %v1380_v44 = vadd.f32 %v8404_v62, %v8403_v45  ;;  %v2038_v39 = vadd.f32 %v1898_v6, %v1396_v25  ;;  %v1382_v53 = vadd.f32 %v8408_v10, %v8407_v60  ;;  %v8410_v50 = vld [vmem:[#allocation118_spill] sm:$0xff]  ;;  %v8414_v43 = vld [vmem:[#allocation23_spill] sm:$0xff]  ;;  %v8418_v6 = vld [vmem:[#allocation125_spill] sm:$0xff] }
 0x166   : > { %8406 = vst [vmem:[#allocation100_spill] sm:$0xff] %v6707_v52  ;;  %v6714_v2 = vadd.f32 %v8410_v50, %v2006_v37  ;;  %v6717_v29 = vadd.f32 %v8412_v48, %v2036_v13  ;;  %v8415_v3 = vld [vmem:[#allocation103_spill] sm:$0xff]  ;;  %v1778_v22 = vrot.slane %v8418_v6, %v5382_v27  ;;  %v8419_v60 = vld [vmem:[#allocation22_spill] sm:$0xff]  ;;  %v8423_v37 = vld [vmem:[#allocation129_spill] sm:$0xff] }
 0x167   : > { %v2022_v62 = vadd.f32 %v1834_v17, %v1380_v44  ;;  %v1366_v45 = vadd.f32 %v8415_v3, %v8414_v43  ;;  %v6722_v19 = vadd.f32 %v8416_v1, %v2038_v39  ;;  %v2024_v25 = vadd.f32 %v1842_v12, %v1382_v53  ;;  %v8420_v10 = vld [vmem:[#allocation102_spill] sm:$0xff]  ;;  %v8424_v44 = vld [vmem:[#allocation35_spill] sm:$0xff]  ;;  %v8425_v17 = vld [vmem:[#allocation96_spill] sm:$0xff] }
 0x168   : > { %8411 = vst [vmem:[#allocation99_spill] sm:$0xff] %v6714_v2  ;;  %8413 = vst [vmem:[#allocation26_spill] sm:$0xff] %v6717_v29  ;;  %v1368_v52 = vadd.f32 %v8420_v10, %v8419_v60  ;;  %v1786_v13 = vrot.slane %v8423_v37, %v5382_v27  ;;  %v1398_v48 = vadd.f32 %v8425_v17, %v8424_v44  ;;  %v8426_v43 = vld [vmem:[#allocation127_spill] sm:$0xff]  ;;  %v8428_v12 = vld [vmem:[#allocation34_spill] sm:$0xff] }
 0x169   : > { %8417 = vst [vmem:[#allocation57_spill] sm:$0xff] %v6722_v19  ;;  %v6729_v50 = vadd.f32 %v8421_v7, %v2022_v62  ;;  %v1906_v1 = vrot.slane %v8426_v43, %v5382_v27  ;;  %v6738_v39 = vadd.f32 %v6405_v9, %v2024_v25  ;;  %v2008_v53 = vadd.f32 %v1778_v22, %v1366_v45  ;;  %v8429_v3 = vld [vmem:[#allocation95_spill] sm:$0xff]  ;;  %v8430_v10 = vld [vmem:[#allocation30_spill] sm:$0xff] }
 0x16a   : > { %v1400_v19 = vadd.f32 %v8429_v3, %v8428_v12  ;;  %v1914_v7 = vrot.slane %v6539_v51, %v5382_v27  ;;  %v2010_v62 = vadd.f32 %v1786_v13, %v1368_v52  ;;  %v8432_v44 = vld [vmem:[#allocation130_spill] sm:$0xff]  ;;  %v8443_v12 = vld [vmem:[#allocation7_spill] sm:$0xff] }
 0x16b   : > { %8422 = vst [vmem:[#allocation111_spill] sm:$0xff] %v6729_v50  ;;  %8427 = vst [vmem:[#allocation104_spill] sm:$0xff] %v6738_v39  ;;  %v2040_v60 = vadd.f32 %v1906_v1, %v1398_v48  ;;  %v8431_v50 = vld [vmem:[#allocation106_spill] sm:$0xff]  ;;  %v1850_v17 = vrot.slane %v8432_v44, %v5382_v27  ;;  %v6749_v2 = vadd.f32 %v6396_v32, %v2008_v53  ;;  %v8439_v48 = vld [vmem:[#allocation3_spill] sm:$0xff]  ;;  %v8444_v3 = vunpack.i.l.bf16 %v8443_v12 }
 0x16c   : > { %v1384_v29 = vadd.f32 %v8431_v50, %v8430_v10  ;;  %v2042_v9 = vadd.f32 %v1914_v7, %v1400_v19  ;;  %v6752_v45 = vadd.f32 %v6446_v49, %v2010_v62  ;;  %v8438_v50 = vld [vmem:[#allocation8_spill] sm:$0xff]  ;;  %v934_v32 = vrot.slane %v8439_v48, %v5382_v27 }
 0x16d   : > { %8433 = vst [vmem:[#allocation58_spill] sm:$0xff] %v6749_v2  ;;  %v6755_v25 = vadd.f32 %v6443_v57, %v2040_v60  ;;  %v657_v1 = vrot.slane %v8439_v48, %v8438_v50  ;;  %v8440_v57 = vld [vmem:[#allocation53_spill] sm:$0xff]  ;;  %v8458_v39 = vld [vmem:[#allocation44_spill] sm:$0xff] }
 0x16e   : > { %8434 = vst [vmem:[#allocation80_spill] sm:$0xff] %v6752_v45  ;;  %v2026_v22 = vadd.f32 %v1850_v17, %v1384_v29  ;;  %v6758_v52 = vadd.f32 %v6459_v58, %v2042_v9  ;;  %v6771_v49 = vrot.slane %v934_v32, %v5382_v27  ;;  %v1258_v29 = vrot.slane %v8439_v48, %v8440_v57  ;;  %v8441_v58 = vld [vmem:[#allocation62_spill] sm:$0xff] }
 0x16f   : > { %8435 = vst [vmem:[#allocation90_spill] sm:$0xff] %v6755_v25  ;;  %v6768_v19 = vrot.slane %v657_v1, %v8438_v50  ;;  %v8442_v53 = vunpack.i.l.bf16 %v8441_v58  ;;  %v8445_v62 = vunpack.i.h.bf16 %v8441_v58  ;;  %v8446_v9 = vld [vmem:[#allocation66_spill] sm:$0xff]  ;;  %v8448_v1 = vunpack.i.h.bf16 %v8443_v12 }
 0x170   : > { %8436 = vst [vmem:[#allocation109_spill] sm:$0xff] %v6758_v52  ;;  %v6761_v13 = vadd.f32 %v6432_v4, %v2026_v22  ;;  %v949_v7 = vmul.f32 %v8444_v3, %v6771_v49  ;;  %v6785_v10 = vrot.slane %v1258_v29, %v8440_v57  ;;  %v8447_v22 = vunpack.i.l.bf16 %v8446_v9  ;;  %v8451_v52 = vld [vmem:[#allocation55_spill] sm:$0xff]  ;;  %v8453_v29 = vld [vmem:[#allocation72_spill] sm:$0xff] }
 0x171   : > { %v672_v4 = vmul.f32 %v8442_v53, %v6768_v19  ;;  %v674_v60 = vmul.f32 %v8445_v62, %v6768_v19  ;;  %v951_v32 = vmul.f32 %v8448_v1, %v6771_v49  ;;  %v8449_v53 = vld [vmem:[#allocation38_spill] sm:$0xff]  ;;  %v8452_v58 = vunpack.i.l.bf16 %v8451_v52 }
 0x172   : > { %8437 = vst [vmem:[#allocation105_spill] sm:$0xff] %v6761_v13  ;;  %v688_v48 = vmul.f32 %v8447_v22, %v6768_v19  ;;  %v8450_v13 = vunpack.i.l.bf16 %v8449_v53  ;;  %v8454_v25 = vunpack.i.l.bf16 %v8453_v29  ;;  %v8456_v12 = vunpack.i.h.bf16 %v8446_v9 }
 0x173   : > { %v1013_v17 = vadd.f32 %v949_v7, %v672_v4  ;;  %v1273_v62 = vmul.f32 %v8452_v58, %v6785_v10  ;;  %v8455_v7 = vld [vmem:[#allocation121_spill] sm:$0xff]  ;;  %v1015_v22 = vadd.f32 %v951_v32, %v674_v60  ;;  %v8457_v2 = vunpack.i.h.bf16 %v8449_v53 }
 0x174   : > { %v965_v3 = vmul.f32 %v8450_v13, %v6771_v49  ;;  %v704_v4 = vmul.f32 %v8454_v25, %v6768_v19  ;;  %v1662_v45 = vrot.slane %v8455_v7, %v8438_v50  ;;  %v690_v1 = vmul.f32 %v8456_v12, %v6768_v19  ;;  %v8460_v25 = vld [vmem:[#allocation43_spill] sm:$0xff] }
 0x175   : > { %v967_v13 = vmul.f32 %v8457_v2, %v6771_v49  ;;  %v8459_v61 = vunpack.i.l.bf16 %v8458_v39  ;;  %v1337_v5 = vadd.f32 %v1273_v62, %v1013_v17  ;;  %v8461_v36 = vunpack.i.l.bf16 %v8460_v25  ;;  %v8464_v2 = vld [vmem:[#allocation122_spill] sm:$0xff] }
 0x176   : > { %v1029_v28 = vadd.f32 %v965_v3, %v688_v48  ;;  %v8462_v60 = vunpack.i.h.bf16 %v8451_v52  ;;  %v8463_v9 = vunpack.i.h.bf16 %v8453_v29  ;;  %v1670_v53 = vrot.slane %v8464_v2, %v8438_v50 }
 0x177   : > { %v981_v58 = vmul.f32 %v8459_v61, %v6771_v49  ;;  %v1289_v35 = vmul.f32 %v8461_v36, %v6785_v10  ;;  %v8465_v61 = vld [vmem:[#allocation78_spill] sm:$0xff]  ;;  %v6827_v3 = vadd.f32 %v1662_v45, %v1337_v5  ;;  %v1726_v36 = vrot.slane %v6424_v46, %v8438_v50  ;;  %v8472_v5 = vld [vmem:[#allocation48_spill] sm:$0xff] }
 0x178   : > { %v1275_v32 = vmul.f32 %v8462_v60, %v6785_v10  ;;  %v706_v7 = vmul.f32 %v8463_v9, %v6768_v19  ;;  %v8466_v48 = vunpack.i.l.bf16 %v8465_v61  ;;  %v8468_v52 = vunpack.i.h.bf16 %v8460_v25 }
 0x179   : > { %v1045_v12 = vadd.f32 %v981_v58, %v704_v4  ;;  %8467 = vst [vmem:[#allocation74_spill] sm:$0xff] %v6827_v3  ;;  %v8469_v29 = vunpack.i.h.bf16 %v8458_v39  ;;  %v1031_v9 = vadd.f32 %v967_v13, %v690_v1  ;;  %v8470_v58 = vld [vmem:[#allocation47_spill] sm:$0xff]  ;;  %v8473_v45 = vunpack.i.l.bf16 %v8472_v5 }
 0x17a   : > { %v720_v17 = vmul.f32 %v8466_v48, %v6768_v19  ;;  %v1291_v62 = vmul.f32 %v8468_v52, %v6785_v10  ;;  %v1339_v4 = vadd.f32 %v1275_v32, %v1015_v22  ;;  %v8471_v24 = vunpack.i.l.bf16 %v8470_v58 }
 0x17b   : > { %v983_v60 = vmul.f32 %v8469_v29, %v6771_v49  ;;  %v997_v55 = vmul.f32 %v8473_v45, %v6771_v49  ;;  %v1353_v42 = vadd.f32 %v1289_v35, %v1029_v28  ;;  %v8474_v52 = vunpack.i.h.bf16 %v8465_v61 }
 0x17c   : > { %v1305_v48 = vmul.f32 %v8471_v24, %v6785_v10  ;;  %v6847_v29 = vadd.f32 %v1670_v53, %v1339_v4  ;;  %v1734_v22 = vrot.slane %v6427_v18, %v8438_v50  ;;  %v8477_v35 = vunpack.i.h.bf16 %v8470_v58  ;;  %v8479_v18 = vld [vmem:[#allocation51_spill] sm:$0xff] }
 0x17d   : > { %v1047_v25 = vadd.f32 %v983_v60, %v706_v7  ;;  %v722_v39 = vmul.f32 %v8474_v52, %v6768_v19  ;;  %v1061_v1 = vadd.f32 %v997_v55, %v720_v17  ;;  %v6852_v24 = vadd.f32 %v1726_v36, %v1353_v42  ;;  %v8481_v42 = vld [vmem:[#allocation64_spill] sm:$0xff]  ;;  %v8486_v52 = vld [vmem:[#allocation13_spill] sm:$0xff] }
 0x17e   : > { %8475 = vst [vmem:[#allocation87_spill] sm:$0xff] %v6847_v29  ;;  %v1369_v32 = vadd.f32 %v1305_v48, %v1045_v12  ;;  %v1307_v28 = vmul.f32 %v8477_v35, %v6785_v10  ;;  %v8478_v7 = vunpack.i.h.bf16 %v8472_v5  ;;  %v8480_v55 = vunpack.i.l.bf16 %v8479_v18  ;;  %v8483_v48 = vld [vmem:[#allocation12_spill] sm:$0xff] }
 0x17f   : > { %8476 = vst [vmem:[#allocation112_spill] sm:$0xff] %v6852_v24  ;;  %v8482_v36 = vunpack.i.l.bf16 %v8481_v42  ;;  %v1790_v58 = vrot.slane %v6169_v0, %v8438_v50  ;;  %v8484_v5 = vunpack.i.l.bf16 %v8483_v48  ;;  %v8542_v23 = vunpack.i.h.bf16 %v8486_v52 }
 0x180   : > { %v999_v61 = vmul.f32 %v8478_v7, %v6771_v49  ;;  %v1321_v17 = vmul.f32 %v8480_v55, %v6785_v10  ;;  %v8488_v7 = vld [vmem:[#allocation36_spill] sm:$0xff] }
 0x181   : > { %v676_v12 = vmul.f32 %v8482_v36, %v6768_v19  ;;  %v692_v45 = vmul.f32 %v8484_v5, %v6768_v19  ;;  %v6883_v0 = vadd.f32 %v1790_v58, %v1369_v32 }
 0x182   : > { %v1385_v5 = vadd.f32 %v1321_v17, %v1061_v1  ;;  %v1854_v17 = vrot.slane %v6192_v54, %v8438_v50  ;;  %v1678_v54 = vrot.slane %v6463_v41, %v8438_v50  ;;  %v8506_v41 = vld [vmem:[#allocation29_spill] sm:$0xff] }
 0x183   : > { %8490 = vst [vmem:[#allocation86_spill] sm:$0xff] %v6883_v0 }
 0x18b   : > { %v2474_v2 = vpop.permute.xlu1 %2473 }
 0x18c   : > { %v2569_v46 = vadd.f32 %v2474_v2, %v6827_v3  ;;  %v1355_v2 = vadd.f32 %v1291_v62, %v1031_v9  ;;  %v1371_v9 = vadd.f32 %v1307_v28, %v1047_v25  ;;  %v8493_v25 = vunpack.i.h.bf16 %v8479_v18 }
 0x18e   : > { %v2476_v13 = vpop.permute.xlu0 %2475  ;;  %2697 = vrot.lane.b32.xlu1 %v2569_v46, %s5187_s18  ;;  %v1063_v46 = vadd.f32 %v999_v61, %v722_v39  ;;  %v6874_v62 = vadd.f32 %v1734_v22, %v1355_v2  ;;  %v8491_v39 = vld [vmem:[#allocation20_spill] sm:$0xff]  ;;  %v1323_v28 = vmul.f32 %v8493_v25, %v6785_v10 }
 0x18f   : > { %v2570_v53 = vadd.f32 %v2476_v13, %v6847_v29  ;;  %v2490_v60 = vpop.permute.xlu1 %2489  ;;  %v8487_v13 = vunpack.i.l.bf16 %v8486_v52  ;;  %v8492_v61 = vunpack.i.l.bf16 %v8491_v39 }
 0x190   : > { %v2577_v4 = vadd.f32 %v2490_v60, %v6852_v24  ;;  %8485 = vst [vmem:[#allocation73_spill] sm:$0xff] %v6874_v62  ;;  %v8489_v60 = vunpack.i.l.bf16 %v8488_v7 }
 0x191   : > { %2699 = vrot.lane.b32.xlu0 %v2570_v53, %s5187_s18  ;;  %v969_v35 = vmul.f32 %v8487_v13, %v6771_v49  ;;  %v708_v22 = vmul.f32 %v8492_v61, %v6768_v19  ;;  %v1798_v13 = vrot.slane %v6298_v14, %v8438_v50  ;;  %v1387_v61 = vadd.f32 %v1323_v28, %v1063_v46  ;;  %v8499_v14 = vld [vmem:[#allocation65_spill] sm:$0xff] }
 0x192   : > { %v953_v55 = vmul.f32 %v8489_v60, %v6771_v49  ;;  %v2492_v36 = vpop.permute.xlu0 %2491  ;;  %2713 = vrot.lane.b32.xlu1 %v2577_v4, %s5187_s18  ;;  %v8494_v60 = vld [vmem:[#allocation21_spill] sm:$0xff]  ;;  %v8500_v27 = vunpack.i.l.bf16 %v8499_v14 }
 0x193   : > { %v2578_v53 = vadd.f32 %v2492_v36, %v6874_v62  ;;  %v2506_v2 = vpop.permute.xlu1 %2505  ;;  %v8495_v4 = vunpack.i.l.bf16 %v8494_v60  ;;  %v6901_v18 = vadd.f32 %v1798_v13, %v1371_v9  ;;  %v8497_v36 = vld [vmem:[#allocation39_spill] sm:$0xff]  ;;  %v8502_v9 = vld [vmem:[#allocation61_spill] sm:$0xff]  ;;  %v1033_v13 = vadd.f32 %v969_v35, %v692_v45 }
 0x194   : > { %v1017_v58 = vadd.f32 %v953_v55, %v676_v12  ;;  %v2585_v1 = vadd.f32 %v2506_v2, %v6883_v0  ;;  %v8498_v25 = vunpack.i.l.bf16 %v8497_v36  ;;  %v1309_v29 = vmul.f32 %v8500_v27, %v6785_v10 }
 0x195   : > { %v985_v32 = vmul.f32 %v8495_v4, %v6771_v49  ;;  %2715 = vrot.lane.b32.xlu0 %v2578_v53, %s5187_s18  ;;  %8496 = vst [vmem:[#allocation110_spill] sm:$0xff] %v6901_v18  ;;  %v6910_v12 = vadd.f32 %v1854_v17, %v1385_v5  ;;  %v8503_v55 = vunpack.i.l.bf16 %v8502_v9  ;;  %v1862_v2 = vrot.slane %v6301_v15, %v8438_v50  ;;  %v8504_v5 = vld [vmem:[#allocation28_spill] sm:$0xff] }
 0x196   : > { %v1277_v57 = vmul.f32 %v8498_v25, %v6785_v10  ;;  %v2508_v4 = vpop.permute.xlu0 %2507  ;;  %2729 = vrot.lane.b32.xlu1 %v2585_v1, %s5187_s18  ;;  %v8505_v17 = vunpack.i.l.bf16 %v8504_v5  ;;  %v8507_v62 = vunpack.i.l.bf16 %v8506_v41  ;;  %v1742_v15 = vrot.slane %v6475_v59, %v8438_v50 }
 0x197   : > { %8501 = vst [vmem:[#allocation85_spill] sm:$0xff] %v6910_v12  ;;  %v1293_v46 = vmul.f32 %v8503_v55, %v6785_v10  ;;  %v2586_v28 = vadd.f32 %v2508_v4, %v6901_v18  ;;  %v2522_v53 = vpop.permute.xlu1 %2521  ;;  %v1049_v27 = vadd.f32 %v985_v32, %v708_v22  ;;  %v6928_v4 = vadd.f32 %v1862_v2, %v1387_v61  ;;  %v8510_v22 = vld [vmem:[#allocation54_spill] sm:$0xff] }
 0x198   : > { %v2593_v25 = vadd.f32 %v2522_v53, %v6910_v12  ;;  %v1341_v1 = vadd.f32 %v1277_v57, %v1017_v58  ;;  %v724_v0 = vmul.f32 %v8505_v17, %v6768_v19  ;;  %v1001_v24 = vmul.f32 %v8507_v62, %v6771_v49 }
 0x199   : > { %2731 = vrot.lane.b32.xlu0 %v2586_v28, %s5187_s18  ;;  %8508 = vst [vmem:[#allocation115_spill] sm:$0xff] %v6928_v4  ;;  %v1373_v57 = vadd.f32 %v1309_v29, %v1049_v27  ;;  %v8511_v32 = vunpack.i.l.bf16 %v8510_v22  ;;  %v1357_v53 = vadd.f32 %v1293_v46, %v1033_v13  ;;  %v1806_v28 = vrot.slane %v6327_v30, %v8438_v50 }
 0x19a   : > { %v2524_v45 = vpop.permute.xlu0 %2523  ;;  %2745 = vrot.lane.b32.xlu1 %v2593_v25, %s5187_s18  ;;  %v6933_v35 = vadd.f32 %v1678_v54, %v1341_v1  ;;  %v1065_v59 = vadd.f32 %v1001_v24, %v724_v0  ;;  %v1870_v29 = vrot.slane %v6331_v34, %v8438_v50  ;;  %v8515_v24 = vld [vmem:[#allocation37_spill] sm:$0xff]  ;;  %v8517_v34 = vld [vmem:[#allocation75_spill] sm:$0xff] }
 0x19b   : > { %v1325_v58 = vmul.f32 %v8511_v32, %v6785_v10  ;;  %v2594_v55 = vadd.f32 %v2524_v45, %v6928_v4  ;;  %v2478_v62 = vpop.permute.xlu1 %2477  ;;  %v6943_v2 = vadd.f32 %v1742_v15, %v1357_v53  ;;  %v6948_v27 = vadd.f32 %v1806_v28, %v1373_v57  ;;  %v8519_v32 = vld [vmem:[#allocation69_spill] sm:$0xff] }
 0x19c   : > { %8509 = vst [vmem:[#allocation123_spill] sm:$0xff] %v6933_v35  ;;  %v2571_v61 = vadd.f32 %v2478_v62, %v6933_v35  ;;  %v8516_v0 = vunpack.i.l.bf16 %v8515_v24  ;;  %v8518_v15 = vunpack.i.l.bf16 %v8517_v34 }
 0x19d   : > { %2747 = vrot.lane.b32.xlu0 %v2594_v55, %s5187_s18  ;;  %8512 = vst [vmem:[#allocation116_spill] sm:$0xff] %v6943_v2  ;;  %8513 = vst [vmem:[#allocation84_spill] sm:$0xff] %v6948_v27  ;;  %v1389_v25 = vadd.f32 %v1325_v58, %v1065_v59  ;;  %v8520_v58 = vunpack.i.l.bf16 %v8519_v32 }
 0x19e   : > { %v2494_v54 = vpop.permute.xlu0 %2493  ;;  %2701 = vrot.lane.b32.xlu1 %v2571_v61, %s5187_s18  ;;  %v957_v17 = vmul.f32 %v8516_v0, %v6771_v49  ;;  %v712_v45 = vmul.f32 %v8518_v15, %v6768_v19  ;;  %v8521_v61 = vld [vmem:[#allocation6_spill] sm:$0xff] }
 0x19f   : > { %v2579_v46 = vadd.f32 %v2494_v54, %v6943_v2  ;;  %v2510_v13 = vpop.permute.xlu1 %2509  ;;  %v6953_v30 = vadd.f32 %v1870_v29, %v1389_v25  ;;  %v696_v55 = vmul.f32 %v8520_v58, %v6768_v19  ;;  %v8522_v28 = vunpack.i.l.bf16 %v8521_v61  ;;  %v8523_v29 = vld [vmem:[#allocation46_spill] sm:$0xff] }
 0x1a0   : > { %v2587_v1 = vadd.f32 %v2510_v13, %v6948_v27  ;;  %v8524_v54 = vunpack.i.l.bf16 %v8523_v29  ;;  %v8525_v13 = vld [vmem:[#allocation56_spill] sm:$0xff]  ;;  %v8527_v0 = vld [vmem:[#allocation42_spill] sm:$0xff] }
 0x1a1   : > { %2717 = vrot.lane.b32.xlu0 %v2579_v46, %s5187_s18  ;;  %8514 = vst [vmem:[#allocation113_spill] sm:$0xff] %v6953_v30  ;;  %v680_v59 = vmul.f32 %v8522_v28, %v6768_v19  ;;  %v8526_v25 = vunpack.i.l.bf16 %v8525_v13  ;;  %v8528_v15 = vunpack.i.l.bf16 %v8527_v0  ;;  %v1694_v28 = vrot.slane %v6435_v56, %v8438_v50 }
 0x1a2   : > { %v2526_v57 = vpop.permute.xlu0 %2525  ;;  %2733 = vrot.lane.b32.xlu1 %v2587_v1, %s5187_s18  ;;  %v989_v46 = vmul.f32 %v8524_v54, %v6771_v49  ;;  %v8529_v54 = vld [vmem:[#allocation81_spill] sm:$0xff] }
 0x1a3   : > { %v2595_v62 = vadd.f32 %v2526_v57, %v6953_v30  ;;  %v6966_v53 = vpop.permute.xlu1 %2479  ;;  %v1281_v1 = vmul.f32 %v8526_v25, %v6785_v10  ;;  %v973_v58 = vmul.f32 %v8528_v15, %v6771_v49  ;;  %v1021_v57 = vadd.f32 %v957_v17, %v680_v59  ;;  %v8531_v25 = vld [vmem:[#allocation49_spill] sm:$0xff] }
 0x1a4   : > { %v1053_v30 = vadd.f32 %v989_v46, %v712_v45  ;;  %v8530_v35 = vunpack.i.l.bf16 %v8529_v54  ;;  %v8532_v18 = vunpack.i.l.bf16 %v8531_v25  ;;  %v8533_v17 = vunpack.i.h.bf16 %v8481_v42  ;;  %v8534_v59 = vld [vmem:[#allocation45_spill] sm:$0xff] }
 0x1a5   : > { %2749 = vrot.lane.b32.xlu0 %v2595_v62, %s5187_s18  ;;  %v1037_v2 = vadd.f32 %v973_v58, %v696_v55  ;;  %v1345_v62 = vadd.f32 %v1281_v1, %v1021_v57  ;;  %v8535_v46 = vunpack.i.l.bf16 %v8534_v59  ;;  %v8536_v55 = vld [vmem:[#allocation50_spill] sm:$0xff]  ;;  %v8540_v42 = vunpack.i.h.bf16 %v8483_v48 }
 0x1a6   : > { %v728_v4 = vmul.f32 %v8530_v35, %v6768_v19  ;;  %v1313_v15 = vmul.f32 %v8532_v18, %v6785_v10  ;;  %v678_v45 = vmul.f32 %v8533_v17, %v6768_v19  ;;  %v8537_v58 = vunpack.i.l.bf16 %v8536_v55  ;;  %v8538_v35 = vld [vmem:[#allocation108_spill] sm:$0xff] }
 0x1a7   : > { %v6981_v27 = vpop.permute.xlu0 %2495  ;;  %v1297_v56 = vmul.f32 %v8535_v46, %v6785_v10  ;;  %v8539_v51 = vunpack.i.l.bf16 %v8538_v35  ;;  %v1758_v18 = vrot.slane %v6438_v31, %v8438_v50  ;;  %v694_v17 = vmul.f32 %v8540_v42, %v6768_v19 }
 0x1a8   : > { %v6988_v12 = vpop.permute.xlu1 %2511  ;;  %v1005_v3 = vmul.f32 %v8537_v58, %v6771_v49  ;;  %v8541_v1 = vunpack.i.h.bf16 %v8488_v7  ;;  %v7015_v37 = vadd.f32 %v1694_v28, %v1345_v62  ;;  %v1377_v58 = vadd.f32 %v1313_v15, %v1053_v30 }
 0x1a9   : > { %v1329_v44 = vmul.f32 %v8539_v51, %v6785_v10  ;;  %v971_v51 = vmul.f32 %v8542_v23, %v6771_v49  ;;  %v8543_v31 = vunpack.i.h.bf16 %v8491_v39  ;;  %v1361_v42 = vadd.f32 %v1297_v56, %v1037_v2  ;;  %v8546_v39 = vld [vmem:[#allocation10_spill] sm:$0xff]  ;;  %v8550_v56 = vld [vmem:[#allocation124_spill] sm:$0xff] }
 0x1aa   : > { %v955_v57 = vmul.f32 %v8541_v1, %v6771_v49  ;;  %v1069_v63 = vadd.f32 %v1005_v3, %v728_v4  ;;  %v8544_v7 = vunpack.i.h.bf16 %v8494_v60  ;;  %v1822_v30 = vrot.slane %v6450_v20, %v8438_v50 }
 0x1ab   : > { %v7013_v46 = vpop.permute.xlu0 %2527  ;;  %v710_v43 = vmul.f32 %v8543_v31, %v6768_v19  ;;  %v8545_v23 = vunpack.i.h.bf16 %v8521_v61  ;;  %v8547_v15 = vunpack.i.l.bf16 %v8546_v39  ;;  %v7037_v4 = vadd.f32 %v1758_v18, %v1361_v42  ;;  %v8551_v18 = vld [vmem:[#allocation11_spill] sm:$0xff] }
 0x1ac   : > { %v2482_v48 = vpop.permute.xlu1 %2481  ;;  %v987_v1 = vmul.f32 %v8544_v7, %v6771_v49  ;;  %v1019_v6 = vadd.f32 %v955_v57, %v678_v45  ;;  %v1393_v2 = vadd.f32 %v1329_v44, %v1069_v63  ;;  %v8548_v60 = vunpack.i.h.bf16 %v8497_v36 }
 0x1ad   : > { %v2573_v28 = vadd.f32 %v2482_v48, %v7015_v37  ;;  %v682_v52 = vmul.f32 %v8545_v23, %v6768_v19  ;;  %v7035_v3 = vmul.f32 %v8547_v15, %v6768_v19  ;;  %v8549_v62 = vunpack.i.h.bf16 %v8499_v14 }
 0x1ae   : > { %v1279_v45 = vmul.f32 %v8548_v60, %v6785_v10  ;;  %v1686_v61 = vrot.slane %v8550_v56, %v8438_v50  ;;  %v7048_v31 = vadd.f32 %v1822_v30, %v1377_v58  ;;  %v8552_v48 = vunpack.i.l.bf16 %v8551_v18 }
 0x1af   : > { %v1311_v20 = vmul.f32 %v8549_v62, %v6785_v10  ;;  %v2498_v57 = vpop.permute.xlu0 %2497  ;;  %2705 = vrot.lane.b32.xlu1 %v2573_v28, %s5187_s18  ;;  %v8553_v44 = vunpack.i.h.bf16 %v8502_v9  ;;  %v1886_v7 = vrot.slane %v8398_v33, %v8438_v50  ;;  %v1035_v23 = vadd.f32 %v971_v51, %v694_v17 }
 0x1b0   : > { %v7053_v63 = vmul.f32 %v8552_v48, %v6771_v49  ;;  %v2581_v14 = vadd.f32 %v2498_v57, %v7037_v4  ;;  %v2514_v42 = vpop.permute.xlu1 %2513  ;;  %v1051_v15 = vadd.f32 %v987_v1, %v710_v43  ;;  %v1343_v28 = vadd.f32 %v1279_v45, %v1019_v6 }
 0x1b1   : > { %v1295_v36 = vmul.f32 %v8553_v44, %v6785_v10  ;;  %v2589_v58 = vadd.f32 %v2514_v42, %v7048_v31  ;;  %v8554_v30 = vunpack.i.h.bf16 %v8504_v5  ;;  %v8555_v62 = vunpack.i.h.bf16 %v8506_v41 }
 0x1b2   : > { %v1750_v56 = vrot.slane %v6483_v11, %v8438_v50  ;;  %2721 = vrot.lane.b32.xlu0 %v2581_v14, %s5187_s18  ;;  %v7071_v57 = vadd.f32 %v1886_v7, %v1393_v2  ;;  %v8556_v33 = vunpack.i.h.bf16 %v8515_v24  ;;  %v8557_v43 = vunpack.i.h.bf16 %v8517_v34 }
 0x1b3   : > { %v726_v60 = vmul.f32 %v8554_v30, %v6768_v19  ;;  %v1003_v9 = vmul.f32 %v8555_v62, %v6771_v49  ;;  %v7079_v17 = vadd.f32 %v1686_v61, %v1343_v28  ;;  %v1375_v51 = vadd.f32 %v1311_v20, %v1051_v15  ;;  %v2530_v41 = vpop.permute.xlu0 %2529  ;;  %2737 = vrot.lane.b32.xlu1 %v2589_v58, %s5187_s18 }
 0x1b4   : > { %v959_v6 = vmul.f32 %v8556_v33, %v6771_v49  ;;  %v714_v5 = vmul.f32 %v8557_v43, %v6768_v19  ;;  %v8558_v11 = vunpack.i.h.bf16 %v8510_v22  ;;  %v8559_v2 = vunpack.i.h.bf16 %v8519_v32  ;;  %v2484_v44 = vpop.permute.xlu1 %2483 }
 0x1b5   : > { %v1359_v24 = vadd.f32 %v1295_v36, %v1035_v23  ;;  %v2597_v48 = vadd.f32 %v2530_v41, %v7071_v57  ;;  %v8560_v34 = vunpack.i.h.bf16 %v8523_v29  ;;  %v8561_v20 = vunpack.i.h.bf16 %v8525_v13 }
 0x1b6   : > { %v1327_v1 = vmul.f32 %v8558_v11, %v6785_v10  ;;  %v698_v45 = vmul.f32 %v8559_v2, %v6768_v19  ;;  %v2572_v22 = vadd.f32 %v6966_v53, %v7079_v17  ;;  %v1814_v42 = vrot.slane %v8378_v8, %v8438_v50  ;;  %v8570_v11 = vld [vmem:[#allocation17_spill] sm:$0xff] }
 0x1b7   : > { %v991_v61 = vmul.f32 %v8560_v34, %v6771_v49  ;;  %v1283_v14 = vmul.f32 %v8561_v20, %v6785_v10  ;;  %v1067_v32 = vadd.f32 %v1003_v9, %v726_v60  ;;  %v8562_v36 = vunpack.i.h.bf16 %v8527_v0  ;;  %2753 = vrot.lane.b32.xlu0 %v2597_v48, %s5187_s18  ;;  %v2500_v8 = vpop.permute.xlu0 %2499 }
 0x1b8   : > { %v7102_v23 = vadd.f32 %v1750_v56, %v1359_v24  ;;  %v1878_v29 = vrot.slane %v6339_v47, %v8438_v50  ;;  %v1023_v13 = vadd.f32 %v959_v6, %v682_v52  ;;  %v7107_v28 = vadd.f32 %v1814_v42, %v1375_v51  ;;  %2703 = vrot.lane.b32.xlu1 %v2572_v22, %s5187_s18  ;;  %v2516_v62 = vpop.permute.xlu1 %2515  ;;  %v8572_v24 = vld [vmem:[#allocation24_spill] sm:$0xff]  ;;  %v8574_v22 = vld [vmem:[#allocation25_spill] sm:$0xff] }
 0x1b9   : > { %v975_v7 = vmul.f32 %v8562_v36, %v6771_v49  ;;  %v1055_v15 = vadd.f32 %v991_v61, %v714_v5  ;;  %v1702_v53 = vrot.slane %v6466_v40, %v8438_v50  ;;  %v8563_v0 = vunpack.i.h.bf16 %v8529_v54  ;;  %v8576_v36 = vld [vmem:[#allocation60_spill] sm:$0xff] }
 0x1ba   : > { %v2580_v47 = vadd.f32 %v6981_v27, %v7102_v23  ;;  %v1391_v60 = vadd.f32 %v1327_v1, %v1067_v32  ;;  %v8564_v52 = vunpack.i.h.bf16 %v8534_v59  ;;  %v8565_v40 = vunpack.i.h.bf16 %v8531_v25  ;;  %v8568_v25 = vld [vmem:[#allocation16_spill] sm:$0xff] }
 0x1bb   : > { %v1039_v58 = vadd.f32 %v975_v7, %v698_v45  ;;  %v730_v30 = vmul.f32 %v8563_v0, %v6768_v19  ;;  %v2588_v33 = vadd.f32 %v6988_v12, %v7107_v28  ;;  %v1347_v6 = vadd.f32 %v1283_v14, %v1023_v13 }
 0x1bc   : > { %v1299_v9 = vmul.f32 %v8564_v52, %v6785_v10  ;;  %v1315_v56 = vmul.f32 %v8565_v40, %v6785_v10  ;;  %v8566_v54 = vunpack.i.h.bf16 %v8536_v55  ;;  %v8567_v27 = vunpack.i.h.bf16 %v8538_v35  ;;  %2719 = vrot.lane.b32.xlu0 %v2580_v47, %s5187_s18  ;;  %v2532_v35 = vpop.permute.xlu0 %2531  ;;  %v2486_v14 = vpop.permute.xlu1 %2485  ;;  %v8579_v47 = vld [vmem:[#allocation68_spill] sm:$0xff] }
 0x1bd   : > { %v7131_v51 = vadd.f32 %v1878_v29, %v1391_v60  ;;  %v1766_v59 = vrot.slane %v6469_v21, %v8438_v50  ;;  %v8569_v41 = vunpack.i.l.bf16 %v8568_v25  ;;  %v8571_v1 = vunpack.i.l.bf16 %v8570_v11  ;;  %2735 = vrot.lane.b32.xlu1 %v2588_v33, %s5187_s18 }
 0x1be   : > { %v1007_v43 = vmul.f32 %v8566_v54, %v6771_v49  ;;  %v1331_v5 = vmul.f32 %v8567_v27, %v6785_v10  ;;  %v7142_v2 = vadd.f32 %v1702_v53, %v1347_v6  ;;  %v1379_v45 = vadd.f32 %v1315_v56, %v1055_v15  ;;  %v8582_v56 = vld [vmem:[#allocation63_spill] sm:$0xff] }
 0x1bf   : > { %v700_v12 = vmul.f32 %v8569_v41, %v6768_v19  ;;  %v977_v55 = vmul.f32 %v8571_v1, %v6771_v49  ;;  %v8573_v48 = vunpack.i.l.bf16 %v8572_v24  ;;  %v2596_v61 = vadd.f32 %v7013_v46, %v7131_v51 }
 0x1c0   : > { %v1071_v34 = vadd.f32 %v1007_v43, %v730_v30  ;;  %v1363_v20 = vadd.f32 %v1299_v9, %v1039_v58  ;;  %v8575_v42 = vunpack.i.l.bf16 %v8574_v22  ;;  %v8577_v7 = vunpack.i.l.bf16 %v8576_v36  ;;  %v2502_v9 = vpop.permute.xlu0 %2501 }
 0x1c1   : > { %v716_v21 = vmul.f32 %v8573_v48, %v6768_v19  ;;  %v2574_v13 = vadd.f32 %v2484_v44, %v7142_v2  ;;  %v1830_v15 = vrot.slane %v6486_v16, %v8438_v50  ;;  %v8578_v53 = vunpack.i.h.bf16 %v8546_v39  ;;  %2751 = vrot.lane.b32.xlu0 %v2596_v61, %s5187_s18  ;;  %v2518_v61 = vpop.permute.xlu1 %2517 }
 0x1c2   : > { %v993_v32 = vmul.f32 %v8575_v42, %v6771_v49  ;;  %v1285_v29 = vmul.f32 %v8577_v7, %v6785_v10  ;;  %v7162_v46 = vadd.f32 %v1766_v59, %v1363_v20  ;;  %v1395_v58 = vadd.f32 %v1331_v5, %v1071_v34  ;;  %v8584_v5 = vld [vmem:[#allocation32_spill] sm:$0xff]  ;;  %v8592_v7 = vld [vmem:[#allocation59_spill] sm:$0xff] }
 0x1c3   : > { %v686_v0 = vmul.f32 %v8578_v53, %v6768_v19  ;;  %v1025_v30 = vadd.f32 %v7053_v63, %v7035_v3  ;;  %v8580_v60 = vunpack.i.l.bf16 %v8579_v47  ;;  %v7170_v44 = vadd.f32 %v1830_v15, %v1379_v45  ;;  %2707 = vrot.lane.b32.xlu1 %v2574_v13, %s5187_s18 }
 0x1c4   : > { %v1710_v16 = vrot.slane %v6493_v26, %v8438_v50  ;;  %v8581_v39 = vunpack.i.h.bf16 %v8551_v18  ;;  %v8583_v33 = vunpack.i.l.bf16 %v8582_v56  ;;  %v2582_v63 = vadd.f32 %v2500_v8, %v7162_v46  ;;  %v8586_v18 = vld [vmem:[#allocation33_spill] sm:$0xff] }
 0x1c5   : > { %v1317_v52 = vmul.f32 %v8580_v60, %v6785_v10  ;;  %v1894_v6 = vrot.slane %v6489_v38, %v8438_v50  ;;  %v1041_v54 = vadd.f32 %v977_v55, %v700_v12  ;;  %v1057_v43 = vadd.f32 %v993_v32, %v716_v21  ;;  %v8588_v8 = vld [vmem:[#allocation125_spill] sm:$0xff] }
 0x1c6   : > { %v963_v40 = vmul.f32 %v8581_v39, %v6771_v49  ;;  %v1301_v3 = vmul.f32 %v8583_v33, %v6785_v10  ;;  %v2590_v26 = vadd.f32 %v2516_v62, %v7170_v44  ;;  %v1349_v27 = vadd.f32 %v1285_v29, %v1025_v30  ;;  %2723 = vrot.lane.b32.xlu0 %v2582_v63, %s5187_s18 }
 0x1c7   : > { %v8585_v59 = vunpack.i.l.bf16 %v8584_v5  ;;  %v8587_v1 = vunpack.i.l.bf16 %v8586_v18  ;;  %v7191_v48 = vadd.f32 %v1894_v6, %v1395_v58  ;;  %v1774_v34 = vrot.slane %v8588_v8, %v8438_v50 }
 0x1c8   : > { %v8589_v38 = vunpack.i.h.bf16 %v8568_v25  ;;  %v8590_v12 = vunpack.i.h.bf16 %v8570_v11  ;;  %v7202_v21 = vadd.f32 %v1710_v16, %v1349_v27  ;;  %v1381_v20 = vadd.f32 %v1317_v52, %v1057_v43  ;;  %2739 = vrot.lane.b32.xlu1 %v2590_v26, %s5187_s18  ;;  %v2534_v16 = vpop.permute.xlu0 %2533 }
 0x1c9   : > { %v732_v41 = vmul.f32 %v8585_v59, %v6768_v19  ;;  %v1009_v45 = vmul.f32 %v8587_v1, %v6771_v49  ;;  %v8591_v42 = vunpack.i.h.bf16 %v8572_v24  ;;  %v8593_v29 = vunpack.i.l.bf16 %v8592_v7  ;;  %v8596_v24 = vld [vmem:[#allocation126_spill] sm:$0xff] }
 0x1ca   : > { %v702_v62 = vmul.f32 %v8589_v38, %v6768_v19  ;;  %v979_v55 = vmul.f32 %v8590_v12, %v6771_v49  ;;  %v2598_v25 = vadd.f32 %v2532_v35, %v7191_v48  ;;  %v1365_v15 = vadd.f32 %v1301_v3, %v1041_v54  ;;  %v8597_v35 = vld [vmem:[#allocation127_spill] sm:$0xff] }
 0x1cb   : > { %v718_v32 = vmul.f32 %v8591_v42, %v6768_v19  ;;  %v1333_v13 = vmul.f32 %v8593_v29, %v6785_v10  ;;  %v8594_v11 = vunpack.i.h.bf16 %v8574_v22  ;;  %v8595_v58 = vunpack.i.h.bf16 %v8576_v36  ;;  %v8605_v42 = vld [vmem:[#allocation130_spill] sm:$0xff] }
 0x1cc   : > { %v2575_v60 = vadd.f32 %v2486_v14, %v7202_v21  ;;  %v1838_v52 = vrot.slane %v8596_v24, %v8438_v50  ;;  %v1073_v39 = vadd.f32 %v1009_v45, %v732_v41  ;;  %v7221_v33 = vadd.f32 %v1774_v34, %v1365_v15  ;;  %2755 = vrot.lane.b32.xlu0 %v2598_v25, %s5187_s18  ;;  %v8599_v14 = vld [vmem:[#allocation128_spill] sm:$0xff]  ;;  %v2488_v41 = vpop.permute.xlu1 %2487  ;;  %v8606_v15 = vld [vmem:[#allocation67_spill] sm:$0xff] }
 0x1cd   : > { %v995_v53 = vmul.f32 %v8594_v11, %v6771_v49  ;;  %v1287_v30 = vmul.f32 %v8595_v58, %v6785_v10  ;;  %v1902_v3 = vrot.slane %v8597_v35, %v8438_v50  ;;  %v1027_v22 = vadd.f32 %v963_v40, %v686_v0 }
 0x1ce   : > { %v8598_v63 = vunpack.i.h.bf16 %v8579_v47  ;;  %v7229_v6 = vadd.f32 %v1838_v52, %v1381_v20  ;;  %v1718_v54 = vrot.slane %v8599_v14, %v8438_v50  ;;  %2709 = vrot.lane.b32.xlu1 %v2575_v60, %s5187_s18  ;;  %v8600_v43 = vunpack.i.h.bf16 %v8582_v56  ;;  %v8603_v56 = vld [vmem:[#allocation129_spill] sm:$0xff] }
 0x1cf   : > { %v2583_v27 = vadd.f32 %v2502_v9, %v7221_v33  ;;  %v1397_v59 = vadd.f32 %v1333_v13, %v1073_v39  ;;  %v1043_v0 = vadd.f32 %v979_v55, %v702_v62  ;;  %v1059_v40 = vadd.f32 %v995_v53, %v718_v32  ;;  %v2504_v55 = vpop.permute.xlu0 %2503 }
 0x1d0   : > { %v1319_v36 = vmul.f32 %v8598_v63, %v6785_v10  ;;  %v1303_v26 = vmul.f32 %v8600_v43, %v6785_v10  ;;  %v2591_v47 = vadd.f32 %v2518_v61, %v7229_v6  ;;  %v1351_v1 = vadd.f32 %v1287_v30, %v1027_v22  ;;  %v2520_v25 = vpop.permute.xlu1 %2519  ;;  %v8608_v63 = vld [vmem:[#allocation112_spill] sm:$0xff]  ;;  %v8609_v43 = vld [vmem:[#allocation73_spill] sm:$0xff] }
 0x1d1   : > { %v8601_v45 = vunpack.i.h.bf16 %v8584_v5  ;;  %v8602_v34 = vunpack.i.h.bf16 %v8586_v18  ;;  %v7245_v12 = vadd.f32 %v1902_v3, %v1397_v59  ;;  %v1782_v9 = vrot.slane %v8603_v56, %v8438_v50  ;;  %2725 = vrot.lane.b32.xlu0 %v2583_v27, %s5187_s18  ;;  %v8610_v59 = vld [vmem:[#allocation86_spill] sm:$0xff] }
 0x1d2   : > { %v7250_v62 = vadd.f32 %v1718_v54, %v1351_v1  ;;  %v1383_v61 = vadd.f32 %v1319_v36, %v1059_v40  ;;  %2741 = vrot.lane.b32.xlu1 %v2591_v47, %s5187_s18  ;;  %v1846_v32 = vrot.slane %v8605_v42, %v8438_v50  ;;  %v1910_v11 = vrot.slane %v8606_v15, %v8438_v50  ;;  %v8611_v1 = vld [vmem:[#allocation110_spill] sm:$0xff]  ;;  %v8615_v42 = vld [vmem:[#allocation123_spill] sm:$0xff]  ;;  %v8616_v15 = vld [vmem:[#allocation116_spill] sm:$0xff] }
 0x1d3   : > { %v734_v8 = vmul.f32 %v8601_v45, %v6768_v19  ;;  %v1011_v38 = vmul.f32 %v8602_v34, %v6771_v49  ;;  %v8604_v19 = vunpack.i.h.bf16 %v8592_v7  ;;  %v2599_v18 = vadd.f32 %v2534_v16, %v7245_v12  ;;  %v2536_v30 = vpop.permute.xlu0 %2535  ;;  %v8607_v16 = vld [vmem:[#allocation74_spill] sm:$0xff]  ;;  %v8612_v34 = vld [vmem:[#allocation85_spill] sm:$0xff] }
 0x1d4   : > { %v1367_v49 = vadd.f32 %v1303_v26, %v1043_v0  ;;  %v2576_v20 = vadd.f32 %v2488_v41, %v7250_v62  ;;  %v7265_v53 = vadd.f32 %v1846_v32, %v1383_v61 }
 0x1d5   : > { %v1335_v5 = vmul.f32 %v8604_v19, %v6785_v10  ;;  %v1075_v29 = vadd.f32 %v1011_v38, %v734_v8  ;;  %2757 = vrot.lane.b32.xlu0 %v2599_v18, %s5187_s18 }
 0x1d6   : > { %v7260_v13 = vadd.f32 %v1782_v9, %v1367_v49  ;;  %2711 = vrot.lane.b32.xlu1 %v2576_v20, %s5187_s18  ;;  %v2592_v58 = vadd.f32 %v2520_v25, %v7265_v53  ;;  %v8613_v9 = vld [vmem:[#allocation87_spill] sm:$0xff] }
 0x1d7   : > { %v1399_v7 = vadd.f32 %v1335_v5, %v1075_v29  ;;  %v8614_v5 = vld [vmem:[#allocation115_spill] sm:$0xff] }
 0x1d8   : > { %v2584_v10 = vadd.f32 %v2504_v55, %v7260_v13 }
 0x1d9   : > { %v7270_v60 = vadd.f32 %v1910_v11, %v1399_v7 }
 0x1da   : > { %2727 = vrot.lane.b32.xlu0 %v2584_v10, %s5187_s18  ;;  %2743 = vrot.lane.b32.xlu1 %v2592_v58, %s5187_s18  ;;  %v8617_v58 = vld [vmem:[#allocation84_spill] sm:$0xff] }
 0x1db   : > { %v2600_v24 = vadd.f32 %v2536_v30, %v7270_v60 }
 0x1de   : > { %2759 = vrot.lane.b32.xlu0 %v2600_v24, %s5187_s18 }
 0x200   : > { %v2698_v52 = vpop.permute.xlu1 %2697 }
 0x201   : > { %v2793_v39 = vmul.f32 %v2698_v52, %v8607_v16  ;;  %v8618_v16 = vld [vmem:[#allocation113_spill] sm:$0xff] }
 0x203   : > { %v2700_v35 = vpop.permute.xlu0 %2699  ;;  %v2826_v3 = vsel %vm2825_vm0, %v2793_v39, 0.0 }
 0x204   : > { %2827 = vadd.xlane.f32.xlu1 %v2826_v3  ;;  %v2714_v22 = vpop.permute.xlu1 %2713  ;;  %v2794_v55 = vmul.f32 %v2700_v35, %v8613_v9 }
 0x205   : > { %v2801_v36 = vmul.f32 %v2714_v22, %v8608_v63 }
 0x206   : > { %v2829_v25 = vsel %vm2825_vm0, %v2794_v55, 0.0 }
 0x207   : > { %v2716_v14 = vpop.permute.xlu0 %2715  ;;  %v2850_v54 = vsel %vm2825_vm0, %v2801_v36, 0.0 }
 0x208   : > { %v2802_v26 = vmul.f32 %v2716_v14, %v8609_v43  ;;  %2851 = vadd.xlane.f32.xlu0 %v2850_v54  ;;  %v2730_v27 = vpop.permute.xlu1 %2729 }
 0x209   : > { %v2809_v41 = vmul.f32 %v2730_v27, %v8610_v59 }
 0x20a   : > { %v2853_v0 = vsel %vm2825_vm0, %v2802_v26, 0.0 }
 0x20b   : > { %v2732_v40 = vpop.permute.xlu0 %2731  ;;  %2854 = vadd.xlane.f32.xlu1 %v2853_v0  ;;  %v2874_v47 = vsel %vm2825_vm0, %v2809_v41, 0.0 }
 0x20c   : > { %v2810_v45 = vmul.f32 %v2732_v40, %v8611_v1  ;;  %2875 = vadd.xlane.f32.xlu0 %v2874_v47  ;;  %v2746_v8 = vpop.permute.xlu1 %2745 }
 0x20d   : > { %v2817_v38 = vmul.f32 %v2746_v8, %v8612_v34 }
 0x20e   : > { %v2877_v56 = vsel %vm2825_vm0, %v2810_v45, 0.0 }
 0x20f   : > { %v2748_v61 = vpop.permute.xlu0 %2747  ;;  %2878 = vadd.xlane.f32.xlu1 %v2877_v56  ;;  %v2898_v19 = vsel %vm2825_vm0, %v2817_v38, 0.0 }
 0x210   : > { %v2818_v18 = vmul.f32 %v2748_v61, %v8614_v5  ;;  %2899 = vadd.xlane.f32.xlu0 %v2898_v19  ;;  %v2702_v49 = vpop.permute.xlu1 %2701 }
 0x211   : > { %v2795_v32 = vmul.f32 %v2702_v49, %v8615_v42 }
 0x212   : > { %v2901_v20 = vsel %vm2825_vm0, %v2818_v18, 0.0 }
 0x213   : > { %v2718_v29 = vpop.permute.xlu0 %2717  ;;  %2902 = vadd.xlane.f32.xlu1 %v2901_v20  ;;  %v2832_v52 = vsel %vm2825_vm0, %v2795_v32, 0.0 }
 0x214   : > { %v2803_v11 = vmul.f32 %v2718_v29, %v8616_v15  ;;  %2830 = vadd.xlane.f32.xlu0 %v2829_v25  ;;  %v2734_v10 = vpop.permute.xlu1 %2733 }
 0x215   : > { %v2811_v30 = vmul.f32 %v2734_v10, %v8617_v58 }
 0x216   : > { %v2856_v7 = vsel %vm2825_vm0, %v2803_v11, 0.0 }
 0x217   : > { %v2750_v24 = vpop.permute.xlu0 %2749  ;;  %2857 = vadd.xlane.f32.xlu1 %v2856_v7  ;;  %v2880_v3 = vsel %vm2825_vm0, %v2811_v30, 0.0 }
 0x218   : > { %v2819_v39 = vmul.f32 %v2750_v24, %v8618_v16  ;;  %2833 = vadd.xlane.f32.xlu0 %v2832_v52 }
 0x21a   : > { %v2904_v35 = vsel %vm2825_vm0, %v2819_v39, 0.0 }
 0x21b   : > { %2905 = vadd.xlane.f32.xlu1 %v2904_v35 }
 0x21c   : > { %2881 = vadd.xlane.f32.xlu0 %v2880_v3 }
 0x221   : > { %v2706_v22 = vpop.permute.xlu1 %2705 }
 0x222   : > { %v2797_v63 = vmul.f32 %v2706_v22, %v7015_v37 }
 0x224   : > { %v2722_v36 = vpop.permute.xlu0 %2721  ;;  %v2838_v14 = vsel %vm2825_vm0, %v2797_v63, 0.0 }
 0x225   : > { %v2805_v54 = vmul.f32 %v2722_v36, %v7037_v4  ;;  %2839 = vadd.xlane.f32.xlu0 %v2838_v14  ;;  %v2738_v43 = vpop.permute.xlu1 %2737 }
 0x226   : > { %v2813_v26 = vmul.f32 %v2738_v43, %v7048_v31 }
 0x227   : > { %v2862_v27 = vsel %vm2825_vm0, %v2805_v54, 0.0 }
 0x228   : > { %2863 = vadd.xlane.f32.xlu1 %v2862_v27  ;;  %v2886_v41 = vsel %vm2825_vm0, %v2813_v26, 0.0 }
 0x229   : > { %v2754_v59 = vpop.permute.xlu0 %2753  ;;  %2887 = vadd.xlane.f32.xlu0 %v2886_v41 }
 0x22a   : > { %v2821_v0 = vmul.f32 %v2754_v59, %v7071_v57  ;;  %v2704_v40 = vpop.permute.xlu1 %2703 }
 0x22b   : > { %v2796_v37 = vmul.f32 %v2704_v40, %v7079_v17 }
 0x22c   : > { %v2910_v47 = vsel %vm2825_vm0, %v2821_v0, 0.0 }
 0x22d   : > { %2911 = vadd.xlane.f32.xlu1 %v2910_v47  ;;  %v2835_v4 = vsel %vm2825_vm0, %v2796_v37, 0.0 }
 0x22e   : > { %v2720_v1 = vpop.permute.xlu0 %2719  ;;  %2836 = vadd.xlane.f32.xlu0 %v2835_v4 }
 0x22f   : > { %v2804_v31 = vmul.f32 %v2720_v1, %v7102_v23  ;;  %v2736_v45 = vpop.permute.xlu1 %2735 }
 0x230   : > { %v2812_v8 = vmul.f32 %v2736_v45, %v7107_v28 }
 0x231   : > { %v2859_v34 = vsel %vm2825_vm0, %v2804_v31, 0.0 }
 0x232   : > { %2860 = vadd.xlane.f32.xlu1 %v2859_v34  ;;  %v2883_v57 = vsel %vm2825_vm0, %v2812_v8, 0.0  ;;  %v8619_v8 = vlaneseq }
 0x233   : > { %v2752_v38 = vpop.permute.xlu0 %2751  ;;  %2884 = vadd.xlane.f32.xlu0 %v2883_v57 }
 0x234   : > { %v2820_v17 = vmul.f32 %v2752_v38, %v7131_v51  ;;  %v2955_v34 = vand.u32 127, %v8619_v8 }
 0x235   : > { %v2708_v56 = vpop.permute.xlu1 %2707 }
 0x236   : > { %v2798_v9 = vmul.f32 %v2708_v56, %v7142_v2  ;;  %v2907_v55 = vsel %vm2825_vm0, %v2820_v17, 0.0  ;;  %v8620_v17 = vld [vmem:[#allocation2_spill] sm:$0xff] }
 0x237   : > { %2908 = vadd.xlane.f32.xlu1 %v2907_v55  ;;  %v7388_v56 = vsub.s32 %v2955_v34, %v8620_v17 }
 0x238   : > { %v2724_v61 = vpop.permute.xlu0 %2723  ;;  %v2841_v23 = vsel %vm2825_vm0, %v2798_v9, 0.0 }
 0x239   : > { %v2806_v28 = vmul.f32 %v2724_v61, %v7162_v46  ;;  %2842 = vadd.xlane.f32.xlu0 %v2841_v23 }
 0x23a   : > { %v2740_v19 = vpop.permute.xlu1 %2739 }
 0x23b   : > { %v2814_v5 = vmul.f32 %v2740_v19, %v7170_v44  ;;  %v2865_v18 = vsel %vm2825_vm0, %v2806_v28, 0.0 }
 0x23c   : > { %2866 = vadd.xlane.f32.xlu1 %v2865_v18 }
 0x23d   : > { %v2889_v51 = vsel %vm2825_vm0, %v2814_v5, 0.0 }
 0x23e   : > { %v2756_v49 = vpop.permute.xlu0 %2755  ;;  %2890 = vadd.xlane.f32.xlu0 %v2889_v51 }
 0x23f   : > { %v2822_v2 = vmul.f32 %v2756_v49, %v7191_v48 }
 0x240   : > { %v2710_v20 = vpop.permute.xlu1 %2709 }
 0x241   : > { %v2799_v42 = vmul.f32 %v2710_v20, %v7202_v21  ;;  %v2913_v32 = vsel %vm2825_vm0, %v2822_v2, 0.0 }
 0x242   : > { %2914 = vadd.xlane.f32.xlu1 %v2913_v32 }
 0x243   : > { %v2726_v29 = vpop.permute.xlu0 %2725  ;;  %v2844_v46 = vsel %vm2825_vm0, %v2799_v42, 0.0 }
 0x244   : > { %v2807_v44 = vmul.f32 %v2726_v29, %v7221_v33  ;;  %2845 = vadd.xlane.f32.xlu0 %v2844_v46  ;;  %v2742_v25 = vpop.permute.xlu1 %2741 }
 0x245   : > { %v2815_v15 = vmul.f32 %v2742_v25, %v7229_v6 }
 0x246   : > { %v2868_v11 = vsel %vm2825_vm0, %v2807_v44, 0.0 }
 0x247   : > { %v2758_v10 = vpop.permute.xlu0 %2757  ;;  %2869 = vadd.xlane.f32.xlu1 %v2868_v11  ;;  %v2892_v48 = vsel %vm2825_vm0, %v2815_v15, 0.0 }
 0x248   : > { %v2823_v21 = vmul.f32 %v2758_v10, %v7245_v12  ;;  %2893 = vadd.xlane.f32.xlu0 %v2892_v48  ;;  %v2712_v7 = vpop.permute.xlu1 %2711 }
 0x249   : > { %v2800_v58 = vmul.f32 %v2712_v7, %v7250_v62 }
 0x24a   : > { %v2916_v30 = vsel %vm2825_vm0, %v2823_v21, 0.0 }
 0x24b   : > { %2917 = vadd.xlane.f32.xlu1 %v2916_v30  ;;  %v2847_v33 = vsel %vm2825_vm0, %v2800_v58, 0.0 }
 0x24c   : > { %v2728_v24 = vpop.permute.xlu0 %2727  ;;  %2848 = vadd.xlane.f32.xlu0 %v2847_v33  ;;  %v2744_v52 = vpop.permute.xlu1 %2743 }
 0x24d   : > { %v2808_v6 = vmul.f32 %v2728_v24, %v7260_v13  ;;  %v2816_v16 = vmul.f32 %v2744_v52, %v7265_v53 }
 0x24f   : > { %v2871_v39 = vsel %vm2825_vm0, %v2808_v6, 0.0  ;;  %v2895_v12 = vsel %vm2825_vm0, %v2816_v16, 0.0 }
 0x250   : > { %v2760_v35 = vpop.permute.xlu0 %2759  ;;  %2872 = vadd.xlane.f32.xlu1 %v2871_v39  ;;  %2896 = vadd.xlane.f32.xlu0 %v2895_v12 }
 0x251   : > { %v2824_v62 = vmul.f32 %v2760_v35, %v7270_v60 }
 0x253   : > { %v2919_v3 = vsel %vm2825_vm0, %v2824_v62, 0.0 }
 0x254   : > { %2920 = vadd.xlane.f32.xlu1 %v2919_v3 }
 0x28d   : > { %v7340_v22 = vpop.xlane.xlu1 %2827 }
 0x28e   : > { %v2959_v19 = vrot.slane %v7340_v22, %v7388_v56 }
 0x291   : > { %v7342_v63 = vpop.xlane.xlu0 %2851 }
 0x292   : > { %v2991_v51 = vrot.slane %v7342_v63, %v7388_v56 }
 0x294   : > { %v7344_v13 = vpop.xlane.xlu1 %2854 }
 0x295   : > { %v7346_v36 = vpop.xlane.xlu0 %2875  ;;  %v2995_v61 = vrot.slane %v7344_v13, %v7388_v56 }
 0x296   : > { %v3023_v20 = vrot.slane %v7346_v36, %v7388_v56 }
 0x297   : > { %v3098_v44 = vsel %vm3084_vm1, %v2995_v61, %v2991_v51 }
 0x298   : > { %v7350_v14 = vpop.xlane.xlu1 %2878 }
 0x299   : > { %v7348_v53 = vpop.xlane.xlu0 %2899  ;;  %v3027_v5 = vrot.slane %v7350_v14, %v7388_v56 }
 0x29a   : > { %v3055_v42 = vrot.slane %v7348_v53, %v7388_v56 }
 0x29b   : > { %v3105_v48 = vsel %vm3084_vm1, %v3027_v5, %v3023_v20 }
 0x29c   : > { %v7354_v43 = vpop.xlane.xlu1 %2902 }
 0x29d   : > { %v7352_v54 = vpop.xlane.xlu0 %2830  ;;  %v3059_v18 = vrot.slane %v7354_v43, %v7388_v56 }
 0x29e   : > { %v2963_v9 = vrot.slane %v7352_v54, %v7388_v56 }
 0x29f   : > { %v3112_v21 = vsel %vm3084_vm1, %v3059_v18, %v3055_v42 }
 0x2a0   : > { %v7358_v26 = vpop.xlane.xlu1 %2857  ;;  %v3085_v32 = vsel %vm3084_vm1, %v2963_v9, %v2959_v19 }
 0x2a1   : > { %v7356_v60 = vpop.xlane.xlu0 %2833  ;;  %v2999_v2 = vrot.slane %v7358_v26, %v7388_v56 }
 0x2a2   : > { %v2967_v23 = vrot.slane %v7356_v60, %v7388_v56 }
 0x2a3   : > { %v3099_v30 = vsel %vm3086_vm2, %v2999_v2, %v3098_v44 }
 0x2a4   : > { %v7362_v59 = vpop.xlane.xlu1 %2905  ;;  %v3087_v25 = vsel %vm3086_vm2, %v2967_v23, %v3085_v32 }
 0x2a5   : > { %v7360_v27 = vpop.xlane.xlu0 %2881  ;;  %v3063_v24 = vrot.slane %v7362_v59, %v7388_v56 }
 0x2a6   : > { %v3031_v29 = vrot.slane %v7360_v27, %v7388_v56 }
 0x2a7   : > { %v3113_v18 = vsel %vm3086_vm2, %v3063_v24, %v3112_v21 }
 0x2a8   : > { %v3106_v52 = vsel %vm3086_vm2, %v3031_v29, %v3105_v48 }
 0x2ae   : > { %v7364_v41 = vpop.xlane.xlu0 %2839 }
 0x2af   : > { %v2975_v33 = vrot.slane %v7364_v41, %v7388_v56 }
 0x2b1   : > { %v7366_v0 = vpop.xlane.xlu1 %2863 }
 0x2b2   : > { %v7368_v40 = vpop.xlane.xlu0 %2887  ;;  %v3007_v16 = vrot.slane %v7366_v0, %v7388_v56 }
 0x2b3   : > { %v3039_v39 = vrot.slane %v7368_v40, %v7388_v56 }
 0x2b6   : > { %v7370_v37 = vpop.xlane.xlu1 %2911 }
 0x2b7   : > { %v7372_v47 = vpop.xlane.xlu0 %2836 }
 0x2b8   : > { %v2971_v49 = vrot.slane %v7372_v47, %v7388_v56 }
 0x2ba   : > { %v3089_v7 = vsel %vm3088_vm3, %v2971_v49, %v3087_v25  ;;  %v3071_v49 = vrot.slane %v7370_v37, %v7388_v56 }
 0x2bb   : > { %v7374_v1 = vpop.xlane.xlu1 %2860  ;;  %v3091_v8 = vsel %vm3090_vm4, %v2975_v33, %v3089_v7 }
 0x2bc   : > { %v7376_v4 = vpop.xlane.xlu0 %2884  ;;  %v3003_v15 = vrot.slane %v7374_v1, %v7388_v56 }
 0x2bd   : > { %v3035_v11 = vrot.slane %v7376_v4, %v7388_v56 }
 0x2be   : > { %v3100_v62 = vsel %vm3088_vm3, %v3003_v15, %v3099_v30 }
 0x2bf   : > { %v3107_v3 = vsel %vm3088_vm3, %v3035_v11, %v3106_v52  ;;  %v3101_v42 = vsel %vm3090_vm4, %v3007_v16, %v3100_v62 }
 0x2c0   : > { %v7378_v31 = vpop.xlane.xlu1 %2908  ;;  %v3108_v32 = vsel %vm3090_vm4, %v3039_v39, %v3107_v3 }
 0x2c1   : > { %v3067_v35 = vrot.slane %v7378_v31, %v7388_v56 }
 0x2c2   : > { %v7380_v45 = vpop.xlane.xlu0 %2842 }
 0x2c3   : > { %v2979_v58 = vrot.slane %v7380_v45, %v7388_v56  ;;  %v3114_v20 = vsel %vm3088_vm3, %v3067_v35, %v3113_v18 }
 0x2c4   : > { %v3115_v52 = vsel %vm3090_vm4, %v3071_v49, %v3114_v20  ;;  %v8621_v49 = vld [vmem:[#allocation9_spill] sm:$0xff] }
 0x2c5   : > { %v7383_v38 = vpop.xlane.xlu1 %2866  ;;  %v3093_v61 = vsel %vm3092_vm5, %v2979_v58, %v3091_v8 }
 0x2c6   : > { %v3011_v34 = vrot.slane %v7383_v38, %v7388_v56 }
 0x2c7   : > { %v7385_v57 = vpop.xlane.xlu0 %2890 }
 0x2c8   : > { %v3043_v23 = vrot.slane %v7385_v57, %v7388_v56  ;;  %v3102_v25 = vsel %vm3092_vm5, %v3011_v34, %v3101_v42 }
 0x2ca   : > { %v3109_v7 = vsel %vm3092_vm5, %v3043_v23, %v3108_v32 }
 0x2cb   : > { %v7392_v55 = vpop.xlane.xlu1 %2914 }
 0x2cc   : > { %v3075_v15 = vrot.slane %v7392_v55, %v7388_v56 }
 0x2cd   : > { %v7398_v28 = vpop.xlane.xlu0 %2845 }
 0x2ce   : > { %v2983_v6 = vrot.slane %v7398_v28, %v7388_v56  ;;  %v3116_v62 = vsel %vm3092_vm5, %v3075_v15, %v3115_v52 }
 0x2d0   : > { %v7419_v46 = vpop.xlane.xlu1 %2869  ;;  %v3095_v2 = vsel %vm3094_vm6, %v2983_v6, %v3093_v61 }
 0x2d1   : > { %v7427_v10 = vpop.xlane.xlu0 %2893  ;;  %v3015_v19 = vrot.slane %v7419_v46, %v7388_v56 }
 0x2d2   : > { %v3047_v51 = vrot.slane %v7427_v10, %v7388_v56 }
 0x2d3   : > { %v3103_v24 = vsel %vm3094_vm6, %v3015_v19, %v3102_v25  ;;  %v7505_v19 = vsub.s32 3, %v8620_v17 }
 0x2d4   : > { %v7448_v12 = vpop.xlane.xlu1 %2917  ;;  %v3110_v6 = vsel %vm3094_vm6, %v3047_v51, %v3109_v7 }
 0x2d5   : > { %v7455_v9 = vpop.xlane.xlu0 %2848  ;;  %v3079_v58 = vrot.slane %v7448_v12, %v7388_v56 }
 0x2d6   : > { %v2987_v5 = vrot.slane %v7455_v9, %v7388_v56 }
 0x2d7   : > { %v3117_v34 = vsel %vm3094_vm6, %v3079_v58, %v3116_v62  ;;  %v8623_v58 = vld [vmem:[#allocation4_spill] sm:$0xff] }
 0x2d8   : > { %v3097_v44 = vsel %vm3096_vm7, %v2987_v5, %v3095_v2  ;;  %v8622_v2 = vld [vmem:[#allocation53_spill] sm:$0xff] }
 0x2d9   : > { %v7473_v29 = vpop.xlane.xlu1 %2872  ;;  %v7481_v48 = vpop.xlane.xlu0 %2896  ;;  %v3124_v21 = vsel %vm3123_vm8, %v3097_v44, -inf }
 0x2da   : > { %v3019_v11 = vrot.slane %v7473_v29, %v7388_v56  ;;  %v3051_v30 = vrot.slane %v7481_v48, %v7388_v56  ;;  %3125 = vmax.xlane.f32.xlu0 %v3124_v21 }
 0x2dc   : > { %v3104_v33 = vsel %vm3096_vm7, %v3019_v11, %v3103_v24  ;;  %v3111_v35 = vsel %vm3096_vm7, %v3051_v30, %v3110_v6  ;;  %v8624_v6 = vld [vmem:[#allocation5_spill] sm:$0xff] }
 0x2dd   : > { %v7493_v16 = vpop.xlane.xlu1 %2920  ;;  %v3127_v39 = vsel %vm3123_vm8, %v3104_v33, -inf  ;;  %v3130_v8 = vsel %vm3123_vm8, %v3111_v35, -inf }
 0x2de   : > { %v3083_v3 = vrot.slane %v7493_v16, %v7388_v56  ;;  %3128 = vmax.xlane.f32.xlu1 %v3127_v39  ;;  %3131 = vmax.xlane.f32.xlu0 %v3130_v8 }
 0x2e0   : > { %v3118_v61 = vsel %vm3096_vm7, %v3083_v3, %v3117_v34 }
 0x2e1   : > { %v3133_v23 = vsel %vm3123_vm8, %v3118_v61, -inf  ;;  %v8625_v61 = vld [vmem:[#allocation52_spill] sm:$0xff] }
 0x2e2   : > { %3134 = vmax.xlane.f32.xlu1 %v3133_v23 }
 0x363   : > { %v3126_v5 = vpop.xlane.xlu0 %3125 }
 0x364   : > { %v3143_v18 = vrot.slane %v3126_v5, %v8438_v50  ;;  %v3147_v51 = vrot.slane %v3126_v5, %v8621_v49  ;;  %v3151_v20 = vrot.slane %v3126_v5, %v8622_v2  ;;  %v3155_v42 = vrot.slane %v3126_v5, %v7505_v19 }
 0x365   : > { %v3159_v30 = vrot.slane %v3126_v5, %v8623_v58  ;;  %v3163_v52 = vrot.slane %v3126_v5, %v8624_v6  ;;  %v3167_v23 = vrot.slane %v3126_v5, %v8625_v61 }
 0x366   : > { %v3300_v32 = vsub.f32 %v7340_v22, %v3143_v18  ;;  %v3301_v44 = vsub.f32 %v7352_v54, %v3147_v51  ;;  %v3302_v15 = vsub.f32 %v7356_v60, %v3151_v20  ;;  %v3303_v24 = vsub.f32 %v7372_v47, %v3155_v42 }
 0x367   : > { %v7513_v25 = vpop.xlane.xlu1 %3128  ;;  %v3304_v60 = vsub.f32 %v7364_v41, %v3159_v30  ;;  %v7526_v3 = vpop.xlane.xlu0 %3131  ;;  %v7529_v47 = vsub.s32 7, %v8620_v17  ;;  %v3305_v8 = vsub.f32 %v7380_v45, %v3163_v52  ;;  %v3306_v17 = vsub.f32 %v7398_v28, %v3167_v23 }
 0x368   : > { %v3332_v11 = vmul.f32 1.442695, %v3300_v32  ;;  %v3334_v21 = vmul.f32 1.442695, %v3301_v44  ;;  %v3179_v7 = vrot.slane %v7513_v25, %v8621_v49  ;;  %v3336_v33 = vmul.f32 1.442695, %v3302_v15 }
 0x369   : > { %v3187_v22 = vrot.slane %v7513_v25, %v7505_v19  ;;  %v3338_v39 = vmul.f32 1.442695, %v3303_v24  ;;  %v3340_v34 = vmul.f32 1.442695, %v3304_v60  ;;  %v3342_v51 = vmul.f32 1.442695, %v3305_v8 }
 0x36a   : > { %5087 = vpow2.f32 %v3332_v11  ;;  %v3309_v54 = vsub.f32 %v7344_v13, %v3179_v7  ;;  %v3211_v13 = vrot.slane %v7526_v3, %v8621_v49  ;;  %v3344_v28 = vmul.f32 1.442695, %v3306_v17 }
 0x36b   : > { %5089 = vpow2.f32 %v3334_v21  ;;  %v3311_v35 = vsub.f32 %v7374_v1, %v3187_v22  ;;  %v3171_v1 = vrot.slane %v3126_v5, %v7529_v47  ;;  %v7540_v42 = vpop.xlane.xlu1 %3134  ;;  %v3175_v5 = vrot.slane %v7513_v25, %v8438_v50 }
 0x36c   : > { %5091 = vpow2.f32 %v3336_v33  ;;  %v3350_v62 = vmul.f32 1.442695, %v3309_v54  ;;  %v3317_v18 = vsub.f32 %v7350_v14, %v3211_v13  ;;  %v3243_v44 = vrot.slane %v7540_v42, %v8621_v49 }
 0x36d   : > { %5093 = vpow2.f32 %v3338_v39  ;;  %v3354_v41 = vmul.f32 1.442695, %v3311_v35  ;;  %v3307_v14 = vsub.f32 %v7455_v9, %v3171_v1  ;;  %v3247_v15 = vrot.slane %v7540_v42, %v8622_v2 }
 0x36e   : > { %5095 = vpow2.f32 %v3350_v62  ;;  %v3366_v45 = vmul.f32 1.442695, %v3317_v18  ;;  %v3325_v21 = vsub.f32 %v7354_v43, %v3243_v44  ;;  %v3183_v9 = vrot.slane %v7513_v25, %v8622_v2 }
 0x36f   : > { %5097 = vpow2.f32 %v3340_v34  ;;  %v3346_v7 = vmul.f32 1.442695, %v3307_v14  ;;  %v3308_v30 = vsub.f32 %v7342_v63, %v3175_v5  ;;  %v3251_v33 = vrot.slane %v7540_v42, %v7505_v19 }
 0x370   : > { %5099 = vpow2.f32 %v3354_v41  ;;  %v3326_v22 = vsub.f32 %v7362_v59, %v3247_v15  ;;  %v3382_v54 = vmul.f32 1.442695, %v3325_v21  ;;  %v3310_v43 = vsub.f32 %v7358_v26, %v3183_v9 }
 0x371   : > { %5101 = vpow2.f32 %v3342_v51  ;;  %v3348_v60 = vmul.f32 1.442695, %v3308_v30  ;;  %v3207_v63 = vrot.slane %v7526_v3, %v8438_v50  ;;  %v3223_v35 = vrot.slane %v7526_v3, %v8623_v58 }
 0x372   : > { %5103 = vpow2.f32 %v3366_v45  ;;  %v3327_v59 = vsub.f32 %v7378_v31, %v3251_v33  ;;  %v3384_v62 = vmul.f32 1.442695, %v3326_v22  ;;  %v3195_v26 = vrot.slane %v7513_v25, %v8624_v6 }
 0x373   : > { %5105 = vpow2.f32 %v3344_v28  ;;  %v3352_v34 = vmul.f32 1.442695, %v3310_v43  ;;  %v3316_v13 = vsub.f32 %v7346_v36, %v3207_v63  ;;  %v3320_v41 = vsub.f32 %v7368_v40, %v3223_v35 }
 0x374   : > { %5107 = vpow2.f32 %v3346_v7  ;;  %v3239_v31 = vrot.slane %v7540_v42, %v8438_v50  ;;  %v3386_v18 = vmul.f32 1.442695, %v3327_v59  ;;  %v3313_v51 = vsub.f32 %v7383_v38, %v3195_v26 }
 0x375   : > { %5109 = vpow2.f32 %v3382_v54  ;;  %v3215_v36 = vrot.slane %v7526_v3, %v8622_v2  ;;  %v3364_v17 = vmul.f32 1.442695, %v3316_v13  ;;  %v3372_v45 = vmul.f32 1.442695, %v3320_v41 }
 0x376   : > { %5111 = vpow2.f32 %v3348_v60  ;;  %v3259_v40 = vrot.slane %v7540_v42, %v8624_v6  ;;  %v3324_v14 = vsub.f32 %v7348_v53, %v3239_v31  ;;  %v3358_v44 = vmul.f32 1.442695, %v3313_v51 }
 0x377   : > { %v7537_v20 = vpop.eup %5087  ;;  %5113 = vpow2.f32 %v3384_v62  ;;  %v3219_v38 = vrot.slane %v7526_v3, %v7505_v19  ;;  %v3318_v28 = vsub.f32 %v7360_v27, %v3215_v36  ;;  %v3231_v21 = vrot.slane %v7526_v3, %v8625_v61 }
 0x378   : > { %v7542_v32 = vpop.eup %5089  ;;  %3429 = vperm.xlu0 %5040, %v7537_v20   ;;  %5115 = vpow2.f32 %v3352_v34  ;;  %v3329_v53 = vsub.f32 %v7392_v55, %v3259_v40  ;;  %v3380_v7 = vmul.f32 1.442695, %v3324_v14  ;;  %v3191_v30 = vrot.slane %v7513_v25, %v8623_v58 }
 0x379   : > { %3432 = vperm.xlu1 %5086, %v7542_v32   ;;  %v7553_v11 = vpop.eup %5091  ;;  %5117 = vpow2.f32 %v3386_v18  ;;  %v3319_v27 = vsub.f32 %v7376_v4, %v3219_v38  ;;  %v3368_v33 = vmul.f32 1.442695, %v3318_v28  ;;  %v3203_v54 = vrot.slane %v7513_v25, %v7529_v47 }
 0x37a   : > { %v7560_v24 = vpop.eup %5093  ;;  %5119 = vpow2.f32 %v3364_v17  ;;  %v3322_v55 = vsub.f32 %v7427_v10, %v3231_v21  ;;  %v3390_v43 = vmul.f32 1.442695, %v3329_v53  ;;  %v3312_v63 = vsub.f32 %v7366_v0, %v3191_v30 }
 0x37b   : > { %v7565_v52 = vpop.eup %5095  ;;  %5121 = vpow2.f32 %v3372_v45  ;;  %v3370_v4 = vmul.f32 1.442695, %v3319_v27  ;;  %v3255_v35 = vrot.slane %v7540_v42, %v8623_v58  ;;  %v3315_v62 = vsub.f32 %v7473_v29, %v3203_v54 }
 0x37c   : > { %3456 = vperm.xlu0 %5040, %v7565_v52   ;;  %v7572_v39 = vpop.eup %5097  ;;  %5123 = vpow2.f32 %v3358_v44  ;;  %v3376_v10 = vmul.f32 1.442695, %v3322_v55  ;;  %v3267_v26 = vrot.slane %v7540_v42, %v7529_v47  ;;  %v3356_v0 = vmul.f32 1.442695, %v3312_v63 }
 0x37d   : > { %3435 = vperm.xlu1 %5086, %v7553_v11   ;;  %v7577_v8 = vpop.eup %5099  ;;  %5125 = vpow2.f32 %v3380_v7  ;;  %v3328_v13 = vsub.f32 %v7370_v37, %v3255_v35  ;;  %v3362_v31 = vmul.f32 1.442695, %v3315_v62  ;;  %v3227_v29 = vrot.slane %v7526_v3, %v8624_v6 }
 0x37e   : > { %v7584_v23 = vpop.eup %5101  ;;  %5127 = vpow2.f32 %v3368_v33  ;;  %v3331_v18 = vsub.f32 %v7493_v16, %v3267_v26  ;;  %v3199_v37 = vrot.slane %v7513_v25, %v8625_v61  ;;  %v3263_v28 = vrot.slane %v7540_v42, %v8625_v61 }
 0x37f   : > { %v7589_v1 = vpop.eup %5103  ;;  %5129 = vpow2.f32 %v3390_v43  ;;  %v3388_v36 = vmul.f32 1.442695, %v3328_v13  ;;  %v3321_v45 = vsub.f32 %v7385_v57, %v3227_v29  ;;  %v3235_v53 = vrot.slane %v7526_v3, %v7529_v47 }
 0x380   : > { %3462 = vperm.xlu0 %5040, %v7577_v8   ;;  %v7599_v5 = vpop.eup %5105  ;;  %5131 = vpow2.f32 %v3370_v4  ;;  %v3394_v40 = vmul.f32 1.442695, %v3331_v18  ;;  %v3314_v44 = vsub.f32 %v7419_v46, %v3199_v37  ;;  %v3330_v46 = vsub.f32 %v7448_v12, %v3263_v28 }
 0x381   : > { %3438 = vperm.xlu1 %5086, %v7560_v24   ;;  %v7605_v15 = vpop.eup %5107  ;;  %5133 = vpow2.f32 %v3376_v10  ;;  %v3374_v38 = vmul.f32 1.442695, %v3321_v45  ;;  %v3323_v30 = vsub.f32 %v7481_v48, %v3235_v53 }
 0x382   : > { %v7610_v9 = vpop.eup %5109  ;;  %5135 = vpow2.f32 %v3356_v0  ;;  %v3360_v21 = vmul.f32 1.442695, %v3314_v44  ;;  %v3392_v27 = vmul.f32 1.442695, %v3330_v46 }
 0x383   : > { %v7617_v22 = vpop.eup %5111  ;;  %5137 = vpow2.f32 %v3362_v31  ;;  %v3378_v12 = vmul.f32 1.442695, %v3323_v30 }
 0x384   : > { %3480 = vperm.xlu0 %5040, %v7589_v1   ;;  %v7622_v60 = vpop.eup %5113  ;;  %5139 = vpow2.f32 %v3388_v36 }
 0x385   : > { %3441 = vperm.xlu1 %5086, %v7572_v39   ;;  %v7629_v59 = vpop.eup %5115  ;;  %5141 = vpow2.f32 %v3394_v40 }
 0x386   : > { %v7634_v34 = vpop.eup %5117  ;;  %5143 = vpow2.f32 %v3374_v38 }
 0x387   : > { %v7639_v41 = vpop.eup %5119  ;;  %5145 = vpow2.f32 %v3360_v21 }
 0x388   : > { %3504 = vperm.xlu0 %5040, %v7610_v9   ;;  %v7644_v51 = vpop.eup %5121  ;;  %5147 = vpow2.f32 %v3392_v27 }
 0x389   : > { %3444 = vperm.xlu1 %5086, %v7584_v23   ;;  %v7648_v17 = vpop.eup %5123  ;;  %5149 = vpow2.f32 %v3378_v12 }
 0x38a   : > { %v7653_v14 = vpop.eup %5125 }
 0x38b   : > { %v7657_v16 = vpop.eup %5127 }
 0x38c   : > { %3507 = vperm.xlu0 %5040, %v7622_v60   ;;  %v7662_v25 = vpop.eup %5129 }
 0x38d   : > { %3447 = vperm.xlu1 %5086, %v7599_v5   ;;  %v7666_v57 = vpop.eup %5131 }
 0x38e   : > { %v7671_v7 = vpop.eup %5133 }
 0x38f   : > { %8626 = vst [vmem:[#allocation79_spill] sm:$0xff] %v7671_v7  ;;  %v7675_v42 = vpop.eup %5135 }
 0x390   : > { %3510 = vperm.xlu0 %5040, %v7634_v34   ;;  %v7678_v33 = vpop.eup %5137 }
 0x391   : > { %3450 = vperm.xlu1 %5086, %v7605_v15   ;;  %8627 = vst [vmem:[#allocation89_spill] sm:$0xff] %v7678_v33  ;;  %v7682_v3 = vpop.eup %5139 }
 0x392   : > { %v7684_v54 = vpop.eup %5141 }
 0x393   : > { %8628 = vst [vmem:[#allocation114_spill] sm:$0xff] %v7684_v54  ;;  %v7688_v55 = vpop.eup %5143 }
 0x394   : > { %3489 = vperm.xlu0 %5040, %v7644_v51   ;;  %v7691_v48 = vpop.eup %5145 }
 0x395   : > { %3453 = vperm.xlu1 %5086, %v7617_v22   ;;  %8629 = vst [vmem:[#allocation31_spill] sm:$0xff] %v7691_v48  ;;  %v7694_v43 = vpop.eup %5147 }
 0x396   : > { %8630 = vst [vmem:[#allocation107_spill] sm:$0xff] %v7694_v43  ;;  %v7697_v63 = vpop.eup %5149 }
 0x397   : > { %8631 = vst [vmem:[#allocation118_spill] sm:$0xff] %v7697_v63 }
 0x398   : > { %3468 = vperm.xlu0 %5040, %v7648_v17  }
 0x399   : > { %3459 = vperm.xlu1 %5086, %v7629_v59  }
 0x39c   : > { %3516 = vperm.xlu0 %5040, %v7662_v25  }
 0x39d   : > { %3477 = vperm.xlu1 %5086, %v7639_v41  }
 0x3a0   : > { %3495 = vperm.xlu0 %5040, %v7671_v7  }
 0x3a1   : > { %3501 = vperm.xlu1 %5086, %v7653_v14  }
 0x3a4   : > { %3474 = vperm.xlu0 %5040, %v7678_v33  }
 0x3a5   : > { %3483 = vperm.xlu1 %5086, %v7657_v16  }
 0x3a8   : > { %3522 = vperm.xlu0 %5040, %v7684_v54  }
 0x3a9   : > { %3486 = vperm.xlu1 %5086, %v7666_v57  }
 0x3ad   : > { %3465 = vperm.xlu1 %5086, %v7675_v42  }
 0x3b1   : > { %3513 = vperm.xlu1 %5086, %v7682_v3  }
 0x3b5   : > { %3492 = vperm.xlu1 %5086, %v7688_v55  }
 0x3b9   : > { %3471 = vperm.xlu1 %5086, %v7691_v48  }
 0x3bd   : > { %3519 = vperm.xlu1 %5086, %v7694_v43  }
 0x3c1   : > { %3498 = vperm.xlu1 %5086, %v7697_v63  }
 0x3f3   : > { %v3430_v35 = vpop.permute.xlu0 %3429 }
 0x3f4   : > { %v3433_v4 = vpop.permute.xlu1 %3432  ;;  %v3527_v29 = vrot.slane %v3430_v35, %v7388_v56 }
 0x3f5   : > { %v3531_v18 = vrot.slane %v3433_v4, %v7388_v56 }
 0x3f7   : > { %v3457_v10 = vpop.permute.xlu0 %3456  ;;  %v3652_v38 = vsel %vm3084_vm1, %v3531_v18, %v3527_v29 }
 0x3f8   : > { %v3436_v62 = vpop.permute.xlu1 %3435 }
 0x3f9   : > { %v3535_v36 = vrot.slane %v3436_v62, %v7388_v56 }
 0x3fb   : > { %v3463_v0 = vpop.permute.xlu0 %3462  ;;  %v3653_v21 = vsel %vm3086_vm2, %v3535_v36, %v3652_v38 }
 0x3fc   : > { %v3439_v26 = vpop.permute.xlu1 %3438  ;;  %v3571_v33 = vrot.slane %v3463_v0, %v7388_v56 }
 0x3fd   : > { %v3539_v45 = vrot.slane %v3439_v26, %v7388_v56 }
 0x3ff   : > { %v3481_v37 = vpop.permute.xlu0 %3480  ;;  %v3654_v46 = vsel %vm3088_vm3, %v3539_v45, %v3653_v21 }
 0x400   : > { %v3442_v13 = vpop.permute.xlu1 %3441 }
 0x401   : > { %v3543_v40 = vrot.slane %v3442_v13, %v7388_v56 }
 0x403   : > { %v3655_v30 = vsel %vm3090_vm4, %v3543_v40, %v3654_v46  ;;  %v3505_v27 = vpop.permute.xlu0 %3504 }
 0x404   : > { %v3445_v31 = vpop.permute.xlu1 %3444 }
 0x405   : > { %v3547_v28 = vrot.slane %v3445_v31, %v7388_v56 }
 0x407   : > { %v3656_v4 = vsel %vm3092_vm5, %v3547_v28, %v3655_v30  ;;  %v3508_v13 = vpop.permute.xlu0 %3507 }
 0x408   : > { %v3448_v44 = vpop.permute.xlu1 %3447 }
 0x409   : > { %v3551_v53 = vrot.slane %v3448_v44, %v7388_v56 }
 0x40b   : > { %v3657_v62 = vsel %vm3094_vm6, %v3551_v53, %v3656_v4  ;;  %v3511_v18 = vpop.permute.xlu0 %3510 }
 0x40c   : > { %v3451_v12 = vpop.permute.xlu1 %3450 }
 0x40d   : > { %v3555_v35 = vrot.slane %v3451_v12, %v7388_v56 }
 0x40f   : > { %v3658_v26 = vsel %vm3096_vm7, %v3555_v35, %v3657_v62  ;;  %v3490_v44 = vpop.permute.xlu0 %3489  ;;  %v3563_v35 = vrot.slane %v3457_v10, %v7388_v56 }
 0x410   : > { %v3454_v31 = vpop.permute.xlu1 %3453  ;;  %v3684_v29 = vsel %vm3123_vm8, %v3658_v26, 0.0 }
 0x411   : > { %3685 = vadd.xlane.f32.xlu1 %v3684_v29  ;;  %v3559_v12 = vrot.slane %v3454_v31, %v7388_v56  ;;  %v3627_v29 = vrot.slane %v3505_v27, %v7388_v56 }
 0x413   : > { %v3469_v38 = vpop.permute.xlu0 %3468  ;;  %v3659_v63 = vsel %vm3084_vm1, %v3563_v35, %v3559_v12  ;;  %v3635_v35 = vrot.slane %v3511_v18, %v7388_v56 }
 0x414   : > { %v3460_v36 = vpop.permute.xlu1 %3459 }
 0x415   : > { %v3567_v53 = vrot.slane %v3460_v36, %v7388_v56  ;;  %v3631_v36 = vrot.slane %v3508_v13, %v7388_v56  ;;  %v3579_v13 = vrot.slane %v3469_v38, %v7388_v56 }
 0x417   : > { %v3517_v28 = vpop.permute.xlu0 %3516  ;;  %v3660_v54 = vsel %vm3086_vm2, %v3567_v53, %v3659_v63 }
 0x418   : > { %v3478_v45 = vpop.permute.xlu1 %3477  ;;  %v3661_v12 = vsel %vm3088_vm3, %v3571_v33, %v3660_v54 }
 0x419   : > { %v3591_v10 = vrot.slane %v3478_v45, %v7388_v56 }
 0x41b   : > { %v3496_v4 = vpop.permute.xlu0 %3495 }
 0x41c   : > { %v3502_v40 = vpop.permute.xlu1 %3501 }
 0x41d   : > { %v3623_v62 = vrot.slane %v3502_v40, %v7388_v56  ;;  %v3595_v40 = vrot.slane %v3481_v37, %v7388_v56 }
 0x41f   : > { %v3673_v31 = vsel %vm3084_vm1, %v3627_v29, %v3623_v62  ;;  %v3475_v7 = vpop.permute.xlu0 %3474  ;;  %v3666_v62 = vsel %vm3084_vm1, %v3595_v40, %v3591_v10 }
 0x420   : > { %v3484_v21 = vpop.permute.xlu1 %3483  ;;  %v3674_v63 = vsel %vm3086_vm2, %v3631_v36, %v3673_v31  ;;  %v3607_v31 = vrot.slane %v3490_v44, %v7388_v56  ;;  %v3643_v36 = vrot.slane %v3517_v28, %v7388_v56  ;;  %v3615_v28 = vrot.slane %v3496_v4, %v7388_v56 }
 0x421   : > { %v3599_v27 = vrot.slane %v3484_v21, %v7388_v56  ;;  %v3587_v21 = vrot.slane %v3475_v7, %v7388_v56  ;;  %v3675_v54 = vsel %vm3088_vm3, %v3635_v35, %v3674_v63 }
 0x423   : > { %v3667_v33 = vsel %vm3086_vm2, %v3599_v27, %v3666_v62 }
 0x424   : > { %v3487_v46 = vpop.permute.xlu1 %3486 }
 0x428   : > { %v3466_v30 = vpop.permute.xlu1 %3465 }
 0x429   : > { %v3575_v43 = vrot.slane %v3466_v30, %v7388_v56  ;;  %v3603_v30 = vrot.slane %v3487_v46, %v7388_v56 }
 0x42b   : > { %v3662_v0 = vsel %vm3090_vm4, %v3575_v43, %v3661_v12  ;;  %v3523_v43 = vpop.permute.xlu0 %3522 }
 0x42c   : > { %v3514_v26 = vpop.permute.xlu1 %3513  ;;  %v3663_v46 = vsel %vm3092_vm5, %v3579_v13, %v3662_v0  ;;  %v3651_v12 = vrot.slane %v3523_v43, %v7388_v56 }
 0x42d   : > { %v3639_v53 = vrot.slane %v3514_v26, %v7388_v56  ;;  %v3668_v26 = vsel %vm3088_vm3, %v3603_v30, %v3667_v33 }
 0x42e   : > { %v3669_v63 = vsel %vm3090_vm4, %v3607_v31, %v3668_v26 }
 0x42f   : > { %v3676_v18 = vsel %vm3090_vm4, %v3639_v53, %v3675_v54 }
 0x430   : > { %v3493_v48 = vpop.permute.xlu1 %3492 }
 0x431   : > { %v3611_v38 = vrot.slane %v3493_v48, %v7388_v56  ;;  %v3677_v48 = vsel %vm3092_vm5, %v3643_v36, %v3676_v18 }
 0x433   : > { %v3670_v30 = vsel %vm3092_vm5, %v3611_v38, %v3669_v63 }
 0x434   : > { %v3472_v45 = vpop.permute.xlu1 %3471 }
 0x435   : > { %v3583_v37 = vrot.slane %v3472_v45, %v7388_v56  ;;  %v3671_v45 = vsel %vm3094_vm6, %v3615_v28, %v3670_v30 }
 0x437   : > { %v3664_v29 = vsel %vm3094_vm6, %v3583_v37, %v3663_v46 }
 0x438   : > { %v3520_v7 = vpop.permute.xlu1 %3519  ;;  %v3665_v10 = vsel %vm3096_vm7, %v3587_v21, %v3664_v29 }
 0x439   : > { %v3647_v40 = vrot.slane %v3520_v7, %v7388_v56  ;;  %v3687_v27 = vsel %vm3123_vm8, %v3665_v10, 0.0 }
 0x43a   : > { %3688 = vadd.xlane.f32.xlu0 %v3687_v27 }
 0x43b   : > { %v3678_v44 = vsel %vm3094_vm6, %v3647_v40, %v3677_v48 }
 0x43c   : > { %v3499_v0 = vpop.permute.xlu1 %3498  ;;  %v3679_v53 = vsel %vm3096_vm7, %v3651_v12, %v3678_v44 }
 0x43d   : > { %v3619_v35 = vrot.slane %v3499_v0, %v7388_v56  ;;  %v3693_v13 = vsel %vm3123_vm8, %v3679_v53, 0.0 }
 0x43e   : > { %3694 = vadd.xlane.f32.xlu1 %v3693_v13 }
 0x43f   : > { %v3672_v62 = vsel %vm3096_vm7, %v3619_v35, %v3671_v45 }
 0x440   : > { %v3690_v37 = vsel %vm3123_vm8, %v3672_v62, 0.0 }
 0x441   : > { %3691 = vadd.xlane.f32.xlu0 %v3690_v37 }
 0x49a   : > { %v3686_v21 = vpop.xlane.xlu1 %3685 }
 0x49b   : > { %5151 = vrcp.f32 %v3686_v21 }
 0x4a8   : > { %v5152_v33 = vpop.eup %5151 }
 0x4a9   : > { %v3711_v4 = vrot.slane %v5152_v33, %v8621_v49  ;;  %v3707_v54 = vrot.slane %v5152_v33, %v8438_v50  ;;  %v3715_v43 = vrot.slane %v5152_v33, %v8622_v2  ;;  %v3719_v26 = vrot.slane %v5152_v33, %v7505_v19 }
 0x4aa   : > { %v3723_v29 = vrot.slane %v5152_v33, %v8623_v58  ;;  %v3727_v31 = vrot.slane %v5152_v33, %v8624_v6  ;;  %v3731_v36 = vrot.slane %v5152_v33, %v8625_v61  ;;  %v3735_v7 = vrot.slane %v5152_v33, %v7529_v47 }
 0x4ab   : > { %v3865_v46 = vmul.f32 %v7542_v32, %v3711_v4  ;;  %v3864_v56 = vmul.f32 %v7537_v20, %v3707_v54  ;;  %v3866_v18 = vmul.f32 %v7553_v11, %v3715_v43  ;;  %v3867_v38 = vmul.f32 %v7560_v24, %v3719_v26 }
 0x4ac   : > { %v3868_v32 = vmul.f32 %v7572_v39, %v3723_v29  ;;  %v3869_v20 = vmul.f32 %v7584_v23, %v3727_v31  ;;  %v3870_v11 = vmul.f32 %v7599_v5, %v3731_v36  ;;  %v3871_v24 = vmul.f32 %v7605_v15, %v3735_v7  ;;  %v8637_v36 = vld [vmem:[#allocation118_spill] sm:$0xff] }
 0x4ad   : > { %3903 = vperm.xlu1 %5086, %v3865_v46   ;;  %3898 = vperm.xlu0 %5040, %v3864_v56   ;;  %v8633_v56 = vld [vmem:[#allocation31_spill] sm:$0xff] }
 0x4b1   : > { %3908 = vperm.xlu1 %5086, %v3866_v18   ;;  %3913 = vperm.xlu0 %5040, %v3867_v38   ;;  %v8635_v18 = vld [vmem:[#allocation107_spill] sm:$0xff] }
 0x4b5   : > { %3918 = vperm.xlu1 %5086, %v3868_v32   ;;  %3923 = vperm.xlu0 %5040, %v3869_v20   ;;  %v8636_v32 = vld [vmem:[#allocation114_spill] sm:$0xff] }
 0x4b9   : > { %3928 = vperm.xlu1 %5086, %v3870_v11   ;;  %3933 = vperm.xlu0 %5040, %v3871_v24   ;;  %v8638_v24 = vld [vmem:[#allocation40_spill] sm:$0xff] }
 0x4c3   : > { %v3689_v10 = vpop.xlane.xlu0 %3688 }
 0x4c4   : > { %5153 = vrcp.f32 %v3689_v10 }
 0x4c7   : > { %v3695_v40 = vpop.xlane.xlu1 %3694 }
 0x4c8   : > { %5155 = vrcp.f32 %v3695_v40  ;;  %v8639_v40 = vld [vmem:[#allocation41_spill] sm:$0xff] }
 0x4ca   : > { %v3692_v27 = vpop.xlane.xlu0 %3691 }
 0x4cb   : > { %5157 = vrcp.f32 %v3692_v27 }
 0x4d1   : > { %v7780_v39 = vpop.eup %5153 }
 0x4d2   : > { %v3739_v23 = vrot.slane %v7780_v39, %v8438_v50  ;;  %v3743_v12 = vrot.slane %v7780_v39, %v8621_v49 }
 0x4d4   : > { %v3872_v5 = vmul.f32 %v7617_v22, %v3739_v23  ;;  %v3873_v15 = vmul.f32 %v7565_v52, %v3743_v12 }
 0x4d5   : > { %v7788_v63 = vpop.eup %5155 }
 0x4d6   : > { %3938 = vperm.xlu1 %5086, %v3872_v5   ;;  %3943 = vperm.xlu0 %5040, %v3873_v15   ;;  %v3807_v22 = vrot.slane %v7788_v63, %v8621_v49  ;;  %v3803_v52 = vrot.slane %v7788_v63, %v8438_v50  ;;  %v3815_v62 = vrot.slane %v7788_v63, %v7505_v19 }
 0x4d7   : > { %v3823_v4 = vrot.slane %v7788_v63, %v8624_v6  ;;  %v3831_v29 = vrot.slane %v7788_v63, %v7529_v47 }
 0x4d8   : > { %v7790_v48 = vpop.eup %5157  ;;  %v3889_v53 = vmul.f32 %v7610_v9, %v3807_v22  ;;  %v3888_v35 = vmul.f32 %v7653_v14, %v3803_v52  ;;  %v3811_v9 = vrot.slane %v7788_v63, %v8622_v2 }
 0x4d9   : > { %v3771_v30 = vrot.slane %v7790_v48, %v8438_v50  ;;  %v3775_v44 = vrot.slane %v7790_v48, %v8621_v49  ;;  %v3779_v13 = vrot.slane %v7790_v48, %v8622_v2  ;;  %v3751_v50 = vrot.slane %v7780_v39, %v7505_v19 }
 0x4da   : > { %v3890_v45 = vmul.f32 %v7622_v60, %v3811_v9  ;;  %v3799_v31 = vrot.slane %v7790_v48, %v7529_v47  ;;  %v3895_v20 = vmul.f32 %v8636_v32, %v3831_v29 }
 0x4db   : > { %v3880_v28 = vmul.f32 %v7639_v41, %v3771_v30  ;;  %v3881_v0 = vmul.f32 %v7589_v1, %v3775_v44  ;;  %v3747_v41 = vrot.slane %v7780_v39, %v8622_v2  ;;  %v3882_v1 = vmul.f32 %v7657_v16, %v3779_v13  ;;  %v8641_v30 = vld [vmem:[#allocation15_spill] sm:$0xff] }
 0x4dc   : > { %v3875_v14 = vmul.f32 %v7577_v8, %v3751_v50  ;;  %v3783_v16 = vrot.slane %v7790_v48, %v7505_v19  ;;  %v3787_v2 = vrot.slane %v7790_v48, %v8623_v58  ;;  %v3755_v8 = vrot.slane %v7780_v39, %v8623_v58  ;;  %v8642_v50 = vld [vmem:[#allocation70_spill] sm:$0xff] }
 0x4dd   : > { %3978 = vperm.xlu1 %5086, %v3880_v28   ;;  %3983 = vperm.xlu0 %5040, %v3881_v0   ;;  %v3874_v49 = vmul.f32 %v7629_v59, %v3747_v41  ;;  %v3891_v59 = vmul.f32 %v7634_v34, %v3815_v62  ;;  %v3759_v19 = vrot.slane %v7780_v39, %v8624_v6 }
 0x4de   : > { %v3883_v37 = vmul.f32 %v7666_v57, %v3783_v16  ;;  %v3884_v60 = vmul.f32 %v7644_v51, %v3787_v2  ;;  %v3876_v21 = vmul.f32 %v7675_v42, %v3755_v8  ;;  %v3819_v34 = vrot.slane %v7788_v63, %v8623_v58 }
 0x4df   : > { %v3877_v57 = vmul.f32 %v7648_v17, %v3759_v19  ;;  %v3791_v51 = vrot.slane %v7790_v48, %v8624_v6  ;;  %v3893_v42 = vmul.f32 %v7662_v25, %v3823_v4  ;;  %v3795_v58 = vrot.slane %v7790_v48, %v8625_v61 }
 0x4e0   : > { %v3892_v33 = vmul.f32 %v7682_v3, %v3819_v34  ;;  %v3763_v17 = vrot.slane %v7780_v39, %v8625_v61  ;;  %v8632_v3 = vld [vmem:[#allocation79_spill] sm:$0xff]  ;;  %v3767_v6 = vrot.slane %v7780_v39, %v7529_v47  ;;  %v3827_v25 = vrot.slane %v7788_v63, %v8625_v61  ;;  %v8640_v63 = vld [vmem:[#allocation14_spill] sm:$0xff] }
 0x4e1   : > { %4023 = vperm.xlu0 %5040, %v3889_v53   ;;  %4018 = vperm.xlu1 %5086, %v3888_v35   ;;  %v3885_v54 = vmul.f32 %v7688_v55, %v3791_v51  ;;  %v3886_v46 = vmul.f32 %v8632_v3, %v3795_v58  ;;  %v8634_v55 = vld [vmem:[#allocation89_spill] sm:$0xff]  ;;  %v3887_v7 = vmul.f32 %v8637_v36, %v3799_v31 }
 0x4e2   : > { %v3878_v43 = vmul.f32 %v8633_v56, %v3763_v17  ;;  %v3879_v26 = vmul.f32 %v8634_v55, %v3767_v6  ;;  %v3894_v38 = vmul.f32 %v8635_v18, %v3827_v25  ;;  %v8645_v58 = vld [vmem:[#allocation77_spill] sm:$0xff] }
 0x4e5   : > { %3988 = vperm.xlu0 %5040, %v3882_v1   ;;  %3948 = vperm.xlu1 %5086, %v3874_v49  }
 0x4e9   : > { %3953 = vperm.xlu0 %5040, %v3875_v14   ;;  %4028 = vperm.xlu1 %5086, %v3890_v45   ;;  %v8643_v14 = vld [vmem:[#allocation71_spill] sm:$0xff] }
 0x4ed   : > { %4033 = vperm.xlu0 %5040, %v3891_v59   ;;  %3993 = vperm.xlu1 %5086, %v3883_v37  }
 0x4f1   : > { %3998 = vperm.xlu0 %5040, %v3884_v60   ;;  %3958 = vperm.xlu1 %5086, %v3876_v21  }
 0x4f5   : > { %3963 = vperm.xlu0 %5040, %v3877_v57   ;;  %4038 = vperm.xlu1 %5086, %v3892_v33  }
 0x4f9   : > { %4043 = vperm.xlu0 %5040, %v3893_v42   ;;  %4003 = vperm.xlu1 %5086, %v3885_v54   ;;  %v8644_v42 = vld [vmem:[#allocation76_spill] sm:$0xff] }
 0x4fd   : > { %4008 = vperm.xlu0 %5040, %v3886_v46   ;;  %3968 = vperm.xlu1 %5086, %v3878_v43  }
 0x501   : > { %3973 = vperm.xlu0 %5040, %v3879_v26   ;;  %4048 = vperm.xlu1 %5086, %v3894_v38  }
 0x505   : > { %4053 = vperm.xlu0 %5040, %v3895_v20   ;;  %4013 = vperm.xlu1 %5086, %v3887_v7  }
 0x528   : > { %v3899_v61 = vpop.permute.xlu0 %3898  ;;  %v3904_v11 = vpop.permute.xlu1 %3903 }
 0x529   : > { %v4056_v10 = vmul.f32 %v3899_v61, %v8638_v24  ;;  %v4057_v27 = vmul.f32 %v3904_v11, %v8639_v40 }
 0x52b   : > { %v4088_v39 = vrot.slane %v4056_v10, 4  ;;  %v4094_v23 = vrot.slane %v4057_v27, 4 }
 0x52c   : > { %v3914_v12 = vpop.permute.xlu0 %3913  ;;  %v3909_v5 = vpop.permute.xlu1 %3908 }
 0x52d   : > { %v4089_v15 = vadd.f32 %v4088_v39, %v4056_v10  ;;  %v4095_v47 = vadd.f32 %v4094_v23, %v4057_v27  ;;  %v4059_v48 = vmul.f32 %v3914_v12, %v8640_v63  ;;  %v4058_v44 = vmul.f32 %v3909_v5, %v8641_v30 }
 0x52f   : > { %v4090_v28 = vrot.slane %v4089_v15, 2  ;;  %v4096_v0 = vrot.slane %v4095_v47, 2  ;;  %v4106_v22 = vrot.slane %v4059_v48, 4  ;;  %v4100_v52 = vrot.slane %v4058_v44, 4 }
 0x530   : > { %v3924_v53 = vpop.permute.xlu0 %3923  ;;  %v3919_v35 = vpop.permute.xlu1 %3918 }
 0x531   : > { %v4091_v13 = vadd.f32 %v4090_v28, %v4089_v15  ;;  %v4097_v41 = vadd.f32 %v4096_v0, %v4095_v47  ;;  %v4107_v1 = vadd.f32 %v4106_v22, %v4059_v48  ;;  %v4101_v49 = vadd.f32 %v4100_v52, %v4058_v44 }
 0x532   : > { %v4061_v9 = vmul.f32 %v3924_v53, %v8642_v50  ;;  %v4060_v45 = vmul.f32 %v3919_v35, %v8643_v14 }
 0x533   : > { %v4092_v62 = vrot.slane %v4091_v13, 1  ;;  %v4098_v16 = vrot.slane %v4097_v41, 1  ;;  %v4108_v59 = vrot.slane %v4107_v1, 2  ;;  %v4102_v37 = vrot.slane %v4101_v49, 2 }
 0x534   : > { %v4118_v2 = vrot.slane %v4061_v9, 4  ;;  %v4112_v8 = vrot.slane %v4060_v45, 4  ;;  %v3934_v60 = vpop.permute.xlu0 %3933  ;;  %v3929_v21 = vpop.permute.xlu1 %3928 }
 0x535   : > { %v4093_v19 = vadd.f32 %v4092_v62, %v4091_v13  ;;  %v4099_v34 = vadd.f32 %v4098_v16, %v4097_v41  ;;  %v4109_v57 = vadd.f32 %v4108_v59, %v4107_v1  ;;  %v4103_v33 = vadd.f32 %v4102_v37, %v4101_v49 }
 0x536   : > { %v4119_v4 = vadd.f32 %v4118_v2, %v4061_v9  ;;  %v4113_v51 = vadd.f32 %v4112_v8, %v4060_v45  ;;  %v4063_v54 = vmul.f32 %v3934_v60, %v8644_v42  ;;  %v4062_v17 = vmul.f32 %v3929_v21, %v8645_v58  ;;  %v8646_v2 = vld [vmem:[#allocation88_spill] sm:$0xff]  ;;  %v8647_v60 = vld [vmem:[#allocation82_spill] sm:$0xff]  ;;  %v8648_v58 = vld [vmem:[#allocation91_spill] sm:$0xff] }
 0x537   : > { %v4658_v3 = vpack.c.bf16 %v4093_v19, %v4093_v19  ;;  %v4659_v46 = vpack.c.bf16 %v4099_v34, %v4099_v34  ;;  %v4110_v56 = vrot.slane %v4109_v57, 1  ;;  %v4104_v43 = vrot.slane %v4103_v33, 1 }
 0x538   : > { %v4120_v6 = vrot.slane %v4119_v4, 2  ;;  %v4114_v25 = vrot.slane %v4113_v51, 2  ;;  %v4130_v55 = vrot.slane %v4063_v54, 4  ;;  %v4124_v26 = vrot.slane %v4062_v17, 4 }
 0x539   : > { %v4408_v18 = vunpack.c.l.b16 %v4658_v3  ;;  %v4409_v38 = vunpack.c.l.b16 %v4659_v46  ;;  %v4111_v29 = vadd.f32 %v4110_v56, %v4109_v57  ;;  %v4105_v31 = vadd.f32 %v4104_v43, %v4103_v33  ;;  %v8649_v3 = vld [vmem:[#allocation94_spill] sm:$0xff] }
 0x53a   : > { %v4121_v32 = vadd.f32 %v4120_v6, %v4119_v4  ;;  %v4115_v20 = vadd.f32 %v4114_v25, %v4113_v51  ;;  %v4131_v36 = vadd.f32 %v4130_v55, %v4063_v54  ;;  %v4125_v7 = vadd.f32 %v4124_v26, %v4062_v17 }
 0x53b   : > { %v4440_v61 = vsel %vm3084_vm1, %v4409_v38, %v4408_v18  ;;  %v4661_v11 = vpack.c.bf16 %v4111_v29, %v4111_v29  ;;  %v4660_v24 = vpack.c.bf16 %v4105_v31, %v4105_v31 }
 0x53c   : > { %v4122_v10 = vrot.slane %v4121_v32, 1  ;;  %v4116_v40 = vrot.slane %v4115_v20, 1  ;;  %v4132_v27 = vrot.slane %v4131_v36, 2  ;;  %v4126_v39 = vrot.slane %v4125_v7, 2 }
 0x53d   : > { %v4411_v23 = vunpack.c.l.b16 %v4661_v11  ;;  %v4410_v12 = vunpack.c.l.b16 %v4660_v24 }
 0x53e   : > { %v4123_v5 = vadd.f32 %v4122_v10, %v4121_v32  ;;  %v4117_v15 = vadd.f32 %v4116_v40, %v4115_v20  ;;  %v4133_v47 = vadd.f32 %v4132_v27, %v4131_v36  ;;  %v4127_v63 = vadd.f32 %v4126_v39, %v4125_v7  ;;  %v8650_v32 = vld [vmem:[#allocation83_spill] sm:$0xff]  ;;  %v8651_v36 = vld [vmem:[#allocation92_spill] sm:$0xff] }
 0x53f   : > { %v4441_v48 = vsel %vm3086_vm2, %v4410_v12, %v4440_v61 }
 0x540   : > { %v4663_v30 = vpack.c.bf16 %v4123_v5, %v4123_v5  ;;  %v4442_v44 = vsel %vm3088_vm3, %v4411_v23, %v4441_v48  ;;  %v4662_v28 = vpack.c.bf16 %v4117_v15, %v4117_v15  ;;  %v4134_v0 = vrot.slane %v4133_v47, 1 }
 0x541   : > { %v4128_v22 = vrot.slane %v4127_v63, 1 }
 0x542   : > { %v4413_v52 = vunpack.c.l.b16 %v4663_v30  ;;  %v4412_v53 = vunpack.c.l.b16 %v4662_v28  ;;  %v4135_v35 = vadd.f32 %v4134_v0, %v4133_v47  ;;  %v8652_v28 = vld [vmem:[#allocation93_spill] sm:$0xff] }
 0x543   : > { %v4129_v13 = vadd.f32 %v4128_v22, %v4127_v63  ;;  %v8653_v22 = vld [vmem:[#allocation27_spill] sm:$0xff] }
 0x544   : > { %v4443_v41 = vsel %vm3090_vm4, %v4412_v53, %v4442_v44  ;;  %v4665_v1 = vpack.c.bf16 %v4135_v35, %v4135_v35 }
 0x545   : > { %v4444_v49 = vsel %vm3092_vm5, %v4413_v52, %v4443_v41  ;;  %v4664_v50 = vpack.c.bf16 %v4129_v13, %v4129_v13 }
 0x546   : > { %v4415_v9 = vunpack.c.l.b16 %v4665_v1 }
 0x547   : > { %v4414_v14 = vunpack.c.l.b16 %v4664_v50 }
 0x549   : > { %v4445_v45 = vsel %vm3094_vm6, %v4414_v14, %v4444_v49 }
 0x54a   : > { %v4446_v62 = vsel %vm3096_vm7, %v4415_v9, %v4445_v45 }
 0x54b   : > { %v4468_v16 = vpack.c.b16 %v4446_v62, %v4446_v62 }
 0x54d   : > { %4476 = vst [vmem:[%s7877_s21] sm:$0xf] %v4468_v16 }
 0x551   : > { %v3944_v59 = vpop.permute.xlu0 %3943  ;;  %v3939_v37 = vpop.permute.xlu1 %3938 }
 0x552   : > { %v4065_v8 = vmul.f32 %v3944_v59, %v8646_v2  ;;  %v4064_v21 = vmul.f32 %v3939_v37, %v8647_v60 }
 0x554   : > { %v4142_v19 = vrot.slane %v4065_v8, 4  ;;  %v4136_v34 = vrot.slane %v4064_v21, 4 }
 0x556   : > { %v4143_v57 = vadd.f32 %v4142_v19, %v4065_v8  ;;  %v4137_v33 = vadd.f32 %v4136_v34, %v4064_v21  ;;  %v8654_v8 = vld [vmem:[#allocation98_spill] sm:$0xff]  ;;  %v8655_v21 = vld [vmem:[#allocation19_spill] sm:$0xff] }
 0x558   : > { %v4144_v4 = vrot.slane %v4143_v57, 2  ;;  %v4138_v51 = vrot.slane %v4137_v33, 2  ;;  %v3984_v42 = vpop.permute.xlu0 %3983  ;;  %v3979_v54 = vpop.permute.xlu1 %3978 }
 0x559   : > { %v4073_v17 = vmul.f32 %v3984_v42, %v8648_v58  ;;  %v4072_v46 = vmul.f32 %v3979_v54, %v8649_v3 }
 0x55a   : > { %v4145_v56 = vadd.f32 %v4144_v4, %v4143_v57  ;;  %v4139_v43 = vadd.f32 %v4138_v51, %v4137_v33 }
 0x55b   : > { %v4190_v6 = vrot.slane %v4073_v17, 4  ;;  %v4184_v25 = vrot.slane %v4072_v46, 4 }
 0x55c   : > { %v4146_v55 = vrot.slane %v4145_v56, 1  ;;  %v4140_v26 = vrot.slane %v4139_v43, 1  ;;  %v4024_v18 = vpop.permute.xlu0 %4023  ;;  %v4019_v38 = vpop.permute.xlu1 %4018 }
 0x55d   : > { %v4191_v29 = vadd.f32 %v4190_v6, %v4073_v17  ;;  %v4185_v31 = vadd.f32 %v4184_v25, %v4072_v46  ;;  %v4081_v20 = vmul.f32 %v4024_v18, %v8650_v32  ;;  %v4080_v7 = vmul.f32 %v4019_v38, %v8651_v36  ;;  %v8656_v32 = vld [vmem:[#allocation101_spill] sm:$0xff] }
 0x55e   : > { %v4147_v61 = vadd.f32 %v4146_v55, %v4145_v56  ;;  %v4141_v11 = vadd.f32 %v4140_v26, %v4139_v43 }
 0x55f   : > { %v4192_v24 = vrot.slane %v4191_v29, 2  ;;  %v4186_v10 = vrot.slane %v4185_v31, 2  ;;  %v4238_v40 = vrot.slane %v4081_v20, 4  ;;  %v4232_v27 = vrot.slane %v4080_v7, 4 }
 0x560   : > { %v4667_v39 = vpack.c.bf16 %v4147_v61, %v4147_v61  ;;  %v4666_v23 = vpack.c.bf16 %v4141_v11, %v4141_v11  ;;  %v3989_v12 = vpop.permute.xlu0 %3988  ;;  %v3949_v5 = vpop.permute.xlu1 %3948 }
 0x561   : > { %v4193_v15 = vadd.f32 %v4192_v24, %v4191_v29  ;;  %v4187_v47 = vadd.f32 %v4186_v10, %v4185_v31  ;;  %v4239_v63 = vadd.f32 %v4238_v40, %v4081_v20  ;;  %v4233_v48 = vadd.f32 %v4232_v27, %v4080_v7 }
 0x562   : > { %v4417_v30 = vunpack.c.l.b16 %v4667_v39  ;;  %v4416_v44 = vunpack.c.l.b16 %v4666_v23  ;;  %v4074_v0 = vmul.f32 %v3989_v12, %v8652_v28  ;;  %v4066_v52 = vmul.f32 %v3949_v5, %v8653_v22  ;;  %v8657_v23 = vld [vmem:[#allocation97_spill] sm:$0xff]  ;;  %v8658_v28 = vld [vmem:[#allocation18_spill] sm:$0xff] }
 0x563   : > { %v4194_v53 = vrot.slane %v4193_v15, 1  ;;  %v4188_v35 = vrot.slane %v4187_v47, 1  ;;  %v4240_v13 = vrot.slane %v4239_v63, 2  ;;  %v4234_v41 = vrot.slane %v4233_v48, 2 }
 0x564   : > { %v7890_v1 = vsel %vm3084_vm1, %v4417_v30, %v4416_v44  ;;  %v4196_v49 = vrot.slane %v4074_v0, 4  ;;  %v4148_v50 = vrot.slane %v4066_v52, 4  ;;  %v3954_v9 = vpop.permute.xlu0 %3953  ;;  %v4029_v14 = vpop.permute.xlu1 %4028 }
 0x565   : > { %v4195_v45 = vadd.f32 %v4194_v53, %v4193_v15  ;;  %v4189_v62 = vadd.f32 %v4188_v35, %v4187_v47  ;;  %v4241_v16 = vadd.f32 %v4240_v13, %v4239_v63  ;;  %v4235_v59 = vadd.f32 %v4234_v41, %v4233_v48 }
 0x566   : > { %v4197_v37 = vadd.f32 %v4196_v49, %v4074_v0  ;;  %v4149_v2 = vadd.f32 %v4148_v50, %v4066_v52  ;;  %v4067_v60 = vmul.f32 %v3954_v9, %v8654_v8  ;;  %v4082_v19 = vmul.f32 %v4029_v14, %v8655_v21  ;;  %v8659_v14 = vld [vmem:[#allocation100_spill] sm:$0xff] }
 0x567   : > { %v4675_v34 = vpack.c.bf16 %v4195_v45, %v4195_v45  ;;  %v4674_v57 = vpack.c.bf16 %v4189_v62, %v4189_v62  ;;  %v4242_v33 = vrot.slane %v4241_v16, 1  ;;  %v4236_v4 = vrot.slane %v4235_v59, 1 }
 0x568   : > { %v4198_v51 = vrot.slane %v4197_v37, 2  ;;  %v4150_v42 = vrot.slane %v4149_v2, 2  ;;  %v4154_v54 = vrot.slane %v4067_v60, 4  ;;  %v4244_v58 = vrot.slane %v4082_v19, 4  ;;  %v4034_v17 = vpop.permute.xlu0 %4033  ;;  %v3994_v3 = vpop.permute.xlu1 %3993 }
 0x569   : > { %v4425_v46 = vunpack.c.l.b16 %v4675_v34  ;;  %v4424_v56 = vunpack.c.l.b16 %v4674_v57  ;;  %v4243_v43 = vadd.f32 %v4242_v33, %v4241_v16  ;;  %v4237_v6 = vadd.f32 %v4236_v4, %v4235_v59 }
 0x56a   : > { %v4199_v25 = vadd.f32 %v4198_v51, %v4197_v37  ;;  %v4151_v55 = vadd.f32 %v4150_v42, %v4149_v2  ;;  %v4155_v26 = vadd.f32 %v4154_v54, %v4067_v60  ;;  %v4245_v18 = vadd.f32 %v4244_v58, %v4082_v19 }
 0x56b   : > { %v4454_v38 = vsel %vm3084_vm1, %v4425_v46, %v4424_v56  ;;  %v4683_v29 = vpack.c.bf16 %v4243_v43, %v4243_v43  ;;  %v4682_v31 = vpack.c.bf16 %v4237_v6, %v4237_v6  ;;  %v4083_v20 = vmul.f32 %v4034_v17, %v8656_v32  ;;  %v8660_v56 = vld [vmem:[#allocation99_spill] sm:$0xff]  ;;  %v8661_v6 = vld [vmem:[#allocation26_spill] sm:$0xff] }
 0x56c   : > { %v4200_v36 = vrot.slane %v4199_v25, 1  ;;  %v4152_v7 = vrot.slane %v4151_v55, 1  ;;  %v4156_v61 = vrot.slane %v4155_v26, 2  ;;  %v4246_v11 = vrot.slane %v4245_v18, 2  ;;  %v3999_v24 = vpop.permute.xlu0 %3998  ;;  %v3959_v10 = vpop.permute.xlu1 %3958 }
 0x56d   : > { %v4433_v40 = vunpack.c.l.b16 %v4683_v29  ;;  %v4432_v27 = vunpack.c.l.b16 %v4682_v31  ;;  %v4250_v39 = vrot.slane %v4083_v20, 4  ;;  %v4075_v12 = vmul.f32 %v3994_v3, %v8657_v23 }
 0x56e   : > { %v4201_v5 = vadd.f32 %v4200_v36, %v4199_v25  ;;  %v4153_v15 = vadd.f32 %v4152_v7, %v4151_v55  ;;  %v4157_v47 = vadd.f32 %v4156_v61, %v4155_v26  ;;  %v4247_v63 = vadd.f32 %v4246_v11, %v4245_v18 }
 0x56f   : > { %v4461_v48 = vsel %vm3084_vm1, %v4433_v40, %v4432_v27  ;;  %v4251_v30 = vadd.f32 %v4250_v39, %v4083_v20  ;;  %v4202_v44 = vrot.slane %v4075_v12, 4  ;;  %v4076_v0 = vmul.f32 %v3999_v24, %v8658_v28  ;;  %v8663_v27 = vld [vmem:[#allocation111_spill] sm:$0xff] }
 0x570   : > { %v4676_v22 = vpack.c.bf16 %v4201_v5, %v4201_v5  ;;  %v4668_v52 = vpack.c.bf16 %v4153_v15, %v4153_v15  ;;  %v4158_v53 = vrot.slane %v4157_v47, 1  ;;  %v4248_v35 = vrot.slane %v4247_v63, 1  ;;  %v3964_v13 = vpop.permute.xlu0 %3963  ;;  %v4039_v41 = vpop.permute.xlu1 %4038 }
 0x571   : > { %v4252_v49 = vrot.slane %v4251_v30, 2  ;;  %v4203_v50 = vadd.f32 %v4202_v44, %v4075_v12  ;;  %v4208_v9 = vrot.slane %v4076_v0, 4  ;;  %v4068_v45 = vmul.f32 %v3959_v10, %v8659_v14  ;;  %v8662_v10 = vld [vmem:[#allocation57_spill] sm:$0xff] }
 0x572   : > { %v4426_v62 = vunpack.c.l.b16 %v4676_v22  ;;  %v4418_v16 = vunpack.c.l.b16 %v4668_v52  ;;  %v4159_v59 = vadd.f32 %v4158_v53, %v4157_v47  ;;  %v4249_v37 = vadd.f32 %v4248_v35, %v4247_v63 }
 0x573   : > { %v4253_v2 = vadd.f32 %v4252_v49, %v4251_v30  ;;  %v4204_v8 = vrot.slane %v4203_v50, 2  ;;  %v4209_v60 = vadd.f32 %v4208_v9, %v4076_v0  ;;  %v4160_v21 = vrot.slane %v4068_v45, 4 }
 0x574   : > { %v4455_v19 = vsel %vm3086_vm2, %v4426_v62, %v4454_v38  ;;  %v4448_v34 = vsel %vm3086_vm2, %v4418_v16, %v7890_v1  ;;  %v4669_v57 = vpack.c.bf16 %v4159_v59, %v4159_v59  ;;  %v4684_v33 = vpack.c.bf16 %v4249_v37, %v4249_v37  ;;  %v4044_v4 = vpop.permute.xlu0 %4043  ;;  %v4004_v17 = vpop.permute.xlu1 %4003 }
 0x575   : > { %v4254_v51 = vrot.slane %v4253_v2, 1  ;;  %v4205_v42 = vadd.f32 %v4204_v8, %v4203_v50  ;;  %v4210_v54 = vrot.slane %v4209_v60, 2  ;;  %v4161_v58 = vadd.f32 %v4160_v21, %v4068_v45  ;;  %v8664_v45 = vld [vmem:[#allocation104_spill] sm:$0xff] }
 0x576   : > { %v4419_v3 = vunpack.c.l.b16 %v4669_v57  ;;  %v4434_v46 = vunpack.c.l.b16 %v4684_v33  ;;  %v4069_v43 = vmul.f32 %v3964_v13, %v8660_v56  ;;  %v4084_v25 = vmul.f32 %v4039_v41, %v8661_v6  ;;  %v8665_v57 = vld [vmem:[#allocation58_spill] sm:$0xff] }
 0x577   : > { %v4255_v55 = vadd.f32 %v4254_v51, %v4253_v2  ;;  %v4206_v26 = vrot.slane %v4205_v42, 1  ;;  %v4211_v18 = vadd.f32 %v4210_v54, %v4209_v60  ;;  %v4162_v38 = vrot.slane %v4161_v58, 2 }
 0x578   : > { %v4449_v1 = vsel %vm3088_vm3, %v4419_v3, %v4448_v34  ;;  %v4462_v29 = vsel %vm3086_vm2, %v4434_v46, %v4461_v48  ;;  %v4166_v31 = vrot.slane %v4069_v43, 4  ;;  %v4256_v32 = vrot.slane %v4084_v25, 4  ;;  %v4009_v23 = vpop.permute.xlu0 %4008  ;;  %v3969_v63 = vpop.permute.xlu1 %3968  ;;  %v8666_v46 = vld [vmem:[#allocation80_spill] sm:$0xff] }
 0x579   : > { %v4685_v20 = vpack.c.bf16 %v4255_v55, %v4255_v55  ;;  %v4207_v36 = vadd.f32 %v4206_v26, %v4205_v42  ;;  %v4212_v7 = vrot.slane %v4211_v18, 1  ;;  %v4163_v61 = vadd.f32 %v4162_v38, %v4161_v58 }
 0x57a   : > { %v4167_v11 = vadd.f32 %v4166_v31, %v4069_v43  ;;  %v4257_v24 = vadd.f32 %v4256_v32, %v4084_v25  ;;  %v4085_v40 = vmul.f32 %v4044_v4, %v8662_v10  ;;  %v4077_v39 = vmul.f32 %v4004_v17, %v8663_v27 }
 0x57b   : > { %v4435_v12 = vunpack.c.l.b16 %v4685_v20  ;;  %v4677_v5 = vpack.c.bf16 %v4207_v36, %v4207_v36  ;;  %v4213_v15 = vadd.f32 %v4212_v7, %v4211_v18  ;;  %v4164_v47 = vrot.slane %v4163_v61, 1 }
 0x57c   : > { %v4168_v30 = vrot.slane %v4167_v11, 2  ;;  %v4258_v48 = vrot.slane %v4257_v24, 2  ;;  %v4262_v44 = vrot.slane %v4085_v40, 4  ;;  %v4214_v28 = vrot.slane %v4077_v39, 4  ;;  %v3974_v8 = vpop.permute.xlu0 %3973  ;;  %v4049_v4 = vpop.permute.xlu1 %4048 }
 0x57d   : > { %v4463_v0 = vsel %vm3088_vm3, %v4435_v12, %v4462_v29  ;;  %v4427_v22 = vunpack.c.l.b16 %v4677_v5  ;;  %v4678_v52 = vpack.c.bf16 %v4213_v15, %v4213_v15  ;;  %v4165_v53 = vadd.f32 %v4164_v47, %v4163_v61  ;;  %v8667_v29 = vld [vmem:[#allocation90_spill] sm:$0xff] }
 0x57e   : > { %v4169_v35 = vadd.f32 %v4168_v30, %v4167_v11  ;;  %v4259_v13 = vadd.f32 %v4258_v48, %v4257_v24  ;;  %v4263_v41 = vadd.f32 %v4262_v44, %v4085_v40  ;;  %v4215_v49 = vadd.f32 %v4214_v28, %v4077_v39  ;;  %v8668_v44 = vld [vmem:[#allocation109_spill] sm:$0xff] }
 0x57f   : > { %v4456_v50 = vsel %vm3088_vm3, %v4427_v22, %v4455_v19  ;;  %v4428_v9 = vunpack.c.l.b16 %v4678_v52  ;;  %v4670_v14 = vpack.c.bf16 %v4165_v53, %v4165_v53  ;;  %v4078_v62 = vmul.f32 %v4009_v23, %v8664_v45  ;;  %v8669_v22 = vld [vmem:[#allocation105_spill] sm:$0xff] }
 0x580   : > { %v4170_v16 = vrot.slane %v4169_v35, 1  ;;  %v4260_v59 = vrot.slane %v4259_v13, 1  ;;  %v4264_v37 = vrot.slane %v4263_v41, 2  ;;  %v4216_v2 = vrot.slane %v4215_v49, 2  ;;  %v4054_v10 = vpop.permute.xlu0 %4053  ;;  %v4014_v40 = vpop.permute.xlu1 %4013 }
 0x581   : > { %v4457_v60 = vsel %vm3090_vm4, %v4428_v9, %v4456_v50  ;;  %v4420_v21 = vunpack.c.l.b16 %v4670_v14  ;;  %v4220_v34 = vrot.slane %v4078_v62, 4  ;;  %v4070_v33 = vmul.f32 %v3969_v63, %v8665_v57 }
 0x582   : > { %v4171_v51 = vadd.f32 %v4170_v16, %v4169_v35  ;;  %v4261_v42 = vadd.f32 %v4260_v59, %v4259_v13  ;;  %v4265_v54 = vadd.f32 %v4264_v37, %v4263_v41  ;;  %v4217_v19 = vadd.f32 %v4216_v2, %v4215_v49 }
 0x583   : > { %v4450_v58 = vsel %vm3090_vm4, %v4420_v21, %v4449_v1  ;;  %v4221_v17 = vadd.f32 %v4220_v34, %v4078_v62  ;;  %v4172_v3 = vrot.slane %v4070_v33, 4  ;;  %v4071_v56 = vmul.f32 %v3974_v8, %v8666_v46 }
 0x584   : > { %v4671_v43 = vpack.c.bf16 %v4171_v51, %v4171_v51  ;;  %v4686_v6 = vpack.c.bf16 %v4261_v42, %v4261_v42  ;;  %v4266_v25 = vrot.slane %v4265_v54, 1  ;;  %v4218_v55 = vrot.slane %v4217_v19, 1 }
 0x585   : > { %v4222_v26 = vrot.slane %v4221_v17, 2  ;;  %v4173_v18 = vadd.f32 %v4172_v3, %v4070_v33  ;;  %v4178_v38 = vrot.slane %v4071_v56, 4  ;;  %v4086_v31 = vmul.f32 %v4049_v4, %v8667_v29 }
 0x586   : > { %v4421_v32 = vunpack.c.l.b16 %v4671_v43  ;;  %v4436_v20 = vunpack.c.l.b16 %v4686_v6  ;;  %v4267_v36 = vadd.f32 %v4266_v25, %v4265_v54  ;;  %v4219_v7 = vadd.f32 %v4218_v55, %v4217_v19 }
 0x587   : > { %v4223_v61 = vadd.f32 %v4222_v26, %v4221_v17  ;;  %v4174_v11 = vrot.slane %v4173_v18, 2  ;;  %v4179_v1 = vadd.f32 %v4178_v38, %v4071_v56  ;;  %v4268_v24 = vrot.slane %v4086_v31, 4 }
 0x588   : > { %v4451_v27 = vsel %vm3092_vm5, %v4421_v32, %v4450_v58  ;;  %v4464_v39 = vsel %vm3090_vm4, %v4436_v20, %v4463_v0  ;;  %v4687_v23 = vpack.c.bf16 %v4267_v36, %v4267_v36  ;;  %v4679_v12 = vpack.c.bf16 %v4219_v7, %v4219_v7 }
 0x589   : > { %v4224_v5 = vrot.slane %v4223_v61, 1  ;;  %v4175_v15 = vadd.f32 %v4174_v11, %v4173_v18  ;;  %v4180_v47 = vrot.slane %v4179_v1, 2  ;;  %v4269_v63 = vadd.f32 %v4268_v24, %v4086_v31 }
 0x58a   : > { %v4437_v30 = vunpack.c.l.b16 %v4687_v23  ;;  %v4429_v48 = vunpack.c.l.b16 %v4679_v12  ;;  %v4087_v28 = vmul.f32 %v4054_v10, %v8668_v44  ;;  %v4079_v52 = vmul.f32 %v4014_v40, %v8669_v22 }
 0x58b   : > { %v4225_v53 = vadd.f32 %v4224_v5, %v4223_v61  ;;  %v4176_v35 = vrot.slane %v4175_v15, 1  ;;  %v4181_v13 = vadd.f32 %v4180_v47, %v4179_v1  ;;  %v4270_v41 = vrot.slane %v4269_v63, 2 }
 0x58c   : > { %v4465_v49 = vsel %vm3092_vm5, %v4437_v30, %v4464_v39  ;;  %v4458_v0 = vsel %vm3092_vm5, %v4429_v48, %v4457_v60  ;;  %v4274_v50 = vrot.slane %v4087_v28, 4  ;;  %v4226_v9 = vrot.slane %v4079_v52, 4 }
 0x58d   : > { %v4680_v14 = vpack.c.bf16 %v4225_v53, %v4225_v53  ;;  %v4177_v45 = vadd.f32 %v4176_v35, %v4175_v15  ;;  %v4182_v62 = vrot.slane %v4181_v13, 1  ;;  %v4271_v16 = vadd.f32 %v4270_v41, %v4269_v63 }
 0x58e   : > { %v4275_v59 = vadd.f32 %v4274_v50, %v4087_v28  ;;  %v4227_v37 = vadd.f32 %v4226_v9, %v4079_v52 }
 0x58f   : > { %v4430_v2 = vunpack.c.l.b16 %v4680_v14  ;;  %v4672_v8 = vpack.c.bf16 %v4177_v45, %v4177_v45  ;;  %v4183_v21 = vadd.f32 %v4182_v62, %v4181_v13  ;;  %v4272_v34 = vrot.slane %v4271_v16, 1 }
 0x590   : > { %v4276_v57 = vrot.slane %v4275_v59, 2  ;;  %v4228_v33 = vrot.slane %v4227_v37, 2 }
 0x591   : > { %v4459_v4 = vsel %vm3094_vm6, %v4430_v2, %v4458_v0  ;;  %v4422_v51 = vunpack.c.l.b16 %v4672_v8  ;;  %v4673_v42 = vpack.c.bf16 %v4183_v21, %v4183_v21  ;;  %v4273_v60 = vadd.f32 %v4272_v34, %v4271_v16 }
 0x592   : > { %v4277_v54 = vadd.f32 %v4276_v57, %v4275_v59  ;;  %v4229_v19 = vadd.f32 %v4228_v33, %v4227_v37 }
 0x593   : > { %v4452_v58 = vsel %vm3094_vm6, %v4422_v51, %v4451_v27  ;;  %v4423_v17 = vunpack.c.l.b16 %v4673_v42  ;;  %v4688_v3 = vpack.c.bf16 %v4273_v60, %v4273_v60 }
 0x594   : > { %v4278_v46 = vrot.slane %v4277_v54, 1  ;;  %v4230_v56 = vrot.slane %v4229_v19, 1 }
 0x595   : > { %v4453_v43 = vsel %vm3096_vm7, %v4423_v17, %v4452_v58  ;;  %v4438_v6 = vunpack.c.l.b16 %v4688_v3 }
 0x596   : > { %v4469_v25 = vpack.c.b16 %v4453_v43, %v4453_v43  ;;  %v4279_v55 = vadd.f32 %v4278_v46, %v4277_v54  ;;  %v4231_v26 = vadd.f32 %v4230_v56, %v4229_v19 }
 0x597   : > { %v4466_v18 = vsel %vm3094_vm6, %v4438_v6, %v4465_v49 }
 0x598   : > { %4477 = vst [vmem:[%s7877_s21 + $0x4] sm:$0xf] %v4469_v25  ;;  %v4689_v38 = vpack.c.bf16 %v4279_v55, %v4279_v55  ;;  %v4681_v29 = vpack.c.bf16 %v4231_v26, %v4231_v26 }
 0x59a   : > { %v4439_v31 = vunpack.c.l.b16 %v4689_v38  ;;  %v4431_v32 = vunpack.c.l.b16 %v4681_v29 }
 0x59c   : > { %v4467_v20 = vsel %vm3096_vm7, %v4439_v31, %v4466_v18  ;;  %v4460_v36 = vsel %vm3096_vm7, %v4431_v32, %v4459_v4 }
 0x59d   : > { %v4471_v7 = vpack.c.b16 %v4467_v20, %v4467_v20  ;;  %v4470_v61 = vpack.c.b16 %v4460_v36, %v4460_v36 }
 0x59f   : > { %4479 = vst [vmem:[%s7877_s21 + $0xc] sm:$0xf] %v4471_v7  ;;  %4478 = vst [vmem:[%s7877_s21 + $0x8] sm:$0xf] %v4470_v61 }
 0x5a0 PF: > { %s18_s29 = sadd.s32 1, %s5181_s29   ;;  %s8670_s27 = smov %s5177_s28 }
 0x5a1   : > { %p15_p5 = scmp.ge.s32.totalorder %s18_s29, 4   ;;  %s8671_s28 = smov %s8673_s30 }
 0x5a3   :  { %17 = sbr.rel (!%p15_p5) target bundleno = 2 (0x2), region = 88 }

// kernel: eaef_forward.10
= control target key start
LH: loop header
LB: loop body
LE: loop exit
PB: predicated region body
PF: predicated region fallthrough
CT: control target
= control target key end

     0   :  { %s4475_s27 = smov 0   ;;  %s4477_s28 = smov 0   ;;  %s6181_s0 = inlined_call_operand.vmem [shape: bf16[2,32,8,64], index: 0, kind: input, shape index: {}]   ;;  %s6182_s1 = inlined_call_operand.vmem [shape: bf16[2,32,64], index: 1, kind: input, shape index: {}]   ;;  %s6183_s2 = inlined_call_operand.vmem [shape: f32[2,32,3], index: 2, kind: input, shape index: {}]   ;;  %s6184_s3 = inlined_call_operand.vmem [shape: bf16[64,256], index: 3, kind: input, shape index: {}]   ;;  %s6185_s4 = inlined_call_operand.vmem [shape: bf16[64,256], index: 4, kind: input, shape index: {}]   ;;  %s6186_s5 = inlined_call_operand.vmem [shape: f32[1,256], index: 5, kind: input, shape index: {}]   ;;  %s6187_s6 = inlined_call_operand.vmem [shape: f32[3,128], index: 6, kind: input, shape index: {}]   ;;  %s6188_s7 = inlined_call_operand.vmem [shape: f32[1,128], index: 7, kind: input, shape index: {}]   ;;  %s6189_s8 = inlined_call_operand.vmem [shape: bf16[2,32,128], index: 8, kind: output, shape index: {}]  }
   0x1   :  { %s4479_s29 = smov 0  }
   0x2 LB: > { %s30_s30 = sadd.s32 1, %s4419_s28  ;;  %p4108_p0 = scmp.ge.s32.totalorder %s4423_s29, 1  ;;  %s4423_s29 = sphi %s4479_s29, %s18_s29   ;;  %s4419_s28 = sphi %s4477_s28, %s6457_s28   ;;  %s4415_s27 = sphi %s4475_s27, %s6456_s27  }
   0x3   : > { %p32_p1 = scmp.ge.s32.totalorder %s30_s30, 2  ;;  %p317_p2 = scmp.lt.s32.totalorder %s4423_s29, 3 }
   0x5   : > { %s6459_s30 = smov (%p32_p1, %s30_s30), 0  ;;  %p318_p3 = pnand %p4108_p0, %p317_p2 }
   0x7   : > { %321 = sbr.rel (%p318_p3) target bundleno = 1299 (0x513), region = 52 }
   0xc   : > { %v4287_v0 = vld [vmem:[%s6184_s3 + $0x34] ss:$8 sps:$4 sm:$0xff]   ;;  %v4289_v1 = vld [vmem:[%s6184_s3 + $0x30] ss:$8 sps:$4 sm:$0xff]   ;;  %v4425_v2 = vmov 1   ;;  %v4426_v3 = vmov 0   ;;  %v6190_v47 = vlaneseq }
   0xd   : > { %4281 = vset.pattern.permute.xlu0 %v4425_v2  ;;  %4280 = vset.pattern.permute.xlu1 %v4426_v3  ;;  %p378_p4 = scmp.lt.s32.totalorder %s4415_s27, 1  ;;  %v4290_v4 = vld [vmem:[%s6184_s3 + $0x24] ss:$8 sps:$4 sm:$0xff]   ;;  %v4292_v5 = vld [vmem:[%s6184_s3 + $0x20] ss:$8 sps:$4 sm:$0xff]   ;;  %vm582_vm0 = vcmask 523264  }
   0xe   : > { %4243 = vmatprep.subr.bf16.mxu1 %v4287_v0  ;;  %639 = vmatprep.subr.bf16.mxu0 %v4287_v0  ;;  %v4293_v6 = vld [vmem:[%s6184_s3 + $0x14] ss:$8 sps:$4 sm:$0xff]   ;;  %v4295_v9 = vld [vmem:[%s6184_s3 + $0x10] ss:$8 sps:$4 sm:$0xff]   ;;  %v4296_v10 = vld [vmem:[%s6184_s3 + $0x4] ss:$8 sps:$4 sm:$0xff]  }
   0xf   : > { %4247 = vmatpush1.bf16.msra.mxu1 %v4289_v1  ;;  %s6461_s27 = smov (!%p378_p4, %s4415_s27), 1  ;;  %640 = vmatpush1.bf16.msra.mxu0 %v4289_v1  ;;  %v4298_v12 = vld [vmem:[%s6184_s3] ss:$8 sps:$4 sm:$0xff]   ;;  %v4427_v16 = vmov 2   ;;  %v4306_v17 = vld [vmem:[%s6185_s4 + $0x34] ss:$8 sps:$4 sm:$0xff]  }
  0x10   : > { %4244 = vmatprep.subr.bf16.mxu1 %v4290_v4  ;;  %641 = vmatprep.subr.bf16.mxu0 %v4290_v4  ;;  %s4209_s17 = sshll.u32 %s6461_s27, 5  ;;  %s4207_s18 = sshll.u32 %s6461_s27, 7  ;;  %v4304_v18 = vld [vmem:[%s6185_s4 + $0x30] ss:$8 sps:$4 sm:$0xff]   ;;  %v4313_v19 = vld [vmem:[%s6185_s4 + $0x24] ss:$8 sps:$4 sm:$0xff]  }
  0x11   : > { %753 = vmatprep.mubr.bf16.mxu1 %v4426_v3  ;;  %663 = vmatprep.mubr.bf16.mxu0 %v4426_v3  ;;  %s405_s23 = scalar_lea.vmem %s6183_s2, %s4209_s17  ;;  %s4521_s26 = scalar_lea.vmem %s6181_s0, %s4207_s18  ;;  %v4311_v22 = vld [vmem:[%s6185_s4 + $0x20] ss:$8 sps:$4 sm:$0xff]   ;;  %v4320_v23 = vld [vmem:[%s6185_s4 + $0x14] ss:$8 sps:$4 sm:$0xff]   ;;  %v4318_v24 = vld [vmem:[%s6185_s4 + $0x10] ss:$8 sps:$4 sm:$0xff]  }
  0x12   : > { %v1547_v7 = vld [vmem:[%s405_s23 + $0x10] sm:$0xff]  ;;  %v1545_v8 = vld [vmem:[%s405_s23] sm:$0xff]  ;;  %v1548_v11 = vld [vmem:[%s405_s23 + $0x18] sm:$0xff]  ;;  %s4208_s21 = sshll.u32 %s6461_s27, 4  ;;  %v4428_v48 = vmov 1966171168  }
  0x13   : > { %4248 = vmatpush1.bf16.msra.mxu1 %v4292_v5  ;;  %642 = vmatpush1.bf16.msra.mxu0 %v4292_v5  ;;  %v1546_v13 = vld [vmem:[%s405_s23 + $0x8] sm:$0xff]  ;;  %v4300_v15 = vld [vmem:[%s4521_s26] sm:$0xff]   ;;  %v4301_v20 = vld [vmem:[%s4521_s26 + $0x50] sm:$0xff]   ;;  %s4556_s24 = scalar_lea.vmem %s6182_s1, %s4208_s21  ;;  %v964_v49 = vunpack.c.l.s4 %v4428_v48  ;;  %v4625_v54 = vshrl.u32 %v6190_v47, 7  ;;  %s4429_s9 = smov 64   ;;  %vm2585_vm1 = vcmask 1041409  }
  0x14   : > { %1562 = vperm.xlu1 %4280, %v1547_v7   ;;  %1591 = vperm.xlu0 %4281, %v1545_v8   ;;  %v4299_v14 = vld [vmem:[%s4521_s26 + $0x48] sm:$0xff]   ;;  %v4303_v26 = vld [vmem:[%s4521_s26 + $0x58] sm:$0xff]   ;;  %v4307_v27 = vld [vmem:[%s4521_s26 + $0x10] sm:$0xff]   ;;  %vm2587_vm2 = vcmask 1042434   ;;  %vm2589_vm3 = vcmask 1043459   ;;  %vm2591_vm4 = vcmask 1044484   ;;  %s6123_s14 = scalar_lea.vmem %s6189_s8, %s4208_s21 }
  0x15   : > { %4245 = vmatprep.subr.bf16.mxu1 %v4293_v6  ;;  %643 = vmatprep.subr.bf16.mxu0 %v4293_v6  ;;  %v4302_v21 = vld [vmem:[%s4521_s26 + $0x8] sm:$0xff]   ;;  %v4308_v29 = vld [vmem:[%s4521_s26 + $0x60] sm:$0xff]   ;;  %v4309_v30 = vld [vmem:[%s4521_s26 + $0x18] sm:$0xff]   ;;  %6253 = vst [vmem:[#allocation2_spill] sm:$0xff] %v4625_v54  ;;  %v965_v55 = vunpack.c.0.s8 %v964_v49  ;;  %vm2593_vm5 = vcmask 1045509   ;;  %vm2595_vm6 = vcmask 1046534  }
  0x16   : > { %v4323_v25 = vld [vmem:[%s6185_s4 + $0x4] ss:$8 sps:$4 sm:$0xff]   ;;  %v4321_v28 = vld [vmem:[%s6185_s4] ss:$8 sps:$4 sm:$0xff]   ;;  %v4315_v33 = vld [vmem:[%s4521_s26 + $0x70] sm:$0xff]   ;;  %vm2597_vm7 = vcmask 1047559  }
  0x17   : > { %4249 = vmatpush1.bf16.msra.mxu1 %v4295_v9  ;;  %644 = vmatpush1.bf16.msra.mxu0 %v4295_v9  ;;  %v4310_v31 = vld [vmem:[%s4521_s26 + $0x68] sm:$0xff]   ;;  %v4314_v32 = vld [vmem:[%s4521_s26 + $0x20] sm:$0xff]   ;;  %v4317_v35 = vld [vmem:[%s4521_s26 + $0x78] sm:$0xff]   ;;  %v4634_v63 = vsub.s32 %v965_v55, %v4625_v54  ;;  %vm2624_vm8 = vcmask 64512  }
  0x18   : > { %1567 = vperm.xlu1 %4280, %v1548_v11   ;;  %1603 = vperm.xlu0 %4281, %v1548_v11   ;;  %v4316_v34 = vld [vmem:[%s4521_s26 + $0x28] sm:$0xff]   ;;  %v4324_v36 = vld [vmem:[%s4521_s26 + $0x30] sm:$0xff]   ;;  %v4325_v37 = vld [vmem:[%s4556_s24] sm:$0xff]  }
  0x19   : > { %4246 = vmatprep.subr.bf16.mxu1 %v4296_v10  ;;  %645 = vmatprep.subr.bf16.mxu0 %v4296_v10  ;;  %v4326_v38 = vld [vmem:[%s4521_s26 + $0x38] sm:$0xff]   ;;  %v4327_v39 = vld [vmem:[%s4556_s24 + $0x8] sm:$0xff]   ;;  %v4328_v40 = vld [vmem:[%s4521_s26 + $0x40] sm:$0xff]  }
  0x1a   : > { %v4169_v51 = vld [vmem:[%s6187_s6] ss:$0 sm:$0xff]  ;;  %v4171_v52 = vld [vmem:[%s6187_s6 + $0x1] ss:$0 sm:$0xff]  ;;  %v4172_v62 = vld [vmem:[%s6187_s6 + $0x2] ss:$0 sm:$0xff] }
  0x1b   : > { %4250 = vmatpush1.bf16.msra.mxu1 %v4298_v12  ;;  %646 = vmatpush1.bf16.msra.mxu0 %v4298_v12  ;;  %v4170_v57 = vld [vmem:[%s6188_s7] ss:$0 sm:$0xff] }
  0x1c   : > { %4282 = vset.pattern.permute.xlu1 %v4425_v2  ;;  %4284 = vset.pattern.permute.xlu0 %v4427_v16 }
  0x1d   : > { %1595 = vperm.xlu1 %4282, %v1546_v13   ;;  %1624 = vperm.xlu0 %4284, %v1546_v13  }
  0x1e   : > { %4150 = vmatmul.mubr.msk.bf16.vlgmr.msra.gmra.mxu1 %vm582_vm0, %v4299_v14  ;;  %4141 = vmatmul.mubr.msk.bf16.vlgmr.msra.gmra.mxu0 %vm582_vm0, %v4300_v15 }
  0x1f   : > { %763 = vmatprep.mubr.bf16.mxu1 %v4426_v3  ;;  %673 = vmatprep.mubr.bf16.mxu0 %v4426_v3 }
  0x20   : > { %908 = vmatprep.subr.bf16.mxu1 %v4306_v17  ;;  %v4638_v17 = vsub.s32 0, %v4625_v54 }
  0x21   : > { %1599 = vperm.xlu1 %4282, %v1547_v7   ;;  %4285 = vset.pattern.permute.xlu0 %v4426_v3 }
  0x22   : > { %1552 = vperm.xlu0 %4285, %v1545_v8   ;;  %909 = vmatpush1.bf16.msra.mxu1 %v4304_v18 }
  0x23   : > { %910 = vmatprep.subr.bf16.mxu1 %v4313_v19 }
  0x25   : > { %4283 = vset.pattern.permute.xlu1 %v4427_v16 }
  0x26   : > { %1620 = vperm.xlu1 %4283, %v1545_v8   ;;  %1557 = vperm.xlu0 %4285, %v1546_v13  }
  0x27   : > { %4151 = vmatmul.mubr.msk.bf16.gmra.mxu1 %vm582_vm0, %v4301_v20  ;;  %4142 = vmatmul.mubr.msk.bf16.gmra.mxu0 %vm582_vm0, %v4302_v21 }
  0x28   : > { %773 = vmatprep.mubr.bf16.mxu1 %v4426_v3  ;;  %683 = vmatprep.mubr.bf16.mxu0 %v4426_v3 }
  0x29   : > { %911 = vmatpush1.bf16.msra.mxu1 %v4311_v22 }
  0x2a   : > { %1628 = vperm.xlu1 %4283, %v1547_v7   ;;  %912 = vmatprep.subr.bf16.mxu1 %v4320_v23 }
  0x2d   : > { %913 = vmatpush1.bf16.msra.mxu1 %v4318_v24 }
  0x2e   : > { %1632 = vperm.xlu1 %4283, %v1548_v11   ;;  %914 = vmatprep.subr.bf16.mxu1 %v4323_v25 }
  0x2f   : > { %4152 = vmatmul.mubr.msk.bf16.gmra.mxu1 %vm582_vm0, %v4303_v26  ;;  %4143 = vmatmul.mubr.msk.bf16.gmra.mxu0 %vm582_vm0, %v4307_v27 }
  0x30   : > { %783 = vmatprep.mubr.bf16.mxu1 %v4426_v3  ;;  %693 = vmatprep.mubr.bf16.mxu0 %v4426_v3 }
  0x31   : > { %915 = vmatpush1.bf16.msra.mxu1 %v4321_v28 }
  0x32   : > { %4286 = vset.pattern.permute.xlu1 %v4426_v3 }
  0x37   : > { %4153 = vmatmul.mubr.msk.bf16.gmra.mxu1 %vm582_vm0, %v4308_v29  ;;  %4144 = vmatmul.mubr.msk.bf16.gmra.mxu0 %vm582_vm0, %v4309_v30 }
  0x38   : > { %793 = vmatprep.mubr.bf16.mxu1 %v4426_v3  ;;  %703 = vmatprep.mubr.bf16.mxu0 %v4426_v3 }
  0x3f   : > { %4154 = vmatmul.mubr.msk.bf16.gmra.mxu1 %vm582_vm0, %v4310_v31  ;;  %4145 = vmatmul.mubr.msk.bf16.gmra.mxu0 %vm582_vm0, %v4314_v32 }
  0x40   : > { %803 = vmatprep.mubr.bf16.mxu1 %v4426_v3  ;;  %713 = vmatprep.mubr.bf16.mxu0 %v4426_v3 }
  0x47   : > { %4155 = vmatmul.mubr.msk.bf16.gmra.mxu1 %vm582_vm0, %v4315_v33  ;;  %4146 = vmatmul.mubr.msk.bf16.gmra.mxu0 %vm582_vm0, %v4316_v34 }
  0x48   : > { %813 = vmatprep.mubr.bf16.mxu1 %v4426_v3  ;;  %723 = vmatprep.mubr.bf16.mxu0 %v4426_v3 }
  0x4f   : > { %4156 = vmatmul.mubr.msk.bf16.gmra.mxu1 %vm582_vm0, %v4317_v35  ;;  %4147 = vmatmul.mubr.msk.bf16.gmra.mxu0 %vm582_vm0, %v4324_v36 }
  0x50   : > { %932 = vmatprep.mubr.bf16.mxu1 %v4426_v3  ;;  %733 = vmatprep.mubr.bf16.mxu0 %v4426_v3 }
  0x57   : > { %4167 = vmatmul.mubr.msk.bf16.vlgmr.msra.gmra.mxu1 %vm582_vm0, %v4325_v37  ;;  %4148 = vmatmul.mubr.msk.bf16.gmra.mxu0 %vm582_vm0, %v4326_v38 }
  0x58   : > { %942 = vmatprep.mubr.bf16.mxu1 %v4426_v3  ;;  %743 = vmatprep.mubr.bf16.mxu0 %v4426_v3 }
  0x5f   : > { %4168 = vmatmul.mubr.msk.bf16.gmra.mxu1 %vm582_vm0, %v4327_v39  ;;  %4149 = vmatmul.mubr.msk.bf16.gmra.mxu0 %vm582_vm0, %v4328_v40 }
  0x8f   : > { %v1563_v41 = vpop.permute.xlu1 %1562  ;;  %v1592_v42 = vpop.permute.xlu0 %1591 }
  0x90   : > { %v1576_v58 = vmul.f32 %v4169_v51, %v1563_v41  ;;  %v1610_v59 = vmul.f32 %v4171_v52, %v1592_v42 }
  0x92   : > { %v1587_v6 = vadd.f32 %v4170_v57, %v1576_v58 }
  0x93   : > { %v1568_v43 = vpop.permute.xlu1 %1567  ;;  %v1604_v44 = vpop.permute.xlu0 %1603 }
  0x94   : > { %v1577_v61 = vmul.f32 %v4169_v51, %v1568_v43  ;;  %v1613_v18 = vmul.f32 %v4171_v52, %v1604_v44 }
  0x96   : > { %v1588_v10 = vadd.f32 %v4170_v57, %v1577_v61 }
  0x98   : > { %v1596_v45 = vpop.permute.xlu1 %1595  ;;  %v1625_v46 = vpop.permute.xlu0 %1624  ;;  %v1617_v24 = vadd.f32 %v1613_v18, %v1588_v10 }
  0x99   : > { %v1611_v7 = vmul.f32 %v4171_v52, %v1596_v45  ;;  %v1640_v11 = vmul.f32 %v4172_v62, %v1625_v46 }
  0x9c   : > { %v1600_v50 = vpop.permute.xlu1 %1599 }
  0x9d   : > { %v1553_v53 = vpop.permute.xlu0 %1552  ;;  %v1612_v2 = vmul.f32 %v4171_v52, %v1600_v50 }
  0x9e   : > { %v1574_v56 = vmul.f32 %v4169_v51, %v1553_v53 }
  0x9f   : > { %v1616_v13 = vadd.f32 %v1612_v2, %v1587_v6 }
  0xa0   : > { %v1585_v60 = vadd.f32 %v4170_v57, %v1574_v56 }
  0xa1   : > { %v1621_v0 = vpop.permute.xlu1 %1620  ;;  %v1558_v1 = vpop.permute.xlu0 %1557 }
  0xa2   : > { %v1614_v3 = vadd.f32 %v1610_v59, %v1585_v60  ;;  %v1639_v4 = vmul.f32 %v4172_v62, %v1621_v0  ;;  %v1575_v5 = vmul.f32 %v4169_v51, %v1558_v1 }
  0xa4   : > { %v1643_v8 = vadd.f32 %v1639_v4, %v1614_v3  ;;  %v1586_v9 = vadd.f32 %v4170_v57, %v1575_v5 }
  0xa5   : > { %v1629_v12 = vpop.permute.xlu1 %1628 }
  0xa6   : > { %v1658_v14 = vrot.slane %v1643_v8, %v4634_v63  ;;  %v1615_v15 = vadd.f32 %v1611_v7, %v1586_v9  ;;  %v1641_v16 = vmul.f32 %v4172_v62, %v1629_v12  ;;  %v1651_v46 = vcombine.high %v1643_v8, %v1643_v8 }
  0xa8   : > { %v1666_v19 = vcombine.high %v1658_v14, %v1658_v14  ;;  %v1644_v20 = vadd.f32 %v1640_v11, %v1615_v15  ;;  %v1645_v21 = vadd.f32 %v1641_v16, %v1616_v13  ;;  %v1674_v23 = vrot.slane %v1658_v14, %v4634_v63 }
  0xa9   : > { %v1633_v22 = vpop.permute.xlu1 %1632  ;;  %v1665_v53 = vrot.slane %v1651_v46, %v4634_v63 }
  0xaa   : > { %v1756_v25 = vrot.slane %v1645_v21, %v4634_v63  ;;  %v1642_v26 = vmul.f32 %v4172_v62, %v1633_v22  ;;  %v4643_v27 = vrot.slane %v1674_v23, %v4638_v17  ;;  %v4646_v28 = vrot.slane %v1666_v19, %v4634_v63 }
  0xab   : > { %v1707_v29 = vrot.slane %v1644_v20, %v4634_v63  ;;  %v1696_v49 = vcombine.high %v1674_v23, %v1674_v23  ;;  %v1700_v50 = vcombine.high %v1644_v20, %v1644_v20  ;;  %v1749_v55 = vcombine.high %v1645_v21, %v1645_v21 }
  0xac   : > { %6254 = vst [vmem:[#allocation3_spill] sm:$0xff] %v4643_v27  ;;  %v1646_v30 = vadd.f32 %v1642_v26, %v1617_v24  ;;  %v1764_v31 = vcombine.high %v1756_v25, %v1756_v25  ;;  %1975 = vrot.lane.b32.xlu0 %v4643_v27, %s4429_s9  ;;  %v4653_v32 = vrot.slane %v4646_v28, %v4638_v17 }
  0xad   : > { %v1723_v33 = vrot.slane %v1707_v29, %v4634_v63  ;;  %v1715_v34 = vcombine.high %v1707_v29, %v1707_v29  ;;  %v1772_v38 = vrot.slane %v1756_v25, %v4634_v63  ;;  %v4696_v56 = vrot.slane %v1696_v49, %v4638_v17 }
  0xae   : > { %6255 = vst [vmem:[#allocation4_spill] sm:$0xff] %v4653_v32  ;;  %v1805_v35 = vrot.slane %v1646_v30, %v4634_v63  ;;  %1977 = vrot.lane.b32.xlu1 %v4653_v32, %s4429_s9  ;;  %v1786_v41 = vrot.slane %v1764_v31, %v4634_v63  ;;  %v1798_v58 = vcombine.high %v1646_v30, %v1646_v30 }
  0xaf   : > { %v4660_v36 = vrot.slane %v1723_v33, %v4638_v17  ;;  %v1737_v37 = vrot.slane %v1715_v34, %v4634_v63  ;;  %v4673_v42 = vrot.slane %v1772_v38, %v4638_v17  ;;  %v1745_v52 = vcombine.high %v1723_v33, %v1723_v33  ;;  %6262 = vst [vmem:[#allocation11_spill] sm:$0xff] %v4696_v56 }
  0xb0   : > { %v1813_v39 = vcombine.high %v1805_v35, %v1805_v35  ;;  %v1821_v43 = vrot.slane %v1805_v35, %v4634_v63  ;;  %v4679_v44 = vrot.slane %v1786_v41, %v4638_v17  ;;  %v1794_v57 = vcombine.high %v1772_v38, %v1772_v38 }
  0xb1   : > { %6256 = vst [vmem:[#allocation5_spill] sm:$0xff] %v4660_v36  ;;  %1991 = vrot.lane.b32.xlu0 %v4660_v36, %s4429_s9  ;;  %v4667_v40 = vrot.slane %v1737_v37, %v4638_v17  ;;  %6258 = vst [vmem:[#allocation7_spill] sm:$0xff] %v4673_v42  ;;  %v4701_v59 = vrot.slane %v1745_v52, %v4638_v17  ;;  %v1714_v61 = vrot.slane %v1700_v50, %v4634_v63 }
  0xb2   : > { %6259 = vst [vmem:[#allocation8_spill] sm:$0xff] %v4679_v44  ;;  %v1835_v45 = vrot.slane %v1813_v39, %v4634_v63  ;;  %v4685_v48 = vrot.slane %v1821_v43, %v4638_v17  ;;  %v1843_v60 = vcombine.high %v1821_v43, %v1821_v43  ;;  %v1763_v62 = vrot.slane %v1749_v55, %v4634_v63 }
  0xb3   : > { %6257 = vst [vmem:[#allocation6_spill] sm:$0xff] %v4667_v40  ;;  %1993 = vrot.lane.b32.xlu1 %v4667_v40, %s4429_s9  ;;  %6263 = vst [vmem:[#allocation12_spill] sm:$0xff] %v4701_v59  ;;  %v4708_v0 = vrot.slane %v1794_v57, %v4638_v17  ;;  %v1681_v1 = vrot.slane %v1665_v53, %v4634_v63  ;;  %v1812_v2 = vrot.slane %v1798_v58, %v4634_v63 }
  0xb4   : > { %6260 = vst [vmem:[#allocation9_spill] sm:$0xff] %v4685_v48  ;;  %v4690_v51 = vrot.slane %v1835_v45, %v4638_v17  ;;  %v4715_v3 = vrot.slane %v1843_v60, %v4638_v17  ;;  %v1730_v4 = vrot.slane %v1714_v61, %v4634_v63  ;;  %v1779_v6 = vrot.slane %v1763_v62, %v4634_v63 }
  0xb5   : > { %2007 = vrot.lane.b32.xlu0 %v4673_v42, %s4429_s9  ;;  %6264 = vst [vmem:[#allocation13_spill] sm:$0xff] %v4708_v0  ;;  %v4721_v5 = vrot.slane %v1681_v1, %v4638_v17  ;;  %v1828_v8 = vrot.slane %v1812_v2, %v4634_v63  ;;  %v1698_v10 = vcombine.high %v4646_v28, %v4646_v28 }
  0xb6   : > { %6261 = vst [vmem:[#allocation10_spill] sm:$0xff] %v4690_v51  ;;  %6265 = vst [vmem:[#allocation14_spill] sm:$0xff] %v4715_v3  ;;  %v4727_v7 = vrot.slane %v1730_v4, %v4638_v17  ;;  %v4733_v9 = vrot.slane %v1779_v6, %v4638_v17  ;;  %v1747_v12 = vcombine.high %v1737_v37, %v1737_v37 }
  0xb7   : > { %2009 = vrot.lane.b32.xlu1 %v4679_v44, %s4429_s9  ;;  %6266 = vst [vmem:[#allocation15_spill] sm:$0xff] %v4721_v5  ;;  %v4740_v11 = vrot.slane %v1828_v8, %v4638_v17  ;;  %v4745_v13 = vrot.slane %v1698_v10, %v4638_v17  ;;  %v1796_v14 = vcombine.high %v1786_v41, %v1786_v41 }
  0xb8   : > { %6267 = vst [vmem:[#allocation16_spill] sm:$0xff] %v4727_v7  ;;  %6268 = vst [vmem:[#allocation17_spill] sm:$0xff] %v4733_v9  ;;  %v1667_v15 = vcombine.high %v1665_v53, %v1665_v53  ;;  %v4750_v16 = vrot.slane %v1747_v12, %v4638_v17  ;;  %v1845_v18 = vcombine.high %v1835_v45, %v1835_v45 }
  0xb9   : > { %2023 = vrot.lane.b32.xlu0 %v4685_v48, %s4429_s9  ;;  %6269 = vst [vmem:[#allocation18_spill] sm:$0xff] %v4740_v11  ;;  %6270 = vst [vmem:[#allocation19_spill] sm:$0xff] %v4745_v13  ;;  %v1716_v19 = vcombine.high %v1714_v61, %v1714_v61  ;;  %v4755_v20 = vrot.slane %v1796_v14, %v4638_v17  ;;  %v1765_v22 = vcombine.high %v1763_v62, %v1763_v62 }
  0xba   : > { %6271 = vst [vmem:[#allocation20_spill] sm:$0xff] %v4750_v16  ;;  %v1695_v21 = vrot.slane %v1667_v15, %v4634_v63  ;;  %v4761_v23 = vrot.slane %v1845_v18, %v4638_v17  ;;  %v1814_v25 = vcombine.high %v1812_v2, %v1812_v2  ;;  %v1697_v33 = vcombine.high %v1681_v1, %v1681_v1 }
  0xbb   : > { %2025 = vrot.lane.b32.xlu1 %v4690_v51, %s4429_s9  ;;  %6272 = vst [vmem:[#allocation21_spill] sm:$0xff] %v4755_v20  ;;  %v1744_v24 = vrot.slane %v1716_v19, %v4634_v63  ;;  %v1793_v28 = vrot.slane %v1765_v22, %v4634_v63  ;;  %v1746_v35 = vcombine.high %v1730_v4, %v1730_v4 }
  0xbc   : > { %6273 = vst [vmem:[#allocation22_spill] sm:$0xff] %v4761_v23  ;;  %v4767_v26 = vrot.slane %v1695_v21, %v4638_v17  ;;  %v1842_v30 = vrot.slane %v1814_v25, %v4634_v63  ;;  %v4789_v37 = vrot.slane %v1697_v33, %v4638_v17  ;;  %v1795_v38 = vcombine.high %v1779_v6, %v1779_v6 }
  0xbd   : > { %1979 = vrot.lane.b32.xlu0 %v4696_v56, %s4429_s9  ;;  %v4773_v29 = vrot.slane %v1744_v24, %v4638_v17  ;;  %v4779_v31 = vrot.slane %v1793_v28, %v4638_v17  ;;  %v4794_v39 = vrot.slane %v1746_v35, %v4638_v17  ;;  %v1844_v41 = vcombine.high %v1828_v8, %v1828_v8 }
  0xbe   : > { %6274 = vst [vmem:[#allocation23_spill] sm:$0xff] %v4767_v26  ;;  %v4784_v34 = vrot.slane %v1842_v30, %v4638_v17  ;;  %6278 = vst [vmem:[#allocation27_spill] sm:$0xff] %v4789_v37  ;;  %v4803_v46 = vrot.slane %v1795_v38, %v4638_v17  ;;  %v1699_v49 = vcombine.high %v1695_v21, %v1695_v21 }
  0xbf   : > { %1995 = vrot.lane.b32.xlu1 %v4701_v59, %s4429_s9  ;;  %6275 = vst [vmem:[#allocation24_spill] sm:$0xff] %v4773_v29  ;;  %6276 = vst [vmem:[#allocation25_spill] sm:$0xff] %v4779_v31  ;;  %v4812_v53 = vrot.slane %v1844_v41, %v4638_v17  ;;  %v1748_v55 = vcombine.high %v1744_v24, %v1744_v24  ;;  %v1797_v61 = vcombine.high %v1793_v28, %v1793_v28 }
  0xc0   : > { %6277 = vst [vmem:[#allocation26_spill] sm:$0xff] %v4784_v34  ;;  %6279 = vst [vmem:[#allocation28_spill] sm:$0xff] %v4794_v39  ;;  %v4821_v60 = vrot.slane %v1699_v49, %v4638_v17  ;;  %v1846_v4 = vcombine.high %v1842_v30, %v1842_v30 }
  0xc1   : > { %2011 = vrot.lane.b32.xlu0 %v4708_v0, %s4429_s9  ;;  %6280 = vst [vmem:[#allocation29_spill] sm:$0xff] %v4803_v46  ;;  %6283 = vst [vmem:[#allocation32_spill] sm:$0xff] %v4812_v53  ;;  %v4830_v2 = vrot.slane %v1748_v55, %v4638_v17  ;;  %v4835_v6 = vrot.slane %v1797_v61, %v4638_v17 }
  0xc2   : > { %6285 = vst [vmem:[#allocation34_spill] sm:$0xff] %v4821_v60  ;;  %v4844_v12 = vrot.slane %v1846_v4, %v4638_v17 }
  0xc3   : > { %2027 = vrot.lane.b32.xlu1 %v4715_v3, %s4429_s9  ;;  %6288 = vst [vmem:[#allocation37_spill] sm:$0xff] %v4830_v2  ;;  %6289 = vst [vmem:[#allocation38_spill] sm:$0xff] %v4835_v6 }
  0xc4   : > { %6290 = vst [vmem:[#allocation39_spill] sm:$0xff] %v4844_v12 }
  0xc5   : > { %1983 = vrot.lane.b32.xlu0 %v4721_v5, %s4429_s9 }
  0xc7   : > { %1999 = vrot.lane.b32.xlu1 %v4727_v7, %s4429_s9 }
  0xc9   : > { %2015 = vrot.lane.b32.xlu0 %v4733_v9, %s4429_s9 }
  0xcb   : > { %2031 = vrot.lane.b32.xlu1 %v4740_v11, %s4429_s9 }
  0xcd   : > { %1981 = vrot.lane.b32.xlu0 %v4745_v13, %s4429_s9 }
  0xcf   : > { %1997 = vrot.lane.b32.xlu1 %v4750_v16, %s4429_s9 }
  0xd1   : > { %2013 = vrot.lane.b32.xlu0 %v4755_v20, %s4429_s9 }
  0xd3   : > { %2029 = vrot.lane.b32.xlu1 %v4761_v23, %s4429_s9 }
  0xd5   : > { %1985 = vrot.lane.b32.xlu0 %v4767_v26, %s4429_s9 }
  0xd7   : > { %2001 = vrot.lane.b32.xlu1 %v4773_v29, %s4429_s9 }
  0xd9   : > { %2017 = vrot.lane.b32.xlu0 %v4779_v31, %s4429_s9 }
  0xdb   : > { %2033 = vrot.lane.b32.xlu1 %v4784_v34, %s4429_s9 }
  0xdd   : > { %1987 = vrot.lane.b32.xlu0 %v4789_v37, %s4429_s9 }
  0xde   : > { %v4796_v43 = vpop.f32.mrf.mxu1  ;;  %v4798_v45 = vpop.f32.mrf.mxu0 }
  0xdf   : > { %2003 = vrot.lane.b32.xlu1 %v4794_v39, %s4429_s9 }
  0xe0   : > { %v4805_v50 = vpop.f32.mrf.mxu1  ;;  %v4807_v52 = vpop.f32.mrf.mxu0 }
  0xe1   : > { %6281 = vst [vmem:[#allocation30_spill] sm:$0xff] %v4805_v50  ;;  %6282 = vst [vmem:[#allocation31_spill] sm:$0xff] %v4807_v52  ;;  %2019 = vrot.lane.b32.xlu0 %v4803_v46, %s4429_s9 }
  0xe2   : > { %v4814_v57 = vpop.f32.mrf.mxu1  ;;  %v4816_v58 = vpop.f32.mrf.mxu0 }
  0xe3   : > { %6284 = vst [vmem:[#allocation33_spill] sm:$0xff] %v4814_v57  ;;  %2035 = vrot.lane.b32.xlu1 %v4812_v53, %s4429_s9 }
  0xe4   : > { %v4823_v62 = vpop.f32.mrf.mxu1  ;;  %v4825_v1 = vpop.f32.mrf.mxu0 }
  0xe5   : > { %6286 = vst [vmem:[#allocation35_spill] sm:$0xff] %v4823_v62  ;;  %6287 = vst [vmem:[#allocation36_spill] sm:$0xff] %v4825_v1  ;;  %1989 = vrot.lane.b32.xlu0 %v4821_v60, %s4429_s9 }
  0xe7   : > { %2005 = vrot.lane.b32.xlu1 %v4830_v2, %s4429_s9  ;;  %v4837_v8 = vpop.f32.mrf.mxu1  ;;  %v4839_v10 = vpop.f32.mrf.mxu0 }
  0xe9   : > { %2021 = vrot.lane.b32.xlu0 %v4835_v6, %s4429_s9  ;;  %v4846_v14 = vpop.f32.mrf.mxu1  ;;  %v4848_v15 = vpop.f32.mrf.mxu0 }
  0xea   : > { %6291 = vst [vmem:[#allocation40_spill] sm:$0xff] %v4846_v14  ;;  %6292 = vst [vmem:[#allocation41_spill] sm:$0xff] %v4848_v15 }
  0xeb   : > { %2037 = vrot.lane.b32.xlu1 %v4844_v12, %s4429_s9  ;;  %v4852_v18 = vpop.f32.mrf.mxu1  ;;  %v4854_v19 = vpop.f32.mrf.mxu0 }
  0xed   : > { %v4856_v21 = vpop.f32.mrf.mxu1  ;;  %v4858_v22 = vpop.f32.mrf.mxu0 }
  0xee   : > { %6293 = vst [vmem:[#allocation42_spill] sm:$0xff] %v4856_v21  ;;  %6294 = vst [vmem:[#allocation43_spill] sm:$0xff] %v4858_v22 }
  0xef   : > { %v4860_v24 = vpop.f32.mrf.mxu1  ;;  %v4862_v25 = vpop.f32.mrf.mxu0 }
  0xf0   : > { %6295 = vst [vmem:[#allocation44_spill] sm:$0xff] %v4860_v24 }
  0xf1   : > { %v4864_v28 = vpop.f32.mrf.mxu1  ;;  %v4866_v30 = vpop.f32.mrf.mxu0 }
  0xf2   : > { %6296 = vst [vmem:[#allocation45_spill] sm:$0xff] %v4864_v28  ;;  %6297 = vst [vmem:[#allocation46_spill] sm:$0xff] %v4866_v30  ;;  %v4936_v28 = vsub.s32 1, %v4625_v54 }
  0xf3   : > { %v4868_v33 = vpop.f32.mrf.mxu1  ;;  %v4870_v35 = vpop.f32.mrf.mxu0 }
  0xf4   : > { %6298 = vst [vmem:[#allocation47_spill] sm:$0xff] %v4868_v33 }
  0xf5   : > { %v4872_v38 = vpop.f32.mrf.mxu1  ;;  %v4874_v41 = vpop.f32.mrf.mxu0 }
  0xf6   : > { %6299 = vst [vmem:[#allocation48_spill] sm:$0xff] %v4872_v38  ;;  %6300 = vst [vmem:[#allocation49_spill] sm:$0xff] %v4874_v41 }
  0xf7   : > { %v4876_v49 = vpop.f32.mrf.mxu1  ;;  %v4878_v55 = vpop.f32.mrf.mxu0 }
  0xf8   : > { %6301 = vst [vmem:[#allocation50_spill] sm:$0xff] %v4876_v49 }
  0xf9   : > { %v4880_v61 = vpop.f32.mrf.mxu1  ;;  %v4882_v4 = vpop.f32.mrf.mxu0 }
  0xfa   : > { %6302 = vst [vmem:[#allocation51_spill] sm:$0xff] %v4880_v61  ;;  %6303 = vst [vmem:[#allocation52_spill] sm:$0xff] %v4882_v4 }
  0xfb   : > { %v4884_v47 = vpop.f32.mrf.mxu1  ;;  %v4886_v12 = vpop.f32.mrf.mxu0 }
  0xfd   : > { %v4888_v6 = vpop.f32.mrf.mxu1  ;;  %v4890_v34 = vpop.f32.mrf.mxu0 }
  0xfe   : > { %6304 = vst [vmem:[#allocation53_spill] sm:$0xff] %v4888_v6  ;;  %6305 = vst [vmem:[#allocation54_spill] sm:$0xff] %v4890_v34 }
  0xff   : > { %v4892_v53 = vpop.f32.mrf.mxu1  ;;  %v4894_v23 = vpop.f32.mrf.mxu0 }
 0x101   : > { %v4896_v11 = vpop.f32.mrf.mxu1  ;;  %v4898_v51 = vpop.f32.mrf.mxu0 }
 0x102   : > { %6306 = vst [vmem:[#allocation55_spill] sm:$0xff] %v4896_v11  ;;  %6307 = vst [vmem:[#allocation56_spill] sm:$0xff] %v4898_v51 }
 0x103   : > { %v4900_v38 = vpop.f32.mrf.mxu1  ;;  %v4902_v3 = vpop.f32.mrf.mxu0 }
 0x104   : > { %6308 = vst [vmem:[#allocation57_spill] sm:$0xff] %v4900_v38 }
 0x105   : > { %v4904_v46 = vpop.f32.mrf.mxu1  ;;  %v4906_v48 = vpop.f32.mrf.mxu0 }
 0x106   : > { %6309 = vst [vmem:[#allocation58_spill] sm:$0xff] %v4904_v46  ;;  %6310 = vst [vmem:[#allocation59_spill] sm:$0xff] %v4906_v48 }
 0x107   : > { %v4908_v9 = vpop.f32.mrf.mxu1  ;;  %v4910_v6 = vpop.f32.mrf.mxu0 }
 0x109   : > { %v4912_v31 = vpop.f32.mrf.mxu1  ;;  %v4914_v0 = vpop.f32.mrf.mxu0 }
 0x10a   : > { %6311 = vst [vmem:[#allocation60_spill] sm:$0xff] %v4912_v31  ;;  %6312 = vst [vmem:[#allocation61_spill] sm:$0xff] %v4914_v0  ;;  %v832_v31 = vld [vmem:[%s6186_s5] sm:$0x3] }
 0x10b   : > { %v4916_v20 = vpop.f32.mrf.mxu1  ;;  %v4918_v11 = vpop.f32.mrf.mxu0  ;;  %v4943_v16 = vrot.slane %v832_v31, %v4638_v17 }
 0x10c   : > { %6313 = vst [vmem:[#allocation62_spill] sm:$0xff] %v4916_v20 }
 0x10d   : > { %v4920_v44 = vpop.f32.mrf.mxu1  ;;  %v4922_v42 = vpop.f32.mrf.mxu0 }
 0x10e   : > { %6314 = vst [vmem:[#allocation63_spill] sm:$0xff] %v4920_v44 }
 0x10f   : > { %v4924_v2 = vpop.f32.mrf.mxu1  ;;  %v4926_v46 = vpop.f32.mrf.mxu0 }
 0x110   : > { %6315 = vst [vmem:[#allocation64_spill] sm:$0xff] %v4924_v2 }
 0x111   : > { %v4928_v29 = vpop.f32.mrf.mxu1  ;;  %v4933_v7 = vpop.f32.mrf.mxu0 }
 0x112   : > { %6316 = vst [vmem:[#allocation65_spill] sm:$0xff] %v4928_v29  ;;  %v4948_v29 = vrot.slane %v832_v31, %v4936_v28 }
 0x113   : > { %v4938_v61 = vpop.f32.mrf.mxu1  ;;  %v4940_v44 = vpop.f32.mrf.mxu0 }
 0x114   : > { %6317 = vst [vmem:[#allocation66_spill] sm:$0xff] %v4938_v61 }
 0x115   : > { %v4945_v59 = vpop.f32.mrf.mxu1  ;;  %v4950_v14 = vpop.f32.mrf.mxu0 }
 0x116   : > { %6318 = vst [vmem:[#allocation67_spill] sm:$0xff] %v4945_v59 }
 0x117   : > { %v934_v21 = vpop.f32.mrf.mxu1  ;;  %v4954_v40 = vpop.f32.mrf.mxu0 }
 0x118   : > { %v935_v50 = vadd.f32 %v934_v21, %v4943_v16 }
 0x119   : > { %v936_v62 = vpop.f32.mrf.mxu1  ;;  %v737_v37 = vpop.f32.mrf.mxu0 }
 0x11a   : > { %v937_v39 = vadd.f32 %v936_v62, %v4948_v29 }
 0x11b   : > { %v938_v36 = vpop.f32.mrf.mxu1  ;;  %v4973_v34 = vpop.f32.mrf.mxu0 }
 0x11c   : > { %v961_v60 = vcombine.low %v935_v50, %v937_v39  ;;  %v939_v26 = vadd.f32 %v938_v36, %v4943_v16  ;;  %v962_v54 = vcombine.high %v935_v50, %v937_v39 }
 0x11d   : > { %v940_v13 = vpop.f32.mrf.mxu1 }
 0x11e   : > { %v969_v59 = vrot.slane %v961_v60, %v4634_v63  ;;  %v941_v31 = vadd.f32 %v940_v13, %v4948_v29  ;;  %v1976_v0 = vpop.permute.xlu0 %1975 }
 0x11f   : > { %v944_v56 = vpop.f32.mrf.mxu1 }
 0x120   : > { %v977_v48 = vcombine.high %v969_v59, %v969_v59  ;;  %v4960_v21 = vrot.slane %v969_v59, %v4634_v63  ;;  %v1012_v51 = vcombine.high %v939_v26, %v941_v31  ;;  %v1978_v62 = vpop.permute.xlu1 %1977  ;;  %v4963_v5 = vadd.f32 %v944_v56, %v4943_v16 }
 0x121   : > { %v946_v27 = vpop.f32.mrf.mxu1  ;;  %v1011_v30 = vcombine.low %v939_v26, %v941_v31 }
 0x122   : > { %6319 = vst [vmem:[#allocation68_spill] sm:$0xff] %v4960_v21  ;;  %v4966_v36 = vrot.slane %v977_v48, %v4634_v63  ;;  %v1164_v60 = vrot.slane %v4960_v21, %v4638_v17  ;;  %v4971_v13 = vadd.f32 %v946_v27, %v4948_v29  ;;  %v1026_v59 = vrot.slane %v1012_v51, %v4634_v63 }
 0x123   : > { %v4976_v41 = vpop.permute.xlu0 %1991  ;;  %v1019_v31 = vrot.slane %v1011_v30, %v4634_v63 }
 0x124   : > { %v4979_v22 = vadd.f32 %v1164_v60, %v4798_v45  ;;  %v1172_v56 = vrot.slane %v4966_v36, %v4638_v17  ;;  %v1061_v48 = vcombine.low %v4963_v5, %v4971_v13  ;;  %v1028_v4 = vcombine.high %v1026_v59, %v1026_v59  ;;  %v741_v60 = vpop.f32.mrf.mxu0 }
 0x125   : > { %v4986_v15 = vrot.slane %v1026_v59, %v4634_v63  ;;  %v1994_v27 = vpop.permute.xlu1 %1993 }
 0x126   : > { %6320 = vst [vmem:[#allocation69_spill] sm:$0xff] %v4979_v22  ;;  %v2071_v32 = vadd.f32 %v1976_v0, %v4979_v22  ;;  %v4990_v51 = vadd.f32 %v1172_v56, %v4816_v58  ;;  %v4993_v45 = vrot.slane %v1061_v48, %v4634_v63  ;;  %v4996_v52 = vrot.slane %v1028_v4, %v4634_v63  ;;  %v5019_v39 = vpop.f32.mrf.mxu0 }
 0x127   : > { %v5000_v1 = vcombine.high %v4986_v15, %v4986_v15  ;;  %v5002_v59 = vpop.permute.xlu0 %2007  ;;  %v1027_v22 = vcombine.high %v1019_v31, %v1019_v31 }
 0x128   : > { %6321 = vst [vmem:[#allocation70_spill] sm:$0xff] %v4990_v51  ;;  %v2072_v0 = vadd.f32 %v1978_v62, %v4990_v51  ;;  %2199 = vrot.lane.b32.xlu0 %v2071_v32, %s4429_s9  ;;  %v5010_v58 = vrot.slane %v4993_v45, %v4634_v63  ;;  %v5017_v56 = vcombine.high %v4996_v52, %v4996_v52  ;;  %v747_v61 = vpop.f32.mrf.mxu0 }
 0x129   : > { %v1280_v26 = vrot.slane %v5000_v1, %v4936_v28  ;;  %v5012_v4 = vpop.permute.xlu1 %2009  ;;  %v976_v62 = vrot.slane %v962_v54, %v4634_v63  ;;  %v5041_v54 = vrot.slane %v1027_v22, %v4634_v63 }
 0x12a   : > { %2201 = vrot.lane.b32.xlu1 %v2072_v0, %s4429_s9  ;;  %v1288_v48 = vrot.slane %v5017_v56, %v4936_v28  ;;  %v1296_v30 = vrot.slane %v5010_v58, %v4936_v28 }
 0x12b   : > { %v5022_v32 = vadd.f32 %v1280_v26, %v737_v37  ;;  %v5024_v50 = vpop.permute.xlu0 %2023  ;;  %v5038_v0 = vrot.slane %v976_v62, %v4634_v63  ;;  %6327 = vst [vmem:[#allocation76_spill] sm:$0xff] %v5041_v54 }
 0x12c   : > { %6323 = vst [vmem:[#allocation72_spill] sm:$0xff] %v5024_v50  ;;  %v5033_v33 = vadd.f32 %v1288_v48, %v741_v60  ;;  %v5035_v57 = vadd.f32 %v1296_v30, %v747_v61  ;;  %v5048_v50 = vrot.slane %v1019_v31, %v4634_v63  ;;  %v5052_v61 = vcombine.high %v4960_v21, %v4960_v21 }
 0x12d   : > { %6322 = vst [vmem:[#allocation71_spill] sm:$0xff] %v5022_v32  ;;  %v5031_v51 = vpop.permute.xlu1 %2025  ;;  %6326 = vst [vmem:[#allocation75_spill] sm:$0xff] %v5038_v0  ;;  %v1196_v32 = vrot.slane %v5038_v0, %v4638_v17  ;;  %v1236_v48 = vrot.slane %v5041_v54, %v4638_v17 }
 0x12e   : > { %6324 = vst [vmem:[#allocation73_spill] sm:$0xff] %v5033_v33  ;;  %6325 = vst [vmem:[#allocation74_spill] sm:$0xff] %v5035_v57  ;;  %v1180_v22 = vrot.slane %v5052_v61, %v4638_v17  ;;  %v1260_v57 = vrot.slane %v4986_v15, %v4638_v17  ;;  %v5067_v33 = vcombine.high %v5048_v50, %v5048_v50 }
 0x12f   : > { %v1980_v37 = vpop.permute.xlu0 %1979  ;;  %6328 = vst [vmem:[#allocation77_spill] sm:$0xff] %v5048_v50  ;;  %6329 = vst [vmem:[#allocation78_spill] sm:$0xff] %v5052_v61  ;;  %v5061_v30 = vadd.f32 %v1196_v32, %v4862_v25  ;;  %v5074_v24 = vadd.f32 %v1236_v48, %v4902_v3 }
 0x130   : > { %6330 = vst [vmem:[#allocation79_spill] sm:$0xff] %v5067_v33  ;;  %v5071_v2 = vadd.f32 %v1260_v57, %v4926_v46  ;;  %v5077_v25 = vadd.f32 %v1180_v22, %v4839_v10  ;;  %v1244_v32 = vrot.slane %v5067_v33, %v4638_v17 }
 0x131   : > { %v1996_v26 = vpop.permute.xlu1 %1995  ;;  %6332 = vst [vmem:[#allocation81_spill] sm:$0xff] %v5074_v24  ;;  %v2080_v3 = vadd.f32 %v1994_v27, %v5074_v24 }
 0x132   : > { %6331 = vst [vmem:[#allocation80_spill] sm:$0xff] %v5071_v2  ;;  %v2073_v46 = vadd.f32 %v1980_v37, %v5077_v25  ;;  %v5091_v10 = vadd.f32 %v1244_v32, %v4910_v6  ;;  %v1268_v6 = vrot.slane %v4996_v52, %v4638_v17 }
 0x133   : > { %v5045_v38 = vpop.permute.xlu0 %2011 }
 0x134   : > { %6333 = vst [vmem:[#allocation82_spill] sm:$0xff] %v5091_v10  ;;  %v2081_v37 = vadd.f32 %v1996_v26, %v5091_v10  ;;  %v1059_v26 = vcombine.high %v5041_v54, %v5041_v54  ;;  %v5117_v33 = vadd.f32 %v1268_v6, %v4940_v44  ;;  %v1276_v44 = vrot.slane %v5000_v1, %v4638_v17 }
 0x135   : > { %v5054_v60 = vpop.permute.xlu1 %2027  ;;  %v1228_v6 = vrot.slane %v5048_v50, %v4638_v17  ;;  %v1272_v1 = vrot.slane %v4996_v52, %v4936_v28 }
 0x137   : > { %v1984_v31 = vpop.permute.xlu0 %1983  ;;  %v5166_v52 = vadd.f32 %v1228_v6, %v4894_v23 }
 0x138   : > { %v2075_v21 = vadd.f32 %v1984_v31, %v5061_v30  ;;  %v978_v31 = vcombine.high %v976_v62, %v976_v62  ;;  %v948_v62 = vpop.f32.mrf.mxu1 }
 0x139   : > { %v2000_v49 = vpop.permute.xlu1 %1999  ;;  %v949_v10 = vadd.f32 %v948_v62, %v4943_v16  ;;  %v1256_v16 = vrot.slane %v1059_v26, %v4936_v28 }
 0x13a   : > { %v2083_v61 = vadd.f32 %v2000_v49, %v5071_v2  ;;  %2207 = vrot.lane.b32.xlu0 %v2075_v21, %s4429_s9  ;;  %v5097_v49 = vrot.slane %v978_v31, %v4634_v63  ;;  %v950_v32 = vpop.f32.mrf.mxu1 }
 0x13b   : > { %v5083_v20 = vpop.permute.xlu0 %2015  ;;  %v951_v24 = vadd.f32 %v950_v32, %v4948_v29  ;;  %v1264_v29 = vrot.slane %v4986_v15, %v4936_v28  ;;  %v5143_v32 = vcombine.high %v4966_v36, %v4966_v36  ;;  %v5154_v15 = vadd.f32 %v1256_v16, %v4922_v42 }
 0x13c   : > { %2223 = vrot.lane.b32.xlu1 %v2083_v61, %s4429_s9  ;;  %6334 = vst [vmem:[#allocation83_spill] sm:$0xff] %v5097_v49  ;;  %v1204_v61 = vrot.slane %v5097_v49, %v4638_v17  ;;  %v1062_v42 = vcombine.high %v4963_v5, %v4971_v13  ;;  %v2079_v5 = vadd.f32 %v4976_v41, %v5166_v52 }
 0x13d   : > { %v5087_v57 = vpop.permute.xlu1 %2031  ;;  %v1111_v62 = vcombine.low %v949_v10, %v951_v24  ;;  %6336 = vst [vmem:[#allocation85_spill] sm:$0xff] %v5154_v15  ;;  %v1284_v13 = vrot.slane %v5017_v56, %v4638_v17 }
 0x13e   : > { %2203 = vrot.lane.b32.xlu0 %v2073_v46, %s4429_s9  ;;  %v5111_v31 = vadd.f32 %v1204_v61, %v4870_v35 }
 0x13f   : > { %v5094_v48 = vpop.permute.xlu0 %1981  ;;  %v1119_v16 = vrot.slane %v1111_v62, %v4634_v63  ;;  %v5207_v62 = vadd.f32 %v1284_v13, %v4973_v34 }
 0x140   : > { %2217 = vrot.lane.b32.xlu1 %v2080_v3, %s4429_s9 }
 0x141   : > { %v1998_v21 = vpop.permute.xlu1 %1997 }
 0x143   : > { %v5103_v27 = vpop.permute.xlu0 %2013 }
 0x144   : > { %2219 = vrot.lane.b32.xlu1 %v2081_v37, %s4429_s9  ;;  %v5121_v37 = vcombine.high %v5038_v0, %v5038_v0  ;;  %v5163_v0 = vadd.f32 %v1276_v44, %v4954_v40 }
 0x145   : > { %v5108_v22 = vpop.permute.xlu1 %2029 }
 0x146   : > { %6335 = vst [vmem:[#allocation84_spill] sm:$0xff] %v5121_v37  ;;  %v1212_v61 = vrot.slane %v5121_v37, %v4638_v17  ;;  %v5160_v37 = vadd.f32 %v1272_v1, %v4950_v14  ;;  %v1188_v14 = vrot.slane %v5143_v32, %v4638_v17 }
 0x147   : > { %v1986_v46 = vpop.permute.xlu0 %1985 }
 0x148   : > { %v2076_v3 = vadd.f32 %v1986_v46, %v5111_v31  ;;  %v5151_v54 = vadd.f32 %v1212_v61, %v4878_v55  ;;  %6338 = vst [vmem:[#allocation87_spill] sm:$0xff] %v5160_v37  ;;  %v5200_v41 = vadd.f32 %v1188_v14, %v4854_v19 }
 0x149   : > { %v2002_v2 = vpop.permute.xlu1 %2001 }
 0x14a   : > { %v2084_v35 = vadd.f32 %v2002_v2, %v5117_v33  ;;  %2209 = vrot.lane.b32.xlu0 %v2076_v3, %s4429_s9  ;;  %v1077_v2 = vcombine.high %v4993_v45, %v4993_v45  ;;  %v5157_v45 = vadd.f32 %v1264_v29, %v4933_v7  ;;  %v1127_v29 = vcombine.high %v1119_v16, %v1119_v16 }
 0x14b   : > { %v5129_v46 = vpop.permute.xlu0 %2017  ;;  %v2074_v19 = vadd.f32 %v5094_v48, %v5200_v41 }
 0x14c   : > { %2225 = vrot.lane.b32.xlu1 %v2084_v35, %s4429_s9  ;;  %v1252_v35 = vrot.slane %v1059_v26, %v4638_v17  ;;  %6337 = vst [vmem:[#allocation86_spill] sm:$0xff] %v5157_v45  ;;  %v1112_v26 = vcombine.high %v949_v10, %v951_v24  ;;  %v5172_v61 = vrot.slane %v1077_v2, %v4634_v63 }
 0x14d   : > { %v5145_v3 = vpop.permute.xlu1 %2033  ;;  %v1076_v10 = vrot.slane %v1062_v42, %v4634_v63 }
 0x14e   : > { %v5178_v40 = vadd.f32 %v1252_v35, %v4918_v11  ;;  %v5192_v11 = vcombine.high %v5097_v49, %v5097_v49  ;;  %v1300_v44 = vrot.slane %v5172_v61, %v4638_v17  ;;  %v1292_v35 = vrot.slane %v5010_v58, %v4638_v17 }
 0x14f   : > { %v1988_v50 = vpop.permute.xlu0 %1987 }
 0x150   : > { %v2077_v55 = vadd.f32 %v1988_v50, %v5151_v54  ;;  %v1126_v50 = vrot.slane %v1112_v26, %v4634_v63  ;;  %6339 = vst [vmem:[#allocation88_spill] sm:$0xff] %v5192_v11  ;;  %v2082_v56 = vadd.f32 %v1998_v21, %v5178_v40  ;;  %v1220_v2 = vrot.slane %v5192_v11, %v4638_v17  ;;  %v749_v26 = vpop.f32.mrf.mxu0 }
 0x151   : > { %v2004_v7 = vpop.permute.xlu1 %2003  ;;  %v5218_v21 = vrot.slane %v1076_v10, %v4634_v63  ;;  %v5226_v14 = vadd.f32 %v1300_v44, %v749_v26  ;;  %v5242_v44 = vcombine.high %v5010_v58, %v5010_v58 }
 0x152   : > { %v2085_v23 = vadd.f32 %v2004_v7, %v5163_v0  ;;  %2211 = vrot.lane.b32.xlu0 %v2077_v55, %s4429_s9  ;;  %v5210_v1 = vrot.slane %v1126_v50, %v4634_v63  ;;  %v5221_v55 = vrot.slane %v1119_v16, %v4634_v63  ;;  %v5224_v7 = vrot.slane %v1127_v29, %v4634_v63 }
 0x153   : > { %v5182_v24 = vpop.permute.xlu0 %2019  ;;  %6341 = vst [vmem:[#allocation90_spill] sm:$0xff] %v5218_v21  ;;  %v1078_v29 = vcombine.high %v1076_v10, %v1076_v10  ;;  %6344 = vst [vmem:[#allocation93_spill] sm:$0xff] %v5242_v44  ;;  %v1128_v10 = vcombine.high %v1126_v50, %v1126_v50  ;;  %v1308_v26 = vrot.slane %v5242_v44, %v4638_v17 }
 0x154   : > { %2227 = vrot.lane.b32.xlu1 %v2085_v23, %s4429_s9  ;;  %6340 = vst [vmem:[#allocation89_spill] sm:$0xff] %v5210_v1  ;;  %6342 = vst [vmem:[#allocation91_spill] sm:$0xff] %v5221_v55  ;;  %v5229_v23 = vadd.f32 %v1220_v2, %v4886_v12  ;;  %v1388_v16 = vrot.slane %v5210_v1, %v4638_v17  ;;  %v1364_v12 = vrot.slane %v5224_v7, %v4638_v17 }
 0x155   : > { %v5197_v6 = vpop.permute.xlu1 %2035  ;;  %6343 = vst [vmem:[#allocation92_spill] sm:$0xff] %v5224_v7  ;;  %v1324_v2 = vrot.slane %v5218_v21, %v4638_v17 }
 0x156   : > { %2215 = vrot.lane.b32.xlu0 %v2079_v5, %s4429_s9  ;;  %v5234_v5 = vadd.f32 %v1292_v35, %v5019_v39  ;;  %v5250_v39 = vcombine.high %v5221_v55, %v5221_v55  ;;  %v5258_v35 = vadd.f32 %v1388_v16, %v4908_v9 }
 0x157   : > { %v1990_v34 = vpop.permute.xlu0 %1989 }
 0x158   : > { %2221 = vrot.lane.b32.xlu1 %v2082_v56, %s4429_s9  ;;  %v2078_v13 = vadd.f32 %v1990_v34, %v5229_v23  ;;  %v2088_v56 = vadd.f32 %v5012_v4, %v5226_v14  ;;  %6345 = vst [vmem:[#allocation94_spill] sm:$0xff] %v5250_v39  ;;  %v2087_v58 = vadd.f32 %v5002_v59, %v5234_v5 }
 0x159   : > { %v2006_v42 = vpop.permute.xlu1 %2005  ;;  %v5262_v4 = vrot.slane %v1078_v29, %v4634_v63  ;;  %v1372_v50 = vrot.slane %v5250_v39, %v4638_v17  ;;  %v5272_v34 = vadd.f32 %v1324_v2, %v4837_v8  ;;  %v2099_v9 = vadd.f32 %v5087_v57, %v5258_v35 }
 0x15a   : > { %v2086_v48 = vadd.f32 %v2006_v42, %v5207_v62  ;;  %2205 = vrot.lane.b32.xlu0 %v2074_v19, %s4429_s9  ;;  %v5267_v19 = vadd.f32 %v1364_v12, %v4884_v47  ;;  %v5278_v59 = vrot.slane %v1128_v10, %v4634_v63  ;;  %v5284_v47 = vadd.f32 %v1308_v26, %v4796_v43 }
 0x15b   : > { %6346 = vst [vmem:[#allocation95_spill] sm:$0xff] %v5262_v4  ;;  %v2091_v42 = vadd.f32 %v5083_v20, %v5272_v34  ;;  %v1332_v57 = vrot.slane %v5262_v4, %v4638_v17  ;;  %v5295_v63 = vcombine.high %v5218_v21, %v5218_v21  ;;  %v5319_v29 = vcombine.high %v5224_v7, %v5224_v7 }
 0x15c   : > { %2229 = vrot.lane.b32.xlu1 %v2086_v48, %s4429_s9  ;;  %6347 = vst [vmem:[#allocation96_spill] sm:$0xff] %v5278_v59  ;;  %v2096_v8 = vadd.f32 %v5031_v51, %v5267_v19  ;;  %v5289_v48 = vadd.f32 %v1372_v50, %v4892_v53  ;;  %v2089_v20 = vadd.f32 %v5045_v38, %v5284_v47 }
 0x15d   : > { %6348 = vst [vmem:[#allocation97_spill] sm:$0xff] %v5295_v63  ;;  %v1396_v43 = vrot.slane %v5278_v59, %v4638_v17  ;;  %v5304_v51 = vcombine.high %v5210_v1, %v5210_v1  ;;  %v5310_v16 = vadd.f32 %v1332_v57, %v4852_v18  ;;  %v1356_v38 = vrot.slane %v5221_v55, %v4638_v17 }
 0x15e   : > { %2213 = vrot.lane.b32.xlu0 %v2078_v13, %s4429_s9  ;;  %v2097_v53 = vadd.f32 %v5054_v60, %v5289_v48  ;;  %v1340_v13 = vrot.slane %v5295_v63, %v4638_v17  ;;  %6350 = vst [vmem:[#allocation99_spill] sm:$0xff] %v5319_v29  ;;  %v5331_v2 = vcombine.high %v5172_v61, %v5172_v61 }
 0x15f   : > { %6349 = vst [vmem:[#allocation98_spill] sm:$0xff] %v5304_v51  ;;  %v2092_v12 = vadd.f32 %v5129_v46, %v5310_v16  ;;  %v1404_v18 = vrot.slane %v5304_v51, %v4638_v17  ;;  %v6354_v46 = vld [vmem:[#allocation50_spill] sm:$0xff] }
 0x160   : > { %2233 = vrot.lane.b32.xlu1 %v2088_v56, %s4429_s9  ;;  %v6351_v56 = vld [vmem:[#allocation62_spill] sm:$0xff]  ;;  %v5340_v50 = vadd.f32 %v1356_v38, %v6354_v46  ;;  %v6359_v38 = vld [vmem:[#allocation57_spill] sm:$0xff]  ;;  %v2038_v46 = vpop.permute.xlu1 %2037 }
 0x161   : > { %v5324_v60 = vadd.f32 %v1396_v43, %v6351_v56  ;;  %6352 = vst [vmem:[#allocation62_spill] sm:$0xff] %v5331_v2 }
 0x162   : > { %2231 = vrot.lane.b32.xlu0 %v2087_v58, %s4429_s9  ;;  %v6353_v58 = vld [vmem:[#allocation44_spill] sm:$0xff] }
 0x163   : > { %v2100_v10 = vadd.f32 %v5145_v3, %v5324_v60  ;;  %v5336_v26 = vadd.f32 %v1340_v13, %v6353_v58  ;;  %v5351_v3 = vcombine.high %v5278_v59, %v5278_v59 }
 0x164   : > { %2255 = vrot.lane.b32.xlu1 %v2099_v9, %s4429_s9  ;;  %v1380_v9 = vrot.slane %v5319_v29, %v4638_v17 }
 0x165   : > { %6356 = vst [vmem:[#allocation44_spill] sm:$0xff] %v5351_v3  ;;  %v1412_v56 = vrot.slane %v5351_v3, %v4638_v17 }
 0x166   : > { %2239 = vrot.lane.b32.xlu0 %v2091_v42, %s4429_s9  ;;  %v2093_v42 = vadd.f32 %v5182_v24, %v5336_v26  ;;  %v6358_v24 = vld [vmem:[#allocation72_spill] sm:$0xff] }
 0x167   : > { %v2095_v13 = vadd.f32 %v6358_v24, %v5340_v50 }
 0x168   : > { %2249 = vrot.lane.b32.xlu1 %v2096_v8, %s4429_s9  ;;  %v6355_v8 = vld [vmem:[#allocation64_spill] sm:$0xff] }
 0x169   : > { %v5347_v57 = vadd.f32 %v1404_v18, %v6355_v8  ;;  %v6360_v18 = vld [vmem:[#allocation33_spill] sm:$0xff] }
 0x16a   : > { %2235 = vrot.lane.b32.xlu0 %v2089_v20, %s4429_s9  ;;  %v1316_v20 = vrot.slane %v5331_v2, %v4638_v17 }
 0x16b   : > { %v2101_v43 = vadd.f32 %v5197_v6, %v5347_v57 }
 0x16c   : > { %2251 = vrot.lane.b32.xlu1 %v2097_v53, %s4429_s9  ;;  %v5360_v53 = vcombine.high %v5262_v4, %v5262_v4 }
 0x16e   : > { %2241 = vrot.lane.b32.xlu0 %v2092_v12, %s4429_s9  ;;  %6357 = vst [vmem:[#allocation50_spill] sm:$0xff] %v5360_v53  ;;  %v5366_v12 = vadd.f32 %v1380_v9, %v6359_v38  ;;  %v1348_v58 = vrot.slane %v5360_v53, %v4638_v17 }
 0x170   : > { %2257 = vrot.lane.b32.xlu1 %v2100_v10, %s4429_s9  ;;  %v5372_v10 = vadd.f32 %v1316_v20, %v6360_v18  ;;  %v2098_v6 = vadd.f32 %v5108_v22, %v5366_v12  ;;  %v6362_v20 = vld [vmem:[#allocation47_spill] sm:$0xff] }
 0x171   : > { %v5386_v24 = vadd.f32 %v1348_v58, %v6362_v20  ;;  %v6364_v20 = vld [vmem:[#allocation70_spill] sm:$0xff] }
 0x172   : > { %2243 = vrot.lane.b32.xlu0 %v2093_v42, %s4429_s9  ;;  %v2090_v9 = vadd.f32 %v5103_v27, %v5372_v10  ;;  %v6361_v42 = vld [vmem:[#allocation66_spill] sm:$0xff] }
 0x173   : > { %v5382_v8 = vadd.f32 %v1412_v56, %v6361_v42 }
 0x174   : > { %2259 = vrot.lane.b32.xlu1 %v2101_v43, %s4429_s9  ;;  %v2022_v43 = vpop.permute.xlu0 %2021 }
 0x175   : > { %v2102_v22 = vadd.f32 %v2038_v46, %v5382_v8  ;;  %v2094_v38 = vadd.f32 %v2022_v43, %v5386_v24 }
 0x176   : > { %2247 = vrot.lane.b32.xlu0 %v2095_v13, %s4429_s9  ;;  %v6363_v13 = vld [vmem:[#allocation69_spill] sm:$0xff] }
 0x178   : > { %2253 = vrot.lane.b32.xlu1 %v2098_v6, %s4429_s9 }
 0x17a   : > { %2237 = vrot.lane.b32.xlu0 %v2090_v9, %s4429_s9 }
 0x17c   : > { %2261 = vrot.lane.b32.xlu1 %v2102_v22, %s4429_s9 }
 0x17e   : > { %2245 = vrot.lane.b32.xlu0 %v2094_v38, %s4429_s9 }
 0x19a   : > { %v2200_v27 = vpop.permute.xlu0 %2199 }
 0x19b   : > { %v2295_v56 = vmul.f32 %v2200_v27, %v6363_v13 }
 0x19c   : > { %v2202_v6 = vpop.permute.xlu1 %2201 }
 0x19d   : > { %v2327_v18 = vsel %vm582_vm0, %v2295_v56, 0.0  ;;  %v2296_v46 = vmul.f32 %v2202_v6, %v6364_v20 }
 0x19e   : > { %2328 = vadd.xlane.f32.xlu0 %v2327_v18 }
 0x19f   : > { %v2330_v38 = vsel %vm582_vm0, %v2296_v46, 0.0 }
 0x1ac   : > { %v2208_v42 = vpop.permute.xlu0 %2207 }
 0x1ad   : > { %v2299_v58 = vmul.f32 %v2208_v42, %v5061_v30 }
 0x1ae   : > { %v2224_v43 = vpop.permute.xlu1 %2223 }
 0x1af   : > { %v2339_v9 = vsel %vm582_vm0, %v2299_v58, 0.0 }
 0x1b0   : > { %v2204_v3 = vpop.permute.xlu0 %2203  ;;  %2340 = vadd.xlane.f32.xlu1 %v2339_v9 }
 0x1b1   : > { %v2297_v22 = vmul.f32 %v2204_v3, %v5077_v25 }
 0x1b2   : > { %v2218_v13 = vpop.permute.xlu1 %2217 }
 0x1b3   : > { %v2333_v27 = vsel %vm582_vm0, %v2297_v22, 0.0 }
 0x1b4   : > { %2331 = vadd.xlane.f32.xlu1 %v2330_v38  ;;  %v6365_v38 = vld [vmem:[#allocation80_spill] sm:$0xff] }
 0x1b6   : > { %v2220_v30 = vpop.permute.xlu1 %2219 }
 0x1b8   : > { %2334 = vadd.xlane.f32.xlu1 %v2333_v27  ;;  %v2307_v27 = vmul.f32 %v2224_v43, %v6365_v38 }
 0x1bc   : > { %v2210_v56 = vpop.permute.xlu0 %2209 }
 0x1bd   : > { %v2300_v18 = vmul.f32 %v2210_v56, %v5111_v31 }
 0x1be   : > { %v2226_v42 = vpop.permute.xlu1 %2225 }
 0x1bf   : > { %v2342_v6 = vsel %vm582_vm0, %v2300_v18, 0.0 }
 0x1c0   : > { %2343 = vadd.xlane.f32.xlu1 %v2342_v6  ;;  %v6366_v6 = vld [vmem:[#allocation81_spill] sm:$0xff] }
 0x1c1   : > { %v2304_v53 = vmul.f32 %v2218_v13, %v6366_v6 }
 0x1c4   : > { %v2212_v58 = vpop.permute.xlu0 %2211 }
 0x1c5   : > { %v2301_v20 = vmul.f32 %v2212_v58, %v5151_v54  ;;  %v2363_v54 = vsel %vm582_vm0, %v2307_v27, 0.0  ;;  %v2308_v27 = vmul.f32 %v2226_v42, %v5117_v33 }
 0x1c6   : > { %v2228_v9 = vpop.permute.xlu1 %2227 }
 0x1c7   : > { %v2345_v25 = vsel %vm582_vm0, %v2301_v20, 0.0 }
 0x1c8   : > { %v2216_v3 = vpop.permute.xlu0 %2215  ;;  %2346 = vadd.xlane.f32.xlu1 %v2345_v25  ;;  %v6367_v25 = vld [vmem:[#allocation82_spill] sm:$0xff] }
 0x1c9   : > { %v2303_v46 = vmul.f32 %v2216_v3, %v5166_v52  ;;  %v2305_v43 = vmul.f32 %v2220_v30, %v6367_v25  ;;  %v2354_v3 = vsel %vm582_vm0, %v2304_v53, 0.0  ;;  %v2309_v53 = vmul.f32 %v2228_v9, %v5163_v0 }
 0x1ca   : > { %v2222_v22 = vpop.permute.xlu1 %2221  ;;  %v2366_v30 = vsel %vm582_vm0, %v2308_v27, 0.0 }
 0x1cb   : > { %v2351_v31 = vsel %vm582_vm0, %v2303_v46, 0.0  ;;  %v2306_v42 = vmul.f32 %v2222_v22, %v5178_v40 }
 0x1cc   : > { %v2206_v56 = vpop.permute.xlu0 %2205  ;;  %2352 = vadd.xlane.f32.xlu0 %v2351_v31  ;;  %v2357_v31 = vsel %vm582_vm0, %v2305_v43, 0.0 }
 0x1cd   : > { %v2298_v18 = vmul.f32 %v2206_v56, %v5200_v41  ;;  %v2360_v25 = vsel %vm582_vm0, %v2306_v42, 0.0 }
 0x1ce   : > { %v2230_v20 = vpop.permute.xlu1 %2229 }
 0x1cf   : > { %v2336_v58 = vsel %vm582_vm0, %v2298_v18, 0.0 }
 0x1d0   : > { %v2214_v59 = vpop.permute.xlu0 %2213  ;;  %2364 = vadd.xlane.f32.xlu0 %v2363_v54  ;;  %2337 = vadd.xlane.f32.xlu1 %v2336_v58  ;;  %v2369_v54 = vsel %vm582_vm0, %v2309_v53, 0.0 }
 0x1d1   : > { %v2302_v52 = vmul.f32 %v2214_v59, %v5229_v23 }
 0x1d2   : > { %v2234_v38 = vpop.permute.xlu1 %2233 }
 0x1d3   : > { %v2348_v46 = vsel %vm582_vm0, %v2302_v52, 0.0  ;;  %v2310_v52 = vmul.f32 %v2230_v20, %v5207_v62  ;;  %v2312_v22 = vmul.f32 %v2234_v38, %v5226_v14 }
 0x1d4   : > { %2355 = vadd.xlane.f32.xlu0 %v2354_v3  ;;  %v2232_v41 = vpop.permute.xlu0 %2231  ;;  %2349 = vadd.xlane.f32.xlu1 %v2348_v46 }
 0x1d5   : > { %v2311_v13 = vmul.f32 %v2232_v41, %v5234_v5  ;;  %v2372_v3 = vsel %vm582_vm0, %v2310_v52, 0.0  ;;  %v2378_v27 = vsel %vm582_vm0, %v2312_v22, 0.0 }
 0x1d6   : > { %v2256_v6 = vpop.permute.xlu1 %2255 }
 0x1d7   : > { %v2375_v56 = vsel %vm582_vm0, %v2311_v13, 0.0  ;;  %v2323_v20 = vmul.f32 %v2256_v6, %v5258_v35 }
 0x1d8   : > { %2358 = vadd.xlane.f32.xlu0 %v2357_v31  ;;  %v2240_v23 = vpop.permute.xlu0 %2239  ;;  %2376 = vadd.xlane.f32.xlu1 %v2375_v56 }
 0x1d9   : > { %v2315_v59 = vmul.f32 %v2240_v23, %v5272_v34  ;;  %v2411_v23 = vsel %vm582_vm0, %v2323_v20, 0.0 }
 0x1da   : > { %v2250_v9 = vpop.permute.xlu1 %2249 }
 0x1db   : > { %v2387_v18 = vsel %vm582_vm0, %v2315_v59, 0.0  ;;  %v2320_v38 = vmul.f32 %v2250_v9, %v5267_v19  ;;  %v6368_v9 = vlaneseq }
 0x1dc   : > { %2367 = vadd.xlane.f32.xlu0 %v2366_v30  ;;  %v2236_v5 = vpop.permute.xlu0 %2235  ;;  %2388 = vadd.xlane.f32.xlu1 %v2387_v18 }
 0x1dd   : > { %v2313_v33 = vmul.f32 %v2236_v5, %v5284_v47  ;;  %v2402_v30 = vsel %vm582_vm0, %v2320_v38, 0.0 }
 0x1de   : > { %v2252_v41 = vpop.permute.xlu1 %2251 }
 0x1df   : > { %v2381_v58 = vsel %vm582_vm0, %v2313_v33, 0.0 }
 0x1e0   : > { %2370 = vadd.xlane.f32.xlu0 %v2369_v54  ;;  %v2242_v34 = vpop.permute.xlu0 %2241  ;;  %2382 = vadd.xlane.f32.xlu1 %v2381_v58 }
 0x1e1   : > { %v2316_v0 = vmul.f32 %v2242_v34, %v5310_v16 }
 0x1e3   : > { %v2390_v43 = vsel %vm582_vm0, %v2316_v0, 0.0 }
 0x1e4   : > { %2361 = vadd.xlane.f32.xlu0 %v2360_v25  ;;  %v2244_v47 = vpop.permute.xlu0 %2243  ;;  %2391 = vadd.xlane.f32.xlu1 %v2390_v43  ;;  %v6369_v43 = vld [vmem:[#allocation2_spill] sm:$0xff] }
 0x1e5   : > { %v2317_v40 = vmul.f32 %v2244_v47, %v5336_v26  ;;  %v2258_v26 = vpop.permute.xlu1 %2257  ;;  %v5638_v37 = vsub.s32 5, %v6369_v43  ;;  %v5643_v63 = vsub.s32 6, %v6369_v43 }
 0x1e6   : > { %v2324_v19 = vmul.f32 %v2258_v26, %v5324_v60 }
 0x1e7   : > { %v2393_v46 = vsel %vm582_vm0, %v2317_v40, 0.0 }
 0x1e8   : > { %2373 = vadd.xlane.f32.xlu0 %v2372_v3  ;;  %v2248_v16 = vpop.permute.xlu0 %2247  ;;  %2394 = vadd.xlane.f32.xlu1 %v2393_v46  ;;  %v2414_v33 = vsel %vm582_vm0, %v2324_v19, 0.0 }
 0x1e9   : > { %v2319_v62 = vmul.f32 %v2248_v16, %v5340_v50  ;;  %v2321_v50 = vmul.f32 %v2252_v41, %v5289_v48  ;;  %v2260_v18 = vpop.permute.xlu1 %2259 }
 0x1ea   : > { %v2325_v5 = vmul.f32 %v2260_v18, %v5347_v57 }
 0x1eb   : > { %v2399_v13 = vsel %vm582_vm0, %v2319_v62, 0.0 }
 0x1ec   : > { %v2238_v31 = vpop.permute.xlu0 %2237  ;;  %2400 = vadd.xlane.f32.xlu1 %v2399_v13  ;;  %2379 = vadd.xlane.f32.xlu0 %v2378_v27 }
 0x1ed   : > { %v2314_v14 = vmul.f32 %v2238_v31, %v5372_v10  ;;  %v2405_v10 = vsel %vm582_vm0, %v2321_v50, 0.0  ;;  %v2254_v6 = vpop.permute.xlu1 %2253 }
 0x1ee   : > { %v2322_v48 = vmul.f32 %v2254_v6, %v5366_v12  ;;  %v2456_v12 = vand.u32 127, %v6368_v9 }
 0x1ef   : > { %v2384_v56 = vsel %vm582_vm0, %v2314_v14, 0.0 }
 0x1f0   : > { %v2246_v59 = vpop.permute.xlu0 %2245  ;;  %2385 = vadd.xlane.f32.xlu1 %v2384_v56  ;;  %2412 = vadd.xlane.f32.xlu0 %v2411_v23  ;;  %v2408_v58 = vsel %vm582_vm0, %v2322_v48, 0.0 }
 0x1f1   : > { %v2318_v35 = vmul.f32 %v2246_v59, %v5386_v24  ;;  %v2417_v24 = vsel %vm582_vm0, %v2325_v5, 0.0  ;;  %v2262_v42 = vpop.permute.xlu1 %2261 }
 0x1f2   : > { %v2326_v54 = vmul.f32 %v2262_v42, %v5382_v8  ;;  %v5469_v8 = vsub.s32 %v2456_v12, %v6369_v43 }
 0x1f3   : > { %v2396_v53 = vsel %vm582_vm0, %v2318_v35, 0.0 }
 0x1f4   : > { %2397 = vadd.xlane.f32.xlu1 %v2396_v53  ;;  %2403 = vadd.xlane.f32.xlu0 %v2402_v30  ;;  %v2420_v60 = vsel %vm582_vm0, %v2326_v54, 0.0 }
 0x1f8   : > { %2406 = vadd.xlane.f32.xlu0 %v2405_v10 }
 0x1fc   : > { %2415 = vadd.xlane.f32.xlu0 %v2414_v33 }
 0x200   : > { %2418 = vadd.xlane.f32.xlu0 %v2417_v24 }
 0x204   : > { %2409 = vadd.xlane.f32.xlu0 %v2408_v58 }
 0x208   : > { %2421 = vadd.xlane.f32.xlu0 %v2420_v60 }
 0x227   : > { %v5464_v52 = vpop.xlane.xlu0 %2328 }
 0x228   : > { %v2460_v46 = vrot.slane %v5464_v52, %v5469_v8 }
 0x239   : > { %v5457_v34 = vpop.xlane.xlu1 %2340 }
 0x23a   : > { %v2476_v13 = vrot.slane %v5457_v34, %v5469_v8 }
 0x23d   : > { %v5459_v57 = vpop.xlane.xlu1 %2331 }
 0x23e   : > { %v2464_v22 = vrot.slane %v5459_v57, %v5469_v8 }
 0x240   : > { %v2586_v62 = vsel %vm2585_vm1, %v2464_v22, %v2460_v46 }
 0x241   : > { %v5461_v0 = vpop.xlane.xlu1 %2334 }
 0x242   : > { %v2468_v3 = vrot.slane %v5461_v0, %v5469_v8 }
 0x244   : > { %v2588_v27 = vsel %vm2587_vm2, %v2468_v3, %v2586_v62 }
 0x249   : > { %v5466_v25 = vpop.xlane.xlu1 %2343 }
 0x24a   : > { %v2480_v31 = vrot.slane %v5466_v25, %v5469_v8 }
 0x251   : > { %v5471_v47 = vpop.xlane.xlu1 %2346 }
 0x252   : > { %v2484_v26 = vrot.slane %v5471_v47, %v5469_v8 }
 0x255   : > { %v5473_v40 = vpop.xlane.xlu0 %2352 }
 0x256   : > { %v2492_v42 = vrot.slane %v5473_v40, %v5469_v8 }
 0x259   : > { %v5481_v41 = vpop.xlane.xlu0 %2364  ;;  %v5483_v16 = vpop.xlane.xlu1 %2337 }
 0x25a   : > { %v2472_v20 = vrot.slane %v5483_v16, %v5469_v8  ;;  %v2508_v12 = vrot.slane %v5481_v41, %v5469_v8 }
 0x25c   : > { %v2590_v14 = vsel %vm2589_vm3, %v2472_v20, %v2588_v27 }
 0x25d   : > { %v5496_v38 = vpop.xlane.xlu0 %2355  ;;  %v5498_v56 = vpop.xlane.xlu1 %2349  ;;  %v2592_v23 = vsel %vm2591_vm4, %v2476_v13, %v2590_v14 }
 0x25e   : > { %v2488_v59 = vrot.slane %v5498_v56, %v5469_v8  ;;  %v2594_v35 = vsel %vm2593_vm5, %v2480_v31, %v2592_v23  ;;  %v2496_v48 = vrot.slane %v5496_v38, %v5469_v8 }
 0x25f   : > { %v2596_v50 = vsel %vm2595_vm6, %v2484_v26, %v2594_v35 }
 0x260   : > { %v2598_v53 = vsel %vm2597_vm7, %v2488_v59, %v2596_v50  ;;  %v2599_v60 = vsel %vm2585_vm1, %v2496_v48, %v2492_v42 }
 0x261   : > { %v5506_v30 = vpop.xlane.xlu0 %2358  ;;  %v5508_v18 = vpop.xlane.xlu1 %2376  ;;  %v2625_v19 = vsel %vm2624_vm8, %v2598_v53, -inf }
 0x262   : > { %2626 = vmax.xlane.f32.xlu1 %v2625_v19  ;;  %v2500_v24 = vrot.slane %v5506_v30, %v5469_v8  ;;  %v2524_v53 = vrot.slane %v5508_v18, %v5469_v8 }
 0x264   : > { %v2600_v22 = vsel %vm2587_vm2, %v2500_v24, %v2599_v60 }
 0x265   : > { %v5511_v10 = vpop.xlane.xlu0 %2367  ;;  %v5513_v6 = vpop.xlane.xlu1 %2388 }
 0x266   : > { %v2512_v3 = vrot.slane %v5511_v10, %v5469_v8 }
 0x269   : > { %v5515_v5 = vpop.xlane.xlu0 %2370  ;;  %v5517_v33 = vpop.xlane.xlu1 %2382 }
 0x26a   : > { %v2516_v62 = vrot.slane %v5515_v5, %v5469_v8  ;;  %v2532_v24 = vrot.slane %v5517_v33, %v5469_v8 }
 0x26d   : > { %v5525_v54 = vpop.xlane.xlu0 %2361  ;;  %v5527_v58 = vpop.xlane.xlu1 %2391 }
 0x26e   : > { %v2504_v9 = vrot.slane %v5525_v54, %v5469_v8 }
 0x270   : > { %v2601_v46 = vsel %vm2589_vm3, %v2504_v9, %v2600_v22 }
 0x271   : > { %v2602_v20 = vsel %vm2591_vm4, %v2508_v12, %v2601_v46  ;;  %v5541_v13 = vpop.xlane.xlu0 %2373  ;;  %v5543_v27 = vpop.xlane.xlu1 %2394  ;;  %v2540_v12 = vrot.slane %v5513_v6, %v5469_v8 }
 0x272   : > { %v2520_v31 = vrot.slane %v5541_v13, %v5469_v8  ;;  %v2603_v14 = vsel %vm2593_vm5, %v2512_v3, %v2602_v20  ;;  %v2544_v3 = vrot.slane %v5527_v58, %v5469_v8 }
 0x273   : > { %v2604_v26 = vsel %vm2595_vm6, %v2516_v62, %v2603_v14  ;;  %v2548_v62 = vrot.slane %v5543_v27, %v5469_v8 }
 0x274   : > { %v2605_v23 = vsel %vm2597_vm7, %v2520_v31, %v2604_v26 }
 0x275   : > { %v5550_v59 = vpop.xlane.xlu0 %2379  ;;  %v5552_v35 = vpop.xlane.xlu1 %2400  ;;  %v2628_v50 = vsel %vm2624_vm8, %v2605_v23, -inf }
 0x276   : > { %v2528_v19 = vrot.slane %v5550_v59, %v5469_v8  ;;  %2629 = vmax.xlane.f32.xlu0 %v2628_v50 }
 0x278   : > { %v2606_v48 = vsel %vm2585_vm1, %v2528_v19, %v2524_v53 }
 0x279   : > { %v5562_v42 = vpop.xlane.xlu0 %2412  ;;  %v5564_v60 = vpop.xlane.xlu1 %2385  ;;  %v2607_v22 = vsel %vm2587_vm2, %v2532_v24, %v2606_v48 }
 0x27a   : > { %v2536_v9 = vrot.slane %v5564_v60, %v5469_v8 }
 0x27c   : > { %v2608_v46 = vsel %vm2589_vm3, %v2536_v9, %v2607_v22 }
 0x27d   : > { %v2609_v20 = vsel %vm2591_vm4, %v2540_v12, %v2608_v46  ;;  %v5577_v31 = vpop.xlane.xlu0 %2403  ;;  %v5579_v14 = vpop.xlane.xlu1 %2397 }
 0x27e   : > { %v2552_v26 = vrot.slane %v5579_v14, %v5469_v8  ;;  %v2610_v23 = vsel %vm2593_vm5, %v2544_v3, %v2609_v20  ;;  %v2560_v12 = vrot.slane %v5577_v31, %v5469_v8  ;;  %v2556_v3 = vrot.slane %v5552_v35, %v5469_v8 }
 0x27f   : > { %v2611_v50 = vsel %vm2595_vm6, %v2548_v62, %v2610_v23 }
 0x280   : > { %v2612_v53 = vsel %vm2597_vm7, %v2552_v26, %v2611_v50  ;;  %v2613_v62 = vsel %vm2585_vm1, %v2560_v12, %v2556_v3  ;;  %v2572_v26 = vrot.slane %v5562_v42, %v5469_v8 }
 0x281   : > { %v5586_v19 = vpop.xlane.xlu0 %2406  ;;  %v2631_v48 = vsel %vm2624_vm8, %v2612_v53, -inf }
 0x282   : > { %2632 = vmax.xlane.f32.xlu1 %v2631_v48  ;;  %v2564_v22 = vrot.slane %v5586_v19, %v5469_v8 }
 0x284   : > { %v2614_v23 = vsel %vm2587_vm2, %v2564_v22, %v2613_v62 }
 0x285   : > { %v5589_v24 = vpop.xlane.xlu0 %2415 }
 0x286   : > { %v2576_v50 = vrot.slane %v5589_v24, %v5469_v8 }
 0x289   : > { %v5591_v9 = vpop.xlane.xlu0 %2418 }
 0x28a   : > { %v2580_v48 = vrot.slane %v5591_v9, %v5469_v8 }
 0x28d   : > { %v5599_v46 = vpop.xlane.xlu0 %2409 }
 0x28e   : > { %v2568_v20 = vrot.slane %v5599_v46, %v5469_v8 }
 0x290   : > { %v2615_v53 = vsel %vm2589_vm3, %v2568_v20, %v2614_v23  ;;  %v5622_v20 = vsub.s32 2, %v6369_v43  ;;  %v5625_v23 = vsub.s32 3, %v6369_v43 }
 0x291   : > { %v2616_v51 = vsel %vm2591_vm4, %v2572_v26, %v2615_v53  ;;  %v5613_v29 = vpop.xlane.xlu0 %2421 }
 0x292   : > { %v2584_v12 = vrot.slane %v5613_v29, %v5469_v8  ;;  %v2617_v3 = vsel %vm2593_vm5, %v2576_v50, %v2616_v51  ;;  %v5631_v50 = vsub.s32 4, %v6369_v43 }
 0x293   : > { %v2618_v1 = vsel %vm2595_vm6, %v2580_v48, %v2617_v3 }
 0x294   : > { %v2619_v22 = vsel %vm2597_vm7, %v2584_v12, %v2618_v1 }
 0x295   : > { %v2634_v62 = vsel %vm2624_vm8, %v2619_v22, -inf }
 0x296   : > { %2635 = vmax.xlane.f32.xlu0 %v2634_v62 }
 0x2eb   : > { %v2627_v26 = vpop.xlane.xlu1 %2626 }
 0x2ec   : > { %v2644_v53 = vrot.slane %v2627_v26, %v4638_v17  ;;  %v2648_v7 = vrot.slane %v2627_v26, %v4936_v28  ;;  %v2652_v51 = vrot.slane %v2627_v26, %v5622_v20  ;;  %v2656_v1 = vrot.slane %v2627_v26, %v5625_v23 }
 0x2ed   : > { %v2660_v45 = vrot.slane %v2627_v26, %v5631_v50 }
 0x2ee   : > { %v2801_v48 = vsub.f32 %v5464_v52, %v2644_v53  ;;  %v2802_v12 = vsub.f32 %v5459_v57, %v2648_v7  ;;  %v2803_v3 = vsub.f32 %v5461_v0, %v2652_v51  ;;  %v2804_v15 = vsub.f32 %v5483_v16, %v2656_v1 }
 0x2ef   : > { %v2664_v52 = vrot.slane %v2627_v26, %v5638_v37  ;;  %v2805_v7 = vsub.f32 %v5457_v34, %v2660_v45  ;;  %v5648_v0 = vsub.s32 7, %v6369_v43  ;;  %v2668_v53 = vrot.slane %v2627_v26, %v5643_v63 }
 0x2f0   : > { %v2833_v22 = vmul.f32 1.442695, %v2801_v48  ;;  %v2835_v62 = vmul.f32 1.442695, %v2802_v12  ;;  %v2837_v39 = vmul.f32 1.442695, %v2803_v3 }
 0x2f1   : > { %v2839_v57 = vmul.f32 1.442695, %v2804_v15  ;;  %v2806_v51 = vsub.f32 %v5466_v25, %v2664_v52  ;;  %v2841_v16 = vmul.f32 1.442695, %v2805_v7  ;;  %v2672_v1 = vrot.slane %v2627_v26, %v5648_v0 }
 0x2f2   : > { %4329 = vpow2.f32 %v2833_v22  ;;  %v2807_v48 = vsub.f32 %v5471_v47, %v2668_v53 }
 0x2f3   : > { %4331 = vpow2.f32 %v2835_v62  ;;  %v2843_v12 = vmul.f32 1.442695, %v2806_v51  ;;  %v2808_v34 = vsub.f32 %v5498_v56, %v2672_v1 }
 0x2f4   : > { %4333 = vpow2.f32 %v2837_v39  ;;  %v2845_v43 = vmul.f32 1.442695, %v2807_v48 }
 0x2f5   : > { %4335 = vpow2.f32 %v2839_v57  ;;  %v2847_v57 = vmul.f32 1.442695, %v2808_v34 }
 0x2f6   : > { %4337 = vpow2.f32 %v2841_v16 }
 0x2f7   : > { %4339 = vpow2.f32 %v2843_v12 }
 0x2f8   : > { %4341 = vpow2.f32 %v2845_v43 }
 0x2ff   : > { %v5654_v3 = vpop.eup %4329  ;;  %v2630_v45 = vpop.xlane.xlu0 %2629 }
 0x300   : > { %v5656_v39 = vpop.eup %4331  ;;  %v2684_v15 = vrot.slane %v2630_v45, %v5622_v20  ;;  %2930 = vperm.xlu1 %4286, %v5654_v3   ;;  %v2692_v25 = vrot.slane %v2630_v45, %v5631_v50  ;;  %v2676_v47 = vrot.slane %v2630_v45, %v4638_v17  ;;  %v2700_v62 = vrot.slane %v2630_v45, %v5643_v63 }
 0x301   : > { %2933 = vperm.xlu0 %4285, %v5656_v39   ;;  %v5665_v22 = vpop.eup %4333  ;;  %v2680_v56 = vrot.slane %v2630_v45, %v4936_v28 }
 0x302   : > { %v2811_v26 = vsub.f32 %v5506_v30, %v2684_v15  ;;  %v2813_v52 = vsub.f32 %v5481_v41, %v2692_v25  ;;  %v2809_v53 = vsub.f32 %v5473_v40, %v2676_v47  ;;  %v5672_v51 = vpop.eup %4335  ;;  %v2815_v16 = vsub.f32 %v5515_v5, %v2700_v62 }
 0x303   : > { %v2810_v1 = vsub.f32 %v5496_v38, %v2680_v56  ;;  %v2688_v41 = vrot.slane %v2630_v45, %v5625_v23  ;;  %v5678_v12 = vpop.eup %4337  ;;  %v2696_v38 = vrot.slane %v2630_v45, %v5638_v37  ;;  %v2704_v56 = vrot.slane %v2630_v45, %v5648_v0 }
 0x304   : > { %v2853_v7 = vmul.f32 1.442695, %v2811_v26  ;;  %2936 = vperm.xlu1 %4286, %v5665_v22   ;;  %v2857_v30 = vmul.f32 1.442695, %v2813_v52  ;;  %v2849_v48 = vmul.f32 1.442695, %v2809_v53  ;;  %v5690_v26 = vpop.eup %4339 }
 0x305   : > { %v2861_v40 = vmul.f32 1.442695, %v2815_v16  ;;  %v2851_v25 = vmul.f32 1.442695, %v2810_v1  ;;  %v2812_v43 = vsub.f32 %v5525_v54, %v2688_v41  ;;  %v5698_v53 = vpop.eup %4341  ;;  %v2816_v1 = vsub.f32 %v5541_v13, %v2704_v56 }
 0x306   : > { %4343 = vpow2.f32 %v2853_v7 }
 0x307   : > { %4345 = vpow2.f32 %v2847_v57  ;;  %v2814_v57 = vsub.f32 %v5511_v10, %v2696_v38  ;;  %v2855_v54 = vmul.f32 1.442695, %v2812_v43 }
 0x308   : > { %2939 = vperm.xlu1 %4286, %v5672_v51   ;;  %4347 = vpow2.f32 %v2857_v30 }
 0x309   : > { %4349 = vpow2.f32 %v2849_v48  ;;  %v2859_v45 = vmul.f32 1.442695, %v2814_v57 }
 0x30a   : > { %4351 = vpow2.f32 %v2861_v40 }
 0x30b   : > { %v5680_v15 = vpop.xlane.xlu1 %2632  ;;  %4353 = vpow2.f32 %v2851_v25 }
 0x30c   : > { %v2708_v34 = vrot.slane %v5680_v15, %v4638_v17  ;;  %v2716_v5 = vrot.slane %v5680_v15, %v5622_v20  ;;  %2942 = vperm.xlu1 %4286, %v5678_v12   ;;  %v2720_v62 = vrot.slane %v5680_v15, %v5625_v23  ;;  %v2712_v10 = vrot.slane %v5680_v15, %v4936_v28 }
 0x30d   : > { %v2724_v13 = vrot.slane %v5680_v15, %v5631_v50  ;;  %v2732_v43 = vrot.slane %v5680_v15, %v5643_v63 }
 0x30e   : > { %v2817_v47 = vsub.f32 %v5508_v18, %v2708_v34  ;;  %v2819_v52 = vsub.f32 %v5517_v33, %v2716_v5  ;;  %v2728_v18 = vrot.slane %v5680_v15, %v5638_v37  ;;  %v2820_v16 = vsub.f32 %v5564_v60, %v2720_v62 }
 0x30f   : > { %v2863_v34 = vmul.f32 1.442695, %v2816_v1  ;;  %v2818_v5 = vsub.f32 %v5550_v59, %v2712_v10  ;;  %v2823_v57 = vsub.f32 %v5543_v27, %v2732_v43 }
 0x310   : > { %v2865_v7 = vmul.f32 1.442695, %v2817_v47  ;;  %2945 = vperm.xlu1 %4286, %v5690_v26   ;;  %v2869_v30 = vmul.f32 1.442695, %v2819_v52  ;;  %v2822_v48 = vsub.f32 %v5527_v58, %v2728_v18  ;;  %v2871_v60 = vmul.f32 1.442695, %v2820_v16 }
 0x311   : > { %v2821_v47 = vsub.f32 %v5513_v6, %v2724_v13  ;;  %v2867_v52 = vmul.f32 1.442695, %v2818_v5 }
 0x312   : > { %4355 = vpow2.f32 %v2865_v7  ;;  %v2875_v38 = vmul.f32 1.442695, %v2822_v48  ;;  %v2736_v48 = vrot.slane %v5680_v15, %v5648_v0 }
 0x313   : > { %v5704_v33 = vpop.eup %4343  ;;  %4357 = vpow2.f32 %v2855_v54  ;;  %v2873_v54 = vmul.f32 1.442695, %v2821_v47 }
 0x314   : > { %2948 = vperm.xlu1 %4286, %v5698_v53   ;;  %2960 = vperm.xlu0 %4285, %v5704_v33   ;;  %v5710_v41 = vpop.eup %4345  ;;  %4359 = vpow2.f32 %v2869_v30  ;;  %v2824_v15 = vsub.f32 %v5579_v14, %v2736_v48 }
 0x315   : > { %v5714_v40 = vpop.eup %4347  ;;  %4361 = vpow2.f32 %v2859_v45 }
 0x316   : > { %v5720_v25 = vpop.eup %4349  ;;  %4363 = vpow2.f32 %v2871_v60  ;;  %v2877_v60 = vmul.f32 1.442695, %v2823_v57  ;;  %v2879_v57 = vmul.f32 1.442695, %v2824_v15 }
 0x317   : > { %v5723_v58 = vpop.eup %4351  ;;  %4365 = vpow2.f32 %v2863_v34 }
 0x318   : > { %2951 = vperm.xlu1 %4286, %v5710_v41   ;;  %2966 = vperm.xlu0 %4285, %v5714_v40   ;;  %v5728_v62 = vpop.eup %4353  ;;  %4367 = vpow2.f32 %v2875_v38 }
 0x319   : > { %4369 = vpow2.f32 %v2867_v52 }
 0x31a   : > { %4371 = vpow2.f32 %v2873_v54 }
 0x31c   : > { %2954 = vperm.xlu1 %4286, %v5720_v25   ;;  %2972 = vperm.xlu0 %4285, %v5723_v58  }
 0x31f   : > { %v5731_v59 = vpop.eup %4355  ;;  %v2636_v7 = vpop.xlane.xlu0 %2635 }
 0x320   : > { %v2740_v56 = vrot.slane %v2636_v7, %v4638_v17  ;;  %2957 = vperm.xlu1 %4286, %v5728_v62   ;;  %v2744_v18 = vrot.slane %v2636_v7, %v4936_v28  ;;  %v2756_v6 = vrot.slane %v2636_v7, %v5631_v50  ;;  %v2764_v16 = vrot.slane %v2636_v7, %v5643_v63  ;;  %v5741_v1 = vpop.eup %4357 }
 0x321   : > { %2978 = vperm.xlu0 %4285, %v5731_v59   ;;  %v5745_v27 = vpop.eup %4359  ;;  %v2760_v14 = vrot.slane %v2636_v7, %v5638_v37 }
 0x322   : > { %v2825_v30 = vsub.f32 %v5552_v35, %v2740_v56  ;;  %v2829_v45 = vsub.f32 %v5562_v42, %v2756_v6  ;;  %v2826_v13 = vsub.f32 %v5577_v31, %v2744_v18  ;;  %v2748_v35 = vrot.slane %v2636_v7, %v5622_v20  ;;  %v5753_v42 = vpop.eup %4361 }
 0x323   : > { %v2831_v34 = vsub.f32 %v5591_v9, %v2764_v16  ;;  %v5756_v38 = vpop.eup %4363  ;;  %v2752_v31 = vrot.slane %v2636_v7, %v5625_v23  ;;  %v2768_v16 = vrot.slane %v2636_v7, %v5648_v0 }
 0x324   : > { %v2881_v10 = vmul.f32 1.442695, %v2825_v30  ;;  %2963 = vperm.xlu1 %4286, %v5741_v1   ;;  %v2889_v5 = vmul.f32 1.442695, %v2829_v45  ;;  %v2883_v43 = vmul.f32 1.442695, %v2826_v13  ;;  %v2827_v47 = vsub.f32 %v5586_v19, %v2748_v35  ;;  %v5762_v52 = vpop.eup %4365 }
 0x325   : > { %2984 = vperm.xlu0 %4285, %v5745_v27   ;;  %v2893_v9 = vmul.f32 1.442695, %v2831_v34  ;;  %v5765_v56 = vpop.eup %4367  ;;  %v2828_v54 = vsub.f32 %v5599_v46, %v2752_v31  ;;  %v2830_v30 = vsub.f32 %v5589_v24, %v2760_v14  ;;  %v2832_v48 = vsub.f32 %v5613_v29, %v2768_v16 }
 0x326   : > { %4373 = vpow2.f32 %v2881_v10  ;;  %v2885_v18 = vmul.f32 1.442695, %v2827_v47  ;;  %v5770_v19 = vpop.eup %4369 }
 0x327   : > { %4375 = vpow2.f32 %v2877_v60  ;;  %v5773_v6 = vpop.eup %4371  ;;  %v2887_v45 = vmul.f32 1.442695, %v2828_v54  ;;  %v2891_v60 = vmul.f32 1.442695, %v2830_v30  ;;  %v2895_v7 = vmul.f32 1.442695, %v2832_v48 }
 0x328   : > { %2969 = vperm.xlu1 %4286, %v5753_v42   ;;  %4377 = vpow2.f32 %v2889_v5 }
 0x329   : > { %2987 = vperm.xlu0 %4285, %v5756_v38   ;;  %4379 = vpow2.f32 %v2883_v43 }
 0x32a   : > { %4381 = vpow2.f32 %v2893_v9 }
 0x32b   : > { %4383 = vpow2.f32 %v2879_v57 }
 0x32c   : > { %2975 = vperm.xlu1 %4286, %v5762_v52   ;;  %4385 = vpow2.f32 %v2885_v18 }
 0x32d   : > { %2993 = vperm.xlu0 %4285, %v5765_v56   ;;  %4387 = vpow2.f32 %v2887_v45 }
 0x32e   : > { %4389 = vpow2.f32 %v2891_v60 }
 0x32f   : > { %4391 = vpow2.f32 %v2895_v7 }
 0x330   : > { %2981 = vperm.xlu1 %4286, %v5770_v19  }
 0x333   : > { %v5777_v10 = vpop.eup %4373 }
 0x334   : > { %2990 = vperm.xlu1 %4286, %v5773_v6   ;;  %3002 = vperm.xlu0 %4285, %v5777_v10   ;;  %v5781_v46 = vpop.eup %4375 }
 0x335   : > { %v5784_v13 = vpop.eup %4377 }
 0x336   : > { %v5788_v24 = vpop.eup %4379 }
 0x337   : > { %v5790_v35 = vpop.eup %4381 }
 0x338   : > { %2996 = vperm.xlu1 %4286, %v5781_v46   ;;  %3014 = vperm.xlu0 %4285, %v5784_v13   ;;  %v5794_v34 = vpop.eup %4383 }
 0x339   : > { %v5796_v29 = vpop.eup %4385 }
 0x33a   : > { %v5800_v5 = vpop.eup %4387 }
 0x33b   : > { %v5803_v15 = vpop.eup %4389 }
 0x33c   : > { %3005 = vperm.xlu1 %4286, %v5788_v24   ;;  %3020 = vperm.xlu0 %4285, %v5790_v35   ;;  %v5806_v43 = vpop.eup %4391 }
 0x340   : > { %3008 = vperm.xlu1 %4286, %v5796_v29   ;;  %2999 = vperm.xlu0 %4285, %v5794_v34  }
 0x344   : > { %3011 = vperm.xlu1 %4286, %v5800_v5  }
 0x348   : > { %3017 = vperm.xlu1 %4286, %v5803_v15  }
 0x34c   : > { %3023 = vperm.xlu1 %4286, %v5806_v43  }
 0x37b   : > { %v2931_v31 = vpop.permute.xlu1 %2930 }
 0x37c   : > { %v2934_v14 = vpop.permute.xlu0 %2933  ;;  %v3028_v16 = vrot.slane %v2931_v31, %v5469_v8 }
 0x37d   : > { %v3032_v18 = vrot.slane %v2934_v14, %v5469_v8 }
 0x37f   : > { %v2937_v47 = vpop.permute.xlu1 %2936  ;;  %v3153_v7 = vsel %vm2585_vm1, %v3032_v18, %v3028_v16 }
 0x380   : > { %v3036_v30 = vrot.slane %v2937_v47, %v5469_v8 }
 0x382   : > { %v3154_v21 = vsel %vm2587_vm2, %v3036_v30, %v3153_v7 }
 0x383   : > { %v2940_v9 = vpop.permute.xlu1 %2939 }
 0x384   : > { %v3040_v45 = vrot.slane %v2940_v9, %v5469_v8 }
 0x386   : > { %v3155_v14 = vsel %vm2589_vm3, %v3040_v45, %v3154_v21 }
 0x387   : > { %v2943_v57 = vpop.permute.xlu1 %2942 }
 0x388   : > { %v3044_v48 = vrot.slane %v2943_v57, %v5469_v8 }
 0x38a   : > { %v3156_v31 = vsel %vm2591_vm4, %v3044_v48, %v3155_v14 }
 0x38b   : > { %v2946_v54 = vpop.permute.xlu1 %2945 }
 0x38c   : > { %v3048_v55 = vrot.slane %v2946_v54, %v5469_v8 }
 0x38e   : > { %v3157_v47 = vsel %vm2593_vm5, %v3048_v55, %v3156_v31 }
 0x38f   : > { %v2949_v60 = vpop.permute.xlu1 %2948  ;;  %v2961_v4 = vpop.permute.xlu0 %2960 }
 0x390   : > { %v3052_v44 = vrot.slane %v2949_v60, %v5469_v8 }
 0x392   : > { %v3158_v11 = vsel %vm2595_vm6, %v3052_v44, %v3157_v47 }
 0x393   : > { %v2952_v2 = vpop.permute.xlu1 %2951  ;;  %v2967_v57 = vpop.permute.xlu0 %2966 }
 0x394   : > { %v3056_v9 = vrot.slane %v2952_v2, %v5469_v8  ;;  %v3068_v2 = vrot.slane %v2961_v4, %v5469_v8  ;;  %v3076_v47 = vrot.slane %v2967_v57, %v5469_v8 }
 0x396   : > { %v3159_v18 = vsel %vm2597_vm7, %v3056_v9, %v3158_v11 }
 0x397   : > { %v2955_v54 = vpop.permute.xlu1 %2954  ;;  %v3185_v16 = vsel %vm2624_vm8, %v3159_v18, 0.0  ;;  %v2973_v30 = vpop.permute.xlu0 %2972 }
 0x398   : > { %3186 = vadd.xlane.f32.xlu0 %v3185_v16  ;;  %v3060_v21 = vrot.slane %v2955_v54, %v5469_v8  ;;  %v3084_v4 = vrot.slane %v2973_v30, %v5469_v8 }
 0x39b   : > { %v2958_v60 = vpop.permute.xlu1 %2957 }
 0x39c   : > { %v3064_v45 = vrot.slane %v2958_v60, %v5469_v8  ;;  %v2979_v48 = vpop.permute.xlu0 %2978 }
 0x39e   : > { %v3160_v55 = vsel %vm2585_vm1, %v3064_v45, %v3060_v21 }
 0x39f   : > { %v2964_v7 = vpop.permute.xlu1 %2963  ;;  %v3161_v11 = vsel %vm2587_vm2, %v3068_v2, %v3160_v55 }
 0x3a0   : > { %v3072_v44 = vrot.slane %v2964_v7, %v5469_v8  ;;  %v2985_v14 = vpop.permute.xlu0 %2984 }
 0x3a2   : > { %v3162_v31 = vsel %vm2589_vm3, %v3072_v44, %v3161_v11 }
 0x3a3   : > { %v2970_v9 = vpop.permute.xlu1 %2969  ;;  %v3163_v16 = vsel %vm2591_vm4, %v3076_v47, %v3162_v31  ;;  %v3092_v31 = vrot.slane %v2979_v48, %v5469_v8 }
 0x3a4   : > { %v3080_v18 = vrot.slane %v2970_v9, %v5469_v8  ;;  %v2988_v54 = vpop.permute.xlu0 %2987 }
 0x3a6   : > { %v3164_v60 = vsel %vm2593_vm5, %v3080_v18, %v3163_v16  ;;  %v3100_v18 = vrot.slane %v2985_v14, %v5469_v8 }
 0x3a7   : > { %v2976_v21 = vpop.permute.xlu1 %2975  ;;  %v3165_v7 = vsel %vm2595_vm6, %v3084_v4, %v3164_v60 }
 0x3a8   : > { %v3088_v45 = vrot.slane %v2976_v21, %v5469_v8  ;;  %v2994_v2 = vpop.permute.xlu0 %2993  ;;  %v3104_v21 = vrot.slane %v2988_v54, %v5469_v8 }
 0x3aa   : > { %v3166_v55 = vsel %vm2597_vm7, %v3088_v45, %v3165_v7 }
 0x3ab   : > { %v2982_v44 = vpop.permute.xlu1 %2981  ;;  %v3188_v57 = vsel %vm2624_vm8, %v3166_v55, 0.0 }
 0x3ac   : > { %v3096_v11 = vrot.slane %v2982_v44, %v5469_v8  ;;  %3189 = vadd.xlane.f32.xlu1 %v3188_v57 }
 0x3ae   : > { %v3167_v30 = vsel %vm2585_vm1, %v3096_v11, %v3092_v31  ;;  %v3112_v11 = vrot.slane %v2994_v2, %v5469_v8 }
 0x3af   : > { %v3003_v47 = vpop.permute.xlu0 %3002  ;;  %v2991_v9 = vpop.permute.xlu1 %2990  ;;  %v3168_v16 = vsel %vm2587_vm2, %v3100_v18, %v3167_v30 }
 0x3b0   : > { %v3108_v45 = vrot.slane %v2991_v9, %v5469_v8  ;;  %v3169_v7 = vsel %vm2589_vm3, %v3104_v21, %v3168_v16  ;;  %v3124_v21 = vrot.slane %v3003_v47, %v5469_v8 }
 0x3b2   : > { %v3170_v48 = vsel %vm2591_vm4, %v3108_v45, %v3169_v7 }
 0x3b3   : > { %v3015_v60 = vpop.permute.xlu0 %3014  ;;  %v2997_v4 = vpop.permute.xlu1 %2996  ;;  %v3171_v54 = vsel %vm2593_vm5, %v3112_v11, %v3170_v48 }
 0x3b4   : > { %v3116_v57 = vrot.slane %v2997_v4, %v5469_v8  ;;  %v3140_v11 = vrot.slane %v3015_v60, %v5469_v8 }
 0x3b6   : > { %v3172_v16 = vsel %vm2595_vm6, %v3116_v57, %v3171_v54 }
 0x3b7   : > { %v3021_v55 = vpop.permute.xlu0 %3020  ;;  %v3006_v44 = vpop.permute.xlu1 %3005 }
 0x3b8   : > { %v3128_v30 = vrot.slane %v3006_v44, %v5469_v8 }
 0x3ba   : > { %v3174_v2 = vsel %vm2585_vm1, %v3128_v30, %v3124_v21 }
 0x3bb   : > { %v3000_v31 = vpop.permute.xlu0 %2999  ;;  %v3009_v14 = vpop.permute.xlu1 %3008 }
 0x3bc   : > { %v3120_v18 = vrot.slane %v3000_v31, %v5469_v8  ;;  %v3132_v9 = vrot.slane %v3009_v14, %v5469_v8 }
 0x3be   : > { %v3173_v45 = vsel %vm2597_vm7, %v3120_v18, %v3172_v16  ;;  %v3175_v44 = vsel %vm2587_vm2, %v3132_v9, %v3174_v2  ;;  %v3148_v18 = vrot.slane %v3021_v55, %v5469_v8 }
 0x3bf   : > { %v3012_v7 = vpop.permute.xlu1 %3011  ;;  %v3191_v4 = vsel %vm2624_vm8, %v3173_v45, 0.0 }
 0x3c0   : > { %v3136_v49 = vrot.slane %v3012_v7, %v5469_v8  ;;  %3192 = vadd.xlane.f32.xlu0 %v3191_v4 }
 0x3c2   : > { %v3176_v48 = vsel %vm2589_vm3, %v3136_v49, %v3175_v44 }
 0x3c3   : > { %v3018_v31 = vpop.permute.xlu1 %3017  ;;  %v3177_v47 = vsel %vm2591_vm4, %v3140_v11, %v3176_v48 }
 0x3c4   : > { %v3144_v57 = vrot.slane %v3018_v31, %v5469_v8 }
 0x3c6   : > { %v3178_v14 = vsel %vm2593_vm5, %v3144_v57, %v3177_v47 }
 0x3c7   : > { %v3024_v54 = vpop.permute.xlu1 %3023  ;;  %v3179_v16 = vsel %vm2595_vm6, %v3148_v18, %v3178_v14 }
 0x3c8   : > { %v3152_v30 = vrot.slane %v3024_v54, %v5469_v8 }
 0x3ca   : > { %v3180_v9 = vsel %vm2597_vm7, %v3152_v30, %v3179_v16 }
 0x3cb   : > { %v3194_v49 = vsel %vm2624_vm8, %v3180_v9, 0.0 }
 0x3cc   : > { %3195 = vadd.xlane.f32.xlu0 %v3194_v49 }
 0x421   : > { %v3187_v60 = vpop.xlane.xlu0 %3186 }
 0x422   : > { %4393 = vrcp.f32 %v3187_v60 }
 0x42f   : > { %v4394_v21 = vpop.eup %4393 }
 0x430   : > { %v3208_v45 = vrot.slane %v4394_v21, %v4638_v17  ;;  %v3212_v7 = vrot.slane %v4394_v21, %v4936_v28  ;;  %v3216_v8 = vrot.slane %v4394_v21, %v5622_v20  ;;  %v3224_v2 = vrot.slane %v4394_v21, %v5631_v50 }
 0x431   : > { %v3220_v48 = vrot.slane %v4394_v21, %v5625_v23  ;;  %v3232_v57 = vrot.slane %v4394_v21, %v5643_v63  ;;  %v3228_v47 = vrot.slane %v4394_v21, %v5638_v37  ;;  %v3236_v18 = vrot.slane %v4394_v21, %v5648_v0 }
 0x432   : > { %v3365_v4 = vmul.f32 %v5654_v3, %v3208_v45  ;;  %v3366_v55 = vmul.f32 %v5656_v39, %v3212_v7  ;;  %v3367_v11 = vmul.f32 %v5665_v22, %v3216_v8  ;;  %v3369_v31 = vmul.f32 %v5678_v12, %v3224_v2 }
 0x433   : > { %v3368_v3 = vmul.f32 %v5672_v51, %v3220_v48  ;;  %v3371_v39 = vmul.f32 %v5698_v53, %v3232_v57  ;;  %v3370_v14 = vmul.f32 %v5690_v26, %v3228_v47  ;;  %v3372_v22 = vmul.f32 %v5710_v41, %v3236_v18 }
 0x434   : > { %3399 = vperm.xlu1 %4286, %v3365_v4   ;;  %3404 = vperm.xlu0 %4285, %v3366_v55  }
 0x435   : > { %v3190_v44 = vpop.xlane.xlu1 %3189 }
 0x436   : > { %4395 = vrcp.f32 %v3190_v44 }
 0x438   : > { %3409 = vperm.xlu1 %4286, %v3367_v11   ;;  %3419 = vperm.xlu0 %4285, %v3369_v31  }
 0x43c   : > { %3414 = vperm.xlu1 %4286, %v3368_v3   ;;  %3429 = vperm.xlu0 %4285, %v3371_v39  }
 0x440   : > { %3424 = vperm.xlu1 %4286, %v3370_v14  }
 0x443   : > { %v4396_v12 = vpop.eup %4395 }
 0x444   : > { %3434 = vperm.xlu1 %4286, %v3372_v22   ;;  %v3244_v54 = vrot.slane %v4396_v12, %v4936_v28  ;;  %v3240_v30 = vrot.slane %v4396_v12, %v4638_v17  ;;  %v3252_v16 = vrot.slane %v4396_v12, %v5625_v23  ;;  %v3248_v9 = vrot.slane %v4396_v12, %v5622_v20 }
 0x445   : > { %v3260_v49 = vrot.slane %v4396_v12, %v5638_v37  ;;  %v3256_v21 = vrot.slane %v4396_v12, %v5631_v50  ;;  %v3268_v45 = vrot.slane %v4396_v12, %v5648_v0  ;;  %v3264_v7 = vrot.slane %v4396_v12, %v5643_v63 }
 0x446   : > { %v3374_v51 = vmul.f32 %v5728_v62, %v3244_v54  ;;  %v3373_v53 = vmul.f32 %v5720_v25, %v3240_v30  ;;  %v3376_v41 = vmul.f32 %v5741_v1, %v3252_v16  ;;  %v3375_v60 = vmul.f32 %v5704_v33, %v3248_v9  ;;  %v6372_v54 = vld [vmem:[#allocation36_spill] sm:$0xff]  ;;  %v6375_v9 = vld [vmem:[#allocation83_spill] sm:$0xff] }
 0x447   : > { %v3378_v25 = vmul.f32 %v5753_v42, %v3260_v49  ;;  %v3377_v62 = vmul.f32 %v5714_v40, %v3256_v21  ;;  %v3380_v4 = vmul.f32 %v5762_v52, %v3268_v45  ;;  %v3379_v1 = vmul.f32 %v5723_v58, %v3264_v7  ;;  %v6376_v49 = vld [vmem:[#allocation88_spill] sm:$0xff]  ;;  %v6378_v21 = vld [vmem:[#allocation46_spill] sm:$0xff] }
 0x448   : > { %3444 = vperm.xlu1 %4286, %v3374_v51   ;;  %3439 = vperm.xlu0 %4285, %v3373_v53   ;;  %v6374_v53 = vld [vmem:[#allocation84_spill] sm:$0xff] }
 0x449   : > { %v3193_v26 = vpop.xlane.xlu0 %3192  ;;  %v1216_v16 = vrot.slane %v6374_v53, %v4936_v28  ;;  %v6380_v7 = vld [vmem:[#allocation76_spill] sm:$0xff] }
 0x44a   : > { %4397 = vrcp.f32 %v3193_v26  ;;  %v1208_v26 = vrot.slane %v6375_v9, %v4936_v28  ;;  %v6406_v9 = vld [vmem:[#allocation71_spill] sm:$0xff] }
 0x44c   : > { %3454 = vperm.xlu1 %4286, %v3376_v41   ;;  %3449 = vperm.xlu0 %4285, %v3375_v60   ;;  %v1224_v41 = vrot.slane %v6376_v49, %v4936_v28  ;;  %v6377_v60 = vld [vmem:[#allocation31_spill] sm:$0xff] }
 0x450   : > { %3464 = vperm.xlu1 %4286, %v3378_v25   ;;  %3459 = vperm.xlu0 %4285, %v3377_v62   ;;  %v6379_v62 = vld [vmem:[#allocation77_spill] sm:$0xff] }
 0x451   : > { %v1232_v45 = vrot.slane %v6379_v62, %v4936_v28 }
 0x454   : > { %3474 = vperm.xlu1 %4286, %v3380_v4   ;;  %3469 = vperm.xlu0 %4285, %v3379_v1   ;;  %v1240_v4 = vrot.slane %v6380_v7, %v4936_v28 }
 0x455   : > { %v3196_v33 = vpop.xlane.xlu0 %3195 }
 0x456   : > { %4399 = vrcp.f32 %v3196_v33  ;;  %v6381_v33 = vld [vmem:[#allocation4_spill] sm:$0xff] }
 0x457   : > { %v4398_v55 = vpop.eup %4397 }
 0x458   : > { %v3276_v8 = vrot.slane %v4398_v55, %v4936_v28  ;;  %v3272_v42 = vrot.slane %v4398_v55, %v4638_v17  ;;  %v3280_v44 = vrot.slane %v4398_v55, %v5622_v20  ;;  %v3284_v48 = vrot.slane %v4398_v55, %v5625_v23 }
 0x459   : > { %v3288_v11 = vrot.slane %v4398_v55, %v5631_v50  ;;  %v3292_v31 = vrot.slane %v4398_v55, %v5638_v37  ;;  %v3296_v57 = vrot.slane %v4398_v55, %v5643_v63 }
 0x45a   : > { %v3382_v40 = vmul.f32 %v5770_v19, %v3276_v8  ;;  %v3381_v2 = vmul.f32 %v5731_v59, %v3272_v42  ;;  %v3383_v58 = vmul.f32 %v5745_v27, %v3280_v44  ;;  %v3384_v52 = vmul.f32 %v5756_v38, %v3284_v48  ;;  %v6383_v42 = vld [vmem:[#allocation79_spill] sm:$0xff] }
 0x45b   : > { %v3385_v19 = vmul.f32 %v5773_v6, %v3288_v11  ;;  %v3386_v59 = vmul.f32 %v5765_v56, %v3292_v31  ;;  %v3387_v27 = vmul.f32 %v5781_v46, %v3296_v57  ;;  %v6385_v48 = vld [vmem:[#allocation43_spill] sm:$0xff]  ;;  %v6387_v31 = vld [vmem:[#allocation54_spill] sm:$0xff] }
 0x45c   : > { %3484 = vperm.xlu1 %4286, %v3382_v40   ;;  %3479 = vperm.xlu0 %4285, %v3381_v2   ;;  %v1248_v40 = vrot.slane %v6383_v42, %v4936_v28  ;;  %v6384_v2 = vld [vmem:[#allocation52_spill] sm:$0xff]  ;;  %v6414_v42 = vld [vmem:[#allocation85_spill] sm:$0xff] }
 0x45d   : > { %v1494_v44 = vadd.f32 %v1216_v16, %v6384_v2  ;;  %v6405_v16 = vld [vmem:[#allocation6_spill] sm:$0xff] }
 0x460   : > { %3489 = vperm.xlu1 %4286, %v3383_v58   ;;  %3494 = vperm.xlu0 %4285, %v3384_v52   ;;  %v6386_v52 = vld [vmem:[#allocation49_spill] sm:$0xff] }
 0x461   : > { %v1492_v11 = vadd.f32 %v1208_v26, %v6386_v52  ;;  %v6407_v26 = vld [vmem:[#allocation28_spill] sm:$0xff] }
 0x462   : > { %v6004_v49 = vadd.f32 %v6407_v26, %v6406_v9 }
 0x463   : > { %v4400_v3 = vpop.eup %4399 }
 0x464   : > { %3499 = vperm.xlu1 %4286, %v3385_v19   ;;  %3504 = vperm.xlu0 %4285, %v3386_v59   ;;  %v3304_v39 = vrot.slane %v4400_v3, %v4638_v17  ;;  %v3308_v47 = vrot.slane %v4400_v3, %v4936_v28  ;;  %v3312_v14 = vrot.slane %v4400_v3, %v5622_v20  ;;  %v6388_v59 = vld [vmem:[#allocation3_spill] sm:$0xff] }
 0x465   : > { %v3316_v18 = vrot.slane %v4400_v3, %v5625_v23  ;;  %v3320_v22 = vrot.slane %v4400_v3, %v5631_v50  ;;  %v3324_v46 = vrot.slane %v4400_v3, %v5638_v37  ;;  %v3328_v20 = vrot.slane %v4400_v3, %v5643_v63  ;;  %v6370_v63 = vld [vmem:[#allocation68_spill] sm:$0xff] }
 0x466   : > { %v3389_v38 = vmul.f32 %v5777_v10, %v3304_v39  ;;  %v3390_v6 = vmul.f32 %v5788_v24, %v3308_v47  ;;  %v3391_v56 = vmul.f32 %v5796_v29, %v3312_v14  ;;  %v3332_v23 = vrot.slane %v4400_v3, %v5648_v0  ;;  %v6389_v3 = vld [vmem:[#allocation15_spill] sm:$0xff] }
 0x467   : > { %v3392_v17 = vmul.f32 %v5800_v5, %v3316_v18  ;;  %v3393_v10 = vmul.f32 %v5784_v13, %v3320_v22  ;;  %v3394_v24 = vmul.f32 %v5803_v15, %v3324_v46  ;;  %v3395_v29 = vmul.f32 %v5790_v35, %v3328_v20  ;;  %v6371_v35 = vld [vmem:[#allocation75_spill] sm:$0xff]  ;;  %v6393_v18 = vld [vmem:[#allocation93_spill] sm:$0xff]  ;;  %v6395_v46 = vld [vmem:[#allocation90_spill] sm:$0xff] }
 0x468   : > { %3509 = vperm.xlu1 %4286, %v3387_v27   ;;  %3519 = vperm.xlu0 %4285, %v3389_v38   ;;  %v3300_v50 = vrot.slane %v4398_v55, %v5648_v0  ;;  %v3396_v5 = vmul.f32 %v5806_v43, %v3332_v23  ;;  %v1176_v37 = vrot.slane %v4966_v36, %v4936_v28  ;;  %v6373_v43 = vld [vmem:[#allocation78_spill] sm:$0xff]  ;;  %v6390_v27 = vld [vmem:[#allocation56_spill] sm:$0xff]  ;;  %v6391_v47 = vld [vmem:[#allocation59_spill] sm:$0xff] }
 0x469   : > { %v1168_v15 = vrot.slane %v6370_v63, %v4936_v28  ;;  %v1200_v12 = vrot.slane %v6371_v35, %v4936_v28  ;;  %v1304_v0 = vrot.slane %v5172_v61, %v4936_v28  ;;  %v1184_v51 = vrot.slane %v6373_v43, %v4936_v28  ;;  %v6397_v23 = vld [vmem:[#allocation61_spill] sm:$0xff]  ;;  %v6403_v43 = vld [vmem:[#allocation34_spill] sm:$0xff] }
 0x46a   : > { %v3388_v13 = vmul.f32 %v5794_v34, %v3300_v50  ;;  %v1484_v30 = vadd.f32 %v1176_v37, %v6372_v54  ;;  %v751_v34 = vpop.f32.mrf.mxu0  ;;  %v1192_v36 = vrot.slane %v5143_v32, %v4936_v28  ;;  %v6382_v32 = vld [vmem:[#allocation41_spill] sm:$0xff]  ;;  %v1496_v19 = vadd.f32 %v1224_v41, %v6387_v31  ;;  %v6402_v54 = vld [vmem:[#allocation23_spill] sm:$0xff]  ;;  %v6408_v41 = vld [vmem:[#allocation94_spill] sm:$0xff] }
 0x46b   : > { %v1482_v61 = vadd.f32 %v1168_v15, %v6377_v60  ;;  %v1490_v25 = vadd.f32 %v1200_v12, %v6378_v21  ;;  %v1516_v1 = vadd.f32 %v1304_v0, %v751_v34  ;;  %v1486_v8 = vadd.f32 %v1184_v51, %v6382_v32  ;;  %v6399_v37 = vld [vmem:[#allocation97_spill] sm:$0xff]  ;;  %v6400_v15 = vld [vmem:[#allocation27_spill] sm:$0xff]  ;;  %v6413_v32 = vld [vmem:[#allocation12_spill] sm:$0xff] }
 0x46c   : > { %3524 = vperm.xlu1 %4286, %v3390_v6   ;;  %3529 = vperm.xlu0 %4285, %v3391_v56   ;;  %v2136_v55 = vadd.f32 %v6381_v33, %v1484_v30  ;;  %v1488_v58 = vadd.f32 %v1192_v36, %v6385_v48  ;;  %v1498_v38 = vadd.f32 %v1232_v45, %v6390_v27  ;;  %v6392_v6 = vld [vmem:[#allocation62_spill] sm:$0xff]  ;;  %v6401_v12 = vld [vmem:[#allocation19_spill] sm:$0xff]  ;;  %v6404_v34 = vld [vmem:[#allocation5_spill] sm:$0xff] }
 0x46d   : > { %v2135_v57 = vadd.f32 %v6388_v59, %v1482_v61  ;;  %v2139_v39 = vadd.f32 %v6389_v3, %v1490_v25  ;;  %v1500_v14 = vadd.f32 %v1240_v4, %v6391_v47  ;;  %v1320_v56 = vrot.slane %v6392_v6, %v4936_v28  ;;  %v6409_v61 = vld [vmem:[#allocation35_spill] sm:$0xff]  ;;  %v6410_v25 = vld [vmem:[#allocation30_spill] sm:$0xff]  ;;  %v6412_v4 = vld [vmem:[#allocation40_spill] sm:$0xff] }
 0x46e   : > { %v1312_v22 = vrot.slane %v6393_v18, %v4936_v28  ;;  %v1328_v20 = vrot.slane %v6395_v46, %v4936_v28  ;;  %v1502_v50 = vadd.f32 %v1248_v40, %v6397_v23  ;;  %v1344_v63 = vrot.slane %v6399_v37, %v4936_v28  ;;  %v6411_v45 = vld [vmem:[#allocation42_spill] sm:$0xff]  ;;  %v6415_v40 = vld [vmem:[#allocation20_spill] sm:$0xff]  ;;  %v6420_v27 = vld [vmem:[#allocation87_spill] sm:$0xff] }
 0x46f   : > { %v2141_v35 = vadd.f32 %v6400_v15, %v1494_v44  ;;  %v2138_v0 = vadd.f32 %v6401_v12, %v1488_v58  ;;  %v5991_v30 = vadd.f32 %v6402_v54, %v1492_v11  ;;  %v5994_v51 = vadd.f32 %v6403_v43, %v1496_v19  ;;  %v6416_v44 = vld [vmem:[#allocation51_spill] sm:$0xff]  ;;  %v6417_v58 = vld [vmem:[#allocation45_spill] sm:$0xff]  ;;  %v6418_v19 = vld [vmem:[#allocation86_spill] sm:$0xff] }
 0x470   : > { %3534 = vperm.xlu1 %4286, %v3392_v17   ;;  %3539 = vperm.xlu0 %4285, %v3393_v10   ;;  %v6394_v17 = vld [vmem:[#allocation95_spill] sm:$0xff]  ;;  %v5997_v53 = vadd.f32 %v6404_v34, %v1498_v38  ;;  %v6000_v36 = vadd.f32 %v6405_v16, %v1500_v14  ;;  %v1376_v60 = vrot.slane %v6408_v41, %v4936_v28  ;;  %v6419_v59 = vld [vmem:[#allocation16_spill] sm:$0xff]  ;;  %v6422_v14 = vld [vmem:[#allocation73_spill] sm:$0xff] }
 0x471   : > { %v1336_v10 = vrot.slane %v6394_v17, %v4936_v28  ;;  %v1520_v21 = vadd.f32 %v1320_v56, %v6409_v61  ;;  %v1518_v62 = vadd.f32 %v1312_v22, %v6410_v25  ;;  %v1522_v33 = vadd.f32 %v1328_v20, %v6412_v4  ;;  %v6421_v38 = vld [vmem:[#allocation24_spill] sm:$0xff]  ;;  %v6423_v6 = vld [vmem:[#allocation37_spill] sm:$0xff]  ;;  %v6424_v18 = vld [vmem:[#allocation74_spill] sm:$0xff] }
 0x472   : > { %v6017_v2 = vadd.f32 %v6415_v40, %v6414_v42  ;;  %v1526_v52 = vadd.f32 %v1344_v63, %v6417_v58  ;;  %v6023_v3 = vadd.f32 %v6419_v59, %v6418_v19  ;;  %v6027_v47 = vadd.f32 %v6421_v38, %v6420_v27  ;;  %v6425_v22 = vld [vmem:[#allocation7_spill] sm:$0xff]  ;;  %v6426_v20 = vld [vmem:[#allocation8_spill] sm:$0xff]  ;;  %v6429_v37 = vld [vmem:[#allocation13_spill] sm:$0xff] }
 0x473   : > { %v1524_v7 = vadd.f32 %v1336_v10, %v6411_v45  ;;  %v6031_v56 = vadd.f32 %v6423_v6, %v6422_v14  ;;  %v6035_v17 = vadd.f32 %v6425_v22, %v6424_v18  ;;  %v6427_v23 = vld [vmem:[#allocation55_spill] sm:$0xff]  ;;  %v6045_v63 = vadd.f32 %v6429_v37, %v1518_v62  ;;  %v6430_v15 = vld [vmem:[#allocation25_spill] sm:$0xff]  ;;  %v6439_v58 = vld [vmem:[#allocation96_spill] sm:$0xff] }
 0x474   : > { %3544 = vperm.xlu1 %4286, %v3394_v24   ;;  %3549 = vperm.xlu0 %4285, %v3395_v29   ;;  %v6396_v24 = vld [vmem:[#allocation11_spill] sm:$0xff]  ;;  %v6431_v54 = vld [vmem:[#allocation17_spill] sm:$0xff]  ;;  %v6441_v19 = vld [vmem:[#allocation44_spill] sm:$0xff] }
 0x475   : > { %v2137_v29 = vadd.f32 %v6396_v24, %v1486_v8  ;;  %v6013_v8 = vadd.f32 %v6413_v32, %v1502_v50  ;;  %v6038_v24 = vadd.f32 %v6426_v20, %v1516_v1  ;;  %v1534_v50 = vadd.f32 %v1376_v60, %v6427_v23  ;;  %v6433_v1 = vld [vmem:[#allocation29_spill] sm:$0xff]  ;;  %v6434_v60 = vld [vmem:[#allocation92_spill] sm:$0xff]  ;;  %v6436_v62 = vld [vmem:[#allocation99_spill] sm:$0xff] }
 0x476   : > { %v6048_v12 = vadd.f32 %v6430_v15, %v1524_v7  ;;  %v6051_v43 = vadd.f32 %v6431_v54, %v1522_v33  ;;  %v6057_v9 = vadd.f32 %v6433_v1, %v1526_v52  ;;  %v1368_v61 = vrot.slane %v6434_v60, %v4936_v28  ;;  %v6437_v7 = vld [vmem:[#allocation98_spill] sm:$0xff] }
 0x477   : > { %v1384_v45 = vrot.slane %v6436_v62, %v4936_v28  ;;  %v1408_v4 = vrot.slane %v6437_v7, %v4936_v28  ;;  %v1400_v52 = vrot.slane %v6439_v58, %v4936_v28  ;;  %v1416_v59 = vrot.slane %v6441_v19, %v4936_v28  ;;  %v6444_v20 = vld [vmem:[#allocation58_spill] sm:$0xff] }
 0x478   : > { %3554 = vperm.xlu1 %4286, %v3396_v5   ;;  %3514 = vperm.xlu0 %4285, %v3388_v13   ;;  %v6398_v5 = vld [vmem:[#allocation91_spill] sm:$0xff] }
 0x479   : > { %v1360_v13 = vrot.slane %v6398_v5, %v4936_v28  ;;  %v6428_v5 = vld [vmem:[#allocation21_spill] sm:$0xff]  ;;  %v1536_v23 = vadd.f32 %v1384_v45, %v6444_v20  ;;  %v6448_v45 = vld [vmem:[#allocation10_spill] sm:$0xff] }
 0x47b   : > { %v1530_v48 = vadd.f32 %v1360_v13, %v6416_v44  ;;  %v6042_v13 = vadd.f32 %v6428_v5, %v1520_v21  ;;  %v6435_v21 = vld [vmem:[#allocation89_spill] sm:$0xff]  ;;  %v6438_v44 = vld [vmem:[#allocation14_spill] sm:$0xff] }
 0x47c   : > { %v1392_v25 = vrot.slane %v6435_v21, %v4936_v28 }
 0x4af   : > { %v3405_v11 = vpop.permute.xlu0 %3404  ;;  %v3400_v31 = vpop.permute.xlu1 %3399 }
 0x4b0   : > { %v3558_v10 = vmul.f32 %v3405_v11, %v2136_v55  ;;  %v3557_v46 = vmul.f32 %v3400_v31, %v2135_v57  ;;  %v6432_v57 = vld [vmem:[#allocation9_spill] sm:$0xff]  ;;  %v6440_v11 = vld [vmem:[#allocation50_spill] sm:$0xff] }
 0x4b1   : > { %v6054_v16 = vadd.f32 %v6432_v57, %v1530_v48  ;;  %v6068_v48 = vadd.f32 %v6438_v44, %v1534_v50  ;;  %v1352_v31 = vrot.slane %v6440_v11, %v4936_v28  ;;  %v6445_v50 = vld [vmem:[#allocation65_spill] sm:$0xff]  ;;  %v6446_v57 = vld [vmem:[#allocation63_spill] sm:$0xff] }
 0x4b2   : > { %v3595_v34 = vrot.slane %v3558_v10, 4  ;;  %v3589_v55 = vrot.slane %v3557_v46, 4  ;;  %v1542_v5 = vadd.f32 %v1408_v4, %v6445_v50  ;;  %v1540_v1 = vadd.f32 %v1400_v52, %v6446_v57  ;;  %v6449_v4 = vld [vmem:[#allocation67_spill] sm:$0xff]  ;;  %v6452_v57 = vld [vmem:[#allocation32_spill] sm:$0xff] }
 0x4b3   : > { %v3420_v26 = vpop.permute.xlu0 %3419  ;;  %v3410_v41 = vpop.permute.xlu1 %3409 }
 0x4b4   : > { %v3596_v33 = vadd.f32 %v3595_v34, %v3558_v10  ;;  %v3590_v32 = vadd.f32 %v3589_v55, %v3557_v46  ;;  %v3561_v42 = vmul.f32 %v3420_v26, %v2139_v39  ;;  %v3559_v40 = vmul.f32 %v3410_v41, %v2137_v29  ;;  %v6442_v39 = vld [vmem:[#allocation53_spill] sm:$0xff]  ;;  %v6443_v10 = vld [vmem:[#allocation60_spill] sm:$0xff] }
 0x4b5   : > { %v1532_v29 = vadd.f32 %v1368_v61, %v6442_v39  ;;  %v1538_v46 = vadd.f32 %v1392_v25, %v6443_v10  ;;  %v6447_v26 = vld [vmem:[#allocation48_spill] sm:$0xff] }
 0x4b6   : > { %v3597_v27 = vrot.slane %v3596_v33, 2  ;;  %v3591_v38 = vrot.slane %v3590_v32, 2  ;;  %v3613_v14 = vrot.slane %v3561_v42, 4  ;;  %v3601_v6 = vrot.slane %v3559_v40, 4 }
 0x4b7   : > { %v3430_v18 = vpop.permute.xlu0 %3429  ;;  %v3415_v22 = vpop.permute.xlu1 %3414  ;;  %v1528_v41 = vadd.f32 %v1352_v31, %v6447_v26  ;;  %v6083_v58 = vadd.f32 %v6448_v45, %v1532_v29  ;;  %v6450_v31 = vld [vmem:[#allocation18_spill] sm:$0xff]  ;;  %v6098_v26 = vadd.f32 %v6452_v57, %v1542_v5 }
 0x4b8   : > { %v3598_v37 = vadd.f32 %v3597_v27, %v3596_v33  ;;  %v3592_v15 = vadd.f32 %v3591_v38, %v3590_v32  ;;  %v3614_v54 = vadd.f32 %v3613_v14, %v3561_v42  ;;  %v3602_v34 = vadd.f32 %v3601_v6, %v3559_v40  ;;  %v6451_v29 = vld [vmem:[#allocation22_spill] sm:$0xff] }
 0x4b9   : > { %v3563_v55 = vmul.f32 %v3430_v18, %v2141_v35  ;;  %v3560_v28 = vmul.f32 %v3415_v22, %v2138_v0  ;;  %v6086_v33 = vadd.f32 %v1416_v59, %v6449_v4  ;;  %v6090_v19 = vadd.f32 %v6450_v31, %v1538_v46 }
 0x4ba   : > { %v3599_v60 = vrot.slane %v3598_v37, 1  ;;  %v3593_v21 = vrot.slane %v3592_v15, 1  ;;  %v3615_v62 = vrot.slane %v3614_v54, 2  ;;  %v3603_v61 = vrot.slane %v3602_v34, 2 }
 0x4bb   : > { %v3625_v7 = vrot.slane %v3563_v55, 4  ;;  %v3607_v25 = vrot.slane %v3560_v28, 4  ;;  %v3425_v44 = vpop.permute.xlu1 %3424  ;;  %v6093_v10 = vadd.f32 %v6451_v29, %v1536_v23 }
 0x4bc   : > { %v3600_v32 = vadd.f32 %v3599_v60, %v3598_v37  ;;  %v3594_v35 = vadd.f32 %v3593_v21, %v3592_v15  ;;  %v3616_v0 = vadd.f32 %v3615_v62, %v3614_v54  ;;  %v3604_v42 = vadd.f32 %v3603_v61, %v3602_v34  ;;  %v6453_v60 = vld [vmem:[#allocation26_spill] sm:$0xff] }
 0x4bd   : > { %v3626_v40 = vadd.f32 %v3625_v7, %v3563_v55  ;;  %v3608_v52 = vadd.f32 %v3607_v25, %v3560_v28  ;;  %v3562_v11 = vmul.f32 %v3425_v44, %v5991_v30  ;;  %v6101_v21 = vadd.f32 %v6453_v60, %v1540_v1 }
 0x4be   : > { %v4212_v27 = vpack.c.bf16 %v3600_v32, %v3600_v32  ;;  %v4211_v38 = vpack.c.bf16 %v3594_v35, %v3594_v35  ;;  %v3617_v14 = vrot.slane %v3616_v0, 1  ;;  %v3605_v6 = vrot.slane %v3604_v42, 1 }
 0x4bf   : > { %v3627_v18 = vrot.slane %v3626_v40, 2  ;;  %v3609_v22 = vrot.slane %v3608_v52, 2  ;;  %v3619_v39 = vrot.slane %v3562_v11, 4  ;;  %v3435_v59 = vpop.permute.xlu1 %3434 }
 0x4c0   : > { %v3910_v20 = vunpack.c.l.b16 %v4212_v27  ;;  %v3909_v50 = vunpack.c.l.b16 %v4211_v38  ;;  %v3618_v37 = vadd.f32 %v3617_v14, %v3616_v0  ;;  %v3606_v15 = vadd.f32 %v3605_v6, %v3604_v42 }
 0x4c1   : > { %v3628_v54 = vadd.f32 %v3627_v18, %v3626_v40  ;;  %v3610_v30 = vadd.f32 %v3609_v22, %v3608_v52  ;;  %v3620_v34 = vadd.f32 %v3619_v39, %v3562_v11  ;;  %v3564_v46 = vmul.f32 %v3435_v59, %v5994_v51  ;;  %v6454_v11 = vld [vmem:[#allocation38_spill] sm:$0xff] }
 0x4c2   : > { %v3941_v55 = vsel %vm2585_vm1, %v3910_v20, %v3909_v50  ;;  %v4213_v28 = vpack.c.bf16 %v3606_v15, %v3606_v15  ;;  %v4215_v45 = vpack.c.bf16 %v3618_v37, %v3618_v37  ;;  %v6107_v31 = vadd.f32 %v6454_v11, %v1528_v41 }
 0x4c3   : > { %v3629_v23 = vrot.slane %v3628_v54, 1  ;;  %v3611_v62 = vrot.slane %v3610_v30, 1  ;;  %v3621_v61 = vrot.slane %v3620_v34, 2  ;;  %v3631_v7 = vrot.slane %v3564_v46, 4  ;;  %v3440_v25 = vpop.permute.xlu0 %3439  ;;  %v3445_v44 = vpop.permute.xlu1 %3444 }
 0x4c4   : > { %v3911_v4 = vunpack.c.l.b16 %v4213_v28  ;;  %v3565_v32 = vmul.f32 %v3440_v25, %v5997_v53  ;;  %v3566_v51 = vmul.f32 %v3445_v44, %v6000_v36  ;;  %v3913_v29 = vunpack.c.l.b16 %v4215_v45 }
 0x4c5   : > { %v3630_v35 = vadd.f32 %v3629_v23, %v3628_v54  ;;  %v3612_v0 = vadd.f32 %v3611_v62, %v3610_v30  ;;  %v3622_v42 = vadd.f32 %v3621_v61, %v3620_v34  ;;  %v3632_v5 = vadd.f32 %v3631_v7, %v3564_v46 }
 0x4c6   : > { %v3942_v40 = vsel %vm2587_vm2, %v3911_v4, %v3941_v55  ;;  %v3637_v1 = vrot.slane %v3565_v32, 4  ;;  %v3643_v52 = vrot.slane %v3566_v51, 4 }
 0x4c7   : > { %v4217_v27 = vpack.c.bf16 %v3630_v35, %v3630_v35  ;;  %v4214_v38 = vpack.c.bf16 %v3612_v0, %v3612_v0  ;;  %v3623_v14 = vrot.slane %v3622_v42, 1  ;;  %v3633_v6 = vrot.slane %v3632_v5, 2  ;;  %v3450_v18 = vpop.permute.xlu0 %3449  ;;  %v3455_v22 = vpop.permute.xlu1 %3454 }
 0x4c8   : > { %v3638_v53 = vadd.f32 %v3637_v1, %v3565_v32  ;;  %v3644_v39 = vadd.f32 %v3643_v52, %v3566_v51  ;;  %v3567_v36 = vmul.f32 %v3450_v18, %v6013_v8  ;;  %v3568_v59 = vmul.f32 %v3455_v22, %v6017_v2 }
 0x4c9   : > { %v3912_v20 = vunpack.c.l.b16 %v4214_v38  ;;  %v3624_v50 = vadd.f32 %v3623_v14, %v3622_v42  ;;  %v3634_v37 = vadd.f32 %v3633_v6, %v3632_v5  ;;  %v3915_v34 = vunpack.c.l.b16 %v4217_v27 }
 0x4ca   : > { %v3639_v15 = vrot.slane %v3638_v53, 2  ;;  %v3645_v54 = vrot.slane %v3644_v39, 2  ;;  %v3649_v41 = vrot.slane %v3567_v36, 4  ;;  %v3655_v30 = vrot.slane %v3568_v59, 4 }
 0x4cb   : > { %v3943_v46 = vsel %vm2589_vm3, %v3912_v20, %v3942_v40  ;;  %v4216_v55 = vpack.c.bf16 %v3624_v50, %v3624_v50  ;;  %v3635_v28 = vrot.slane %v3634_v37, 1  ;;  %v3460_v57 = vpop.permute.xlu0 %3459  ;;  %v3465_v60 = vpop.permute.xlu1 %3464 }
 0x4cc   : > { %v3944_v23 = vsel %vm2591_vm4, %v3913_v29, %v3943_v46  ;;  %v3640_v8 = vadd.f32 %v3639_v15, %v3638_v53  ;;  %v3646_v62 = vadd.f32 %v3645_v54, %v3644_v39  ;;  %v3650_v2 = vadd.f32 %v3649_v41, %v3567_v36 }
 0x4cd   : > { %v3914_v61 = vunpack.c.l.b16 %v4216_v55  ;;  %v3636_v7 = vadd.f32 %v3635_v28, %v3634_v37  ;;  %v3656_v25 = vadd.f32 %v3655_v30, %v3568_v59  ;;  %v3569_v44 = vmul.f32 %v3460_v57, %v6023_v3  ;;  %v6455_v57 = vld [vmem:[#allocation39_spill] sm:$0xff] }
 0x4ce   : > { %v3641_v45 = vrot.slane %v3640_v8, 1  ;;  %v3647_v4 = vrot.slane %v3646_v62, 1  ;;  %v3651_v32 = vrot.slane %v3650_v2, 2  ;;  %v3570_v51 = vmul.f32 %v3465_v60, %v6027_v47 }
 0x4cf   : > { %v3945_v35 = vsel %vm2593_vm5, %v3914_v61, %v3944_v23  ;;  %v4218_v0 = vpack.c.bf16 %v3636_v7, %v3636_v7  ;;  %v3657_v42 = vrot.slane %v3656_v25, 2  ;;  %v3661_v5 = vrot.slane %v3569_v44, 4  ;;  %v3470_v40 = vpop.permute.xlu0 %3469  ;;  %v3475_v20 = vpop.permute.xlu1 %3474 }
 0x4d0   : > { %v3946_v1 = vsel %vm2595_vm6, %v3915_v34, %v3945_v35  ;;  %v3642_v52 = vadd.f32 %v3641_v45, %v3640_v8  ;;  %v3648_v11 = vadd.f32 %v3647_v4, %v3646_v62  ;;  %v3652_v27 = vadd.f32 %v3651_v32, %v3650_v2 }
 0x4d1   : > { %v3916_v38 = vunpack.c.l.b16 %v4218_v0  ;;  %v3658_v14 = vadd.f32 %v3657_v42, %v3656_v25  ;;  %v3662_v3 = vadd.f32 %v3661_v5, %v3569_v44  ;;  %v3667_v6 = vrot.slane %v3570_v51, 4 }
 0x4d2   : > { %v4219_v18 = vpack.c.bf16 %v3642_v52, %v3642_v52  ;;  %v4220_v22 = vpack.c.bf16 %v3648_v11, %v3648_v11  ;;  %v3653_v53 = vrot.slane %v3652_v27, 1  ;;  %v3571_v47 = vmul.f32 %v3470_v40, %v6004_v49 }
 0x4d3   : > { %v3947_v39 = vsel %vm2597_vm7, %v3916_v38, %v3946_v1  ;;  %v3659_v36 = vrot.slane %v3658_v14, 1  ;;  %v3663_v59 = vrot.slane %v3662_v3, 2  ;;  %v3668_v29 = vadd.f32 %v3667_v6, %v3570_v51 }
 0x4d4   : > { %v3969_v50 = vpack.c.b16 %v3947_v39, %v3947_v39  ;;  %v3917_v37 = vunpack.c.l.b16 %v4219_v18  ;;  %v3918_v15 = vunpack.c.l.b16 %v4220_v22  ;;  %v3654_v54 = vadd.f32 %v3653_v53, %v3652_v27 }
 0x4d5   : > { %v3660_v41 = vadd.f32 %v3659_v36, %v3658_v14  ;;  %v3664_v30 = vadd.f32 %v3663_v59, %v3662_v3  ;;  %v3669_v49 = vrot.slane %v3668_v29, 2  ;;  %v3673_v34 = vrot.slane %v3571_v47, 4 }
 0x4d6   : > { %3977 = vst [vmem:[%s6123_s14] sm:$0xf] %v3969_v50  ;;  %v3948_v46 = vsel %vm2585_vm1, %v3918_v15, %v3917_v37  ;;  %v4221_v55 = vpack.c.bf16 %v3654_v54, %v3654_v54  ;;  %v3572_v28 = vmul.f32 %v3475_v20, %v6031_v56  ;;  %v6131_v60 = vadd.f32 %v6455_v57, %v6086_v33 }
 0x4d7   : > { %v4222_v23 = vpack.c.bf16 %v3660_v41, %v3660_v41  ;;  %v3665_v8 = vrot.slane %v3664_v30, 1  ;;  %v3670_v62 = vadd.f32 %v3669_v49, %v3668_v29  ;;  %v3674_v2 = vadd.f32 %v3673_v34, %v3571_v47  ;;  %v3480_v61 = vpop.permute.xlu0 %3479  ;;  %v3485_v7 = vpop.permute.xlu1 %3484 }
 0x4d8   : > { %v3919_v25 = vunpack.c.l.b16 %v4221_v55  ;;  %v3679_v44 = vrot.slane %v3572_v28, 4  ;;  %v3573_v45 = vmul.f32 %v3480_v61, %v6035_v17  ;;  %v3574_v4 = vmul.f32 %v3485_v7, %v6038_v24 }
 0x4d9   : > { %v3920_v32 = vunpack.c.l.b16 %v4222_v23  ;;  %v3666_v51 = vadd.f32 %v3665_v8, %v3664_v30  ;;  %v3671_v35 = vrot.slane %v3670_v62, 1  ;;  %v3675_v56 = vrot.slane %v3674_v2, 2 }
 0x4da   : > { %v3949_v0 = vsel %vm2587_vm2, %v3919_v25, %v3948_v46  ;;  %v3680_v33 = vadd.f32 %v3679_v44, %v3572_v28  ;;  %v3685_v42 = vrot.slane %v3573_v45, 4  ;;  %v3691_v5 = vrot.slane %v3574_v4, 4 }
 0x4db   : > { %v3950_v40 = vsel %vm2589_vm3, %v3920_v32, %v3949_v0  ;;  %v4223_v1 = vpack.c.bf16 %v3666_v51, %v3666_v51  ;;  %v3672_v52 = vadd.f32 %v3671_v35, %v3670_v62  ;;  %v3676_v11 = vadd.f32 %v3675_v56, %v3674_v2  ;;  %v3495_v27 = vpop.permute.xlu0 %3494  ;;  %v3490_v38 = vpop.permute.xlu1 %3489 }
 0x4dc   : > { %v3681_v14 = vrot.slane %v3680_v33, 2  ;;  %v3686_v17 = vadd.f32 %v3685_v42, %v3573_v45  ;;  %v3692_v3 = vadd.f32 %v3691_v5, %v3574_v4  ;;  %v3576_v24 = vmul.f32 %v3495_v27, %v6042_v13 }
 0x4dd   : > { %v3921_v6 = vunpack.c.l.b16 %v4223_v1  ;;  %v4224_v18 = vpack.c.bf16 %v3672_v52, %v3672_v52  ;;  %v3677_v22 = vrot.slane %v3676_v11, 1  ;;  %v3575_v53 = vmul.f32 %v3490_v38, %v6045_v63 }
 0x4de   : > { %v3682_v47 = vadd.f32 %v3681_v14, %v3680_v33  ;;  %v3687_v39 = vrot.slane %v3686_v17, 2  ;;  %v3693_v36 = vrot.slane %v3692_v3, 2  ;;  %v3703_v59 = vrot.slane %v3576_v24, 4 }
 0x4df   : > { %v3951_v29 = vsel %vm2591_vm4, %v3921_v6, %v3950_v40  ;;  %v3922_v20 = vunpack.c.l.b16 %v4224_v18  ;;  %v3678_v50 = vadd.f32 %v3677_v22, %v3676_v11  ;;  %v3697_v37 = vrot.slane %v3575_v53, 4  ;;  %v3505_v15 = vpop.permute.xlu0 %3504  ;;  %v3500_v54 = vpop.permute.xlu1 %3499 }
 0x4e0   : > { %v3683_v41 = vrot.slane %v3682_v47, 1  ;;  %v3688_v30 = vadd.f32 %v3687_v39, %v3686_v17  ;;  %v3694_v49 = vadd.f32 %v3693_v36, %v3692_v3  ;;  %v3704_v13 = vadd.f32 %v3703_v59, %v3576_v24 }
 0x4e1   : > { %v3952_v34 = vsel %vm2593_vm5, %v3922_v20, %v3951_v29  ;;  %v4225_v46 = vpack.c.bf16 %v3678_v50, %v3678_v50  ;;  %v3698_v55 = vadd.f32 %v3697_v37, %v3575_v53  ;;  %v3578_v63 = vmul.f32 %v3505_v15, %v6048_v12 }
 0x4e2   : > { %v3684_v28 = vadd.f32 %v3683_v41, %v3682_v47  ;;  %v3689_v57 = vrot.slane %v3688_v30, 1  ;;  %v3695_v23 = vrot.slane %v3694_v49, 1  ;;  %v3705_v8 = vrot.slane %v3704_v13, 2 }
 0x4e3   : > { %v3923_v62 = vunpack.c.l.b16 %v4225_v46  ;;  %v3699_v2 = vrot.slane %v3698_v55, 2  ;;  %v3715_v61 = vrot.slane %v3578_v63, 4  ;;  %v3577_v7 = vmul.f32 %v3500_v54, %v6051_v43  ;;  %v3520_v25 = vpop.permute.xlu0 %3519  ;;  %v3510_v44 = vpop.permute.xlu1 %3509 }
 0x4e4   : > { %v4226_v45 = vpack.c.bf16 %v3684_v28, %v3684_v28  ;;  %v3690_v4 = vadd.f32 %v3689_v57, %v3688_v30  ;;  %v3696_v32 = vadd.f32 %v3695_v23, %v3694_v49  ;;  %v3706_v51 = vadd.f32 %v3705_v8, %v3704_v13 }
 0x4e5   : > { %v3953_v35 = vsel %vm2595_vm6, %v3923_v62, %v3952_v34  ;;  %v3700_v56 = vadd.f32 %v3699_v2, %v3698_v55  ;;  %v3716_v0 = vadd.f32 %v3715_v61, %v3578_v63  ;;  %v3709_v12 = vrot.slane %v3577_v7, 4 }
 0x4e6   : > { %v3924_v33 = vunpack.c.l.b16 %v4226_v45  ;;  %v4227_v42 = vpack.c.bf16 %v3690_v4, %v3690_v4  ;;  %v4228_v5 = vpack.c.bf16 %v3696_v32, %v3696_v32  ;;  %v3707_v40 = vrot.slane %v3706_v51, 1 }
 0x4e7   : > { %v3701_v1 = vrot.slane %v3700_v56, 1  ;;  %v3717_v52 = vrot.slane %v3716_v0, 2  ;;  %v3710_v11 = vadd.f32 %v3709_v12, %v3577_v7  ;;  %v3581_v43 = vmul.f32 %v3520_v25, %v6054_v16  ;;  %v3530_v27 = vpop.permute.xlu0 %3529  ;;  %v3525_v24 = vpop.permute.xlu1 %3524 }
 0x4e8   : > { %v3954_v38 = vsel %vm2597_vm7, %v3924_v33, %v3953_v35  ;;  %v3925_v14 = vunpack.c.l.b16 %v4227_v42  ;;  %v3926_v17 = vunpack.c.l.b16 %v4228_v5  ;;  %v3708_v3 = vadd.f32 %v3707_v40, %v3706_v51 }
 0x4e9   : > { %v3970_v6 = vpack.c.b16 %v3954_v38, %v3954_v38  ;;  %v3702_v18 = vadd.f32 %v3701_v1, %v3700_v56  ;;  %v3718_v22 = vadd.f32 %v3717_v52, %v3716_v0  ;;  %v3711_v53 = vrot.slane %v3710_v11, 2 }
 0x4ea   : > { %v3955_v47 = vsel %vm2585_vm1, %v3926_v17, %v3925_v14  ;;  %v4230_v39 = vpack.c.bf16 %v3708_v3, %v3708_v3  ;;  %v3733_v36 = vrot.slane %v3581_v43, 4  ;;  %v3579_v59 = vmul.f32 %v3510_v44, %v6057_v9 }
 0x4eb   : > { %3978 = vst [vmem:[%s6123_s14 + $0x4] sm:$0xf] %v3970_v6  ;;  %v4229_v29 = vpack.c.bf16 %v3702_v18, %v3702_v18  ;;  %v3719_v16 = vrot.slane %v3718_v22, 1  ;;  %v3712_v20 = vadd.f32 %v3711_v53, %v3710_v11  ;;  %v3583_v50 = vmul.f32 %v3530_v27, %v6068_v48  ;;  %v3540_v37 = vpop.permute.xlu0 %3539  ;;  %v3535_v57 = vpop.permute.xlu1 %3534 }
 0x4ec   : > { %v3928_v15 = vunpack.c.l.b16 %v4230_v39  ;;  %v3734_v54 = vadd.f32 %v3733_v36, %v3581_v43  ;;  %v3721_v41 = vrot.slane %v3579_v59, 4  ;;  %v3582_v30 = vmul.f32 %v3525_v24, %v6083_v58 }
 0x4ed   : > { %v3927_v49 = vunpack.c.l.b16 %v4229_v29  ;;  %v3720_v13 = vadd.f32 %v3719_v16, %v3718_v22  ;;  %v3713_v34 = vrot.slane %v3712_v20, 1  ;;  %v3745_v46 = vrot.slane %v3583_v50, 4 }
 0x4ee   : > { %v3735_v55 = vrot.slane %v3734_v54, 2  ;;  %v3722_v63 = vadd.f32 %v3721_v41, %v3579_v59  ;;  %v3739_v28 = vrot.slane %v3582_v30, 4  ;;  %v3585_v9 = vmul.f32 %v3540_v37, %v6090_v19 }
 0x4ef   : > { %v3956_v23 = vsel %vm2587_vm2, %v3927_v49, %v3955_v47  ;;  %v4232_v8 = vpack.c.bf16 %v3720_v13, %v3720_v13  ;;  %v3714_v48 = vadd.f32 %v3713_v34, %v3712_v20  ;;  %v3746_v62 = vadd.f32 %v3745_v46, %v3583_v50  ;;  %v3550_v25 = vpop.permute.xlu0 %3549  ;;  %v3545_v11 = vpop.permute.xlu1 %3544 }
 0x4f0   : > { %v3957_v2 = vsel %vm2589_vm3, %v3928_v15, %v3956_v23  ;;  %v3736_v61 = vadd.f32 %v3735_v55, %v3734_v54  ;;  %v3723_v7 = vrot.slane %v3722_v63, 2  ;;  %v3740_v58 = vadd.f32 %v3739_v28, %v3582_v30 }
 0x4f1   : > { %v3930_v44 = vunpack.c.l.b16 %v4232_v8  ;;  %v4231_v45 = vpack.c.bf16 %v3714_v48, %v3714_v48  ;;  %v3747_v4 = vrot.slane %v3746_v62, 2  ;;  %v3757_v32 = vrot.slane %v3585_v9, 4 }
 0x4f2   : > { %v3737_v51 = vrot.slane %v3736_v61, 1  ;;  %v3724_v35 = vadd.f32 %v3723_v7, %v3722_v63  ;;  %v3741_v56 = vrot.slane %v3740_v58, 2  ;;  %v3584_v19 = vmul.f32 %v3535_v57, %v6093_v10 }
 0x4f3   : > { %v3929_v0 = vunpack.c.l.b16 %v4231_v45  ;;  %v3748_v12 = vadd.f32 %v3747_v4, %v3746_v62  ;;  %v3758_v33 = vadd.f32 %v3757_v32, %v3585_v9  ;;  %v3587_v42 = vmul.f32 %v3550_v25, %v6098_v26  ;;  %v3515_v26 = vpop.permute.xlu0 %3514  ;;  %v3555_v30 = vpop.permute.xlu1 %3554 }
 0x4f4   : > { %v3738_v5 = vadd.f32 %v3737_v51, %v3736_v61  ;;  %v3725_v40 = vrot.slane %v3724_v35, 1  ;;  %v3742_v1 = vadd.f32 %v3741_v56, %v3740_v58  ;;  %v3751_v52 = vrot.slane %v3584_v19, 4 }
 0x4f5   : > { %v3958_v43 = vsel %vm2591_vm4, %v3929_v0, %v3957_v2  ;;  %v3749_v27 = vrot.slane %v3748_v12, 1  ;;  %v3759_v38 = vrot.slane %v3758_v33, 2  ;;  %v3769_v14 = vrot.slane %v3587_v42, 4 }
 0x4f6   : > { %v4235_v17 = vpack.c.bf16 %v3738_v5, %v3738_v5  ;;  %v3726_v3 = vadd.f32 %v3725_v40, %v3724_v35  ;;  %v3959_v24 = vsel %vm2593_vm5, %v3930_v44, %v3958_v43  ;;  %v3743_v10 = vrot.slane %v3742_v1, 1 }
 0x4f7   : > { %v3750_v6 = vadd.f32 %v3749_v27, %v3748_v12  ;;  %v3760_v18 = vadd.f32 %v3759_v38, %v3758_v33  ;;  %v3752_v22 = vadd.f32 %v3751_v52, %v3584_v19  ;;  %v3770_v53 = vadd.f32 %v3769_v14, %v3587_v42 }
 0x4f8   : > { %v3933_v47 = vunpack.c.l.b16 %v4235_v17  ;;  %v4233_v39 = vpack.c.bf16 %v3726_v3, %v3726_v3  ;;  %v3744_v36 = vadd.f32 %v3743_v10, %v3742_v1  ;;  %v3586_v59 = vmul.f32 %v3545_v11, %v6101_v21 }
 0x4f9   : > { %v4237_v29 = vpack.c.bf16 %v3750_v6, %v3750_v6  ;;  %v3761_v16 = vrot.slane %v3760_v18, 1  ;;  %v3753_v20 = vrot.slane %v3752_v22, 2  ;;  %v3771_v50 = vrot.slane %v3770_v53, 2 }
 0x4fa   : > { %v3931_v37 = vunpack.c.l.b16 %v4233_v39  ;;  %v4236_v15 = vpack.c.bf16 %v3744_v36, %v3744_v36  ;;  %v3763_v54 = vrot.slane %v3586_v59, 4  ;;  %v3580_v41 = vmul.f32 %v3515_v26, %v6107_v31 }
 0x4fb   : > { %v3935_v49 = vunpack.c.l.b16 %v4237_v29  ;;  %v3762_v13 = vadd.f32 %v3761_v16, %v3760_v18  ;;  %v3754_v34 = vadd.f32 %v3753_v20, %v3752_v22  ;;  %v3772_v46 = vadd.f32 %v3771_v50, %v3770_v53 }
 0x4fc   : > { %v3960_v55 = vsel %vm2595_vm6, %v3931_v37, %v3959_v24  ;;  %v3934_v63 = vunpack.c.l.b16 %v4236_v15  ;;  %v3764_v28 = vadd.f32 %v3763_v54, %v3586_v59  ;;  %v3727_v9 = vrot.slane %v3580_v41, 4 }
 0x4fd   : > { %v3755_v21 = vrot.slane %v3754_v34, 1  ;;  %v3773_v57 = vrot.slane %v3772_v46, 1  ;;  %v3588_v23 = vmul.f32 %v3555_v30, %v6131_v60  ;;  %v4239_v48 = vpack.c.bf16 %v3762_v13, %v3762_v13 }
 0x4fe   : > { %v3962_v8 = vsel %vm2585_vm1, %v3934_v63, %v3933_v47  ;;  %v3765_v62 = vrot.slane %v3764_v28, 2  ;;  %v3728_v2 = vadd.f32 %v3727_v9, %v3580_v41 }
 0x4ff   : > { %v3963_v31 = vsel %vm2587_vm2, %v3935_v49, %v3962_v8  ;;  %v3756_v61 = vadd.f32 %v3755_v21, %v3754_v34  ;;  %v3774_v7 = vadd.f32 %v3773_v57, %v3772_v46  ;;  %v3775_v44 = vrot.slane %v3588_v23, 4 }
 0x500   : > { %v3766_v58 = vadd.f32 %v3765_v62, %v3764_v28  ;;  %v3729_v25 = vrot.slane %v3728_v2, 2  ;;  %v3937_v4 = vunpack.c.l.b16 %v4239_v48 }
 0x501   : > { %v4238_v45 = vpack.c.bf16 %v3756_v61, %v3756_v61  ;;  %v3776_v35 = vadd.f32 %v3775_v44, %v3588_v23  ;;  %v4241_v19 = vpack.c.bf16 %v3774_v7, %v3774_v7 }
 0x502   : > { %v3767_v32 = vrot.slane %v3766_v58, 1  ;;  %v3730_v51 = vadd.f32 %v3729_v25, %v3728_v2 }
 0x503   : > { %v3936_v56 = vunpack.c.l.b16 %v4238_v45  ;;  %v3777_v12 = vrot.slane %v3776_v35, 2  ;;  %v3939_v52 = vunpack.c.l.b16 %v4241_v19 }
 0x504   : > { %v3768_v60 = vadd.f32 %v3767_v32, %v3766_v58  ;;  %v3731_v0 = vrot.slane %v3730_v51, 1 }
 0x505   : > { %v3964_v33 = vsel %vm2589_vm3, %v3936_v56, %v3963_v31  ;;  %v3778_v1 = vadd.f32 %v3777_v12, %v3776_v35 }
 0x506   : > { %v3965_v42 = vsel %vm2591_vm4, %v3937_v4, %v3964_v33  ;;  %v4240_v5 = vpack.c.bf16 %v3768_v60, %v3768_v60  ;;  %v3732_v40 = vadd.f32 %v3731_v0, %v3730_v51 }
 0x507   : > { %v3779_v27 = vrot.slane %v3778_v1, 1 }
 0x508   : > { %v3938_v11 = vunpack.c.l.b16 %v4240_v5  ;;  %v4234_v43 = vpack.c.bf16 %v3732_v40, %v3732_v40 }
 0x509   : > { %v3780_v17 = vadd.f32 %v3779_v27, %v3778_v1 }
 0x50a   : > { %v3966_v38 = vsel %vm2593_vm5, %v3938_v11, %v3965_v42  ;;  %v3932_v14 = vunpack.c.l.b16 %v4234_v43 }
 0x50b   : > { %v3967_v3 = vsel %vm2595_vm6, %v3939_v52, %v3966_v38  ;;  %v4242_v10 = vpack.c.bf16 %v3780_v17, %v3780_v17 }
 0x50c   : > { %v3961_v24 = vsel %vm2597_vm7, %v3932_v14, %v3960_v55 }
 0x50d   : > { %v3971_v6 = vpack.c.b16 %v3961_v24, %v3961_v24  ;;  %v3940_v18 = vunpack.c.l.b16 %v4242_v10 }
 0x50f   : > { %3979 = vst [vmem:[%s6123_s14 + $0x8] sm:$0xf] %v3971_v6  ;;  %v3968_v22 = vsel %vm2597_vm7, %v3940_v18, %v3967_v3 }
 0x510   : > { %v3972_v53 = vpack.c.b16 %v3968_v22, %v3968_v22 }
 0x512   : > { %3980 = vst [vmem:[%s6123_s14 + $0xc] sm:$0xf] %v3972_v53 }
 0x513 PF: > { %s18_s29 = sadd.s32 1, %s4423_s29   ;;  %s6456_s27 = smov %s4419_s28 }
 0x514   : > { %p15_p5 = scmp.ge.s32.totalorder %s18_s29, 4   ;;  %s6457_s28 = smov %s6459_s30 }
 0x516   :  { %17 = sbr.rel (!%p15_p5) target bundleno = 2 (0x2), region = 88 }

// kernel: eaef_forward.13
= control target key start
LH: loop header
LB: loop body
LE: loop exit
PB: predicated region body
PF: predicated region fallthrough
CT: control target
= control target key end

     0   :  { %s503_s12 = smov 0   ;;  %s553_s0 = inlined_call_operand.vmem [shape: bf16[2,32,128], index: 0, kind: input, shape index: {}]   ;;  %s554_s1 = inlined_call_operand.vmem [shape: bf16[2,32,128], index: 1, kind: input, shape index: {}]   ;;  %s555_s2 = inlined_call_operand.vmem [shape: bf16[2,32,128], index: 2, kind: input, shape index: {}]   ;;  %s556_s3 = inlined_call_operand.vmem [shape: f32[2,2,256], index: 3, kind: output, shape index: {}]  }
   0x1 LB: > { %s418_s13 = sadd.s32 4294967295, %s480_s12   ;;  %p422_p0 = scmp.ge.s32.totalorder %s480_s12, 1  ;;  %s480_s12 = sphi %s503_s12, %s13_s12  }
   0x2   : > { %p157_p1 = scmp.lt.s32.totalorder %s480_s12, 3 }
   0x4   : > { %p158_p2 = pnand %p422_p0, %p157_p1 }
   0x5   : > { %p191_p3 = scmp.lt.s32.totalorder (!%p158_p2), %s418_s13, 1  ;;  %s482_s18 = smov (!%p158_p2), 64  }
   0x6   : > { %161 = sbr.rel (%p158_p2) target bundleno = 160 (0xa0), region = 32 }
   0xb   : > { %s558_s13 = smov (!%p191_p3, %s418_s13), 1  ;;  %vm235_vm0 = vcmask 523264   ;;  %vm324_vm1 = vcmask 1040384  }
   0xc   : > { %s514_s14 = sshll.u32 %s558_s13, 4  ;;  %s437_s25 = sshll.u32 %s558_s13, 2 }
   0xd   : > { %s200_s17 = scalar_lea.vmem %s554_s1, %s514_s14  ;;  %s205_s21 = scalar_lea.vmem %s555_s2, %s514_s14 }
   0xe   : > { %v447_v0 = vld [vmem:[%s200_s17] sm:$0xff]   ;;  %v463_v1 = vld [vmem:[%s200_s17 + $0x8] sm:$0xff]   ;;  %s195_s24 = scalar_lea.vmem %s553_s0, %s514_s14  ;;  %s210_s28 = scalar_lea.vmem %s556_s3, %s437_s25 }
   0xf   : > { %v448_v2 = vunpack.c.l.bf16 %v447_v0  ;;  %v449_v3 = vunpack.c.h.bf16 %v447_v0  ;;  %v452_v4 = vunpack.c.l.bf16 %v463_v1  ;;  %v453_v5 = vunpack.c.h.bf16 %v463_v1  ;;  %v455_v32 = vld [vmem:[%s205_s21] sm:$0xff]   ;;  %v464_v36 = vld [vmem:[%s205_s21 + $0x8] sm:$0xff]  }
  0x10   : > { %v439_v33 = vld [vmem:[%s195_s24] sm:$0xff]   ;;  %v456_v34 = vunpack.c.l.bf16 %v455_v32  ;;  %v457_v35 = vunpack.c.h.bf16 %v455_v32  ;;  %v462_v39 = vld [vmem:[%s195_s24 + $0x8] sm:$0xff]   ;;  %v460_v40 = vunpack.c.l.bf16 %v464_v36  ;;  %v461_v45 = vunpack.c.h.bf16 %v464_v36 }
  0x11   : > { %v252_v6 = vsel %vm235_vm0, %v453_v5, -inf  ;;  %v289_v7 = vsel %vm235_vm0, %v448_v2, 0.0  ;;  %v290_v8 = vsel %vm235_vm0, %v449_v3, 0.0  ;;  %v292_v9 = vsel %vm235_vm0, %v452_v4, 0.0 }
  0x12   : > { %v291_v10 = vadd.f32 %v290_v8, %v289_v7  ;;  %v294_v11 = vsel %vm235_vm0, %v453_v5, 0.0  ;;  %v249_v12 = vsel %vm235_vm0, %v448_v2, -inf  ;;  %v250_v13 = vsel %vm235_vm0, %v449_v3, -inf }
  0x13   : > { %v251_v14 = vsel %vm235_vm0, %v452_v4, -inf  ;;  %v253_v16 = vmax.f32 %v249_v12, %v250_v13  ;;  %v440_v37 = vunpack.c.l.bf16 %v439_v33  ;;  %v441_v38 = vunpack.c.h.bf16 %v439_v33 }
  0x14   : > { %v293_v15 = vadd.f32 %v292_v9, %v291_v10  ;;  %v254_v17 = vmax.f32 %v251_v14, %v252_v6  ;;  %v302_v41 = vadd.f32 %v457_v35, %v456_v34  ;;  %v444_v42 = vunpack.c.l.bf16 %v462_v39 }
  0x15   : > { %v276_v43 = vsel %vm235_vm0, %v440_v37, 0.0  ;;  %v277_v44 = vsel %vm235_vm0, %v441_v38, 0.0  ;;  %v445_v47 = vunpack.c.h.bf16 %v462_v39  ;;  %v236_v53 = vsel %vm235_vm0, %v440_v37, -inf }
  0x16   : > { %v295_v18 = vadd.f32 %v294_v11, %v293_v15  ;;  %v255_v19 = vmax.f32 %v253_v16, %v254_v17  ;;  %v303_v46 = vadd.f32 %v460_v40, %v302_v41  ;;  %v278_v48 = vadd.f32 %v277_v44, %v276_v43 }
  0x17   : > { %v279_v49 = vsel %vm235_vm0, %v444_v42, 0.0  ;;  %v281_v52 = vsel %vm235_vm0, %v445_v47, 0.0  ;;  %v237_v54 = vsel %vm235_vm0, %v441_v38, -inf  ;;  %v238_v55 = vsel %vm235_vm0, %v444_v42, -inf }
  0x18   : > { %v296_v20 = vrot.slane %v295_v18, 4  ;;  %v256_v21 = vrot.slane %v255_v19, 4  ;;  %v304_v50 = vadd.f32 %v461_v45, %v303_v46  ;;  %v280_v51 = vadd.f32 %v279_v49, %v278_v48 }
  0x19   : > { %v239_v56 = vsel %vm235_vm0, %v445_v47, -inf  ;;  %v262_v57 = vmax.f32 %v456_v34, %v457_v35  ;;  %v263_v58 = vmax.f32 %v460_v40, %v461_v45  ;;  %v240_v61 = vmax.f32 %v236_v53, %v237_v54 }
  0x1a   : > { %v297_v22 = vadd.f32 %v296_v20, %v295_v18  ;;  %v257_v23 = vmax.f32 %v255_v19, %v256_v21  ;;  %v305_v59 = vrot.slane %v304_v50, 4  ;;  %v282_v60 = vadd.f32 %v281_v52, %v280_v51 }
  0x1b   : > { %v241_v62 = vmax.f32 %v238_v55, %v239_v56  ;;  %v264_v63 = vmax.f32 %v262_v57, %v263_v58 }
  0x1c   : > { %v298_v24 = vrot.slane %v297_v22, 2  ;;  %v258_v25 = vrot.slane %v257_v23, 2  ;;  %v306_v0 = vadd.f32 %v305_v59, %v304_v50  ;;  %v283_v1 = vrot.slane %v282_v60, 4 }
  0x1d   : > { %v242_v2 = vmax.f32 %v240_v61, %v241_v62  ;;  %v265_v3 = vrot.slane %v264_v63, 4 }
  0x1e   : > { %v299_v26 = vadd.f32 %v298_v24, %v297_v22  ;;  %v259_v27 = vmax.f32 %v257_v23, %v258_v25  ;;  %v307_v4 = vrot.slane %v306_v0, 2  ;;  %v284_v5 = vadd.f32 %v283_v1, %v282_v60 }
  0x1f   : > { %v243_v6 = vrot.slane %v242_v2, 4  ;;  %v266_v7 = vmax.f32 %v264_v63, %v265_v3 }
  0x20   : > { %v300_v28 = vrot.slane %v299_v26, 1  ;;  %v260_v29 = vrot.slane %v259_v27, 1  ;;  %v308_v8 = vadd.f32 %v307_v4, %v306_v0  ;;  %v285_v9 = vrot.slane %v284_v5, 2 }
  0x21   : > { %v244_v10 = vmax.f32 %v242_v2, %v243_v6  ;;  %v267_v11 = vrot.slane %v266_v7, 2 }
  0x22   : > { %v301_v30 = vadd.f32 %v300_v28, %v299_v26  ;;  %v261_v31 = vmax.f32 %v259_v27, %v260_v29  ;;  %v309_v12 = vrot.slane %v308_v8, 1  ;;  %v286_v13 = vadd.f32 %v285_v9, %v284_v5 }
  0x23   : > { %v245_v14 = vrot.slane %v244_v10, 2  ;;  %v268_v15 = vmax.f32 %v266_v7, %v267_v11 }
  0x24   : > { %312 = vrot.lane.b32.xlu0 %v301_v30, %s482_s18  ;;  %v310_v16 = vadd.f32 %v309_v12, %v308_v8  ;;  %v287_v17 = vrot.slane %v286_v13, 1 }
  0x25   : > { %v246_v18 = vmax.f32 %v244_v10, %v245_v14  ;;  %v269_v19 = vrot.slane %v268_v15, 1 }
  0x26   : > { %v317_v20 = vmul.f32 0.03125, %v310_v16  ;;  %v288_v21 = vadd.f32 %v287_v17, %v286_v13 }
  0x27   : > { %v247_v22 = vrot.slane %v246_v18, 1  ;;  %v270_v24 = vmax.f32 %v268_v15, %v269_v19 }
  0x28   : > { %272 = vrot.lane.b32.xlu0 %v261_v31, %s482_s18  ;;  %v321_v25 = vrot.slane %v317_v20, 7 }
  0x29   : > { %v248_v27 = vmax.f32 %v246_v18, %v247_v22 }
  0x2a   : > { %v326_v30 = vsel %vm324_vm1, %v270_v24, %v321_v25 }
  0x96   : > { %v313_v23 = vpop.permute.xlu0 %312 }
  0x97   : > { %v315_v26 = vsel %vm235_vm0, %v288_v21, %v313_v23 }
  0x98   : > { %v316_v28 = vmul.f32 0.03125, %v315_v26 }
  0x9a   : > { %v320_v29 = vrot.slane %v316_v28, 7  ;;  %v273_v31 = vpop.permute.xlu0 %272 }
  0x9b   : > { %v275_v32 = vsel %vm235_vm0, %v248_v27, %v273_v31 }
  0x9c   : > { %v325_v33 = vsel %vm324_vm1, %v275_v32, %v320_v29 }
  0x9d   : > { %v329_v34 = vcombine.low %v325_v33, %v326_v30 }
  0x9f   : > { %431 = vst.sshfl [vmem:[%s210_s28] sm:$0x33 pattern:$0x76325410] %v329_v34 }
  0xa0 PF: > { %s13_s12 = sadd.s32 1, %s480_s12  }
  0xa1   : > { %p10_p4 = scmp.ge.s32.totalorder %s13_s12, 4  }
  0xa3   :  { %12 = sbr.rel (!%p10_p4) target bundleno = 1 (0x1), region = 68 }

// kernel: eaef_forward.12
= control target key start
LH: loop header
LB: loop body
LE: loop exit
PB: predicated region body
PF: predicated region fallthrough
CT: control target
= control target key end

     0   :  { %s4873_s27 = smov 0   ;;  %s4875_s28 = smov 0   ;;  %s6594_s0 = inlined_call_operand.vmem [shape: bf16[2,32,8,64], index: 0, kind: input, shape index: {}]   ;;  %s6595_s1 = inlined_call_operand.vmem [shape: bf16[2,32,64], index: 1, kind: input, shape index: {}]   ;;  %s6596_s2 = inlined_call_operand.vmem [shape: f32[2,32,3], index: 2, kind: input, shape index: {}]   ;;  %s6597_s3 = inlined_call_operand.vmem [shape: bf16[64,384], index: 3, kind: input, shape index: {}]   ;;  %s6598_s4 = inlined_call_operand.vmem [shape: bf16[64,384], index: 4, kind: input, shape index: {}]   ;;  %s6599_s5 = inlined_call_operand.vmem [shape: f32[1,384], index: 5, kind: input, shape index: {}]   ;;  %s6600_s6 = inlined_call_operand.vmem [shape: f32[3,128], index: 6, kind: input, shape index: {}]   ;;  %s6601_s7 = inlined_call_operand.vmem [shape: f32[1,128], index: 7, kind: input, shape index: {}]   ;;  %s6602_s8 = inlined_call_operand.vmem [shape: bf16[2,32,128], index: 8, kind: output, shape index: {}]  }
   0x1   :  { %s4877_s29 = smov 0  }
   0x2 LB: > { %s30_s30 = sadd.s32 1, %s4818_s28  ;;  %p4395_p0 = scmp.ge.s32.totalorder %s4822_s29, 1  ;;  %s4822_s29 = sphi %s4877_s29, %s18_s29   ;;  %s4818_s28 = sphi %s4875_s28, %s6995_s28   ;;  %s4814_s27 = sphi %s4873_s27, %s6994_s27  }
   0x3   : > { %p32_p1 = scmp.ge.s32.totalorder %s30_s30, 2  ;;  %p317_p2 = scmp.lt.s32.totalorder %s4822_s29, 3 }
   0x5   : > { %s6997_s30 = smov (%p32_p1, %s30_s30), 0  ;;  %p318_p3 = pnand %p4395_p0, %p317_p2 }
   0x7   : > { %321 = sbr.rel (%p318_p3) target bundleno = 1248 (0x4e0), region = 52 }
   0xc   : > { %v4678_v0 = vld [vmem:[%s6597_s3 + $0x4c] ss:$12 sps:$4 sm:$0xff]   ;;  %p378_p4 = scmp.lt.s32.totalorder %s4814_s27, 1  ;;  %v4680_v1 = vld [vmem:[%s6597_s3 + $0x48] ss:$12 sps:$4 sm:$0xff]   ;;  %v4824_v2 = vmov 0  }
   0xd   : > { %835 = vmatprep.mubr.bf16.mxu1 %v4824_v2  ;;  %695 = vmatprep.mubr.bf16.mxu0 %v4824_v2  ;;  %v4681_v3 = vld [vmem:[%s6597_s3 + $0x34] ss:$12 sps:$4 sm:$0xff]   ;;  %v4683_v4 = vld [vmem:[%s6597_s3 + $0x30] ss:$12 sps:$4 sm:$0xff]   ;;  %v4686_v6 = vld [vmem:[%s6597_s3 + $0x18] ss:$12 sps:$4 sm:$0xff]  }
   0xe   : > { %4634 = vmatprep.subr.bf16.mxu1 %v4678_v0  ;;  %671 = vmatprep.subr.bf16.mxu0 %v4678_v0  ;;  %s6999_s27 = smov (!%p378_p4, %s4814_s27), 1  ;;  %v4684_v5 = vld [vmem:[%s6597_s3 + $0x1c] ss:$12 sps:$4 sm:$0xff]   ;;  %v4687_v7 = vld [vmem:[%s6597_s3 + $0x4] ss:$12 sps:$4 sm:$0xff]   ;;  %vm614_vm0 = vcmask 523264  }
   0xf   : > { %4638 = vmatpush1.bf16.msra.mxu1 %v4680_v1  ;;  %672 = vmatpush1.bf16.msra.mxu0 %v4680_v1  ;;  %s4520_s19 = sshll.u32 %s6999_s27, 7  ;;  %v4689_v8 = vld [vmem:[%s6597_s3] ss:$12 sps:$4 sm:$0xff]   ;;  %v4691_v9 = vld [vmem:[%s6597_s3 + $0x50] ss:$12 sps:$4 sm:$0xff]   ;;  %s4522_s26 = sshll.u32 %s6999_s27, 5 }
  0x10   : > { %4635 = vmatprep.subr.bf16.mxu1 %v4681_v3  ;;  %673 = vmatprep.subr.bf16.mxu0 %v4681_v3  ;;  %s4914_s22 = scalar_lea.vmem %s6594_s0, %s4520_s19  ;;  %v4693_v12 = vld [vmem:[%s6597_s3 + $0x38] ss:$12 sps:$4 sm:$0xff]   ;;  %v4695_v13 = vld [vmem:[%s6597_s3 + $0x20] ss:$12 sps:$4 sm:$0xff]   ;;  %v4697_v16 = vld [vmem:[%s6597_s3 + $0x8] ss:$12 sps:$4 sm:$0xff]   ;;  %s405_s15 = scalar_lea.vmem %s6596_s2, %s4522_s26 }
  0x11   : > { %4671 = vset.pattern.permute.xlu1 %v4824_v2  ;;  %4670 = vset.pattern.permute.xlu0 %v4824_v2  ;;  %v4931_v10 = vld [vmem:[%s4914_s22 + $0x70] sm:$0xff]   ;;  %v4692_v11 = vld [vmem:[%s4914_s22] sm:$0xff]   ;;  %v4946_v14 = vld [vmem:[%s4914_s22 + $0x78] sm:$0xff]   ;;  %s4521_s19 = sshll.u32 %s6999_s27, 4  ;;  %v4825_v33 = vmov 1   ;;  %v4826_v38 = vmov 2  }
  0x12   : > { %v4696_v15 = vld [vmem:[%s4914_s22 + $0x8] sm:$0xff]   ;;  %s4966_s25 = scalar_lea.vmem %s6595_s1, %s4521_s19  ;;  %v4701_v18 = vld [vmem:[%s4914_s22 + $0x10] sm:$0xff]   ;;  %v2088_v24 = vld [vmem:[%s405_s15] sm:$0xff]  ;;  %vm2872_vm1 = vcmask 1041409   ;;  %vm2874_vm2 = vcmask 1042434   ;;  %vm2876_vm3 = vcmask 1043459   ;;  %s6548_s13 = scalar_lea.vmem %s6602_s8, %s4521_s19 }
  0x13   : > { %4639 = vmatpush1.bf16.msra.mxu1 %v4683_v4  ;;  %674 = vmatpush1.bf16.msra.mxu0 %v4683_v4  ;;  %v4700_v17 = vld [vmem:[%s6598_s4 + $0x4c] ss:$12 sps:$4 sm:$0xff]   ;;  %v4698_v19 = vld [vmem:[%s6598_s4 + $0x48] ss:$12 sps:$4 sm:$0xff]   ;;  %v4705_v21 = vld [vmem:[%s6598_s4 + $0x30] ss:$12 sps:$4 sm:$0xff]  }
  0x14   : > { %4636 = vmatprep.subr.bf16.mxu1 %v4684_v5  ;;  %675 = vmatprep.subr.bf16.mxu0 %v4684_v5  ;;  %v4707_v20 = vld [vmem:[%s6598_s4 + $0x34] ss:$12 sps:$4 sm:$0xff]   ;;  %v4714_v22 = vld [vmem:[%s6598_s4 + $0x1c] ss:$12 sps:$4 sm:$0xff]   ;;  %v4712_v28 = vld [vmem:[%s6598_s4 + $0x18] ss:$12 sps:$4 sm:$0xff]  }
  0x15   : > { %v2090_v23 = vld [vmem:[%s405_s15 + $0x10] sm:$0xff]  ;;  %v4702_v25 = vld [vmem:[%s4914_s22 + $0x18] sm:$0xff]   ;;  %2095 = vperm.xlu0 %4670, %v2088_v24   ;;  %v4703_v27 = vld [vmem:[%s4914_s22 + $0x20] sm:$0xff]   ;;  %vm2878_vm4 = vcmask 1044484   ;;  %vm2880_vm5 = vcmask 1045509   ;;  %vm2882_vm6 = vcmask 1046534  }
  0x16   : > { %2105 = vperm.xlu1 %4671, %v2090_v23   ;;  %v2091_v26 = vld [vmem:[%s405_s15 + $0x18] sm:$0xff]  ;;  %v4721_v29 = vld [vmem:[%s6598_s4 + $0x4] ss:$12 sps:$4 sm:$0xff]   ;;  %v2089_v30 = vld [vmem:[%s405_s15 + $0x8] sm:$0xff]  ;;  %vm2884_vm7 = vcmask 1047559   ;;  %vm2911_vm8 = vcmask 64512  }
  0x17   : > { %4640 = vmatpush1.bf16.msra.mxu1 %v4686_v6  ;;  %676 = vmatpush1.bf16.msra.mxu0 %v4686_v6  ;;  %v4719_v31 = vld [vmem:[%s6598_s4] ss:$12 sps:$4 sm:$0xff]   ;;  %v4723_v32 = vld [vmem:[%s6598_s4 + $0x50] ss:$12 sps:$4 sm:$0xff]   ;;  %v4724_v45 = vld [vmem:[%s6598_s4 + $0x38] ss:$12 sps:$4 sm:$0xff]  }
  0x18   : > { %4637 = vmatprep.subr.bf16.mxu1 %v4687_v7  ;;  %677 = vmatprep.subr.bf16.mxu0 %v4687_v7  ;;  %v4704_v34 = vld [vmem:[%s4914_s22 + $0x28] sm:$0xff]   ;;  %v4708_v35 = vld [vmem:[%s4914_s22 + $0x30] sm:$0xff]   ;;  %v4709_v36 = vld [vmem:[%s4914_s22 + $0x38] sm:$0xff]  }
  0x19   : > { %2100 = vperm.xlu0 %4670, %v2089_v30   ;;  %v4710_v37 = vld [vmem:[%s4914_s22 + $0x40] sm:$0xff]   ;;  %v4711_v39 = vld [vmem:[%s4914_s22 + $0x48] sm:$0xff]   ;;  %v4715_v40 = vld [vmem:[%s4914_s22 + $0x50] sm:$0xff]  }
  0x1a   : > { %2110 = vperm.xlu1 %4671, %v2091_v26   ;;  %v4716_v41 = vld [vmem:[%s4914_s22 + $0x58] sm:$0xff]   ;;  %v4717_v42 = vld [vmem:[%s4914_s22 + $0x60] sm:$0xff]   ;;  %v4718_v43 = vld [vmem:[%s4914_s22 + $0x68] sm:$0xff]  }
  0x1b   : > { %4641 = vmatpush1.bf16.msra.mxu1 %v4689_v8  ;;  %678 = vmatpush1.bf16.msra.mxu0 %v4689_v8  ;;  %v4722_v44 = vld [vmem:[%s4966_s25] sm:$0xff]   ;;  %v4725_v47 = vld [vmem:[%s4966_s25 + $0x8] sm:$0xff]  }
  0x1c   : > { %4582 = vmatprep.subr.bf16.mxu1 %v4691_v9  ;;  %v4726_v46 = vld [vmem:[%s6598_s4 + $0x20] ss:$12 sps:$4 sm:$0xff]   ;;  %v4727_v48 = vld [vmem:[%s6598_s4 + $0x8] ss:$12 sps:$4 sm:$0xff]  }
  0x1d   : > { %4672 = vset.pattern.permute.xlu0 %v4825_v33 }
  0x1e   : > { %4446 = vmatmul.mubr.msk.bf16.vlgmr.msra.gmra.mxu1 %vm614_vm0, %v4931_v10  ;;  %4432 = vmatmul.mubr.msk.bf16.vlgmr.msra.gmra.mxu0 %vm614_vm0, %v4692_v11 }
  0x1f   : > { %4583 = vmatpush3.bf16.msra.mxu1 %v4691_v9  ;;  %845 = vmatprep.mubr.bf16.mxu1 %v4824_v2 }
  0x20   : > { %4584 = vmatprep.subr.bf16.mxu1 %v4693_v12  ;;  %705 = vmatprep.mubr.bf16.mxu0 %v4824_v2 }
  0x21   : > { %4673 = vset.pattern.permute.xlu1 %v4825_v33  ;;  %2134 = vperm.xlu0 %4672, %v2088_v24  }
  0x22   : > { %2138 = vperm.xlu1 %4673, %v2089_v30  }
  0x23   : > { %4585 = vmatpush3.bf16.msra.mxu1 %v4693_v12 }
  0x24   : > { %4586 = vmatprep.subr.bf16.mxu1 %v4695_v13 }
  0x25   : > { %2146 = vperm.xlu0 %4672, %v2091_v26  }
  0x26   : > { %4447 = vmatmul.mubr.msk.bf16.gmra.mxu1 %vm614_vm0, %v4946_v14  ;;  %4433 = vmatmul.mubr.msk.bf16.gmra.mxu0 %vm614_vm0, %v4696_v15 }
  0x27   : > { %4587 = vmatpush3.bf16.msra.mxu1 %v4695_v13  ;;  %4590 = vmatprep.mubr.msk.bf16.mxu1 %vm614_vm0, %v4692_v11 }
  0x28   : > { %4588 = vmatprep.subr.bf16.mxu1 %v4697_v16  ;;  %715 = vmatprep.mubr.bf16.mxu0 %v4824_v2 }
  0x29   : > { %2142 = vperm.xlu1 %4673, %v2090_v23   ;;  %4675 = vset.pattern.permute.xlu0 %v4826_v38 }
  0x2a   : > { %2167 = vperm.xlu0 %4675, %v2089_v30  }
  0x2b   : > { %4589 = vmatpush3.bf16.msra.mxu1 %v4697_v16 }
  0x2c   : > { %1138 = vmatprep.subr.bf16.mxu1 %v4700_v17 }
  0x2d   : > { %4674 = vset.pattern.permute.xlu1 %v4826_v38 }
  0x2e   : > { %4591 = vmatmul.mubr.msk.bf16.vlgmr.msra.gmra.mxu1 %vm614_vm0, %v4696_v15  ;;  %4434 = vmatmul.mubr.msk.bf16.gmra.mxu0 %vm614_vm0, %v4701_v18 }
  0x2f   : > { %1139 = vmatpush1.bf16.msra.mxu1 %v4698_v19  ;;  %4594 = vmatprep.mubr.msk.bf16.mxu1 %vm614_vm0, %v4701_v18 }
  0x30   : > { %725 = vmatprep.mubr.bf16.mxu0 %v4824_v2  ;;  %1140 = vmatprep.subr.bf16.mxu1 %v4707_v20 }
  0x31   : > { %2163 = vperm.xlu1 %4674, %v2088_v24   ;;  %4676 = vset.pattern.permute.xlu0 %v4824_v2 }
  0x33   : > { %1141 = vmatpush1.bf16.msra.mxu1 %v4705_v21 }
  0x34   : > { %1142 = vmatprep.subr.bf16.mxu1 %v4714_v22 }
  0x35   : > { %2171 = vperm.xlu1 %4674, %v2090_v23  }
  0x36   : > { %4595 = vmatmul.mubr.msk.bf16.gmra.mxu1 %vm614_vm0, %v4702_v25  ;;  %4435 = vmatmul.mubr.msk.bf16.gmra.mxu0 %vm614_vm0, %v4702_v25 }
  0x37   : > { %4598 = vmatprep.mubr.msk.bf16.mxu1 %vm614_vm0, %v4703_v27  ;;  %735 = vmatprep.mubr.bf16.mxu0 %v4824_v2 }
  0x38   : > { %1143 = vmatpush1.bf16.msra.mxu1 %v4712_v28 }
  0x39   : > { %1144 = vmatprep.subr.bf16.mxu1 %v4721_v29  ;;  %2175 = vperm.xlu1 %4674, %v2091_v26  }
  0x3c   : > { %1145 = vmatpush1.bf16.msra.mxu1 %v4719_v31 }
  0x3d   : > { %4622 = vmatprep.subr.bf16.mxu1 %v4723_v32  ;;  %4677 = vset.pattern.permute.xlu1 %v4824_v2 }
  0x3e   : > { %4599 = vmatmul.mubr.msk.bf16.gmra.mxu1 %vm614_vm0, %v4704_v34  ;;  %4436 = vmatmul.mubr.msk.bf16.gmra.mxu0 %vm614_vm0, %v4703_v27 }
  0x3f   : > { %4602 = vmatprep.mubr.msk.bf16.mxu1 %vm614_vm0, %v4708_v35  ;;  %745 = vmatprep.mubr.bf16.mxu0 %v4824_v2 }
  0x46   : > { %4603 = vmatmul.mubr.msk.bf16.gmra.mxu1 %vm614_vm0, %v4709_v36  ;;  %4437 = vmatmul.mubr.msk.bf16.gmra.mxu0 %vm614_vm0, %v4704_v34 }
  0x47   : > { %4606 = vmatprep.mubr.msk.bf16.mxu1 %vm614_vm0, %v4710_v37  ;;  %755 = vmatprep.mubr.bf16.mxu0 %v4824_v2 }
  0x4e   : > { %4607 = vmatmul.mubr.msk.bf16.gmra.mxu1 %vm614_vm0, %v4711_v39  ;;  %4438 = vmatmul.mubr.msk.bf16.gmra.mxu0 %vm614_vm0, %v4708_v35 }
  0x4f   : > { %4610 = vmatprep.mubr.msk.bf16.mxu1 %vm614_vm0, %v4715_v40  ;;  %765 = vmatprep.mubr.bf16.mxu0 %v4824_v2 }
  0x56   : > { %4611 = vmatmul.mubr.msk.bf16.gmra.mxu1 %vm614_vm0, %v4716_v41  ;;  %4439 = vmatmul.mubr.msk.bf16.gmra.mxu0 %vm614_vm0, %v4709_v36 }
  0x57   : > { %4614 = vmatprep.mubr.msk.bf16.mxu1 %vm614_vm0, %v4717_v42  ;;  %775 = vmatprep.mubr.bf16.mxu0 %v4824_v2 }
  0x5e   : > { %4615 = vmatmul.mubr.msk.bf16.gmra.mxu1 %vm614_vm0, %v4718_v43  ;;  %4440 = vmatmul.mubr.msk.bf16.gmra.mxu0 %vm614_vm0, %v4710_v37 }
  0x5f   : > { %4618 = vmatprep.mubr.msk.bf16.mxu1 %vm614_vm0, %v4931_v10  ;;  %785 = vmatprep.mubr.bf16.mxu0 %v4824_v2 }
  0x66   : > { %4619 = vmatmul.mubr.msk.bf16.gmra.mxu1 %vm614_vm0, %v4946_v14  ;;  %4441 = vmatmul.mubr.msk.bf16.gmra.mxu0 %vm614_vm0, %v4711_v39 }
  0x67   : > { %1162 = vmatprep.mubr.bf16.mxu1 %v4824_v2  ;;  %795 = vmatprep.mubr.bf16.mxu0 %v4824_v2 }
  0x6e   : > { %4478 = vmatmul.mubr.msk.bf16.vlgmr.msra.gmra.mxu1 %vm614_vm0, %v4722_v44  ;;  %4442 = vmatmul.mubr.msk.bf16.gmra.mxu0 %vm614_vm0, %v4715_v40 }
  0x6f   : > { %4623 = vmatpush3.bf16.msra.mxu1 %v4723_v32  ;;  %1172 = vmatprep.mubr.bf16.mxu1 %v4824_v2 }
  0x70   : > { %4624 = vmatprep.subr.bf16.mxu1 %v4724_v45  ;;  %805 = vmatprep.mubr.bf16.mxu0 %v4824_v2 }
  0x73   : > { %4625 = vmatpush3.bf16.msra.mxu1 %v4724_v45 }
  0x74   : > { %4626 = vmatprep.subr.bf16.mxu1 %v4726_v46 }
  0x76   : > { %4479 = vmatmul.mubr.msk.bf16.gmra.mxu1 %vm614_vm0, %v4725_v47  ;;  %4443 = vmatmul.mubr.msk.bf16.gmra.mxu0 %vm614_vm0, %v4716_v41  ;;  %v4482_v41 = vld [vmem:[%s6600_s6] ss:$0 sm:$0xff] }
  0x77   : > { %4627 = vmatpush3.bf16.msra.mxu1 %v4726_v46  ;;  %4630 = vmatprep.mubr.msk.bf16.mxu1 %vm614_vm0, %v4722_v44 }
  0x78   : > { %4628 = vmatprep.subr.bf16.mxu1 %v4727_v48  ;;  %815 = vmatprep.mubr.bf16.mxu0 %v4824_v2 }
  0x7b   : > { %4629 = vmatpush3.bf16.msra.mxu1 %v4727_v48 }
  0x7e   : > { %4631 = vmatmul.mubr.msk.bf16.vlgmr.msra.gmra.mxu1 %vm614_vm0, %v4725_v47  ;;  %4444 = vmatmul.mubr.msk.bf16.gmra.mxu0 %vm614_vm0, %v4717_v42 }
  0x7f   : > { %825 = vmatprep.mubr.bf16.mxu0 %v4824_v2 }
  0x86   : > { %4445 = vmatmul.mubr.msk.bf16.gmra.mxu0 %vm614_vm0, %v4718_v43 }
  0x90   : > { %v2096_v28 = vpop.permute.xlu0 %2095 }
  0x91   : > { %v2106_v11 = vpop.permute.xlu1 %2105 }
  0x92   : > { %v2119_v48 = vmul.f32 %v4482_v41, %v2106_v11 }
  0x94   : > { %v2101_v36 = vpop.permute.xlu0 %2100 }
  0x95   : > { %v2111_v18 = vpop.permute.xlu1 %2110 }
  0x9c   : > { %v2135_v45 = vpop.permute.xlu0 %2134 }
  0x9d   : > { %v2139_v25 = vpop.permute.xlu1 %2138 }
  0xa4   : > { %v2143_v33 = vpop.permute.xlu1 %2142 }
  0xac   : > { %v2164_v42 = vpop.permute.xlu1 %2163 }
  0xde   : > { %v5067_v49 = vpop.f32.mrf.mxu1  ;;  %v5069_v50 = vpop.f32.mrf.mxu0 }
  0xdf   : > { %6664 = vst [vmem:[#allocation2_spill] sm:$0xff] %v5067_v49 }
  0xe0   : > { %v5071_v51 = vpop.f32.mrf.mxu1  ;;  %v5073_v52 = vpop.f32.mrf.mxu0 }
  0xe1   : > { %6665 = vst [vmem:[#allocation3_spill] sm:$0xff] %v5071_v51 }
  0xe2   : > { %v5075_v53 = vpop.f32.mrf.mxu1  ;;  %v5077_v54 = vpop.f32.mrf.mxu0 }
  0xe3   : > { %6666 = vst [vmem:[#allocation4_spill] sm:$0xff] %v5075_v53 }
  0xe4   : > { %v5079_v55 = vpop.f32.mrf.mxu1  ;;  %v5081_v56 = vpop.f32.mrf.mxu0 }
  0xe5   : > { %6667 = vst [vmem:[#allocation5_spill] sm:$0xff] %v5079_v55 }
  0xe6   : > { %v5083_v57 = vpop.f32.mrf.mxu1  ;;  %v5085_v58 = vpop.f32.mrf.mxu0 }
  0xe7   : > { %6668 = vst [vmem:[#allocation6_spill] sm:$0xff] %v5083_v57  ;;  %6669 = vst [vmem:[#allocation7_spill] sm:$0xff] %v5085_v58 }
  0xe8   : > { %v5087_v59 = vpop.f32.mrf.mxu1  ;;  %v5089_v60 = vpop.f32.mrf.mxu0 }
  0xe9   : > { %6670 = vst [vmem:[#allocation8_spill] sm:$0xff] %v5087_v59  ;;  %6671 = vst [vmem:[#allocation9_spill] sm:$0xff] %v5089_v60 }
  0xea   : > { %v5091_v61 = vpop.f32.mrf.mxu1  ;;  %v5093_v62 = vpop.f32.mrf.mxu0 }
  0xeb   : > { %6672 = vst [vmem:[#allocation10_spill] sm:$0xff] %v5091_v61  ;;  %6673 = vst [vmem:[#allocation11_spill] sm:$0xff] %v5093_v62 }
  0xec   : > { %v5095_v63 = vpop.f32.mrf.mxu1  ;;  %v5097_v0 = vpop.f32.mrf.mxu0 }
  0xed   : > { %6674 = vst [vmem:[#allocation12_spill] sm:$0xff] %v5095_v63  ;;  %6675 = vst [vmem:[#allocation13_spill] sm:$0xff] %v5097_v0 }
  0xee   : > { %v5099_v1 = vpop.f32.mrf.mxu1  ;;  %v5101_v2 = vpop.f32.mrf.mxu0 }
  0xef   : > { %6676 = vst [vmem:[#allocation14_spill] sm:$0xff] %v5099_v1  ;;  %6677 = vst [vmem:[#allocation15_spill] sm:$0xff] %v5101_v2  ;;  %v4485_v1 = vld [vmem:[%s6600_s6 + $0x2] ss:$0 sm:$0xff] }
  0xf0   : > { %v5103_v3 = vpop.f32.mrf.mxu1  ;;  %v5105_v4 = vpop.f32.mrf.mxu0 }
  0xf1   : > { %6678 = vst [vmem:[#allocation16_spill] sm:$0xff] %v5103_v3  ;;  %6679 = vst [vmem:[#allocation17_spill] sm:$0xff] %v5105_v4  ;;  %v2147_v3 = vpop.permute.xlu0 %2146 }
  0xf2   : > { %v5107_v5 = vpop.f32.mrf.mxu1  ;;  %v5109_v6 = vpop.f32.mrf.mxu0 }
  0xf3   : > { %6680 = vst [vmem:[#allocation18_spill] sm:$0xff] %v5107_v5  ;;  %6681 = vst [vmem:[#allocation19_spill] sm:$0xff] %v5109_v6  ;;  %v2120_v5 = vmul.f32 %v4482_v41, %v2111_v18 }
  0xf4   : > { %v5111_v7 = vpop.f32.mrf.mxu1  ;;  %v5113_v8 = vpop.f32.mrf.mxu0 }
  0xf5   : > { %6682 = vst [vmem:[#allocation20_spill] sm:$0xff] %v5111_v7  ;;  %6683 = vst [vmem:[#allocation21_spill] sm:$0xff] %v5113_v8 }
  0xf6   : > { %v5115_v9 = vpop.f32.mrf.mxu1  ;;  %v5117_v10 = vpop.f32.mrf.mxu0 }
  0xf7   : > { %6684 = vst [vmem:[#allocation22_spill] sm:$0xff] %v5115_v9  ;;  %6685 = vst [vmem:[#allocation23_spill] sm:$0xff] %v5117_v10 }
  0xf8   : > { %v5119_v12 = vpop.f32.mrf.mxu1  ;;  %v5121_v13 = vpop.f32.mrf.mxu0 }
  0xf9   : > { %6686 = vst [vmem:[#allocation24_spill] sm:$0xff] %v5119_v12  ;;  %6687 = vst [vmem:[#allocation25_spill] sm:$0xff] %v5121_v13  ;;  %v6603_v12 = vlaneseq }
  0xfa   : > { %v5123_v14 = vpop.f32.mrf.mxu1  ;;  %v5125_v15 = vpop.f32.mrf.mxu0 }
  0xfb   : > { %6688 = vst [vmem:[#allocation26_spill] sm:$0xff] %v5123_v14  ;;  %6689 = vst [vmem:[#allocation27_spill] sm:$0xff] %v5125_v15  ;;  %v5204_v61 = vshrl.u32 %v6603_v12, 7 }
  0xfc   : > { %v5127_v16 = vpop.f32.mrf.mxu1  ;;  %v5129_v17 = vpop.f32.mrf.mxu0 }
  0xfd   : > { %6690 = vst [vmem:[#allocation28_spill] sm:$0xff] %v5127_v16  ;;  %6691 = vst [vmem:[#allocation29_spill] sm:$0xff] %v5129_v17 }
  0xfe   : > { %v5131_v19 = vpop.f32.mrf.mxu1  ;;  %v5133_v20 = vpop.f32.mrf.mxu0  ;;  %6718 = vst [vmem:[#allocation56_spill] sm:$0xff] %v5204_v61 }
  0xff   : > { %6692 = vst [vmem:[#allocation30_spill] sm:$0xff] %v5131_v19  ;;  %v2117_v19 = vmul.f32 %v4482_v41, %v2096_v28  ;;  %v2118_v28 = vmul.f32 %v4482_v41, %v2101_v36 }
 0x100   : > { %v5135_v21 = vpop.f32.mrf.mxu1  ;;  %v5137_v22 = vpop.f32.mrf.mxu0 }
 0x101   : > { %6693 = vst [vmem:[#allocation31_spill] sm:$0xff] %v5135_v21 }
 0x102   : > { %v5139_v23 = vpop.f32.mrf.mxu1  ;;  %v5141_v24 = vpop.f32.mrf.mxu0 }
 0x103   : > { %6694 = vst [vmem:[#allocation32_spill] sm:$0xff] %v5139_v23  ;;  %v4827_v23 = vmov 1966171168  }
 0x104   : > { %v5143_v26 = vpop.f32.mrf.mxu1  ;;  %v5145_v27 = vpop.f32.mrf.mxu0  ;;  %v1248_v21 = vunpack.c.l.s4 %v4827_v23 }
 0x105   : > { %6695 = vst [vmem:[#allocation33_spill] sm:$0xff] %v5143_v26  ;;  %v2172_v26 = vpop.permute.xlu1 %2171 }
 0x106   : > { %v5147_v29 = vpop.f32.mrf.mxu1  ;;  %v5149_v30 = vpop.f32.mrf.mxu0 }
 0x107   : > { %6696 = vst [vmem:[#allocation34_spill] sm:$0xff] %v5147_v29  ;;  %6697 = vst [vmem:[#allocation35_spill] sm:$0xff] %v5149_v30  ;;  %v4483_v29 = vld [vmem:[%s6601_s7] ss:$0 sm:$0xff] }
 0x108   : > { %v5151_v31 = vpop.f32.mrf.mxu1  ;;  %v5153_v32 = vpop.f32.mrf.mxu0  ;;  %v2130_v16 = vadd.f32 %v4483_v29, %v2119_v48  ;;  %v2128_v23 = vadd.f32 %v4483_v29, %v2117_v19  ;;  %v2131_v48 = vadd.f32 %v4483_v29, %v2120_v5  ;;  %v2129_v19 = vadd.f32 %v4483_v29, %v2118_v28 }
 0x109   : > { %6698 = vst [vmem:[#allocation36_spill] sm:$0xff] %v5151_v31  ;;  %6699 = vst [vmem:[#allocation37_spill] sm:$0xff] %v5153_v32  ;;  %v2168_v5 = vpop.permute.xlu0 %2167 }
 0x10a   : > { %v5155_v34 = vpop.f32.mrf.mxu1  ;;  %v5157_v35 = vpop.f32.mrf.mxu0 }
 0x10b   : > { %6700 = vst [vmem:[#allocation38_spill] sm:$0xff] %v5155_v34  ;;  %6701 = vst [vmem:[#allocation39_spill] sm:$0xff] %v5157_v35  ;;  %v4484_v34 = vld [vmem:[%s6600_s6 + $0x1] ss:$0 sm:$0xff] }
 0x10c   : > { %v5159_v37 = vpop.f32.mrf.mxu1  ;;  %v5161_v38 = vpop.f32.mrf.mxu0  ;;  %v2155_v9 = vmul.f32 %v4484_v34, %v2143_v33  ;;  %v2184_v33 = vmul.f32 %v4485_v1, %v2172_v26  ;;  %v2156_v63 = vmul.f32 %v4484_v34, %v2147_v3  ;;  %v2154_v36 = vmul.f32 %v4484_v34, %v2139_v25 }
 0x10d   : > { %6702 = vst [vmem:[#allocation40_spill] sm:$0xff] %v5159_v37  ;;  %6703 = vst [vmem:[#allocation41_spill] sm:$0xff] %v5161_v38  ;;  %v2182_v3 = vmul.f32 %v4485_v1, %v2164_v42  ;;  %v2183_v25 = vmul.f32 %v4485_v1, %v2168_v5 }
 0x10e   : > { %v5163_v39 = vpop.f32.mrf.mxu1  ;;  %v5165_v40 = vpop.f32.mrf.mxu0  ;;  %v2159_v18 = vadd.f32 %v2155_v9, %v2130_v16  ;;  %v2160_v26 = vadd.f32 %v2156_v63, %v2131_v48 }
 0x10f   : > { %6704 = vst [vmem:[#allocation42_spill] sm:$0xff] %v5163_v39  ;;  %6705 = vst [vmem:[#allocation43_spill] sm:$0xff] %v5165_v40  ;;  %v1249_v39 = vunpack.c.0.s8 %v1248_v21 }
 0x110   : > { %v5170_v43 = vpop.f32.mrf.mxu1  ;;  %v5172_v44 = vpop.f32.mrf.mxu0  ;;  %v2188_v16 = vadd.f32 %v2184_v33, %v2159_v18 }
 0x111   : > { %6706 = vst [vmem:[#allocation44_spill] sm:$0xff] %v5170_v43  ;;  %6707 = vst [vmem:[#allocation45_spill] sm:$0xff] %v5172_v44  ;;  %v2153_v43 = vmul.f32 %v4484_v34, %v2135_v45  ;;  %v5211_v21 = vsub.s32 %v1249_v39, %v5204_v61 }
 0x112   : > { %v5174_v46 = vpop.f32.mrf.mxu1  ;;  %v5176_v47 = vpop.f32.mrf.mxu0 }
 0x113   : > { %6708 = vst [vmem:[#allocation46_spill] sm:$0xff] %v5174_v46  ;;  %6709 = vst [vmem:[#allocation47_spill] sm:$0xff] %v5176_v47  ;;  %v2157_v41 = vadd.f32 %v2153_v43, %v2128_v23  ;;  %v2299_v43 = vrot.slane %v2188_v16, %v5211_v21 }
 0x114   : > { %v5184_v31 = vpop.f32.mrf.mxu1  ;;  %v5186_v37 = vpop.f32.mrf.mxu0 }
 0x115   : > { %6710 = vst [vmem:[#allocation48_spill] sm:$0xff] %v5184_v31  ;;  %6711 = vst [vmem:[#allocation49_spill] sm:$0xff] %v5186_v37  ;;  %v2186_v39 = vadd.f32 %v2182_v3, %v2157_v41  ;;  %v2307_v33 = vcombine.high %v2299_v43, %v2299_v43 }
 0x116   : > { %v5188_v14 = vpop.f32.mrf.mxu1  ;;  %v5190_v11 = vpop.f32.mrf.mxu0 }
 0x117   : > { %6712 = vst [vmem:[#allocation50_spill] sm:$0xff] %v5188_v14  ;;  %6713 = vst [vmem:[#allocation51_spill] sm:$0xff] %v5190_v11  ;;  %v2176_v11 = vpop.permute.xlu1 %2175 }
 0x118   : > { %v5195_v7 = vpop.f32.mrf.mxu1  ;;  %v5197_v46 = vpop.f32.mrf.mxu0  ;;  %v2185_v12 = vmul.f32 %v4485_v1, %v2176_v11  ;;  %v2292_v11 = vcombine.high %v2188_v16, %v2188_v16  ;;  %v2201_v1 = vrot.slane %v2186_v39, %v5211_v21  ;;  %v1033_v16 = vld [vmem:[%s6599_s5] sm:$0x7] }
 0x119   : > { %6714 = vst [vmem:[#allocation52_spill] sm:$0xff] %v5195_v7  ;;  %6715 = vst [vmem:[#allocation53_spill] sm:$0xff] %v5197_v46 }
 0x11a   : > { %v5199_v14 = vpop.f32.mrf.mxu1  ;;  %v5201_v31 = vpop.f32.mrf.mxu0  ;;  %v2189_v28 = vadd.f32 %v2185_v12, %v2160_v26  ;;  %v5241_v12 = vsub.s32 0, %v5204_v61  ;;  %v2306_v3 = vrot.slane %v2292_v11, %v5211_v21  ;;  %v5249_v26 = vsub.s32 1, %v5204_v61 }
 0x11b   : > { %6716 = vst [vmem:[#allocation54_spill] sm:$0xff] %v5199_v14  ;;  %6717 = vst [vmem:[#allocation55_spill] sm:$0xff] %v5201_v31  ;;  %v2158_v31 = vadd.f32 %v2154_v36, %v2129_v19  ;;  %v2217_v47 = vrot.slane %v2201_v1, %v5211_v21 }
 0x11c   : > { %v5206_v57 = vpop.f32.mrf.mxu1  ;;  %v5208_v7 = vpop.f32.mrf.mxu0  ;;  %v2348_v36 = vrot.slane %v2189_v28, %v5211_v21  ;;  %6727 = vst [vmem:[#allocation65_spill] sm:$0xff] %v5241_v12  ;;  %v2341_v5 = vcombine.high %v2189_v28, %v2189_v28  ;;  %6728 = vst [vmem:[#allocation66_spill] sm:$0xff] %v5249_v26  ;;  %v2329_v28 = vrot.slane %v2307_v33, %v5211_v21 }
 0x11d   : > { %6719 = vst [vmem:[#allocation57_spill] sm:$0xff] %v5206_v57  ;;  %6720 = vst [vmem:[#allocation58_spill] sm:$0xff] %v5208_v7  ;;  %v2187_v63 = vadd.f32 %v2183_v25, %v2158_v31  ;;  %v2315_v25 = vrot.slane %v2299_v43, %v5211_v21  ;;  %v2194_v7 = vcombine.high %v2186_v39, %v2186_v39 }
 0x11e   : > { %v5213_v45 = vpop.f32.mrf.mxu1  ;;  %v5215_v9 = vpop.f32.mrf.mxu0  ;;  %v5266_v43 = vrot.slane %v1033_v16, %v5241_v12  ;;  %v5271_v33 = vrot.slane %v1033_v16, %v5249_v26  ;;  %v2308_v40 = vcombine.high %v2306_v3, %v2306_v3  ;;  %v5295_v38 = vrot.slane %v2329_v28, %v5241_v12 }
 0x11f   : > { %6721 = vst [vmem:[#allocation59_spill] sm:$0xff] %v5213_v45  ;;  %v2250_v31 = vrot.slane %v2187_v63, %v5211_v21  ;;  %v2364_v45 = vrot.slane %v2348_v36, %v5211_v21  ;;  %v2243_v11 = vcombine.high %v2187_v63, %v2187_v63  ;;  %v2337_v63 = vcombine.high %v2315_v25, %v2315_v25 }
 0x120   : > { %v5217_v14 = vpop.f32.mrf.mxu1  ;;  %v5219_v57 = vpop.f32.mrf.mxu0  ;;  %v5288_v44 = vrot.slane %v2315_v25, %v5241_v12  ;;  %6734 = vst [vmem:[#allocation72_spill] sm:$0xff] %v5295_v38 }
 0x121   : > { %6722 = vst [vmem:[#allocation60_spill] sm:$0xff] %v5217_v14  ;;  %v5259_v14 = vsub.s32 2, %v5204_v61  ;;  %v2266_v59 = vrot.slane %v2250_v31, %v5211_v21  ;;  %v2322_v61 = vrot.slane %v2306_v3, %v5211_v21  ;;  %v2257_v37 = vrot.slane %v2243_v11, %v5211_v21 }
 0x122   : > { %v5221_v29 = vpop.f32.mrf.mxu1  ;;  %v5223_v34 = vpop.f32.mrf.mxu0  ;;  %6732 = vst [vmem:[#allocation70_spill] sm:$0xff] %v5288_v44 }
 0x123   : > { %6723 = vst [vmem:[#allocation61_spill] sm:$0xff] %v5221_v29  ;;  %v2209_v29 = vcombine.high %v2201_v1, %v2201_v1  ;;  %6730 = vst [vmem:[#allocation68_spill] sm:$0xff] %v5259_v14  ;;  %v5283_v13 = vrot.slane %v1033_v16, %v5259_v14  ;;  %v2208_v1 = vrot.slane %v2194_v7, %v5211_v21 }
 0x124   : > { %v5226_v23 = vpop.f32.mrf.mxu1  ;;  %v5228_v42 = vpop.f32.mrf.mxu0  ;;  %v5298_v16 = vrot.slane %v2337_v63, %v5241_v12  ;;  %v5301_v3 = vrot.slane %v2322_v61, %v5241_v12  ;;  %v5312_v7 = vrot.slane %v2217_v47, %v5241_v12  ;;  %v2288_v58 = vcombine.high %v2266_v59, %v2266_v59 }
 0x125   : > { %6724 = vst [vmem:[#allocation62_spill] sm:$0xff] %v5226_v23  ;;  %v2231_v17 = vrot.slane %v2209_v29, %v5211_v21  ;;  %v2210_v55 = vcombine.high %v2208_v1, %v2208_v1  ;;  %v2259_v0 = vcombine.high %v2257_v37, %v2257_v37  ;;  %v2338_v49 = vcombine.high %v2322_v61, %v2322_v61 }
 0x126   : > { %v5230_v48 = vpop.f32.mrf.mxu1  ;;  %v5232_v18 = vpop.f32.mrf.mxu0 }
 0x127   : > { %6725 = vst [vmem:[#allocation63_spill] sm:$0xff] %v5230_v48  ;;  %v5309_v2 = vrot.slane %v2231_v17, %v5241_v12  ;;  %v2241_v60 = vcombine.high %v2231_v17, %v2231_v17  ;;  %v5356_v17 = vrot.slane %v2210_v55, %v5211_v21 }
 0x128   : > { %v5236_v19 = vpop.f32.mrf.mxu1  ;;  %v5238_v41 = vpop.f32.mrf.mxu0 }
 0x129   : > { %6726 = vst [vmem:[#allocation64_spill] sm:$0xff] %v5236_v19  ;;  %v2356_v19 = vcombine.high %v2348_v36, %v2348_v36  ;;  %v2258_v36 = vcombine.high %v2250_v31, %v2250_v31  ;;  %v2386_v31 = vcombine.high %v2364_v45, %v2364_v45 }
 0x12a   : > { %v5252_v23 = vpop.f32.mrf.mxu1  ;;  %v5254_v48 = vpop.f32.mrf.mxu0 }
 0x12b   : > { %6729 = vst [vmem:[#allocation67_spill] sm:$0xff] %v5252_v23  ;;  %v2355_v23 = vrot.slane %v2341_v5, %v5211_v21  ;;  %v2339_v5 = vcombine.high %v2329_v28, %v2329_v28  ;;  %v2280_v11 = vrot.slane %v2258_v36, %v5211_v21  ;;  %v5321_v8 = vrot.slane %v2386_v31, %v5241_v12 }
 0x12c   : > { %v5261_v15 = vpop.f32.mrf.mxu1  ;;  %v5263_v46 = vpop.f32.mrf.mxu0  ;;  %v2336_v36 = vrot.slane %v2308_v40, %v5211_v21  ;;  %v2239_v31 = vcombine.high %v2217_v47, %v2217_v47 }
 0x12d   : > { %6731 = vst [vmem:[#allocation69_spill] sm:$0xff] %v5261_v15  ;;  %v2378_v15 = vrot.slane %v2356_v19, %v5211_v21  ;;  %v5291_v19 = vrot.slane %v2266_v59, %v5241_v12  ;;  %v2357_v29 = vcombine.high %v2355_v23, %v2355_v23  ;;  %v5315_v28 = vrot.slane %v2339_v5, %v5241_v12 }
 0x12e   : > { %v5274_v10 = vpop.f32.mrf.mxu1  ;;  %v5276_v39 = vpop.f32.mrf.mxu0  ;;  %6737 = vst [vmem:[#allocation75_spill] sm:$0xff] %v5321_v8  ;;  %v2371_v32 = vrot.slane %v2355_v23, %v5211_v21  ;;  %v5329_v5 = vrot.slane %v2280_v11, %v5241_v12  ;;  %v2290_v59 = vcombine.high %v2280_v11, %v2280_v11  ;;  %v5360_v11 = vrot.slane %v2239_v31, %v5241_v12 }
 0x12f   : > { %6733 = vst [vmem:[#allocation71_spill] sm:$0xff] %v5291_v19  ;;  %v2388_v6 = vcombine.high %v2378_v15, %v2378_v15  ;;  %v5318_v63 = vrot.slane %v2378_v15, %v5241_v12  ;;  %v2385_v4 = vrot.slane %v2357_v29, %v5211_v21  ;;  %v5332_v15 = vrot.slane %v2364_v45, %v5241_v12 }
 0x130   : > { %v1166_v35 = vpop.f32.mrf.mxu1  ;;  %v5285_v30 = vpop.f32.mrf.mxu0  ;;  %6738 = vst [vmem:[#allocation76_spill] sm:$0xff] %v5329_v5  ;;  %v2224_v29 = vrot.slane %v2208_v1, %v5211_v21  ;;  %v5344_v5 = vrot.slane %v2371_v32, %v5241_v12  ;;  %v2273_v45 = vrot.slane %v2257_v37, %v5211_v21  ;;  %v2387_v47 = vcombine.high %v2371_v32, %v2371_v32 }
 0x131   : > { %6736 = vst [vmem:[#allocation74_spill] sm:$0xff] %v5318_v63  ;;  %6739 = vst [vmem:[#allocation77_spill] sm:$0xff] %v5332_v15  ;;  %v5337_v23 = vrot.slane %v2388_v6, %v5241_v12  ;;  %v5353_v6 = vrot.slane %v2288_v58, %v5241_v12  ;;  %v2287_v1 = vrot.slane %v2259_v0, %v5211_v21 }
 0x132   : > { %v5304_v14 = vpop.f32.mrf.mxu1  ;;  %v5306_v25 = vpop.f32.mrf.mxu0  ;;  %6743 = vst [vmem:[#allocation81_spill] sm:$0xff] %v5344_v5  ;;  %6747 = vst [vmem:[#allocation85_spill] sm:$0xff] %v5360_v11  ;;  %v5363_v37 = vrot.slane %v2338_v49, %v5241_v12  ;;  %v2340_v32 = vcombine.high %v2336_v36, %v2336_v36  ;;  %v2389_v5 = vcombine.high %v2385_v4, %v2385_v4 }
 0x133   : > { %6735 = vst [vmem:[#allocation73_spill] sm:$0xff] %v5306_v25  ;;  %6741 = vst [vmem:[#allocation79_spill] sm:$0xff] %v5337_v23  ;;  %v5341_v25 = vrot.slane %v2336_v36, %v5241_v12  ;;  %v5369_v58 = vrot.slane %v2241_v60, %v5241_v12  ;;  %v5372_v55 = vrot.slane %v2290_v59, %v5241_v12 }
 0x134   : > { %v1170_v53 = vpop.f32.mrf.mxu1  ;;  %v5325_v62 = vpop.f32.mrf.mxu0  ;;  %6746 = vst [vmem:[#allocation84_spill] sm:$0xff] %v5353_v6  ;;  %6748 = vst [vmem:[#allocation86_spill] sm:$0xff] %v5363_v37  ;;  %v2240_v0 = vcombine.high %v2224_v29, %v2224_v29  ;;  %v5375_v31 = vrot.slane %v2224_v29, %v5241_v12  ;;  %v5378_v49 = vrot.slane %v2273_v45, %v5241_v12 }
 0x135   : > { %6742 = vst [vmem:[#allocation80_spill] sm:$0xff] %v5341_v25  ;;  %6750 = vst [vmem:[#allocation88_spill] sm:$0xff] %v5369_v58  ;;  %v2289_v36 = vcombine.high %v2273_v45, %v2273_v45  ;;  %v5389_v59 = vrot.slane %v5356_v17, %v5241_v12  ;;  %v2291_v29 = vcombine.high %v2287_v1, %v2287_v1 }
 0x136   : > { %v1174_v51 = vpop.f32.mrf.mxu1  ;;  %v5334_v40 = vpop.f32.mrf.mxu0  ;;  %6751 = vst [vmem:[#allocation89_spill] sm:$0xff] %v5372_v55  ;;  %6752 = vst [vmem:[#allocation90_spill] sm:$0xff] %v5375_v31  ;;  %v1171_v55 = vadd.f32 %v1170_v53, %v5271_v33  ;;  %v1169_v53 = vadd.f32 %v5304_v14, %v5266_v43 }
 0x137   : > { %6740 = vst [vmem:[#allocation78_spill] sm:$0xff] %v5334_v40  ;;  %v5350_v40 = vrot.slane %v2385_v4, %v5241_v12  ;;  %6753 = vst [vmem:[#allocation91_spill] sm:$0xff] %v5378_v49  ;;  %v5381_v4 = vrot.slane %v2387_v47, %v5241_v12  ;;  %v5393_v49 = vrot.slane %v2287_v1, %v5241_v12 }
 0x138   : > { %v1176_v61 = vpop.f32.mrf.mxu1  ;;  %v5347_v15 = vpop.f32.mrf.mxu0  ;;  %6756 = vst [vmem:[#allocation94_spill] sm:$0xff] %v5389_v59  ;;  %v5396_v47 = vrot.slane %v2340_v32, %v5241_v12  ;;  %v5406_v59 = vrot.slane %v2240_v0, %v5241_v12  ;;  %v5420_v0 = vrot.slane %v2291_v29, %v5241_v12 }
 0x139   : > { %6744 = vst [vmem:[#allocation82_spill] sm:$0xff] %v5347_v15  ;;  %6745 = vst [vmem:[#allocation83_spill] sm:$0xff] %v5350_v40  ;;  %v1177_v15 = vadd.f32 %v1176_v61, %v5271_v33  ;;  %v1167_v61 = vadd.f32 %v1166_v35, %v5271_v33  ;;  %v5399_v35 = vrot.slane %v2389_v5, %v5241_v12 }
 0x13a   : > { %v1178_v25 = vpop.f32.mrf.mxu1  ;;  %v5366_v40 = vpop.f32.mrf.mxu0  ;;  %6754 = vst [vmem:[#allocation92_spill] sm:$0xff] %v5381_v4  ;;  %6757 = vst [vmem:[#allocation95_spill] sm:$0xff] %v5393_v49  ;;  %v5413_v5 = vrot.slane %v2289_v36, %v5241_v12  ;;  %v1311_v49 = vcombine.low %v1169_v53, %v1171_v55 }
 0x13b   : > { %6749 = vst [vmem:[#allocation87_spill] sm:$0xff] %v5366_v40  ;;  %v1175_v40 = vadd.f32 %v1174_v51, %v5266_v43  ;;  %6758 = vst [vmem:[#allocation96_spill] sm:$0xff] %v5396_v47  ;;  %v1165_v51 = vadd.f32 %v5274_v10, %v5266_v43  ;;  %v1179_v14 = vadd.f32 %v1178_v25, %v5266_v43 }
 0x13c   : > { %v1180_v60 = vpop.f32.mrf.mxu1  ;;  %v5385_v37 = vpop.f32.mrf.mxu0  ;;  %6759 = vst [vmem:[#allocation97_spill] sm:$0xff] %v5399_v35  ;;  %6761 = vst [vmem:[#allocation99_spill] sm:$0xff] %v5406_v59 }
 0x13d   : > { %6755 = vst [vmem:[#allocation93_spill] sm:$0xff] %v5385_v37  ;;  %v1378_v45 = vcombine.low %v1175_v40, %v1177_v15  ;;  %v1379_v4 = vcombine.high %v1175_v40, %v1177_v15  ;;  %v1181_v1 = vadd.f32 %v1180_v60, %v5271_v33  ;;  %6762 = vst [vmem:[#allocation100_spill] sm:$0xff] %v5413_v5 }
 0x13e   : > { %v4632_v37 = vpop.f32.mrf.mxu1  ;;  %v5403_v6 = vpop.f32.mrf.mxu0  ;;  %v1244_v35 = vcombine.low %v1165_v51, %v1167_v61  ;;  %v1245_v10 = vcombine.high %v1165_v51, %v1167_v61  ;;  %v2242_v40 = vcombine.high %v5356_v17, %v5356_v17  ;;  %6764 = vst [vmem:[#allocation102_spill] sm:$0xff] %v5420_v0  ;;  %v1312_v60 = vcombine.high %v1169_v53, %v1171_v55 }
 0x13f   : > { %6760 = vst [vmem:[#allocation98_spill] sm:$0xff] %v5403_v6  ;;  %v1226_v32 = vadd.f32 %v4632_v37, %v5283_v13  ;;  %v1387_v36 = vrot.slane %v1378_v45, %v5211_v21  ;;  %v1394_v61 = vrot.slane %v1379_v4, %v5211_v21  ;;  %v1445_v59 = vcombine.low %v1179_v14, %v1181_v1 }
 0x140   : > { %v1217_v47 = vpop.f32.mrf.mxu1  ;;  %v5415_v15 = vpop.f32.mrf.mxu0  ;;  %v1446_v31 = vcombine.high %v1179_v14, %v1181_v1  ;;  %v1253_v45 = vrot.slane %v1244_v35, %v5211_v21  ;;  %v1260_v4 = vrot.slane %v1245_v10, %v5211_v21  ;;  %v5434_v53 = vrot.slane %v2242_v40, %v5241_v12 }
 0x141   : > { %6763 = vst [vmem:[#allocation101_spill] sm:$0xff] %v5415_v15  ;;  %v1380_v33 = vcombine.high %v1226_v32, %v1226_v32  ;;  %v1401_v37 = vrot.slane %v1226_v32, %v5211_v21  ;;  %v1218_v51 = vadd.f32 %v1217_v47, %v5283_v13  ;;  %v1320_v47 = vrot.slane %v1311_v49, %v5211_v21 }
 0x142   : > { %v4633_v5 = vpop.f32.mrf.mxu1  ;;  %v821_v32 = vpop.f32.mrf.mxu0  ;;  %6765 = vst [vmem:[#allocation103_spill] sm:$0xff] %v5434_v53  ;;  %v1327_v1 = vrot.slane %v1312_v60, %v5211_v21  ;;  %v1461_v10 = vrot.slane %v1446_v31, %v5211_v21 }
 0x143   : > { %v1408_v17 = vrot.slane %v1380_v33, %v5211_v21  ;;  %v1229_v29 = vadd.f32 %v4633_v5, %v5283_v13  ;;  %v1409_v0 = vcombine.low %v1387_v36, %v1401_v37  ;;  %v1410_v58 = vcombine.high %v1387_v36, %v1401_v37 }
 0x144   : > { %v1246_v43 = vcombine.high %v1218_v51, %v1218_v51  ;;  %v1267_v25 = vrot.slane %v1218_v51, %v5211_v21  ;;  %v1220_v55 = vpop.f32.mrf.mxu1  ;;  %v1454_v37 = vrot.slane %v1445_v59, %v5211_v21  ;;  %v823_v53 = vpop.f32.mrf.mxu0 }
 0x145   : > { %v1411_v14 = vcombine.low %v1394_v61, %v1408_v17  ;;  %v1447_v33 = vcombine.high %v1229_v29, %v1229_v29  ;;  %v1412_v36 = vcombine.high %v1394_v61, %v1408_v17  ;;  %v1468_v51 = vrot.slane %v1229_v29, %v5211_v21 }
 0x146   : > { %v1274_v5 = vrot.slane %v1246_v43, %v5211_v21  ;;  %v1221_v35 = vadd.f32 %v1220_v55, %v5283_v13  ;;  %v5443_v49 = vrot.slane %v1409_v0, %v5211_v21  ;;  %v5446_v40 = vrot.slane %v1410_v58, %v5211_v21 }
 0x147   : > { %v1275_v60 = vcombine.low %v1253_v45, %v1267_v25  ;;  %v1475_v43 = vrot.slane %v1447_v33, %v5211_v21  ;;  %v1476_v11 = vcombine.low %v1454_v37, %v1468_v51  ;;  %v1477_v6 = vcombine.high %v1454_v37, %v1468_v51 }
 0x148   : > { %v1313_v59 = vcombine.high %v1221_v35, %v1221_v35  ;;  %v5450_v61 = vrot.slane %v1411_v14, %v5211_v21  ;;  %v1276_v17 = vcombine.high %v1253_v45, %v1267_v25  ;;  %v1277_v13 = vcombine.low %v1260_v4, %v1274_v5  ;;  %v827_v14 = vpop.f32.mrf.mxu0 }
 0x149   : > { %v1334_v31 = vrot.slane %v1221_v35, %v5211_v21  ;;  %v5454_v0 = vrot.slane %v1412_v36, %v5211_v21  ;;  %v1278_v29 = vcombine.high %v1260_v4, %v1274_v5  ;;  %v5457_v58 = vrot.slane %v1476_v11, %v5211_v21 }
 0x14a   : > { %v5460_v55 = vrot.slane %v1477_v6, %v5211_v21  ;;  %v1478_v33 = vcombine.low %v1461_v10, %v1475_v43  ;;  %v1479_v37 = vcombine.high %v1461_v10, %v1475_v43  ;;  %v1341_v51 = vrot.slane %v1313_v59, %v5211_v21 }
 0x14b   : > { %v1711_v25 = vrot.slane %v5443_v49, %v5249_v26  ;;  %v1342_v36 = vcombine.low %v1320_v47, %v1334_v31  ;;  %v1343_v35 = vcombine.high %v1320_v47, %v1334_v31  ;;  %v5470_v4 = vrot.slane %v1275_v60, %v5211_v21 }
 0x14c   : > { %6766 = vst [vmem:[#allocation104_spill] sm:$0xff] %v5460_v55  ;;  %v1815_v45 = vrot.slane %v5460_v55, %v5241_v12  ;;  %v1819_v11 = vrot.slane %v5460_v55, %v5249_v26  ;;  %v5473_v6 = vrot.slane %v1277_v13, %v5211_v21  ;;  %v5476_v5 = vrot.slane %v1276_v17, %v5211_v21 }
 0x14d   : > { %v1707_v10 = vrot.slane %v5443_v49, %v5241_v12  ;;  %v5481_v43 = vrot.slane %v1278_v29, %v5211_v21  ;;  %v1344_v59 = vcombine.low %v1327_v1, %v1341_v51  ;;  %v1345_v47 = vcombine.high %v1327_v1, %v1341_v51 }
 0x14e   : > { %6767 = vst [vmem:[#allocation105_spill] sm:$0xff] %v5473_v6  ;;  %v5485_v31 = vcombine.high %v5457_v58, %v5457_v58  ;;  %v5488_v60 = vrot.slane %v1478_v33, %v5211_v21  ;;  %v2068_v13 = vadd.f32 %v1819_v11, %v823_v53  ;;  %v829_v6 = vpop.f32.mrf.mxu0  ;;  %v5492_v17 = vcombine.high %v5460_v55, %v5460_v55 }
 0x14f   : > { %6768 = vst [vmem:[#allocation106_spill] sm:$0xff] %v5481_v43  ;;  %v2041_v15 = vadd.f32 %v1711_v25, %v5219_v57  ;;  %v5496_v29 = vrot.slane %v1479_v37, %v5211_v21  ;;  %v5498_v43 = vadd.f32 %v1815_v45, %v821_v32  ;;  %v5501_v1 = vrot.slane %v1342_v36, %v5211_v21 }
 0x150   : > { %6769 = vst [vmem:[#allocation107_spill] sm:$0xff] %v5485_v31  ;;  %6770 = vst [vmem:[#allocation108_spill] sm:$0xff] %v5488_v60  ;;  %v5504_v51 = vrot.slane %v1343_v35, %v5211_v21  ;;  %v2040_v53 = vadd.f32 %v1707_v10, %v5215_v9  ;;  %v1719_v11 = vrot.slane %v5446_v40, %v5241_v12  ;;  %v831_v45 = vpop.f32.mrf.mxu0 }
 0x151   : > { %6771 = vst [vmem:[#allocation109_spill] sm:$0xff] %v5492_v17  ;;  %6772 = vst [vmem:[#allocation110_spill] sm:$0xff] %v5496_v29  ;;  %v2566_v33 = vadd.f32 %v5288_v44, %v2041_v15  ;;  %v1723_v57 = vrot.slane %v5446_v40, %v5249_v26  ;;  %v5513_v37 = vrot.slane %v1344_v59, %v5211_v21 }
 0x152   : > { %6773 = vst [vmem:[#allocation111_spill] sm:$0xff] %v5501_v1  ;;  %6774 = vst [vmem:[#allocation112_spill] sm:$0xff] %v5504_v51  ;;  %v5516_v32 = vrot.slane %v1345_v47, %v5211_v21  ;;  %v1827_v25 = vrot.slane %v5485_v31, %v5241_v12  ;;  %v1831_v9 = vrot.slane %v5485_v31, %v5249_v26 }
 0x153   : > { %6775 = vst [vmem:[#allocation113_spill] sm:$0xff] %v5513_v37  ;;  %v2575_v15 = vadd.f32 %v5318_v63, %v2068_v13  ;;  %v1839_v36 = vrot.slane %v5492_v17, %v5241_v12  ;;  %v2630_v35 = vmul.f32 %v2566_v33, %v2040_v53  ;;  %v2044_v10 = vadd.f32 %v1723_v57, %v5228_v42 }
 0x154   : > { %6776 = vst [vmem:[#allocation114_spill] sm:$0xff] %v5516_v32  ;;  %v1843_v59 = vrot.slane %v5492_v17, %v5249_v26  ;;  %v2043_v21 = vadd.f32 %v1719_v11, %v5223_v34  ;;  %v1527_v47 = vrot.slane %v5476_v5, %v5241_v12  ;;  %v1531_v55 = vrot.slane %v5476_v5, %v5249_v26 }
 0x155   : > { %2678 = vadd.xlane.f32.xlu1 %v2630_v35  ;;  %v2567_v13 = vadd.f32 %v5295_v38, %v2044_v10  ;;  %v1515_v63 = vrot.slane %v5470_v4, %v5241_v12  ;;  %v1519_v42 = vrot.slane %v5470_v4, %v5249_v26  ;;  %v5540_v53 = vcombine.high %v5443_v49, %v5443_v49  ;;  %v833_v35 = vpop.f32.mrf.mxu0 }
 0x156   : > { %v5542_v34 = vadd.f32 %v1827_v25, %v827_v14  ;;  %v2071_v33 = vadd.f32 %v1831_v9, %v829_v6  ;;  %v1996_v11 = vadd.f32 %v1531_v55, %v5081_v56  ;;  %v5547_v57 = vcombine.high %v5446_v40, %v5446_v40 }
 0x157   : > { %v2631_v10 = vmul.f32 %v2567_v13, %v2043_v21  ;;  %v1993_v17 = vadd.f32 %v1519_v42, %v5073_v52  ;;  %v1731_v31 = vrot.slane %v5540_v53, %v5241_v12  ;;  %v1735_v44 = vrot.slane %v5540_v53, %v5249_v26 }
 0x158   : > { %v2073_v38 = vadd.f32 %v1839_v36, %v831_v45  ;;  %v1995_v14 = vadd.f32 %v1527_v47, %v5077_v54  ;;  %v2551_v6 = vadd.f32 %v5309_v2, %v1996_v11  ;;  %v1747_v56 = vrot.slane %v5547_v57, %v5249_v26 }
 0x159   : > { %2680 = vadd.xlane.f32.xlu0 %v2631_v10  ;;  %v1992_v55 = vadd.f32 %v1515_v63, %v5069_v50  ;;  %v2550_v25 = vadd.f32 %v5312_v7, %v1993_v17  ;;  %v2047_v52 = vadd.f32 %v1735_v44, %v5238_v41  ;;  %v1615_v9 = vrot.slane %v5501_v1, %v5249_v26 }
 0x15a   : > { %v2074_v21 = vadd.f32 %v1843_v59, %v833_v35  ;;  %v2615_v13 = vmul.f32 %v2551_v6, %v1995_v14  ;;  %v1743_v54 = vrot.slane %v5547_v57, %v5241_v12  ;;  %v2050_v45 = vadd.f32 %v1747_v56, %v5263_v46 }
 0x15b   : > { %v2614_v36 = vmul.f32 %v2550_v25, %v1992_v55  ;;  %v2046_v47 = vadd.f32 %v1731_v31, %v5232_v18  ;;  %v2568_v42 = vadd.f32 %v5298_v16, %v2047_v52  ;;  %v2017_v50 = vadd.f32 %v1615_v9, %v5137_v22 }
 0x15c   : > { %2648 = vadd.xlane.f32.xlu1 %v2615_v13  ;;  %v1611_v44 = vrot.slane %v5501_v1, %v5241_v12  ;;  %v1755_v41 = vrot.slane %v5450_v61, %v5241_v12  ;;  %v1759_v63 = vrot.slane %v5450_v61, %v5249_v26  ;;  %v1627_v46 = vrot.slane %v5504_v51, %v5249_v26  ;;  %v6778_v13 = vld [vmem:[#allocation73_spill] sm:$0xff] }
 0x15d   : > { %v2576_v17 = vadd.f32 %v5321_v8, %v2071_v33  ;;  %2646 = vadd.xlane.f32.xlu0 %v2614_v36  ;;  %v2632_v18 = vmul.f32 %v2568_v42, %v2046_v47  ;;  %v2569_v31 = vadd.f32 %v5315_v28, %v2050_v45  ;;  %v1623_v22 = vrot.slane %v5504_v51, %v5241_v12  ;;  %v6825_v8 = vld [vmem:[#allocation99_spill] sm:$0xff] }
 0x15e   : > { %v2558_v59 = vadd.f32 %v5291_v19, %v2017_v50  ;;  %v2053_v11 = vadd.f32 %v1759_v63, %v5285_v30  ;;  %v2020_v35 = vadd.f32 %v1627_v46, %v5145_v27  ;;  %v1767_v10 = vrot.slane %v5454_v0, %v5241_v12  ;;  %v6780_v63 = vld [vmem:[#allocation80_spill] sm:$0xff]  ;;  %v6801_v19 = vld [vmem:[#allocation21_spill] sm:$0xff] }
 0x15f   : > { %v2577_v14 = vadd.f32 %v5337_v23, %v2074_v21  ;;  %v2639_v33 = vmul.f32 %v2575_v15, %v5498_v43  ;;  %v2049_v6 = vadd.f32 %v1743_v54, %v5254_v48  ;;  %v1771_v56 = vrot.slane %v5454_v0, %v5249_v26  ;;  %v6777_v21 = vld [vmem:[#allocation76_spill] sm:$0xff]  ;;  %v6779_v54 = vld [vmem:[#allocation101_spill] sm:$0xff] }
 0x160   : > { %2682 = vadd.xlane.f32.xlu1 %v2632_v18  ;;  %v2016_v55 = vadd.f32 %v1611_v44, %v5133_v20  ;;  %v2052_v25 = vadd.f32 %v1755_v41, %v5276_v39  ;;  %v2570_v30 = vadd.f32 %v5301_v3, %v2053_v11  ;;  %v1807_v27 = vrot.slane %v5457_v58, %v5249_v26 }
 0x161   : > { %2696 = vadd.xlane.f32.xlu0 %v2639_v33  ;;  %v2633_v52 = vmul.f32 %v2569_v31, %v2049_v6  ;;  %v2019_v9 = vadd.f32 %v1623_v22, %v5141_v24  ;;  %v2056_v43 = vadd.f32 %v1771_v56, %v5325_v62  ;;  %v5600_v48 = vcombine.high %v5470_v4, %v5470_v4  ;;  %v6781_v31 = vld [vmem:[#allocation9_spill] sm:$0xff]  ;;  %v6785_v6 = vld [vmem:[#allocation2_spill] sm:$0xff] }
 0x162   : > { %v2622_v15 = vmul.f32 %v2558_v59, %v2016_v55  ;;  %v2559_v20 = vadd.f32 %v6777_v21, %v2020_v35  ;;  %v2055_v39 = vadd.f32 %v1767_v10, %v6778_v13  ;;  %v2065_v45 = vadd.f32 %v1807_v27, %v6779_v54  ;;  %v6782_v59 = vld [vmem:[#allocation3_spill] sm:$0xff]  ;;  %v6783_v10 = vld [vmem:[#allocation77_spill] sm:$0xff] }
 0x163   : > { %v1803_v36 = vrot.slane %v5457_v58, %v5241_v12  ;;  %v1543_v47 = vrot.slane %v5600_v48, %v5249_v26  ;;  %v1851_v62 = vrot.slane %v5488_v60, %v5241_v12  ;;  %v1855_v24 = vrot.slane %v5488_v60, %v5249_v26 }
 0x164   : > { %2684 = vadd.xlane.f32.xlu1 %v2633_v52  ;;  %v2634_v42 = vmul.f32 %v2570_v30, %v2052_v25  ;;  %v2640_v50 = vmul.f32 %v2576_v17, %v5542_v34  ;;  %v2641_v44 = vmul.f32 %v2577_v14, %v2073_v38  ;;  %v5616_v41 = vcombine.high %v5476_v5, %v5476_v5  ;;  %v6784_v17 = vld [vmem:[#allocation98_spill] sm:$0xff]  ;;  %v6786_v30 = vld [vmem:[#allocation85_spill] sm:$0xff] }
 0x165   : > { %2662 = vadd.xlane.f32.xlu0 %v2622_v15  ;;  %v2571_v46 = vadd.f32 %v6780_v63, %v2056_v43  ;;  %v1539_v18 = vrot.slane %v5600_v48, %v5241_v12  ;;  %v1999_v22 = vadd.f32 %v1543_v47, %v6781_v31  ;;  %v2077_v11 = vadd.f32 %v1855_v24, %v6782_v59  ;;  %v6787_v52 = vld [vmem:[#allocation13_spill] sm:$0xff]  ;;  %v6793_v31 = vld [vmem:[#allocation88_spill] sm:$0xff] }
 0x166   : > { %v2623_v35 = vmul.f32 %v2559_v20, %v2019_v9  ;;  %v2574_v33 = vadd.f32 %v6783_v10, %v2065_v45  ;;  %v1555_v38 = vrot.slane %v5616_v41, %v5249_v26  ;;  %v1867_v34 = vrot.slane %v5496_v29, %v5249_v26  ;;  %v6788_v43 = vld [vmem:[#allocation5_spill] sm:$0xff]  ;;  %v6790_v45 = vld [vmem:[#allocation7_spill] sm:$0xff] }
 0x167   : > { %v2064_v14 = vadd.f32 %v1803_v36, %v6784_v17  ;;  %v2076_v56 = vadd.f32 %v1851_v62, %v6785_v6  ;;  %v1551_v55 = vrot.slane %v5616_v41, %v5241_v12  ;;  %v1863_v25 = vrot.slane %v5496_v29, %v5241_v12  ;;  %v6789_v20 = vld [vmem:[#allocation105_spill] sm:$0xff]  ;;  %v6795_v17 = vld [vmem:[#allocation83_spill] sm:$0xff] }
 0x168   : > { %2686 = vadd.xlane.f32.xlu1 %v2634_v42  ;;  %v2552_v27 = vadd.f32 %v6786_v30, %v1999_v22  ;;  %v2002_v9 = vadd.f32 %v1555_v38, %v6787_v52  ;;  %v2080_v15 = vadd.f32 %v1867_v34, %v6788_v43  ;;  %v1567_v13 = vrot.slane %v6789_v20, %v5249_v26  ;;  %v6791_v47 = vld [vmem:[#allocation81_spill] sm:$0xff]  ;;  %v6799_v52 = vld [vmem:[#allocation4_spill] sm:$0xff] }
 0x169   : > { %2664 = vadd.xlane.f32.xlu0 %v2623_v35  ;;  %v2635_v54 = vmul.f32 %v2571_v46, %v2055_v39  ;;  %v1998_v36 = vadd.f32 %v1539_v18, %v6790_v45  ;;  %v2578_v62 = vadd.f32 %v6791_v47, %v2077_v11  ;;  %v5643_v24 = vcombine.high %v5501_v1, %v5501_v1  ;;  %v6794_v38 = vld [vmem:[#allocation17_spill] sm:$0xff]  ;;  %v6796_v46 = vld [vmem:[#allocation106_spill] sm:$0xff] }
 0x16a   : > { %v2638_v42 = vmul.f32 %v2574_v33, %v2064_v14  ;;  %v2553_v22 = vadd.f32 %v6793_v31, %v2002_v9  ;;  %v1563_v59 = vrot.slane %v6789_v20, %v5241_v12  ;;  %v2005_v34 = vadd.f32 %v1567_v13, %v6794_v38  ;;  %v6798_v33 = vld [vmem:[#allocation11_spill] sm:$0xff]  ;;  %v6800_v45 = vld [vmem:[#allocation37_spill] sm:$0xff]  ;;  %v6841_v31 = vld [vmem:[#allocation10_spill] sm:$0xff] }
 0x16b   : > { %6792 = vst [vmem:[#allocation73_spill] sm:$0xff] %v5643_v24  ;;  %v2579_v6 = vadd.f32 %v6795_v17, %v2080_v15  ;;  %v1639_v39 = vrot.slane %v5643_v24, %v5249_v26  ;;  %v1579_v18 = vrot.slane %v6796_v46, %v5249_v26  ;;  %v5656_v11 = vcombine.high %v5504_v51, %v5504_v51  ;;  %v6802_v17 = vld [vmem:[#allocation90_spill] sm:$0xff]  ;;  %v6812_v47 = vld [vmem:[#allocation89_spill] sm:$0xff] }
 0x16c   : > { %2688 = vadd.xlane.f32.xlu1 %v2635_v54  ;;  %v2616_v35 = vmul.f32 %v2552_v27, %v1998_v36  ;;  %v2001_v14 = vadd.f32 %v1551_v55, %v6798_v33  ;;  %v2079_v9 = vadd.f32 %v1863_v25, %v6799_v52  ;;  %v1575_v43 = vrot.slane %v6796_v46, %v5241_v12  ;;  %v6803_v54 = vld [vmem:[#allocation15_spill] sm:$0xff] }
 0x16d   : > { %6797 = vst [vmem:[#allocation101_spill] sm:$0xff] %v5656_v11  ;;  %2698 = vadd.xlane.f32.xlu0 %v2640_v50  ;;  %v2642_v15 = vmul.f32 %v2578_v62, %v2076_v56  ;;  %v1635_v13 = vrot.slane %v5643_v24, %v5241_v12  ;;  %v2023_v38 = vadd.f32 %v1639_v39, %v6800_v45  ;;  %v6805_v39 = vld [vmem:[#allocation41_spill] sm:$0xff]  ;;  %v6806_v45 = vld [vmem:[#allocation84_spill] sm:$0xff]  ;;  %v6811_v24 = vld [vmem:[#allocation82_spill] sm:$0xff] }
 0x16e   : > { %v2008_v21 = vadd.f32 %v1579_v18, %v6801_v19  ;;  %v2554_v1 = vadd.f32 %v6802_v17, %v2005_v34  ;;  %v1647_v27 = vrot.slane %v5656_v11, %v5241_v12  ;;  %v1651_v55 = vrot.slane %v5656_v11, %v5249_v26  ;;  %v6804_v19 = vld [vmem:[#allocation19_spill] sm:$0xff] }
 0x16f   : > { %v5673_v25 = vcombine.high %v5450_v61, %v5450_v61  ;;  %v2617_v50 = vmul.f32 %v2553_v22, %v2001_v14  ;;  %v2643_v56 = vmul.f32 %v2579_v6, %v2079_v9  ;;  %v2004_v36 = vadd.f32 %v1563_v59, %v6803_v54  ;;  %v6807_v6 = vld [vmem:[#allocation94_spill] sm:$0xff]  ;;  %v6808_v59 = vld [vmem:[#allocation45_spill] sm:$0xff]  ;;  %v6809_v54 = vld [vmem:[#allocation35_spill] sm:$0xff] }
 0x170   : > { %v1663_v62 = vrot.slane %v5513_v37, %v5249_v26  ;;  %2694 = vadd.xlane.f32.xlu1 %v2638_v42  ;;  %v2007_v34 = vadd.f32 %v1575_v43, %v6804_v19  ;;  %v2026_v18 = vadd.f32 %v1651_v55, %v6805_v39  ;;  %v1659_v52 = vrot.slane %v5513_v37, %v5241_v12  ;;  %v6810_v19 = vld [vmem:[#allocation39_spill] sm:$0xff] }
 0x171   : > { %v1783_v33 = vrot.slane %v5673_v25, %v5249_v26  ;;  %2700 = vadd.xlane.f32.xlu0 %v2641_v44  ;;  %v2560_v22 = vadd.f32 %v6806_v45, %v2023_v38  ;;  %v2555_v14 = vadd.f32 %v6807_v6, %v2008_v21  ;;  %v5689_v42 = vcombine.high %v6789_v20, %v6789_v20 }
 0x172   : > { %v2029_v9 = vadd.f32 %v1663_v62, %v6808_v59  ;;  %v2618_v43 = vmul.f32 %v2554_v1, %v2004_v36  ;;  %v2022_v55 = vadd.f32 %v1635_v13, %v6809_v54  ;;  %v2025_v39 = vadd.f32 %v1647_v27, %v6810_v19  ;;  %v6813_v62 = vld [vmem:[#allocation43_spill] sm:$0xff]  ;;  %v6815_v59 = vld [vmem:[#allocation86_spill] sm:$0xff] }
 0x173   : > { %v2059_v11 = vadd.f32 %v1783_v33, %v6811_v24  ;;  %v2561_v23 = vadd.f32 %v6812_v47, %v2026_v18  ;;  %v1779_v44 = vrot.slane %v5673_v25, %v5241_v12  ;;  %v1591_v21 = vrot.slane %v5689_v42, %v5249_v26  ;;  %v6814_v36 = vld [vmem:[#allocation91_spill] sm:$0xff] }
 0x174   : > { %v1675_v38 = vrot.slane %v5516_v32, %v5249_v26  ;;  %2650 = vadd.xlane.f32.xlu1 %v2616_v35  ;;  %v2028_v1 = vadd.f32 %v1659_v52, %v6813_v62  ;;  %v2562_v13 = vadd.f32 %v6814_v36, %v2029_v9  ;;  %v1671_v27 = vrot.slane %v5516_v32, %v5241_v12  ;;  %v6816_v35 = vld [vmem:[#allocation25_spill] sm:$0xff] }
 0x175   : > { %v5707_v24 = vcombine.high %v6796_v46, %v6796_v46  ;;  %2702 = vadd.xlane.f32.xlu0 %v2642_v15  ;;  %v2624_v18 = vmul.f32 %v2560_v22, %v2022_v55  ;;  %v2619_v33 = vmul.f32 %v2555_v14, %v2007_v34  ;;  %v2572_v54 = vadd.f32 %v6815_v59, %v2059_v11  ;;  %v6817_v52 = vld [vmem:[#allocation49_spill] sm:$0xff]  ;;  %v6819_v15 = vld [vmem:[#allocation78_spill] sm:$0xff]  ;;  %v6822_v55 = vld [vmem:[#allocation47_spill] sm:$0xff] }
 0x176   : > { %v1587_v19 = vrot.slane %v5689_v42, %v5241_v12  ;;  %v2011_v45 = vadd.f32 %v1591_v21, %v6816_v35  ;;  %v2032_v62 = vadd.f32 %v1675_v38, %v6817_v52  ;;  %v5718_v36 = vcombine.high %v5488_v60, %v5488_v60  ;;  %v6823_v38 = vld [vmem:[#allocation29_spill] sm:$0xff] }
 0x177   : > { %v1603_v9 = vrot.slane %v5707_v24, %v5249_v26  ;;  %v2625_v47 = vmul.f32 %v2561_v23, %v2025_v39  ;;  %v2058_v22 = vadd.f32 %v1779_v44, %v6819_v15  ;;  %v5723_v11 = vcombine.high %v5454_v0, %v5454_v0  ;;  %v6824_v39 = vld [vmem:[#allocation23_spill] sm:$0xff] }
 0x178   : > { %6818 = vst [vmem:[#allocation80_spill] sm:$0xff] %v5718_v36  ;;  %v5727_v34 = vcombine.high %v5513_v37, %v5513_v37  ;;  %2652 = vadd.xlane.f32.xlu1 %v2617_v50  ;;  %v2626_v14 = vmul.f32 %v2562_v13, %v2028_v1  ;;  %v2031_v21 = vadd.f32 %v1671_v27, %v6822_v55  ;;  %v6826_v1 = vld [vmem:[#allocation95_spill] sm:$0xff] }
 0x179   : > { %6820 = vst [vmem:[#allocation9_spill] sm:$0xff] %v5723_v11  ;;  %v2014_v35 = vadd.f32 %v1603_v9, %v6823_v38  ;;  %v1879_v52 = vrot.slane %v5718_v36, %v5249_v26  ;;  %2704 = vadd.xlane.f32.xlu0 %v2643_v56  ;;  %v2636_v23 = vmul.f32 %v2572_v54, %v2058_v22  ;;  %v6827_v9 = vld [vmem:[#allocation8_spill] sm:$0xff]  ;;  %v6828_v54 = vld [vmem:[#allocation93_spill] sm:$0xff] }
 0x17a   : > { %6821 = vst [vmem:[#allocation3_spill] sm:$0xff] %v5727_v34  ;;  %v2010_v44 = vadd.f32 %v1587_v19, %v6824_v39  ;;  %v1599_v15 = vrot.slane %v5707_v24, %v5241_v12  ;;  %v1795_v37 = vrot.slane %v5723_v11, %v5249_v26  ;;  %v2556_v50 = vadd.f32 %v6825_v8, %v2011_v45  ;;  %v6830_v45 = vld [vmem:[#allocation103_spill] sm:$0xff]  ;;  %v6831_v39 = vld [vmem:[#allocation92_spill] sm:$0xff] }
 0x17b   : > { %v2563_v13 = vadd.f32 %v6826_v1, %v2032_v62  ;;  %v1875_v27 = vrot.slane %v5718_v36, %v5241_v12  ;;  %v2083_v55 = vadd.f32 %v1879_v52, %v6827_v9  ;;  %v1791_v56 = vrot.slane %v5723_v11, %v5241_v12  ;;  %v6833_v11 = vld [vmem:[#allocation53_spill] sm:$0xff] }
 0x17c   : > { %v2062_v19 = vadd.f32 %v1795_v37, %v6828_v54  ;;  %v1687_v22 = vrot.slane %v5727_v34, %v5249_v26  ;;  %v5750_v38 = vcombine.high %v5516_v32, %v5516_v32  ;;  %2654 = vadd.xlane.f32.xlu1 %v2618_v43  ;;  %v2557_v62 = vadd.f32 %v6830_v45, %v2014_v35  ;;  %v6832_v37 = vld [vmem:[#allocation96_spill] sm:$0xff]  ;;  %v6834_v35 = vld [vmem:[#allocation27_spill] sm:$0xff] }
 0x17d   : > { %v2580_v1 = vadd.f32 %v6831_v39, %v2083_v55  ;;  %v1683_v52 = vrot.slane %v5727_v34, %v5241_v12  ;;  %v5758_v9 = vcombine.high %v5496_v29, %v5496_v29  ;;  %2666 = vadd.xlane.f32.xlu0 %v2624_v18  ;;  %v2013_v55 = vadd.f32 %v1599_v15, %v6834_v35  ;;  %v6835_v39 = vld [vmem:[#allocation6_spill] sm:$0xff] }
 0x17e   : > { %6829 = vst [vmem:[#allocation98_spill] sm:$0xff] %v5750_v38  ;;  %v2573_v54 = vadd.f32 %v6832_v37, %v2062_v19  ;;  %v2035_v51 = vadd.f32 %v1687_v22, %v6833_v11  ;;  %v1695_v32 = vrot.slane %v5750_v38, %v5241_v12  ;;  %v1699_v43 = vrot.slane %v5750_v38, %v5249_v26  ;;  %v6836_v37 = vld [vmem:[#allocation87_spill] sm:$0xff]  ;;  %v6837_v22 = vld [vmem:[#allocation100_spill] sm:$0xff]  ;;  %v6839_v15 = vld [vmem:[#allocation58_spill] sm:$0xff] }
 0x17f   : > { %v2082_v10 = vadd.f32 %v1875_v27, %v6835_v39  ;;  %v1887_v34 = vrot.slane %v5758_v9, %v5241_v12  ;;  %v1891_v18 = vrot.slane %v5758_v9, %v5249_v26  ;;  %v2620_v36 = vmul.f32 %v2556_v50, %v2010_v44  ;;  %v6838_v38 = vld [vmem:[#allocation51_spill] sm:$0xff]  ;;  %v6843_v50 = vld [vmem:[#allocation12_spill] sm:$0xff] }
 0x180   : > { %v2627_v19 = vmul.f32 %v2563_v13, %v2031_v21  ;;  %v2061_v11 = vadd.f32 %v1791_v56, %v6836_v37  ;;  %v2564_v29 = vadd.f32 %v6837_v22, %v2035_v51  ;;  %2656 = vadd.xlane.f32.xlu1 %v2619_v33  ;;  %v2621_v45 = vmul.f32 %v2557_v62, %v2013_v55  ;;  %v6840_v39 = vld [vmem:[#allocation55_spill] sm:$0xff]  ;;  %v6842_v21 = vld [vmem:[#allocation68_spill] sm:$0xff]  ;;  %v6847_v62 = vld [vmem:[#allocation42_spill] sm:$0xff] }
 0x181   : > { %v2644_v60 = vmul.f32 %v2580_v1, %v2082_v10  ;;  %v2034_v6 = vadd.f32 %v1683_v52, %v6838_v38  ;;  %v2038_v35 = vadd.f32 %v1699_v43, %v6839_v15  ;;  %2668 = vadd.xlane.f32.xlu0 %v2625_v47  ;;  %v2037_v12 = vadd.f32 %v1695_v32, %v6840_v39  ;;  %v6844_v32 = vld [vmem:[#allocation48_spill] sm:$0xff]  ;;  %v6848_v52 = vld [vmem:[#allocation46_spill] sm:$0xff]  ;;  %v6852_v43 = vld [vmem:[#allocation57_spill] sm:$0xff] }
 0x182   : > { %v5776_v27 = vmul.f32 %v2573_v54, %v2061_v11  ;;  %v5780_v26 = vadd.f32 %v1887_v34, %v6841_v31  ;;  %v1727_v44 = vrot.slane %v5446_v40, %v6842_v21  ;;  %v2086_v51 = vadd.f32 %v1891_v18, %v6843_v50  ;;  %v6845_v34 = vld [vmem:[#allocation102_spill] sm:$0xff] }
 0x183   : > { %v1715_v10 = vrot.slane %v5443_v49, %v6842_v21  ;;  %v1739_v33 = vrot.slane %v5540_v53, %v6842_v21  ;;  %v1751_v47 = vrot.slane %v5547_v57, %v6842_v21  ;;  %v5791_v1 = vmul.f32 %v2564_v29, %v2034_v6  ;;  %v6846_v49 = vld [vmem:[#allocation44_spill] sm:$0xff]  ;;  %v6859_v39 = vld [vmem:[#allocation50_spill] sm:$0xff] }
 0x184   : > { %v2045_v13 = vadd.f32 %v1727_v44, %v6844_v32  ;;  %v1763_v31 = vrot.slane %v5450_v61, %v6842_v21  ;;  %v1775_v40 = vrot.slane %v5454_v0, %v6842_v21  ;;  %2690 = vadd.xlane.f32.xlu1 %v2636_v23  ;;  %v2565_v56 = vadd.f32 %v6845_v34, %v2038_v35  ;;  %v6849_v29 = vld [vmem:[#allocation72_spill] sm:$0xff]  ;;  %v6853_v23 = vld [vmem:[#allocation70_spill] sm:$0xff] }
 0x185   : > { %v2042_v38 = vadd.f32 %v1715_v10, %v6846_v49  ;;  %v2048_v53 = vadd.f32 %v6847_v62, %v1739_v33  ;;  %v2051_v37 = vadd.f32 %v6848_v52, %v1751_v47  ;;  %2670 = vadd.xlane.f32.xlu0 %v2626_v14  ;;  %v6851_v6 = vld [vmem:[#allocation52_spill] sm:$0xff]  ;;  %v1787_v0 = vrot.slane %v5673_v25, %v6842_v21  ;;  %v6865_v32 = vld [vmem:[#allocation14_spill] sm:$0xff] }
 0x186   : > { %v5803_v57 = vadd.f32 %v6849_v29, %v2045_v13  ;;  %v2054_v54 = vadd.f32 %v1763_v31, %v6851_v6  ;;  %v2057_v61 = vadd.f32 %v1775_v40, %v6852_v43  ;;  %v1535_v14 = vrot.slane %v5476_v5, %v6842_v21  ;;  %v6862_v10 = vld [vmem:[#allocation16_spill] sm:$0xff]  ;;  %v6868_v31 = vld [vmem:[#allocation18_spill] sm:$0xff]  ;;  %v6880_v43 = vld [vmem:[#allocation107_spill] sm:$0xff] }
 0x187   : > { %v5810_v55 = vadd.f32 %v6853_v23, %v2042_v38  ;;  %v5813_v18 = vadd.f32 %v5298_v16, %v2048_v53  ;;  %v5816_v11 = vadd.f32 %v5315_v28, %v2051_v37  ;;  %v2060_v25 = vadd.f32 %v6859_v39, %v1787_v0  ;;  %v6860_v16 = vld [vmem:[#allocation20_spill] sm:$0xff]  ;;  %v6873_v53 = vld [vmem:[#allocation97_spill] sm:$0xff]  ;;  %v6883_v23 = vld [vmem:[#allocation103_spill] sm:$0xff] }
 0x188   : > { %6850 = vst [vmem:[#allocation2_spill] sm:$0xff] %v5803_v57  ;;  %v5821_v15 = vadd.f32 %v5301_v3, %v2054_v54  ;;  %v5824_v35 = vadd.f32 %v6780_v63, %v2057_v61  ;;  %v1523_v44 = vrot.slane %v5470_v4, %v6842_v21  ;;  %2658 = vadd.xlane.f32.xlu1 %v2620_v36  ;;  %v6864_v47 = vld [vmem:[#allocation24_spill] sm:$0xff]  ;;  %v6881_v61 = vld [vmem:[#allocation109_spill] sm:$0xff]  ;;  %v6885_v39 = vld [vmem:[#allocation110_spill] sm:$0xff] }
 0x189   : > { %6854 = vst [vmem:[#allocation85_spill] sm:$0xff] %v5810_v55  ;;  %6855 = vst [vmem:[#allocation13_spill] sm:$0xff] %v5813_v18  ;;  %v1997_v50 = vadd.f32 %v1535_v14, %v6860_v16  ;;  %v1571_v28 = vrot.slane %v6789_v20, %v6842_v21  ;;  %v1547_v5 = vrot.slane %v5600_v48, %v6842_v21  ;;  %2672 = vadd.xlane.f32.xlu0 %v2627_v19  ;;  %v6869_v49 = vld [vmem:[#allocation28_spill] sm:$0xff] }
 0x18a   : > { %6856 = vst [vmem:[#allocation5_spill] sm:$0xff] %v5816_v11  ;;  %6857 = vst [vmem:[#allocation105_spill] sm:$0xff] %v5821_v15  ;;  %v1595_v3 = vrot.slane %v5689_v42, %v6842_v21  ;;  %v5837_v63 = vadd.f32 %v6815_v59, %v2060_v25  ;;  %v1994_v33 = vadd.f32 %v1523_v44, %v6862_v10  ;;  %v6866_v42 = vld [vmem:[#allocation22_spill] sm:$0xff]  ;;  %v6874_v37 = vld [vmem:[#allocation88_spill] sm:$0xff] }
 0x18b   : > { %6858 = vst [vmem:[#allocation7_spill] sm:$0xff] %v5824_v35  ;;  %v1559_v4 = vrot.slane %v5616_v41, %v6842_v21  ;;  %v1583_v36 = vrot.slane %v6796_v46, %v6842_v21  ;;  %v5845_v20 = vadd.f32 %v5309_v2, %v1997_v50  ;;  %v2006_v48 = vadd.f32 %v1571_v28, %v6864_v47  ;;  %v6879_v54 = vld [vmem:[#allocation60_spill] sm:$0xff]  ;;  %v6887_v50 = vld [vmem:[#allocation77_spill] sm:$0xff] }
 0x18c   : > { %6861 = vst [vmem:[#allocation17_spill] sm:$0xff] %v5837_v63  ;;  %v2000_v13 = vadd.f32 %v6865_v32, %v1547_v5  ;;  %v2012_v19 = vadd.f32 %v6866_v42, %v1595_v3  ;;  %v5851_v59 = vadd.f32 %v5312_v7, %v1994_v33  ;;  %v1607_v41 = vrot.slane %v5707_v24, %v6842_v21  ;;  %v6876_v24 = vld [vmem:[#allocation94_spill] sm:$0xff]  ;;  %v6886_v44 = vld [vmem:[#allocation80_spill] sm:$0xff]  ;;  %v6889_v5 = vld [vmem:[#allocation59_spill] sm:$0xff] }
 0x18d   : > { %6863 = vst [vmem:[#allocation106_spill] sm:$0xff] %v5845_v20  ;;  %v2003_v40 = vadd.f32 %v6868_v31, %v1559_v4  ;;  %v2009_v38 = vadd.f32 %v1583_v36, %v6869_v49  ;;  %2660 = vadd.xlane.f32.xlu1 %v2621_v45  ;;  %v5858_v2 = vadd.f32 %v6802_v17, %v2006_v48  ;;  %v6878_v17 = vld [vmem:[#allocation26_spill] sm:$0xff]  ;;  %v6890_v10 = vld [vmem:[#allocation61_spill] sm:$0xff]  ;;  %v6891_v4 = vld [vmem:[#allocation64_spill] sm:$0xff] }
 0x18e   : > { %6867 = vst [vmem:[#allocation11_spill] sm:$0xff] %v5851_v59  ;;  %v5861_v46 = vadd.f32 %v6786_v30, %v2000_v13  ;;  %v5864_v62 = vadd.f32 %v6825_v8, %v2012_v19  ;;  %v1811_v7 = vrot.slane %v5457_v58, %v6842_v21  ;;  %2706 = vadd.xlane.f32.xlu0 %v2644_v60  ;;  %v6882_v58 = vld [vmem:[#allocation108_spill] sm:$0xff]  ;;  %v6892_v36 = vld [vmem:[#allocation69_spill] sm:$0xff]  ;;  %v6893_v48 = vld [vmem:[#allocation63_spill] sm:$0xff] }
 0x18f   : > { %6870 = vst [vmem:[#allocation4_spill] sm:$0xff] %v5858_v2  ;;  %v2581_v52 = vadd.f32 %v6873_v53, %v2086_v51  ;;  %v5870_v29 = vadd.f32 %v6874_v37, %v2003_v40  ;;  %v5873_v45 = vadd.f32 %v6876_v24, %v2009_v38  ;;  %v2015_v6 = vadd.f32 %v6878_v17, %v1607_v41  ;;  %v6894_v13 = vld [vmem:[#allocation112_spill] sm:$0xff]  ;;  %v6895_v42 = vld [vmem:[#allocation75_spill] sm:$0xff]  ;;  %v6899_v49 = vld [vmem:[#allocation81_spill] sm:$0xff] }
 0x190   : > { %6871 = vst [vmem:[#allocation37_spill] sm:$0xff] %v5861_v46  ;;  %6872 = vst [vmem:[#allocation21_spill] sm:$0xff] %v5864_v62  ;;  %v2066_v30 = vadd.f32 %v1811_v7, %v6879_v54  ;;  %v1835_v8 = vrot.slane %v6880_v43, %v6842_v21  ;;  %v1847_v0 = vrot.slane %v6881_v61, %v6842_v21  ;;  %v6897_v31 = vld [vmem:[#allocation79_spill] sm:$0xff]  ;;  %v6906_v24 = vld [vmem:[#allocation33_spill] sm:$0xff] }
 0x191   : > { %6875 = vst [vmem:[#allocation90_spill] sm:$0xff] %v5870_v29  ;;  %6877 = vst [vmem:[#allocation15_spill] sm:$0xff] %v5873_v45  ;;  %v1859_v60 = vrot.slane %v6882_v58, %v6842_v21  ;;  %v2629_v51 = vmul.f32 %v2565_v56, %v2037_v12  ;;  %v5884_v14 = vadd.f32 %v6883_v23, %v2015_v6  ;;  %2692 = vadd.xlane.f32.xlu1 %v5776_v27  ;;  %v6907_v6 = vld [vmem:[#allocation101_spill] sm:$0xff] }
 0x192   : > { %v1871_v25 = vrot.slane %v6885_v39, %v6842_v21  ;;  %v1883_v16 = vrot.slane %v6886_v44, %v6842_v21  ;;  %v5892_v28 = vadd.f32 %v6887_v50, %v2066_v30  ;;  %v2072_v3 = vadd.f32 %v6889_v5, %v1835_v8  ;;  %2674 = vadd.xlane.f32.xlu0 %v5791_v1  ;;  %v6901_v1 = vld [vmem:[#allocation111_spill] sm:$0xff]  ;;  %v6909_v8 = vld [vmem:[#allocation73_spill] sm:$0xff]  ;;  %v6912_v39 = vld [vmem:[#allocation76_spill] sm:$0xff] }
 0x193   : > { %6884 = vst [vmem:[#allocation19_spill] sm:$0xff] %v5884_v14  ;;  %v2075_v33 = vadd.f32 %v6890_v10, %v1847_v0  ;;  %v2078_v12 = vadd.f32 %v1859_v60, %v6891_v4  ;;  %v2645_v56 = vmul.f32 %v2581_v52, %v5780_v26  ;;  %v1631_v27 = vrot.slane %v6894_v13, %v6842_v21  ;;  %v6902_v26 = vld [vmem:[#allocation83_spill] sm:$0xff]  ;;  %v6904_v52 = vld [vmem:[#allocation92_spill] sm:$0xff]  ;;  %v6910_v0 = vld [vmem:[#allocation114_spill] sm:$0xff] }
 0x194   : > { %6888 = vst [vmem:[#allocation41_spill] sm:$0xff] %v5892_v28  ;;  %v2081_v47 = vadd.f32 %v1871_v25, %v6892_v36  ;;  %v2084_v32 = vadd.f32 %v6893_v48, %v1883_v16  ;;  %v5904_v19 = vadd.f32 %v6895_v42, %v2072_v3  ;;  %v1619_v41 = vrot.slane %v6901_v1, %v6842_v21  ;;  %v6908_v30 = vld [vmem:[#allocation31_spill] sm:$0xff]  ;;  %v6911_v60 = vld [vmem:[#allocation113_spill] sm:$0xff]  ;;  %v6914_v44 = vld [vmem:[#allocation32_spill] sm:$0xff] }
 0x195   : > { %v5907_v40 = vadd.f32 %v6897_v31, %v2075_v33  ;;  %v5910_v38 = vadd.f32 %v6899_v49, %v2078_v12  ;;  %v2021_v17 = vadd.f32 %v1631_v27, %v6906_v24  ;;  %v1655_v54 = vrot.slane %v6907_v6, %v6842_v21  ;;  %v6915_v50 = vld [vmem:[#allocation98_spill] sm:$0xff]  ;;  %v6916_v3 = vld [vmem:[#allocation3_spill] sm:$0xff]  ;;  %v6922_v13 = vld [vmem:[#allocation89_spill] sm:$0xff] }
 0x196   : > { %6896 = vst [vmem:[#allocation45_spill] sm:$0xff] %v5904_v19  ;;  %v5915_v7 = vadd.f32 %v6902_v26, %v2081_v47  ;;  %v5918_v37 = vadd.f32 %v6904_v52, %v2084_v32  ;;  %v2018_v43 = vadd.f32 %v1619_v41, %v6908_v30  ;;  %v1643_v61 = vrot.slane %v6909_v8, %v6842_v21  ;;  %v6917_v33 = vld [vmem:[#allocation71_spill] sm:$0xff]  ;;  %v6919_v12 = vld [vmem:[#allocation30_spill] sm:$0xff]  ;;  %v6920_v47 = vld [vmem:[#allocation40_spill] sm:$0xff] }
 0x197   : > { %6898 = vst [vmem:[#allocation35_spill] sm:$0xff] %v5907_v40  ;;  %6900 = vst [vmem:[#allocation39_spill] sm:$0xff] %v5910_v38  ;;  %v1679_v58 = vrot.slane %v6910_v0, %v6842_v21  ;;  %v1667_v23 = vrot.slane %v6911_v60, %v6842_v21  ;;  %2676 = vadd.xlane.f32.xlu0 %v2629_v51  ;;  %v5931_v25 = vadd.f32 %v6912_v39, %v2021_v17  ;;  %v6921_v32 = vld [vmem:[#allocation36_spill] sm:$0xff]  ;;  %v6924_v42 = vld [vmem:[#allocation38_spill] sm:$0xff] }
 0x198   : > { %6903 = vst [vmem:[#allocation82_spill] sm:$0xff] %v5915_v7  ;;  %6905 = vst [vmem:[#allocation43_spill] sm:$0xff] %v5918_v37  ;;  %v2027_v16 = vadd.f32 %v6914_v44, %v1655_v54  ;;  %v1703_v5 = vrot.slane %v6915_v50, %v6842_v21  ;;  %v1691_v10 = vrot.slane %v6916_v3, %v6842_v21  ;;  %v6925_v49 = vld [vmem:[#allocation34_spill] sm:$0xff]  ;;  %v6926_v26 = vld [vmem:[#allocation84_spill] sm:$0xff] }
 0x199   : > { %6913 = vst [vmem:[#allocation86_spill] sm:$0xff] %v5931_v25  ;;  %v5939_v4 = vadd.f32 %v6917_v33, %v2018_v43  ;;  %v2024_v36 = vadd.f32 %v6919_v12, %v1643_v61  ;;  %v2033_v48 = vadd.f32 %v1679_v58, %v6920_v47  ;;  %v2030_v51 = vadd.f32 %v1667_v23, %v6921_v32  ;;  %v6928_v24 = vld [vmem:[#allocation95_spill] sm:$0xff]  ;;  %v6932_v30 = vld [vmem:[#allocation9_spill] sm:$0xff]  ;;  %v6936_v58 = vld [vmem:[#allocation54_spill] sm:$0xff] }
 0x19a   : > { %v5945_v27 = vadd.f32 %v6922_v13, %v2027_v16  ;;  %v2039_v31 = vadd.f32 %v6924_v42, %v1703_v5  ;;  %v2036_v1 = vadd.f32 %v6925_v49, %v1691_v10  ;;  %v1895_v41 = vrot.slane %v5758_v9, %v6842_v21  ;;  %v6930_v6 = vld [vmem:[#allocation91_spill] sm:$0xff]  ;;  %v6938_v39 = vld [vmem:[#allocation96_spill] sm:$0xff] }
 0x19b   : > { %6918 = vst [vmem:[#allocation25_spill] sm:$0xff] %v5939_v4  ;;  %v5952_v52 = vadd.f32 %v6926_v26, %v2024_v36  ;;  %v5955_v17 = vadd.f32 %v6928_v24, %v2033_v48  ;;  %v5958_v54 = vadd.f32 %v6930_v6, %v2030_v51  ;;  %v1799_v43 = vrot.slane %v6932_v30, %v6842_v21  ;;  %v6935_v9 = vld [vmem:[#allocation67_spill] sm:$0xff]  ;;  %v6941_v6 = vld [vmem:[#allocation56_spill] sm:$0xff] }
 0x19c   : > { %6923 = vst [vmem:[#allocation49_spill] sm:$0xff] %v5945_v27  ;;  %2708 = vadd.xlane.f32.xlu0 %v2645_v56  ;;  %v5963_v8 = vadd.f32 %v6845_v34, %v2039_v31  ;;  %v5966_v61 = vadd.f32 %v6837_v22, %v2036_v1  ;;  %v2087_v0 = vadd.f32 %v6935_v9, %v1895_v41  ;;  %v6940_v1 = vlaneseq }
 0x19d   : > { %6927 = vst [vmem:[#allocation78_spill] sm:$0xff] %v5952_v52  ;;  %6929 = vst [vmem:[#allocation47_spill] sm:$0xff] %v5955_v17  ;;  %v2063_v60 = vadd.f32 %v6936_v58, %v1799_v43 }
 0x19e   : > { %6931 = vst [vmem:[#allocation29_spill] sm:$0xff] %v5958_v54  ;;  %6933 = vst [vmem:[#allocation23_spill] sm:$0xff] %v5963_v8  ;;  %v5971_v23 = vadd.f32 %v6873_v53, %v2087_v0  ;;  %v2743_v41 = vand.u32 127, %v6940_v1 }
 0x19f   : > { %6934 = vst [vmem:[#allocation99_spill] sm:$0xff] %v5966_v61  ;;  %v5974_v44 = vadd.f32 %v6938_v39, %v2063_v60 }
 0x1a0   : > { %6937 = vst [vmem:[#allocation8_spill] sm:$0xff] %v5971_v23  ;;  %v6022_v30 = vsub.s32 %v2743_v41, %v6941_v6 }
 0x1a1   : > { %6939 = vst [vmem:[#allocation93_spill] sm:$0xff] %v5974_v44 }
 0x1de   : > { %v5976_v16 = vpop.xlane.xlu1 %2678 }
 0x1df   : > { %v2811_v0 = vrot.slane %v5976_v16, %v6022_v30 }
 0x1e2   : > { %v5978_v50 = vpop.xlane.xlu0 %2680 }
 0x1e3   : > { %v2815_v58 = vrot.slane %v5978_v50, %v6022_v30 }
 0x1e5   : > { %v5980_v56 = vpop.xlane.xlu1 %2648  ;;  %v2893_v54 = vsel %vm2872_vm1, %v2815_v58, %v2811_v0 }
 0x1e6   : > { %v5982_v34 = vpop.xlane.xlu0 %2646  ;;  %v2751_v1 = vrot.slane %v5980_v56, %v6022_v30 }
 0x1e7   : > { %v2747_v41 = vrot.slane %v5982_v34, %v6022_v30 }
 0x1e9   : > { %v5984_v22 = vpop.xlane.xlu1 %2682  ;;  %v2873_v0 = vsel %vm2872_vm1, %v2751_v1, %v2747_v41 }
 0x1ea   : > { %v5986_v5 = vpop.xlane.xlu0 %2696  ;;  %v2819_v60 = vrot.slane %v5984_v22, %v6022_v30 }
 0x1eb   : > { %v2847_v58 = vrot.slane %v5986_v5, %v6022_v30 }
 0x1ec   : > { %v2894_v52 = vsel %vm2874_vm2, %v2819_v60, %v2893_v54 }
 0x1ed   : > { %v5988_v3 = vpop.xlane.xlu1 %2684 }
 0x1ee   : > { %v5990_v10 = vpop.xlane.xlu0 %2662  ;;  %v2823_v44 = vrot.slane %v5988_v3, %v6022_v30 }
 0x1ef   : > { %v2779_v27 = vrot.slane %v5990_v10, %v6022_v30 }
 0x1f0   : > { %v2895_v7 = vsel %vm2876_vm3, %v2823_v44, %v2894_v52 }
 0x1f1   : > { %v5992_v53 = vpop.xlane.xlu1 %2686 }
 0x1f2   : > { %v5994_v33 = vpop.xlane.xlu0 %2664  ;;  %v2827_v61 = vrot.slane %v5992_v53, %v6022_v30 }
 0x1f3   : > { %v2783_v8 = vrot.slane %v5994_v33, %v6022_v30 }
 0x1f4   : > { %v2896_v38 = vsel %vm2878_vm4, %v2827_v61, %v2895_v7 }
 0x1f5   : > { %v5996_v12 = vpop.xlane.xlu1 %2688  ;;  %v2886_v40 = vsel %vm2872_vm1, %v2783_v8, %v2779_v27 }
 0x1f6   : > { %v5998_v36 = vpop.xlane.xlu0 %2698  ;;  %v2831_v4 = vrot.slane %v5996_v12, %v6022_v30 }
 0x1f7   : > { %v2851_v41 = vrot.slane %v5998_v36, %v6022_v30 }
 0x1f8   : > { %v2897_v14 = vsel %vm2880_vm5, %v2831_v4, %v2896_v38 }
 0x1f9   : > { %v6000_v47 = vpop.xlane.xlu1 %2694 }
 0x1fa   : > { %v6002_v48 = vpop.xlane.xlu0 %2700  ;;  %v2843_v17 = vrot.slane %v6000_v47, %v6022_v30 }
 0x1fb   : > { %v2855_v59 = vrot.slane %v6002_v48, %v6022_v30 }
 0x1fc   : > { %v2900_v52 = vsel %vm2872_vm1, %v2847_v58, %v2843_v17 }
 0x1fd   : > { %v6004_v32 = vpop.xlane.xlu1 %2650  ;;  %v2901_v29 = vsel %vm2874_vm2, %v2851_v41, %v2900_v52 }
 0x1fe   : > { %v6006_v51 = vpop.xlane.xlu0 %2702  ;;  %v2755_v25 = vrot.slane %v6004_v32, %v6022_v30 }
 0x200   : > { %v2875_v7 = vsel %vm2874_vm2, %v2755_v25, %v2873_v0 }
 0x201   : > { %v6008_v13 = vpop.xlane.xlu1 %2652 }
 0x202   : > { %v6010_v42 = vpop.xlane.xlu0 %2704  ;;  %v2759_v54 = vrot.slane %v6008_v13, %v6022_v30 }
 0x204   : > { %v2877_v17 = vsel %vm2876_vm3, %v2759_v54, %v2875_v7 }
 0x205   : > { %v6012_v31 = vpop.xlane.xlu1 %2654 }
 0x206   : > { %v6014_v49 = vpop.xlane.xlu0 %2666  ;;  %v2763_v19 = vrot.slane %v6012_v31, %v6022_v30 }
 0x207   : > { %v2787_v44 = vrot.slane %v6014_v49, %v6022_v30 }
 0x208   : > { %v2879_v62 = vsel %vm2878_vm4, %v2763_v19, %v2877_v17 }
 0x209   : > { %v6017_v26 = vpop.xlane.xlu1 %2656  ;;  %v2887_v54 = vsel %vm2874_vm2, %v2787_v44, %v2886_v40 }
 0x20a   : > { %v6019_v24 = vpop.xlane.xlu0 %2668  ;;  %v2767_v28 = vrot.slane %v6017_v26, %v6022_v30 }
 0x20b   : > { %v2791_v27 = vrot.slane %v6019_v24, %v6022_v30 }
 0x20c   : > { %v2881_v2 = vsel %vm2880_vm5, %v2767_v28, %v2879_v62  ;;  %v2902_v62 = vsel %vm2876_vm3, %v2855_v59, %v2901_v29  ;;  %v2863_v28 = vrot.slane %v6010_v42, %v6022_v30 }
 0x20d   : > { %v6024_v43 = vpop.xlane.xlu1 %2690  ;;  %v2888_v41 = vsel %vm2876_vm3, %v2791_v27, %v2887_v54 }
 0x20e   : > { %v6026_v9 = vpop.xlane.xlu0 %2670  ;;  %v2835_v1 = vrot.slane %v6024_v43, %v6022_v30 }
 0x20f   : > { %v2795_v58 = vrot.slane %v6026_v9, %v6022_v30 }
 0x210   : > { %v2898_v4 = vsel %vm2882_vm6, %v2835_v1, %v2897_v14  ;;  %v2859_v14 = vrot.slane %v6006_v51, %v6022_v30 }
 0x211   : > { %v6034_v39 = vpop.xlane.xlu1 %2658  ;;  %v2889_v40 = vsel %vm2878_vm4, %v2795_v58, %v2888_v41  ;;  %v6141_v41 = vsub.s32 4, %v6941_v6 }
 0x212   : > { %v6042_v23 = vpop.xlane.xlu0 %2672  ;;  %v2771_v8 = vrot.slane %v6034_v39, %v6022_v30 }
 0x213   : > { %v2799_v38 = vrot.slane %v6042_v23, %v6022_v30 }
 0x214   : > { %v2883_v52 = vsel %vm2882_vm6, %v2771_v8, %v2881_v2 }
 0x215   : > { %v2890_v2 = vsel %vm2880_vm5, %v2799_v38, %v2889_v40  ;;  %v6942_v40 = vld [vmem:[#allocation65_spill] sm:$0xff] }
 0x216   : > { %v6058_v37 = vpop.xlane.xlu1 %2660 }
 0x217   : > { %v6066_v60 = vpop.xlane.xlu0 %2706  ;;  %v2775_v45 = vrot.slane %v6058_v37, %v6022_v30 }
 0x218   : > { %v2867_v27 = vrot.slane %v6066_v60, %v6022_v30 }
 0x219   : > { %v2885_v44 = vsel %vm2884_vm7, %v2775_v45, %v2883_v52  ;;  %v2903_v45 = vsel %vm2878_vm4, %v2859_v14, %v2902_v62  ;;  %v6147_v52 = vsub.s32 6, %v6941_v6  ;;  %v6943_v62 = vld [vmem:[#allocation66_spill] sm:$0xff] }
 0x21a   : > { %v6086_v61 = vpop.xlane.xlu1 %2692  ;;  %v2912_v17 = vsel %vm2911_vm8, %v2885_v44, -inf  ;;  %v2904_v38 = vsel %vm2880_vm5, %v2863_v28, %v2903_v45 }
 0x21b   : > { %v2839_v25 = vrot.slane %v6086_v61, %v6022_v30  ;;  %v6096_v0 = vpop.xlane.xlu0 %2674 }
 0x21c   : > { %v2803_v7 = vrot.slane %v6096_v0, %v6022_v30 }
 0x21d   : > { %v2899_v46 = vsel %vm2884_vm7, %v2839_v25, %v2898_v4  ;;  %v2905_v4 = vsel %vm2882_vm6, %v2867_v27, %v2904_v38 }
 0x21e   : > { %v2918_v19 = vsel %vm2911_vm8, %v2899_v46, -inf  ;;  %v2891_v8 = vsel %vm2882_vm6, %v2803_v7, %v2890_v2  ;;  %v6158_v2 = vsub.s32 5, %v6941_v6 }
 0x21f   : > { %2919 = vmax.xlane.f32.xlu1 %v2918_v19  ;;  %v6144_v19 = vsub.s32 3, %v6941_v6 }
 0x220   : > { %v6116_v1 = vpop.xlane.xlu0 %2676 }
 0x221   : > { %v2807_v46 = vrot.slane %v6116_v1, %v6022_v30 }
 0x223   : > { %v2892_v58 = vsel %vm2884_vm7, %v2807_v46, %v2891_v8  ;;  %2913 = vmax.xlane.f32.xlu1 %v2912_v17 }
 0x224   : > { %v2915_v29 = vsel %vm2911_vm8, %v2892_v58, -inf }
 0x225   : > { %v6131_v59 = vpop.xlane.xlu0 %2708  ;;  %2916 = vmax.xlane.f32.xlu0 %v2915_v29 }
 0x226   : > { %v2871_v25 = vrot.slane %v6131_v59, %v6022_v30 }
 0x228   : > { %v2906_v54 = vsel %vm2884_vm7, %v2871_v25, %v2905_v4 }
 0x229   : > { %v2921_v7 = vsel %vm2911_vm8, %v2906_v54, -inf }
 0x22a   : > { %2922 = vmax.xlane.f32.xlu0 %v2921_v7 }
 0x2a8   : > { %v6149_v14 = vpop.xlane.xlu1 %2919 }
 0x2a9   : > { %v2995_v44 = vrot.slane %v6149_v14, %v6942_v40  ;;  %v2999_v28 = vrot.slane %v6149_v14, %v6943_v62  ;;  %v3003_v46 = vrot.slane %v6149_v14, %v6842_v21  ;;  %v3011_v27 = vrot.slane %v6149_v14, %v6141_v41 }
 0x2aa   : > { %v3007_v8 = vrot.slane %v6149_v14, %v6144_v19  ;;  %v3019_v29 = vrot.slane %v6149_v14, %v6147_v52  ;;  %v3015_v7 = vrot.slane %v6149_v14, %v6158_v2 }
 0x2ab   : > { %v3104_v17 = vsub.f32 %v5976_v16, %v2995_v44  ;;  %v3105_v58 = vsub.f32 %v5978_v50, %v2999_v28  ;;  %v3106_v45 = vsub.f32 %v5984_v22, %v3003_v46  ;;  %v3108_v25 = vsub.f32 %v5992_v53, %v3011_v27 }
 0x2ac   : > { %v6170_v54 = vpop.xlane.xlu1 %2913  ;;  %v3107_v20 = vsub.f32 %v5988_v3, %v3007_v8  ;;  %v3110_v50 = vsub.f32 %v6024_v43, %v3019_v29  ;;  %v3109_v53 = vsub.f32 %v5996_v12, %v3015_v7 }
 0x2ad   : > { %v3152_v38 = vmul.f32 1.442695, %v3104_v17  ;;  %v3154_v4 = vmul.f32 1.442695, %v3105_v58  ;;  %v3156_v16 = vmul.f32 1.442695, %v3106_v45  ;;  %v2931_v44 = vrot.slane %v6170_v54, %v6942_v40 }
 0x2ae   : > { %v3160_v22 = vmul.f32 1.442695, %v3108_v25  ;;  %v3158_v28 = vmul.f32 1.442695, %v3107_v20  ;;  %v2935_v46 = vrot.slane %v6170_v54, %v6943_v62  ;;  %v3164_v27 = vmul.f32 1.442695, %v3110_v50  ;;  %v6184_v43 = vpop.xlane.xlu0 %2916 }
 0x2af   : > { %4728 = vpow2.f32 %v3152_v38  ;;  %v2939_v3 = vrot.slane %v6170_v54, %v6842_v21  ;;  %v3088_v8 = vsub.f32 %v5982_v34, %v2931_v44  ;;  %v3162_v17 = vmul.f32 1.442695, %v3109_v53 }
 0x2b0   : > { %4730 = vpow2.f32 %v3154_v4  ;;  %v3089_v58 = vsub.f32 %v5980_v56, %v2935_v46  ;;  %v2943_v20 = vrot.slane %v6170_v54, %v6144_v19  ;;  %v2947_v34 = vrot.slane %v6170_v54, %v6141_v41 }
 0x2b1   : > { %4732 = vpow2.f32 %v3156_v16  ;;  %v3090_v12 = vsub.f32 %v6004_v32, %v2939_v3  ;;  %v3120_v45 = vmul.f32 1.442695, %v3088_v8  ;;  %v2951_v32 = vrot.slane %v6170_v54, %v6158_v2 }
 0x2b2   : > { %4734 = vpow2.f32 %v3160_v22  ;;  %v3122_v29 = vmul.f32 1.442695, %v3089_v58  ;;  %v3091_v38 = vsub.f32 %v6008_v13, %v2943_v20  ;;  %v3092_v13 = vsub.f32 %v6012_v31, %v2947_v34 }
 0x2b3   : > { %4736 = vpow2.f32 %v3158_v28  ;;  %v3124_v4 = vmul.f32 1.442695, %v3090_v12  ;;  %v6195_v7 = vpop.xlane.xlu0 %2922  ;;  %v2955_v46 = vrot.slane %v6170_v54, %v6147_v52  ;;  %v3093_v8 = vsub.f32 %v6017_v26, %v2951_v32 }
 0x2b4   : > { %4738 = vpow2.f32 %v3164_v27  ;;  %v3027_v16 = vrot.slane %v6195_v7, %v6942_v40  ;;  %v3126_v22 = vmul.f32 1.442695, %v3091_v38  ;;  %v3043_v44 = vrot.slane %v6195_v7, %v6141_v41 }
 0x2b5   : > { %4740 = vpow2.f32 %v3162_v17  ;;  %v3051_v27 = vrot.slane %v6195_v7, %v6147_v52  ;;  %v3128_v17 = vmul.f32 1.442695, %v3092_v13  ;;  %v6227_v20 = vsub.s32 7, %v6941_v6 }
 0x2b6   : > { %4742 = vpow2.f32 %v3120_v45  ;;  %v3112_v28 = vsub.f32 %v6000_v47, %v3027_v16  ;;  %v3116_v31 = vsub.f32 %v6006_v51, %v3043_v44  ;;  %v2971_v12 = vrot.slane %v6184_v43, %v6842_v21 }
 0x2b7   : > { %4744 = vpow2.f32 %v3122_v29  ;;  %v3118_v51 = vsub.f32 %v6066_v60, %v3051_v27  ;;  %v2959_v29 = vrot.slane %v6170_v54, %v6227_v20  ;;  %v3094_v34 = vsub.f32 %v6034_v39, %v2955_v46 }
 0x2b8   : > { %4746 = vpow2.f32 %v3124_v4  ;;  %v3168_v58 = vmul.f32 1.442695, %v3112_v28  ;;  %v3176_v45 = vmul.f32 1.442695, %v3116_v31  ;;  %v3130_v38 = vmul.f32 1.442695, %v3093_v8 }
 0x2b9   : > { %4748 = vpow2.f32 %v3126_v22  ;;  %v2979_v60 = vrot.slane %v6184_v43, %v6141_v41  ;;  %v3098_v4 = vsub.f32 %v6014_v49, %v2971_v12  ;;  %v3180_v32 = vmul.f32 1.442695, %v3118_v51 }
 0x2ba   : > { %4750 = vpow2.f32 %v3168_v58  ;;  %v3095_v54 = vsub.f32 %v6058_v37, %v2959_v29  ;;  %v3132_v39 = vmul.f32 1.442695, %v3094_v34  ;;  %v3031_v13 = vrot.slane %v6195_v7, %v6943_v62 }
 0x2bb   : > { %4752 = vpow2.f32 %v3128_v17  ;;  %v2987_v49 = vrot.slane %v6184_v43, %v6147_v52  ;;  %v3100_v44 = vsub.f32 %v6026_v9, %v2979_v60  ;;  %v3140_v28 = vmul.f32 1.442695, %v3098_v4 }
 0x2bc   : > { %v6190_v25 = vpop.eup %4728  ;;  %4754 = vpow2.f32 %v3176_v45  ;;  %v3134_v37 = vmul.f32 1.442695, %v3095_v54  ;;  %v3035_v46 = vrot.slane %v6195_v7, %v6842_v21  ;;  %v3113_v27 = vsub.f32 %v5986_v5, %v3031_v13 }
 0x2bd   : > { %v6197_v56 = vpop.eup %4730  ;;  %3265 = vperm.xlu0 %4676, %v6190_v25   ;;  %4756 = vpow2.f32 %v3130_v38  ;;  %v3023_v8 = vrot.slane %v6149_v14, %v6227_v20  ;;  %v3102_v17 = vsub.f32 %v6096_v0, %v2987_v49  ;;  %v3144_v9 = vmul.f32 1.442695, %v3100_v44 }
 0x2be   : > { %3268 = vperm.xlu1 %4677, %v6197_v56   ;;  %v6205_v50 = vpop.eup %4732  ;;  %4758 = vpow2.f32 %v3180_v32  ;;  %v3039_v12 = vrot.slane %v6195_v7, %v6144_v19  ;;  %v3114_v51 = vsub.f32 %v5998_v36, %v3035_v46  ;;  %v3170_v5 = vmul.f32 1.442695, %v3113_v27 }
 0x2bf   : > { %v6210_v53 = vpop.eup %4734  ;;  %4760 = vpow2.f32 %v3132_v39  ;;  %v3111_v14 = vsub.f32 %v6086_v61, %v3023_v8  ;;  %v3148_v0 = vmul.f32 1.442695, %v3102_v17  ;;  %v3047_v34 = vrot.slane %v6195_v7, %v6158_v2 }
 0x2c0   : > { %v6220_v3 = vpop.eup %4736  ;;  %4762 = vpow2.f32 %v3140_v28  ;;  %v3115_v38 = vsub.f32 %v6002_v48, %v3039_v12  ;;  %v3172_v36 = vmul.f32 1.442695, %v3114_v51  ;;  %v2963_v32 = vrot.slane %v6184_v43, %v6942_v40 }
 0x2c1   : > { %3271 = vperm.xlu0 %4676, %v6205_v50   ;;  %v6223_v47 = vpop.eup %4738  ;;  %4764 = vpow2.f32 %v3134_v37  ;;  %v3166_v4 = vmul.f32 1.442695, %v3111_v14  ;;  %v3117_v54 = vsub.f32 %v6010_v42, %v3047_v34  ;;  %v2967_v49 = vrot.slane %v6184_v43, %v6943_v62 }
 0x2c2   : > { %3277 = vperm.xlu1 %4677, %v6210_v53   ;;  %v6233_v26 = vpop.eup %4740  ;;  %4766 = vpow2.f32 %v3144_v9  ;;  %v3174_v39 = vmul.f32 1.442695, %v3115_v38  ;;  %v3096_v44 = vsub.f32 %v5990_v10, %v2963_v32  ;;  %v2975_v46 = vrot.slane %v6184_v43, %v6144_v19 }
 0x2c3   : > { %v6238_v6 = vpop.eup %4742  ;;  %4768 = vpow2.f32 %v3170_v5  ;;  %v3178_v28 = vmul.f32 1.442695, %v3117_v54  ;;  %v3097_v27 = vsub.f32 %v5994_v33, %v2967_v49  ;;  %v2983_v9 = vrot.slane %v6184_v43, %v6158_v2 }
 0x2c4   : > { %v6245_v16 = vpop.eup %4744  ;;  %4770 = vpow2.f32 %v3148_v0  ;;  %v3136_v8 = vmul.f32 1.442695, %v3096_v44  ;;  %v3099_v12 = vsub.f32 %v6019_v24, %v2975_v46  ;;  %v2991_v14 = vrot.slane %v6184_v43, %v6227_v20 }
 0x2c5   : > { %3274 = vperm.xlu0 %4676, %v6220_v3   ;;  %v6250_v22 = vpop.eup %4746  ;;  %4772 = vpow2.f32 %v3172_v36  ;;  %v3138_v51 = vmul.f32 1.442695, %v3097_v27  ;;  %v3101_v0 = vsub.f32 %v6042_v23, %v2983_v9 }
 0x2c6   : > { %3283 = vperm.xlu1 %4677, %v6223_v47   ;;  %v6260_v31 = vpop.eup %4748  ;;  %4774 = vpow2.f32 %v3166_v4  ;;  %v3142_v34 = vmul.f32 1.442695, %v3099_v12  ;;  %v3103_v24 = vsub.f32 %v6116_v1, %v2991_v14  ;;  %v3055_v4 = vrot.slane %v6195_v7, %v6227_v20 }
 0x2c7   : > { %v6266_v58 = vpop.eup %4750  ;;  %4776 = vpow2.f32 %v3174_v39  ;;  %v3146_v36 = vmul.f32 1.442695, %v3101_v0 }
 0x2c8   : > { %v6271_v45 = vpop.eup %4752  ;;  %4778 = vpow2.f32 %v3178_v28  ;;  %v3150_v23 = vmul.f32 1.442695, %v3103_v24  ;;  %v3119_v43 = vsub.f32 %v6131_v59, %v3055_v4 }
 0x2c9   : > { %3280 = vperm.xlu0 %4676, %v6233_v26   ;;  %v6276_v29 = vpop.eup %4754  ;;  %4780 = vpow2.f32 %v3136_v8 }
 0x2ca   : > { %3217 = vperm.xlu1 %4677, %v6238_v6   ;;  %v6281_v60 = vpop.eup %4756  ;;  %4782 = vpow2.f32 %v3138_v51  ;;  %v3182_v39 = vmul.f32 1.442695, %v3119_v43 }
 0x2cb   : > { %v6285_v61 = vpop.eup %4758  ;;  %4784 = vpow2.f32 %v3142_v34 }
 0x2cc   : > { %v6290_v48 = vpop.eup %4760  ;;  %4786 = vpow2.f32 %v3146_v36 }
 0x2cd   : > { %3220 = vperm.xlu0 %4676, %v6245_v16   ;;  %v6294_v13 = vpop.eup %4762  ;;  %4788 = vpow2.f32 %v3150_v23 }
 0x2ce   : > { %3223 = vperm.xlu1 %4677, %v6250_v22   ;;  %6944 = vst [vmem:[#allocation53_spill] sm:$0xff] %v6294_v13  ;;  %v6299_v37 = vpop.eup %4764  ;;  %4790 = vpow2.f32 %v3182_v39 }
 0x2cf   : > { %v6303_v42 = vpop.eup %4766 }
 0x2d0   : > { %6945 = vst [vmem:[#allocation27_spill] sm:$0xff] %v6303_v42  ;;  %v6308_v17 = vpop.eup %4768 }
 0x2d1   : > { %3289 = vperm.xlu0 %4676, %v6266_v58   ;;  %v6312_v10 = vpop.eup %4770 }
 0x2d2   : > { %3226 = vperm.xlu1 %4677, %v6260_v31   ;;  %6946 = vst [vmem:[#allocation6_spill] sm:$0xff] %v6312_v10  ;;  %v6317_v5 = vpop.eup %4772 }
 0x2d3   : > { %v6321_v33 = vpop.eup %4774 }
 0x2d4   : > { %6947 = vst [vmem:[#allocation87_spill] sm:$0xff] %v6321_v33  ;;  %v6326_v38 = vpop.eup %4776 }
 0x2d5   : > { %3301 = vperm.xlu0 %4676, %v6276_v29   ;;  %v6333_v32 = vpop.eup %4778 }
 0x2d6   : > { %3229 = vperm.xlu1 %4677, %v6271_v45   ;;  %v6337_v54 = vpop.eup %4780 }
 0x2d7   : > { %v6340_v1 = vpop.eup %4782 }
 0x2d8   : > { %v6343_v7 = vpop.eup %4784 }
 0x2d9   : > { %3307 = vperm.xlu0 %4676, %v6285_v61   ;;  %6948 = vst [vmem:[#allocation100_spill] sm:$0xff] %v6343_v7  ;;  %v6346_v49 = vpop.eup %4786 }
 0x2da   : > { %3232 = vperm.xlu1 %4677, %v6281_v60   ;;  %6949 = vst [vmem:[#allocation51_spill] sm:$0xff] %v6346_v49  ;;  %v6349_v59 = vpop.eup %4788 }
 0x2db   : > { %6950 = vst [vmem:[#allocation58_spill] sm:$0xff] %v6349_v59  ;;  %v6352_v44 = vpop.eup %4790 }
 0x2dc   : > { %6951 = vst [vmem:[#allocation55_spill] sm:$0xff] %v6352_v44 }
 0x2dd   : > { %3247 = vperm.xlu0 %4676, %v6294_v13  }
 0x2de   : > { %3235 = vperm.xlu1 %4677, %v6290_v48  }
 0x2e1   : > { %3253 = vperm.xlu0 %4676, %v6303_v42  }
 0x2e2   : > { %3238 = vperm.xlu1 %4677, %v6299_v37  }
 0x2e5   : > { %3259 = vperm.xlu0 %4676, %v6312_v10  }
 0x2e6   : > { %3292 = vperm.xlu1 %4677, %v6308_v17  }
 0x2e9   : > { %3286 = vperm.xlu0 %4676, %v6321_v33  }
 0x2ea   : > { %3295 = vperm.xlu1 %4677, %v6317_v5  }
 0x2ee   : > { %3298 = vperm.xlu1 %4677, %v6326_v38  }
 0x2f2   : > { %3304 = vperm.xlu1 %4677, %v6333_v32  }
 0x2f6   : > { %3241 = vperm.xlu1 %4677, %v6337_v54  }
 0x2fa   : > { %3244 = vperm.xlu1 %4677, %v6340_v1  }
 0x2fe   : > { %3250 = vperm.xlu1 %4677, %v6343_v7  }
 0x302   : > { %3256 = vperm.xlu1 %4677, %v6346_v49  }
 0x306   : > { %3262 = vperm.xlu1 %4677, %v6349_v59  }
 0x30a   : > { %3310 = vperm.xlu1 %4677, %v6352_v44  }
 0x338   : > { %v3266_v28 = vpop.permute.xlu0 %3265 }
 0x339   : > { %v3269_v46 = vpop.permute.xlu1 %3268  ;;  %v3379_v11 = vrot.slane %v3266_v28, %v6022_v30 }
 0x33a   : > { %v3383_v15 = vrot.slane %v3269_v46, %v6022_v30 }
 0x33c   : > { %v3272_v27 = vpop.permute.xlu0 %3271  ;;  %v3454_v33 = vsel %vm2872_vm1, %v3383_v15, %v3379_v11 }
 0x33d   : > { %v3278_v8 = vpop.permute.xlu1 %3277  ;;  %v3387_v55 = vrot.slane %v3272_v27, %v6022_v30 }
 0x33e   : > { %v3395_v28 = vrot.slane %v3278_v8, %v6022_v30 }
 0x33f   : > { %v3455_v49 = vsel %vm2874_vm2, %v3387_v55, %v3454_v33 }
 0x340   : > { %v3275_v9 = vpop.permute.xlu0 %3274 }
 0x341   : > { %v3284_v12 = vpop.permute.xlu1 %3283  ;;  %v3391_v57 = vrot.slane %v3275_v9, %v6022_v30 }
 0x343   : > { %v3456_v42 = vsel %vm2876_vm3, %v3391_v57, %v3455_v49  ;;  %v3403_v49 = vrot.slane %v3284_v12, %v6022_v30 }
 0x344   : > { %v3281_v51 = vpop.permute.xlu0 %3280 }
 0x345   : > { %v3218_v14 = vpop.permute.xlu1 %3217  ;;  %v3399_v46 = vrot.slane %v3281_v51, %v6022_v30 }
 0x346   : > { %v3315_v7 = vrot.slane %v3218_v14, %v6022_v30 }
 0x348   : > { %v3221_v34 = vpop.permute.xlu0 %3220 }
 0x349   : > { %v3224_v0 = vpop.permute.xlu1 %3223  ;;  %v3319_v59 = vrot.slane %v3221_v34, %v6022_v30  ;;  %v3457_v34 = vsel %vm2878_vm4, %v3395_v28, %v3456_v42 }
 0x34a   : > { %v3323_v27 = vrot.slane %v3224_v0, %v6022_v30  ;;  %v3458_v57 = vsel %vm2880_vm5, %v3399_v46, %v3457_v34 }
 0x34b   : > { %v3440_v9 = vsel %vm2872_vm1, %v3319_v59, %v3315_v7 }
 0x34c   : > { %v6355_v36 = vpop.permute.xlu0 %3289  ;;  %v3441_v8 = vsel %vm2874_vm2, %v3323_v27, %v3440_v9 }
 0x34d   : > { %v3227_v24 = vpop.permute.xlu1 %3226 }
 0x34e   : > { %v3327_v11 = vrot.slane %v3227_v24, %v6022_v30 }
 0x350   : > { %v6357_v23 = vpop.permute.xlu0 %3301  ;;  %v3442_v7 = vsel %vm2876_vm3, %v3327_v11, %v3441_v8 }
 0x351   : > { %v3230_v4 = vpop.permute.xlu1 %3229 }
 0x352   : > { %v3331_v55 = vrot.slane %v3230_v4, %v6022_v30  ;;  %v3459_v4 = vsel %vm2882_vm6, %v3403_v49, %v3458_v57 }
 0x354   : > { %v6359_v39 = vpop.permute.xlu0 %3307  ;;  %v3443_v24 = vsel %vm2878_vm4, %v3331_v55, %v3442_v7 }
 0x355   : > { %v3233_v43 = vpop.permute.xlu1 %3232 }
 0x356   : > { %v3335_v33 = vrot.slane %v3233_v43, %v6022_v30 }
 0x358   : > { %v3248_v35 = vpop.permute.xlu0 %3247  ;;  %v3444_v43 = vsel %vm2880_vm5, %v3335_v33, %v3443_v24 }
 0x359   : > { %v3236_v63 = vpop.permute.xlu1 %3235  ;;  %v3355_v33 = vrot.slane %v3248_v35, %v6022_v30 }
 0x35a   : > { %v3339_v51 = vrot.slane %v3236_v63, %v6022_v30 }
 0x35c   : > { %v3254_v44 = vpop.permute.xlu0 %3253  ;;  %v3445_v63 = vsel %vm2882_vm6, %v3339_v51, %v3444_v43 }
 0x35d   : > { %v3239_v18 = vpop.permute.xlu1 %3238 }
 0x35e   : > { %v3343_v59 = vrot.slane %v3239_v18, %v6022_v30 }
 0x360   : > { %v3260_v13 = vpop.permute.xlu0 %3259  ;;  %v3446_v27 = vsel %vm2884_vm7, %v3343_v59, %v3445_v63  ;;  %v3411_v59 = vrot.slane %v6355_v36, %v6022_v30 }
 0x361   : > { %v3293_v10 = vpop.permute.xlu1 %3292  ;;  %v3472_v18 = vsel %vm2911_vm8, %v3446_v27, 0.0 }
 0x362   : > { %v3415_v8 = vrot.slane %v3293_v10, %v6022_v30 }
 0x364   : > { %v3287_v14 = vpop.permute.xlu0 %3286  ;;  %v3461_v35 = vsel %vm2872_vm1, %v3415_v8, %v3411_v59 }
 0x365   : > { %v3296_v15 = vpop.permute.xlu1 %3295  ;;  %v3407_v0 = vrot.slane %v3287_v14, %v6022_v30 }
 0x366   : > { %v3419_v14 = vrot.slane %v3296_v15, %v6022_v30 }
 0x367   : > { %v3460_v12 = vsel %vm2884_vm7, %v3407_v0, %v3459_v4  ;;  %v3363_v4 = vrot.slane %v3254_v44, %v6022_v30  ;;  %v3371_v44 = vrot.slane %v3260_v13, %v6022_v30 }
 0x368   : > { %v3478_v46 = vsel %vm2911_vm8, %v3460_v12, 0.0  ;;  %v3462_v12 = vsel %vm2874_vm2, %v3419_v14, %v3461_v35 }
 0x369   : > { %v3299_v42 = vpop.permute.xlu1 %3298  ;;  %3479 = vadd.xlane.f32.xlu0 %v3478_v46 }
 0x36a   : > { %v3423_v0 = vrot.slane %v3299_v42, %v6022_v30  ;;  %v3427_v42 = vrot.slane %v6357_v23, %v6022_v30 }
 0x36c   : > { %v3463_v46 = vsel %vm2876_vm3, %v3423_v0, %v3462_v12 }
 0x36d   : > { %v3305_v28 = vpop.permute.xlu1 %3304  ;;  %3473 = vadd.xlane.f32.xlu0 %v3472_v18 }
 0x36e   : > { %v3431_v63 = vrot.slane %v3305_v28, %v6022_v30  ;;  %v3435_v28 = vrot.slane %v6359_v39, %v6022_v30 }
 0x371   : > { %v3242_v9 = vpop.permute.xlu1 %3241 }
 0x372   : > { %v3347_v34 = vrot.slane %v3242_v9, %v6022_v30  ;;  %v3464_v9 = vsel %vm2878_vm4, %v3427_v42, %v3463_v46 }
 0x375   : > { %v3245_v11 = vpop.permute.xlu1 %3244 }
 0x376   : > { %v3351_v55 = vrot.slane %v3245_v11, %v6022_v30 }
 0x378   : > { %v3447_v57 = vsel %vm2872_vm1, %v3351_v55, %v3347_v34  ;;  %v3465_v34 = vsel %vm2880_vm5, %v3431_v63, %v3464_v9 }
 0x379   : > { %v3251_v49 = vpop.permute.xlu1 %3250  ;;  %v3448_v7 = vsel %vm2874_vm2, %v3355_v33, %v3447_v57  ;;  %v3466_v13 = vsel %vm2882_vm6, %v3435_v28, %v3465_v34 }
 0x37a   : > { %v3359_v51 = vrot.slane %v3251_v49, %v6022_v30 }
 0x37c   : > { %v3449_v24 = vsel %vm2876_vm3, %v3359_v51, %v3448_v7 }
 0x37d   : > { %v3257_v43 = vpop.permute.xlu1 %3256  ;;  %v3450_v15 = vsel %vm2878_vm4, %v3363_v4, %v3449_v24 }
 0x37e   : > { %v3367_v10 = vrot.slane %v3257_v43, %v6022_v30 }
 0x380   : > { %v3451_v36 = vsel %vm2880_vm5, %v3367_v10, %v3450_v15 }
 0x381   : > { %v3263_v27 = vpop.permute.xlu1 %3262  ;;  %v3452_v11 = vsel %vm2882_vm6, %v3371_v44, %v3451_v36 }
 0x382   : > { %v3375_v18 = vrot.slane %v3263_v27, %v6022_v30 }
 0x384   : > { %v3453_v55 = vsel %vm2884_vm7, %v3375_v18, %v3452_v11 }
 0x385   : > { %v3311_v57 = vpop.permute.xlu1 %3310  ;;  %v3475_v33 = vsel %vm2911_vm8, %v3453_v55, 0.0 }
 0x386   : > { %v3439_v23 = vrot.slane %v3311_v57, %v6022_v30  ;;  %3476 = vadd.xlane.f32.xlu1 %v3475_v33 }
 0x388   : > { %v3467_v49 = vsel %vm2884_vm7, %v3439_v23, %v3466_v13 }
 0x389   : > { %v3481_v8 = vsel %vm2911_vm8, %v3467_v49, 0.0 }
 0x38a   : > { %3482 = vadd.xlane.f32.xlu0 %v3481_v8 }
 0x3f2   : > { %v3480_v51 = vpop.xlane.xlu0 %3479 }
 0x3f3   : > { %4792 = vrcp.f32 %v3480_v51 }
 0x3f6   : > { %v3474_v14 = vpop.xlane.xlu0 %3473 }
 0x3f7   : > { %4794 = vrcp.f32 %v3474_v14 }
 0x400   : > { %v6428_v7 = vpop.eup %4792 }
 0x401   : > { %v3563_v39 = vrot.slane %v6428_v7, %v6943_v62  ;;  %v3559_v30 = vrot.slane %v6428_v7, %v6942_v40  ;;  %v3567_v24 = vrot.slane %v6428_v7, %v6842_v21  ;;  %v3571_v4 = vrot.slane %v6428_v7, %v6144_v19 }
 0x402   : > { %v3575_v10 = vrot.slane %v6428_v7, %v6141_v41  ;;  %v3583_v46 = vrot.slane %v6428_v7, %v6147_v52 }
 0x403   : > { %v3669_v59 = vmul.f32 %v6197_v56, %v3563_v39  ;;  %v3668_v0 = vmul.f32 %v6190_v25, %v3559_v30  ;;  %v3670_v43 = vmul.f32 %v6205_v50, %v3567_v24  ;;  %v3671_v35 = vmul.f32 %v6220_v3, %v3571_v4  ;;  %v6952_v24 = vld [vmem:[#allocation53_spill] sm:$0xff]  ;;  %v6953_v4 = vld [vmem:[#allocation100_spill] sm:$0xff] }
 0x404   : > { %v3579_v56 = vrot.slane %v6428_v7, %v6158_v2  ;;  %v4795_v12 = vpop.eup %4794  ;;  %v3672_v25 = vmul.f32 %v6210_v53, %v3575_v10  ;;  %v3674_v3 = vmul.f32 %v6223_v47, %v3583_v46  ;;  %v6955_v10 = vld [vmem:[#allocation51_spill] sm:$0xff] }
 0x405   : > { %3771 = vperm.xlu1 %4677, %v3669_v59   ;;  %3766 = vperm.xlu0 %4676, %v3668_v0   ;;  %v3499_v50 = vrot.slane %v4795_v12, %v6943_v62  ;;  %v3511_v42 = vrot.slane %v4795_v12, %v6141_v41  ;;  %v3495_v44 = vrot.slane %v4795_v12, %v6942_v40  ;;  %v6958_v46 = vld [vmem:[#allocation87_spill] sm:$0xff] }
 0x406   : > { %v3673_v15 = vmul.f32 %v6233_v26, %v3579_v56  ;;  %v3519_v27 = vrot.slane %v4795_v12, %v6147_v52  ;;  %v3503_v18 = vrot.slane %v4795_v12, %v6842_v21  ;;  %v3507_v9 = vrot.slane %v4795_v12, %v6144_v19  ;;  %v6956_v56 = vld [vmem:[#allocation6_spill] sm:$0xff] }
 0x407   : > { %v3653_v63 = vmul.f32 %v6245_v16, %v3499_v50  ;;  %v3656_v53 = vmul.f32 %v6271_v45, %v3511_v42  ;;  %v3652_v26 = vmul.f32 %v6238_v6, %v3495_v44  ;;  %v3515_v45 = vrot.slane %v4795_v12, %v6158_v2  ;;  %v6960_v42 = vld [vmem:[#allocation2_spill] sm:$0xff] }
 0x408   : > { %v3658_v47 = vmul.f32 %v6290_v48, %v3519_v27  ;;  %v3654_v16 = vmul.f32 %v6250_v22, %v3503_v18  ;;  %v3655_v34 = vmul.f32 %v6260_v31, %v3507_v9  ;;  %v3523_v48 = vrot.slane %v4795_v12, %v6227_v20 }
 0x409   : > { %3776 = vperm.xlu1 %4677, %v3670_v43   ;;  %3781 = vperm.xlu0 %4676, %v3671_v35   ;;  %v3657_v28 = vmul.f32 %v6281_v60, %v3515_v45  ;;  %v6954_v43 = vld [vmem:[#allocation27_spill] sm:$0xff] }
 0x40a   : > { %v3659_v33 = vmul.f32 %v6299_v37, %v3523_v48 }
 0x40d   : > { %3786 = vperm.xlu1 %4677, %v3672_v25   ;;  %3791 = vperm.xlu0 %4676, %v3673_v15   ;;  %v6957_v25 = vld [vmem:[#allocation58_spill] sm:$0xff] }
 0x40f   : > { %v3477_v11 = vpop.xlane.xlu1 %3476 }
 0x411   : > { %3796 = vperm.xlu1 %4677, %v3674_v3   ;;  %3691 = vperm.xlu0 %4676, %v3653_v63  }
 0x413   : > { %v3483_v36 = vpop.xlane.xlu0 %3482 }
 0x414   : > { %4796 = vrcp.f32 %v3483_v36 }
 0x415   : > { %3706 = vperm.xlu0 %4676, %v3656_v53   ;;  %3686 = vperm.xlu1 %4677, %v3652_v26   ;;  %4798 = vrcp.f32 %v3477_v11  ;;  %v6961_v53 = vld [vmem:[#allocation85_spill] sm:$0xff] }
 0x419   : > { %3716 = vperm.xlu0 %4676, %v3658_v47   ;;  %3696 = vperm.xlu1 %4677, %v3654_v16   ;;  %v6962_v16 = vld [vmem:[#allocation104_spill] sm:$0xff] }
 0x41d   : > { %3701 = vperm.xlu1 %4677, %v3655_v34   ;;  %v6963_v34 = vld [vmem:[#allocation13_spill] sm:$0xff] }
 0x421   : > { %v4797_v6 = vpop.eup %4796  ;;  %3711 = vperm.xlu1 %4677, %v3657_v28  }
 0x422   : > { %v3591_v55 = vrot.slane %v4797_v6, %v6942_v40  ;;  %v3599_v57 = vrot.slane %v4797_v6, %v6842_v21  ;;  %v3595_v31 = vrot.slane %v4797_v6, %v6943_v62  ;;  %v3607_v13 = vrot.slane %v4797_v6, %v6141_v41  ;;  %v4799_v51 = vpop.eup %4798 }
 0x423   : > { %v3603_v49 = vrot.slane %v4797_v6, %v6144_v19  ;;  %v3615_v8 = vrot.slane %v4797_v6, %v6147_v52  ;;  %v3611_v14 = vrot.slane %v4797_v6, %v6158_v2  ;;  %v3527_v39 = vrot.slane %v4799_v51, %v6942_v40 }
 0x424   : > { %v3676_v22 = vmul.f32 %v6266_v58, %v3591_v55  ;;  %v3678_v23 = vmul.f32 %v6317_v5, %v3599_v57  ;;  %v3677_v60 = vmul.f32 %v6308_v17, %v3595_v31  ;;  %v3680_v58 = vmul.f32 %v6276_v29, %v3607_v13 }
 0x425   : > { %3721 = vperm.xlu1 %4677, %v3659_v33   ;;  %v3679_v37 = vmul.f32 %v6326_v38, %v3603_v49  ;;  %v3682_v5 = vmul.f32 %v6285_v61, %v3615_v8  ;;  %v3681_v17 = vmul.f32 %v6333_v32, %v3611_v14  ;;  %v3531_v30 = vrot.slane %v4799_v51, %v6943_v62 }
 0x426   : > { %3806 = vperm.xlu0 %4676, %v3676_v22   ;;  %v3660_v29 = vmul.f32 %v6337_v54, %v3527_v39  ;;  %v3535_v59 = vrot.slane %v4799_v51, %v6842_v21  ;;  %v3539_v0 = vrot.slane %v4799_v51, %v6144_v19  ;;  %v3543_v40 = vrot.slane %v4799_v51, %v6141_v41 }
 0x427   : > { %v3661_v38 = vmul.f32 %v6340_v1, %v3531_v30  ;;  %v3547_v62 = vrot.slane %v4799_v51, %v6158_v2  ;;  %v3551_v35 = vrot.slane %v4799_v51, %v6147_v52  ;;  %v3555_v19 = vrot.slane %v4799_v51, %v6227_v20  ;;  %v6959_v52 = vld [vmem:[#allocation55_spill] sm:$0xff]  ;;  %v6966_v51 = vld [vmem:[#allocation105_spill] sm:$0xff] }
 0x428   : > { %v3662_v61 = vmul.f32 %v6952_v24, %v3535_v59  ;;  %v3663_v32 = vmul.f32 %v6953_v4, %v3539_v0  ;;  %v3664_v54 = vmul.f32 %v6954_v43, %v3543_v40  ;;  %v3587_v41 = vrot.slane %v6428_v7, %v6227_v20  ;;  %v6968_v24 = vld [vmem:[#allocation74_spill] sm:$0xff] }
 0x429   : > { %3811 = vperm.xlu1 %4677, %v3677_v60   ;;  %v3665_v1 = vmul.f32 %v6955_v10, %v3547_v62  ;;  %v3666_v12 = vmul.f32 %v6956_v56, %v3551_v35  ;;  %v3667_v15 = vmul.f32 %v6957_v25, %v3555_v19  ;;  %v3619_v2 = vrot.slane %v4797_v6, %v6227_v20  ;;  %v6964_v6 = vld [vmem:[#allocation5_spill] sm:$0xff] }
 0x42a   : > { %3816 = vperm.xlu0 %4676, %v3678_v23   ;;  %v3675_v50 = vmul.f32 %v6958_v46, %v3587_v41  ;;  %v1823_v20 = vrot.slane %v6962_v16, %v6842_v21  ;;  %v6965_v23 = vld [vmem:[#allocation62_spill] sm:$0xff]  ;;  %v6969_v35 = vld [vmem:[#allocation17_spill] sm:$0xff] }
 0x42b   : > { %v3683_v3 = vmul.f32 %v6959_v52, %v3619_v2 }
 0x42c   : > { %v2069_v13 = vadd.f32 %v1823_v20, %v6965_v23  ;;  %v6971_v20 = vld [vmem:[#allocation11_spill] sm:$0xff] }
 0x42d   : > { %3821 = vperm.xlu1 %4677, %v3679_v37   ;;  %v6967_v37 = vld [vmem:[#allocation7_spill] sm:$0xff] }
 0x42e   : > { %3826 = vperm.xlu0 %4676, %v3680_v58  }
 0x431   : > { %3831 = vperm.xlu1 %4677, %v3681_v17  }
 0x432   : > { %3836 = vperm.xlu0 %4676, %v3682_v5  }
 0x435   : > { %3731 = vperm.xlu1 %4677, %v3661_v38  }
 0x436   : > { %3726 = vperm.xlu0 %4676, %v3660_v29  }
 0x439   : > { %3741 = vperm.xlu1 %4677, %v3663_v32  }
 0x43a   : > { %3736 = vperm.xlu0 %4676, %v3662_v61   ;;  %v6512_v61 = vadd.f32 %v6968_v24, %v2069_v13 }
 0x43d   : > { %3751 = vperm.xlu1 %4677, %v3665_v1   ;;  %v6970_v1 = vld [vmem:[#allocation106_spill] sm:$0xff] }
 0x43e   : > { %3746 = vperm.xlu0 %4676, %v3664_v54  }
 0x441   : > { %3761 = vperm.xlu1 %4677, %v3667_v15  }
 0x442   : > { %3756 = vperm.xlu0 %4676, %v3666_v12  }
 0x445   : > { %3841 = vperm.xlu1 %4677, %v3683_v3  }
 0x446   : > { %3801 = vperm.xlu0 %4676, %v3675_v50  }
 0x480   : > { %v3772_v63 = vpop.permute.xlu1 %3771  ;;  %v3767_v36 = vpop.permute.xlu0 %3766 }
 0x481   : > { %v3861_v44 = vmul.f32 %v3772_v63, %v6960_v42  ;;  %v3860_v26 = vmul.f32 %v3767_v36, %v6961_v53 }
 0x483   : > { %v3978_v7 = vrot.slane %v3861_v44, 4  ;;  %v3972_v27 = vrot.slane %v3860_v26, 4 }
 0x484   : > { %v3777_v18 = vpop.permute.xlu1 %3776  ;;  %v3782_v47 = vpop.permute.xlu0 %3781 }
 0x485   : > { %v3979_v9 = vadd.f32 %v3978_v7, %v3861_v44  ;;  %v3973_v11 = vadd.f32 %v3972_v27, %v3860_v26  ;;  %v3862_v45 = vmul.f32 %v3777_v18, %v6963_v34  ;;  %v3863_v55 = vmul.f32 %v3782_v47, %v6964_v6 }
 0x487   : > { %v3980_v28 = vrot.slane %v3979_v9, 2  ;;  %v3974_v48 = vrot.slane %v3973_v11, 2  ;;  %v3984_v22 = vrot.slane %v3862_v45, 4  ;;  %v3990_v57 = vrot.slane %v3863_v55, 4 }
 0x488   : > { %v3787_v33 = vpop.permute.xlu1 %3786  ;;  %v3792_v31 = vpop.permute.xlu0 %3791 }
 0x489   : > { %v3981_v60 = vadd.f32 %v3980_v28, %v3979_v9  ;;  %v3975_v49 = vadd.f32 %v3974_v48, %v3973_v11  ;;  %v3985_v58 = vadd.f32 %v3984_v22, %v3862_v45  ;;  %v3991_v8 = vadd.f32 %v3990_v57, %v3863_v55  ;;  %v6972_v57 = vld [vmem:[#allocation4_spill] sm:$0xff] }
 0x48a   : > { %v3864_v21 = vmul.f32 %v3787_v33, %v6966_v51  ;;  %v3865_v14 = vmul.f32 %v3792_v31, %v6967_v37  ;;  %v6973_v51 = vld [vmem:[#allocation37_spill] sm:$0xff] }
 0x48b   : > { %v3982_v5 = vrot.slane %v3981_v60, 1  ;;  %v3976_v39 = vrot.slane %v3975_v49, 1  ;;  %v3986_v17 = vrot.slane %v3985_v58, 2  ;;  %v3992_v30 = vrot.slane %v3991_v8, 2 }
 0x48c   : > { %v3996_v29 = vrot.slane %v3864_v21, 4  ;;  %v4002_v59 = vrot.slane %v3865_v14, 4  ;;  %v3797_v38 = vpop.permute.xlu1 %3796  ;;  %v3692_v0 = vpop.permute.xlu0 %3691 }
 0x48d   : > { %v3983_v40 = vadd.f32 %v3982_v5, %v3981_v60  ;;  %v3977_v4 = vadd.f32 %v3976_v39, %v3975_v49  ;;  %v3987_v32 = vadd.f32 %v3986_v17, %v3985_v58  ;;  %v3993_v62 = vadd.f32 %v3992_v30, %v3991_v8 }
 0x48e   : > { %v3997_v43 = vadd.f32 %v3996_v29, %v3864_v21  ;;  %v4003_v54 = vadd.f32 %v4002_v59, %v3865_v14  ;;  %v3866_v10 = vmul.f32 %v3797_v38, %v6969_v35  ;;  %v3845_v19 = vmul.f32 %v3692_v0, %v6970_v1 }
 0x48f   : > { %v4541_v56 = vpack.c.bf16 %v3983_v40, %v3983_v40  ;;  %v4540_v12 = vpack.c.bf16 %v3977_v4, %v3977_v4  ;;  %v3988_v41 = vrot.slane %v3987_v32, 1  ;;  %v3994_v25 = vrot.slane %v3993_v62, 1 }
 0x490   : > { %v3998_v15 = vrot.slane %v3997_v43, 2  ;;  %v4004_v2 = vrot.slane %v4003_v54, 2  ;;  %v4008_v46 = vrot.slane %v3866_v10, 4  ;;  %v3882_v50 = vrot.slane %v3845_v19, 4  ;;  %v3687_v52 = vpop.permute.xlu1 %3686  ;;  %v3707_v44 = vpop.permute.xlu0 %3706 }
 0x491   : > { %v4213_v3 = vunpack.c.l.b16 %v4541_v56  ;;  %v4212_v63 = vunpack.c.l.b16 %v4540_v12  ;;  %v3989_v36 = vadd.f32 %v3988_v41, %v3987_v32  ;;  %v3995_v42 = vadd.f32 %v3994_v25, %v3993_v62  ;;  %v6974_v32 = vld [vmem:[#allocation21_spill] sm:$0xff]  ;;  %v6975_v12 = vld [vmem:[#allocation90_spill] sm:$0xff] }
 0x492   : > { %v3999_v53 = vadd.f32 %v3998_v15, %v3997_v43  ;;  %v4005_v26 = vadd.f32 %v4004_v2, %v4003_v54  ;;  %v4009_v7 = vadd.f32 %v4008_v46, %v3866_v10  ;;  %v3883_v27 = vadd.f32 %v3882_v50, %v3845_v19 }
 0x493   : > { %v4242_v18 = vsel %vm2872_vm1, %v4213_v3, %v4212_v63  ;;  %v4542_v47 = vpack.c.bf16 %v3989_v36, %v3989_v36  ;;  %v4543_v16 = vpack.c.bf16 %v3995_v42, %v3995_v42  ;;  %v3844_v9 = vmul.f32 %v3687_v52, %v6971_v20 }
 0x494   : > { %v4000_v11 = vrot.slane %v3999_v53, 1  ;;  %v4006_v34 = vrot.slane %v4005_v26, 1  ;;  %v4010_v45 = vrot.slane %v4009_v7, 2  ;;  %v3884_v6 = vrot.slane %v3883_v27, 2  ;;  %v3697_v55 = vpop.permute.xlu1 %3696  ;;  %v3717_v37 = vpop.permute.xlu0 %3716 }
 0x495   : > { %v4214_v28 = vunpack.c.l.b16 %v4542_v47  ;;  %v4215_v48 = vunpack.c.l.b16 %v4543_v16  ;;  %v3876_v22 = vrot.slane %v3844_v9, 4  ;;  %v3848_v33 = vmul.f32 %v3707_v44, %v6972_v57 }
 0x496   : > { %v4001_v31 = vadd.f32 %v4000_v11, %v3999_v53  ;;  %v4007_v23 = vadd.f32 %v4006_v34, %v4005_v26  ;;  %v4011_v13 = vadd.f32 %v4010_v45, %v4009_v7  ;;  %v3885_v60 = vadd.f32 %v3884_v6, %v3883_v27  ;;  %v6976_v7 = vld [vmem:[#allocation15_spill] sm:$0xff] }
 0x497   : > { %v4243_v49 = vsel %vm2874_vm2, %v4214_v28, %v4242_v18  ;;  %v3877_v58 = vadd.f32 %v3876_v22, %v3844_v9  ;;  %v3900_v8 = vrot.slane %v3848_v33, 4  ;;  %v3846_v21 = vmul.f32 %v3697_v55, %v6973_v51  ;;  %v6977_v6 = vld [vmem:[#allocation19_spill] sm:$0xff] }
 0x498   : > { %v4244_v14 = vsel %vm2876_vm3, %v4215_v48, %v4243_v49  ;;  %v4544_v5 = vpack.c.bf16 %v4001_v31, %v4001_v31  ;;  %v4545_v39 = vpack.c.bf16 %v4007_v23, %v4007_v23  ;;  %v4012_v17 = vrot.slane %v4011_v13, 1  ;;  %v3702_v30 = vpop.permute.xlu1 %3701 }
 0x499   : > { %v3886_v29 = vrot.slane %v3885_v60, 1  ;;  %v3878_v59 = vrot.slane %v3877_v58, 2  ;;  %v3901_v38 = vadd.f32 %v3900_v8, %v3848_v33  ;;  %v3888_v0 = vrot.slane %v3846_v21, 4  ;;  %v6978_v33 = vld [vmem:[#allocation41_spill] sm:$0xff] }
 0x49a   : > { %v4216_v24 = vunpack.c.l.b16 %v4544_v5  ;;  %v4217_v40 = vunpack.c.l.b16 %v4545_v39  ;;  %v4013_v4 = vadd.f32 %v4012_v17, %v4011_v13  ;;  %v3850_v62 = vmul.f32 %v3717_v37, %v6974_v32  ;;  %v6979_v32 = vld [vmem:[#allocation45_spill] sm:$0xff] }
 0x49b   : > { %v3887_v43 = vadd.f32 %v3886_v29, %v3885_v60  ;;  %v3879_v54 = vadd.f32 %v3878_v59, %v3877_v58  ;;  %v3902_v35 = vrot.slane %v3901_v38, 2  ;;  %v3889_v10 = vadd.f32 %v3888_v0, %v3846_v21 }
 0x49c   : > { %v4245_v1 = vsel %vm2878_vm4, %v4216_v24, %v4244_v14  ;;  %v4546_v19 = vpack.c.bf16 %v4013_v4, %v4013_v4  ;;  %v3912_v56 = vrot.slane %v3850_v62, 4  ;;  %v3847_v41 = vmul.f32 %v3702_v30, %v6975_v12  ;;  %v3712_v25 = vpop.permute.xlu1 %3711 }
 0x49d   : > { %v4246_v15 = vsel %vm2880_vm5, %v4217_v40, %v4245_v1  ;;  %v4525_v2 = vpack.c.bf16 %v3887_v43, %v3887_v43  ;;  %v3880_v46 = vrot.slane %v3879_v54, 1  ;;  %v3903_v50 = vadd.f32 %v3902_v35, %v3901_v38 }
 0x49e   : > { %v4218_v3 = vunpack.c.l.b16 %v4546_v19  ;;  %v3890_v63 = vrot.slane %v3889_v10, 2  ;;  %v3913_v36 = vadd.f32 %v3912_v56, %v3850_v62  ;;  %v3894_v42 = vrot.slane %v3847_v41, 4 }
 0x49f   : > { %v4197_v44 = vunpack.c.l.b16 %v4525_v2  ;;  %v3881_v53 = vadd.f32 %v3880_v46, %v3879_v54  ;;  %v3904_v26 = vrot.slane %v3903_v50, 1  ;;  %v3849_v27 = vmul.f32 %v3712_v25, %v6976_v7 }
 0x4a0   : > { %v6528_v18 = vsel %vm2882_vm6, %v4218_v3, %v4246_v15  ;;  %v3891_v47 = vadd.f32 %v3890_v63, %v3889_v10  ;;  %v3914_v16 = vrot.slane %v3913_v36, 2  ;;  %v3895_v20 = vadd.f32 %v3894_v42, %v3847_v41  ;;  %v3722_v9 = vpop.permute.xlu1 %3721 }
 0x4a1   : > { %v3807_v52 = vpop.permute.xlu0 %3806  ;;  %v4524_v11 = vpack.c.bf16 %v3881_v53, %v3881_v53  ;;  %v3905_v34 = vadd.f32 %v3904_v26, %v3903_v50  ;;  %v3906_v45 = vrot.slane %v3849_v27, 4  ;;  %v3851_v55 = vmul.f32 %v3722_v9, %v6977_v6  ;;  %v6981_v26 = vld [vmem:[#allocation39_spill] sm:$0xff] }
 0x4a2   : > { %v3892_v48 = vrot.slane %v3891_v47, 1  ;;  %v3915_v22 = vadd.f32 %v3914_v16, %v3913_v36  ;;  %v3896_v57 = vrot.slane %v3895_v20, 2  ;;  %v3868_v31 = vmul.f32 %v3807_v52, %v6978_v33 }
 0x4a3   : > { %v4196_v23 = vunpack.c.l.b16 %v4524_v11  ;;  %v4528_v13 = vpack.c.bf16 %v3905_v34, %v3905_v34  ;;  %v3907_v60 = vadd.f32 %v3906_v45, %v3849_v27  ;;  %v3918_v49 = vrot.slane %v3851_v55, 4 }
 0x4a4   : > { %v3893_v58 = vadd.f32 %v3892_v48, %v3891_v47  ;;  %v3916_v8 = vrot.slane %v3915_v22, 1  ;;  %v3897_v51 = vadd.f32 %v3896_v57, %v3895_v20  ;;  %v4020_v21 = vrot.slane %v3868_v31, 4  ;;  %v3812_v37 = vpop.permute.xlu1 %3811 }
 0x4a5   : > { %v3817_v28 = vpop.permute.xlu0 %3816  ;;  %v4228_v14 = vsel %vm2872_vm1, %v4197_v44, %v4196_v23  ;;  %v4200_v5 = vunpack.c.l.b16 %v4528_v13  ;;  %v3908_v39 = vrot.slane %v3907_v60, 2  ;;  %v3919_v17 = vadd.f32 %v3918_v49, %v3851_v55  ;;  %v6980_v44 = vld [vmem:[#allocation35_spill] sm:$0xff] }
 0x4a6   : > { %v4526_v29 = vpack.c.bf16 %v3893_v58, %v3893_v58  ;;  %v3917_v59 = vadd.f32 %v3916_v8, %v3915_v22  ;;  %v3898_v38 = vrot.slane %v3897_v51, 1  ;;  %v4021_v0 = vadd.f32 %v4020_v21, %v3868_v31 }
 0x4a7   : > { %v3909_v24 = vadd.f32 %v3908_v39, %v3907_v60  ;;  %v3920_v40 = vrot.slane %v3919_v17, 2  ;;  %v3869_v4 = vmul.f32 %v3812_v37, %v6512_v61  ;;  %v3870_v62 = vmul.f32 %v3817_v28, %v6979_v32 }
 0x4a8   : > { %v4198_v43 = vunpack.c.l.b16 %v4526_v29  ;;  %v4530_v54 = vpack.c.bf16 %v3917_v59, %v3917_v59  ;;  %v3899_v35 = vadd.f32 %v3898_v38, %v3897_v51  ;;  %v4022_v10 = vrot.slane %v4021_v0, 2  ;;  %v3822_v1 = vpop.permute.xlu1 %3821  ;;  %v6982_v51 = vld [vmem:[#allocation82_spill] sm:$0xff] }
 0x4a9   : > { %v3827_v30 = vpop.permute.xlu0 %3826  ;;  %v3910_v19 = vrot.slane %v3909_v24, 1  ;;  %v3921_v56 = vadd.f32 %v3920_v40, %v3919_v17  ;;  %v4026_v12 = vrot.slane %v3869_v4, 4  ;;  %v4032_v41 = vrot.slane %v3870_v62, 4  ;;  %v6983_v40 = vld [vmem:[#allocation43_spill] sm:$0xff] }
 0x4aa   : > { %v4229_v15 = vsel %vm2874_vm2, %v4198_v43, %v4228_v14  ;;  %v4202_v2 = vunpack.c.l.b16 %v4530_v54  ;;  %v4527_v46 = vpack.c.bf16 %v3899_v35, %v3899_v35  ;;  %v4023_v50 = vadd.f32 %v4022_v10, %v4021_v0  ;;  %v6984_v35 = vld [vmem:[#allocation86_spill] sm:$0xff] }
 0x4ab   : > { %v3911_v52 = vadd.f32 %v3910_v19, %v3909_v24  ;;  %v3922_v3 = vrot.slane %v3921_v56, 1  ;;  %v4027_v61 = vadd.f32 %v4026_v12, %v3869_v4  ;;  %v4033_v63 = vadd.f32 %v4032_v41, %v3870_v62  ;;  %v6985_v41 = vld [vmem:[#allocation25_spill] sm:$0xff] }
 0x4ac   : > { %v4199_v36 = vunpack.c.l.b16 %v4527_v46  ;;  %v4024_v42 = vrot.slane %v4023_v50, 1  ;;  %v3871_v53 = vmul.f32 %v3822_v1, %v6980_v44  ;;  %v3872_v7 = vmul.f32 %v3827_v30, %v6981_v26  ;;  %v3832_v27 = vpop.permute.xlu1 %3831 }
 0x4ad   : > { %v3837_v25 = vpop.permute.xlu0 %3836  ;;  %v4529_v47 = vpack.c.bf16 %v3911_v52, %v3911_v52  ;;  %v3923_v16 = vadd.f32 %v3922_v3, %v3921_v56  ;;  %v4028_v20 = vrot.slane %v4027_v61, 2  ;;  %v4034_v9 = vrot.slane %v4033_v63, 2 }
 0x4ae   : > { %v4230_v11 = vsel %vm2876_vm3, %v4199_v36, %v4229_v15  ;;  %v4025_v34 = vadd.f32 %v4024_v42, %v4023_v50  ;;  %v4038_v45 = vrot.slane %v3871_v53, 4  ;;  %v4044_v6 = vrot.slane %v3872_v7, 4 }
 0x4af   : > { %v4201_v55 = vunpack.c.l.b16 %v4529_v47  ;;  %v4231_v28 = vsel %vm2878_vm4, %v4200_v5, %v4230_v11  ;;  %v4531_v48 = vpack.c.bf16 %v3923_v16, %v3923_v16  ;;  %v4029_v22 = vadd.f32 %v4028_v20, %v4027_v61 }
 0x4b0   : > { %v4548_v33 = vpack.c.bf16 %v4025_v34, %v4025_v34  ;;  %v4035_v31 = vadd.f32 %v4034_v9, %v4033_v63  ;;  %v4039_v23 = vadd.f32 %v4038_v45, %v3871_v53  ;;  %v4045_v13 = vadd.f32 %v4044_v6, %v3872_v7  ;;  %v3732_v60 = vpop.permute.xlu1 %3731  ;;  %v6986_v34 = vld [vmem:[#allocation49_spill] sm:$0xff] }
 0x4b1   : > { %v3727_v57 = vpop.permute.xlu0 %3726  ;;  %v4232_v49 = vsel %vm2880_vm5, %v4201_v55, %v4231_v28  ;;  %v4203_v58 = vunpack.c.l.b16 %v4531_v48  ;;  %v4030_v8 = vrot.slane %v4029_v22, 1  ;;  %v3873_v21 = vmul.f32 %v3832_v27, %v6982_v51 }
 0x4b2   : > { %v4233_v37 = vsel %vm2882_vm6, %v4202_v2, %v4232_v49  ;;  %v4220_v14 = vunpack.c.l.b16 %v4548_v33  ;;  %v4036_v39 = vrot.slane %v4035_v31, 1  ;;  %v4040_v5 = vrot.slane %v4039_v23, 2 }
 0x4b3   : > { %v4234_v17 = vsel %vm2884_vm7, %v4203_v58, %v4233_v37  ;;  %v4031_v30 = vadd.f32 %v4030_v8, %v4029_v22  ;;  %v4046_v29 = vrot.slane %v4045_v13, 2  ;;  %v4050_v59 = vrot.slane %v3873_v21, 4  ;;  %v6987_v22 = vld [vmem:[#allocation78_spill] sm:$0xff] }
 0x4b4   : > { %v4256_v38 = vpack.c.b16 %v4234_v17, %v4234_v17  ;;  %v4037_v0 = vadd.f32 %v4036_v39, %v4035_v31  ;;  %v4041_v24 = vadd.f32 %v4040_v5, %v4039_v23  ;;  %v3874_v4 = vmul.f32 %v3837_v25, %v6983_v40  ;;  %v3742_v32 = vpop.permute.xlu1 %3741  ;;  %v6989_v40 = vld [vmem:[#allocation29_spill] sm:$0xff] }
 0x4b5   : > { %v4549_v62 = vpack.c.bf16 %v4031_v30, %v4031_v30  ;;  %v4047_v43 = vadd.f32 %v4046_v29, %v4045_v13  ;;  %v4051_v54 = vadd.f32 %v4050_v59, %v3873_v21  ;;  %v3853_v10 = vmul.f32 %v3732_v60, %v6984_v35  ;;  %v3737_v1 = vpop.permute.xlu0 %3736  ;;  %v6988_v29 = vld [vmem:[#allocation47_spill] sm:$0xff] }
 0x4b6   : > { %4264 = vst [vmem:[%s6548_s13] sm:$0xf] %v4256_v38  ;;  %v4550_v19 = vpack.c.bf16 %v4037_v0, %v4037_v0  ;;  %v4042_v56 = vrot.slane %v4041_v24, 1  ;;  %v4056_v12 = vrot.slane %v3874_v4, 4  ;;  %v3852_v15 = vmul.f32 %v3727_v57, %v6985_v41 }
 0x4b7   : > { %v4221_v2 = vunpack.c.l.b16 %v4549_v62  ;;  %v4048_v46 = vrot.slane %v4047_v43, 1  ;;  %v4052_v50 = vrot.slane %v4051_v54, 2  ;;  %v3930_v52 = vrot.slane %v3853_v10, 4 }
 0x4b8   : > { %v4222_v3 = vunpack.c.l.b16 %v4550_v19  ;;  %v4043_v61 = vadd.f32 %v4042_v56, %v4041_v24  ;;  %v4057_v25 = vadd.f32 %v4056_v12, %v3874_v4  ;;  %v3924_v63 = vrot.slane %v3852_v15, 4  ;;  %v3752_v26 = vpop.permute.xlu1 %3751 }
 0x4b9   : > { %v4249_v36 = vsel %vm2872_vm1, %v4221_v2, %v4220_v14  ;;  %v4049_v42 = vadd.f32 %v4048_v46, %v4047_v43  ;;  %v4053_v44 = vadd.f32 %v4052_v50, %v4051_v54  ;;  %v3931_v53 = vadd.f32 %v3930_v52, %v3853_v10  ;;  %v3747_v6 = vpop.permute.xlu0 %3746 }
 0x4ba   : > { %v4250_v7 = vsel %vm2874_vm2, %v4222_v3, %v4249_v36  ;;  %v4551_v27 = vpack.c.bf16 %v4043_v61, %v4043_v61  ;;  %v4058_v47 = vrot.slane %v4057_v25, 2  ;;  %v3925_v16 = vadd.f32 %v3924_v63, %v3852_v15  ;;  %v6990_v3 = vld [vmem:[#allocation23_spill] sm:$0xff] }
 0x4bb   : > { %v4552_v20 = vpack.c.bf16 %v4049_v42, %v4049_v42  ;;  %v4054_v9 = vrot.slane %v4053_v44, 1  ;;  %v3932_v11 = vrot.slane %v3931_v53, 2  ;;  %v3855_v45 = vmul.f32 %v3742_v32, %v6986_v34  ;;  %v6992_v34 = vld [vmem:[#allocation8_spill] sm:$0xff] }
 0x4bc   : > { %v4223_v55 = vunpack.c.l.b16 %v4551_v27  ;;  %v4059_v28 = vadd.f32 %v4058_v47, %v4057_v25  ;;  %v3926_v48 = vrot.slane %v3925_v16, 2  ;;  %v3854_v57 = vmul.f32 %v3737_v1, %v6987_v22  ;;  %v3762_v39 = vpop.permute.xlu1 %3761  ;;  %v6991_v27 = vld [vmem:[#allocation99_spill] sm:$0xff] }
 0x4bd   : > { %v4224_v33 = vunpack.c.l.b16 %v4552_v20  ;;  %v4055_v31 = vadd.f32 %v4054_v9, %v4053_v44  ;;  %v3933_v23 = vadd.f32 %v3932_v11, %v3931_v53  ;;  %v3942_v13 = vrot.slane %v3855_v45, 4  ;;  %v3757_v32 = vpop.permute.xlu0 %3756 }
 0x4be   : > { %v4251_v60 = vsel %vm2876_vm3, %v4223_v55, %v4250_v7  ;;  %v4060_v49 = vrot.slane %v4059_v28, 1  ;;  %v3927_v58 = vadd.f32 %v3926_v48, %v3925_v16  ;;  %v3936_v8 = vrot.slane %v3854_v57, 4 }
 0x4bf   : > { %v4252_v51 = vsel %vm2878_vm4, %v4224_v33, %v4251_v60  ;;  %v4553_v21 = vpack.c.bf16 %v4055_v31, %v4055_v31  ;;  %v3934_v37 = vrot.slane %v3933_v23, 1  ;;  %v3943_v14 = vadd.f32 %v3942_v13, %v3855_v45  ;;  %v6993_v31 = vld [vmem:[#allocation93_spill] sm:$0xff] }
 0x4c0   : > { %v4061_v5 = vadd.f32 %v4060_v49, %v4059_v28  ;;  %v3928_v17 = vrot.slane %v3927_v58, 1  ;;  %v3937_v30 = vadd.f32 %v3936_v8, %v3854_v57  ;;  %v3857_v59 = vmul.f32 %v3752_v26, %v6988_v29  ;;  %v3842_v25 = vpop.permute.xlu1 %3841 }
 0x4c1   : > { %v4225_v38 = vunpack.c.l.b16 %v4553_v21  ;;  %v3935_v0 = vadd.f32 %v3934_v37, %v3933_v23  ;;  %v3944_v24 = vrot.slane %v3943_v14, 2  ;;  %v3856_v4 = vmul.f32 %v3747_v6, %v6989_v40  ;;  %v3802_v16 = vpop.permute.xlu0 %3801 }
 0x4c2   : > { %v4554_v62 = vpack.c.bf16 %v4061_v5, %v4061_v5  ;;  %v3929_v43 = vadd.f32 %v3928_v17, %v3927_v58  ;;  %v3938_v54 = vrot.slane %v3937_v30, 2  ;;  %v3954_v35 = vrot.slane %v3857_v59, 4 }
 0x4c3   : > { %v4253_v10 = vsel %vm2880_vm5, %v4225_v38, %v4252_v51  ;;  %v4533_v1 = vpack.c.bf16 %v3935_v0, %v3935_v0  ;;  %v3945_v19 = vadd.f32 %v3944_v24, %v3943_v14  ;;  %v3948_v56 = vrot.slane %v3856_v4, 4 }
 0x4c4   : > { %v4226_v12 = vunpack.c.l.b16 %v4554_v62  ;;  %v4532_v41 = vpack.c.bf16 %v3929_v43, %v3929_v43  ;;  %v3939_v15 = vadd.f32 %v3938_v54, %v3937_v30  ;;  %v3955_v2 = vadd.f32 %v3954_v35, %v3857_v59 }
 0x4c5   : > { %v4205_v46 = vunpack.c.l.b16 %v4533_v1  ;;  %v3946_v50 = vrot.slane %v3945_v19, 1  ;;  %v3949_v52 = vadd.f32 %v3948_v56, %v3856_v4  ;;  %v3859_v61 = vmul.f32 %v3762_v39, %v6990_v3 }
 0x4c6   : > { %v6566_v63 = vsel %vm2882_vm6, %v4226_v12, %v4253_v10  ;;  %v4204_v36 = vunpack.c.l.b16 %v4532_v41  ;;  %v3940_v42 = vrot.slane %v3939_v15, 1  ;;  %v3956_v44 = vrot.slane %v3955_v2, 2 }
 0x4c7   : > { %v3947_v53 = vadd.f32 %v3946_v50, %v3945_v19  ;;  %v3950_v26 = vrot.slane %v3949_v52, 2  ;;  %v3966_v7 = vrot.slane %v3859_v61, 4  ;;  %v3858_v47 = vmul.f32 %v3757_v32, %v6991_v27 }
 0x4c8   : > { %v4235_v20 = vsel %vm2872_vm1, %v4205_v46, %v4204_v36  ;;  %v3941_v9 = vadd.f32 %v3940_v42, %v3939_v15  ;;  %v3957_v11 = vadd.f32 %v3956_v44, %v3955_v2  ;;  %v3875_v45 = vmul.f32 %v3842_v25, %v6992_v34 }
 0x4c9   : > { %v4535_v6 = vpack.c.bf16 %v3947_v53, %v3947_v53  ;;  %v3951_v55 = vadd.f32 %v3950_v26, %v3949_v52  ;;  %v3967_v28 = vadd.f32 %v3966_v7, %v3859_v61  ;;  %v3960_v48 = vrot.slane %v3858_v47, 4 }
 0x4ca   : > { %v4534_v22 = vpack.c.bf16 %v3941_v9, %v3941_v9  ;;  %v3958_v57 = vrot.slane %v3957_v11, 1  ;;  %v4062_v33 = vrot.slane %v3875_v45, 4  ;;  %v3867_v23 = vmul.f32 %v3802_v16, %v6993_v31 }
 0x4cb   : > { %v4207_v13 = vunpack.c.l.b16 %v4535_v6  ;;  %v3952_v60 = vrot.slane %v3951_v55, 1  ;;  %v3968_v49 = vrot.slane %v3967_v28, 2  ;;  %v3961_v58 = vadd.f32 %v3960_v48, %v3858_v47 }
 0x4cc   : > { %v4206_v8 = vunpack.c.l.b16 %v4534_v22  ;;  %v3959_v51 = vadd.f32 %v3958_v57, %v3957_v11  ;;  %v4063_v21 = vadd.f32 %v4062_v33, %v3875_v45  ;;  %v4014_v37 = vrot.slane %v3867_v23, 4 }
 0x4cd   : > { %v3953_v14 = vadd.f32 %v3952_v60, %v3951_v55  ;;  %v3969_v39 = vadd.f32 %v3968_v49, %v3967_v28  ;;  %v3962_v5 = vrot.slane %v3961_v58, 2 }
 0x4ce   : > { %v4236_v17 = vsel %vm2874_vm2, %v4206_v8, %v4235_v20  ;;  %v4537_v30 = vpack.c.bf16 %v3959_v51, %v3959_v51  ;;  %v4064_v29 = vrot.slane %v4063_v21, 2  ;;  %v4015_v59 = vadd.f32 %v4014_v37, %v3867_v23 }
 0x4cf   : > { %v4237_v38 = vsel %vm2876_vm3, %v4207_v13, %v4236_v17  ;;  %v4536_v0 = vpack.c.bf16 %v3953_v14, %v3953_v14  ;;  %v3970_v24 = vrot.slane %v3969_v39, 1  ;;  %v3963_v40 = vadd.f32 %v3962_v5, %v3961_v58 }
 0x4d0   : > { %v4209_v4 = vunpack.c.l.b16 %v4537_v30  ;;  %v4065_v32 = vadd.f32 %v4064_v29, %v4063_v21  ;;  %v4016_v62 = vrot.slane %v4015_v59, 2 }
 0x4d1   : > { %v4208_v43 = vunpack.c.l.b16 %v4536_v0  ;;  %v3971_v54 = vadd.f32 %v3970_v24, %v3969_v39  ;;  %v3964_v35 = vrot.slane %v3963_v40, 1 }
 0x4d2   : > { %v4066_v10 = vrot.slane %v4065_v32, 1  ;;  %v4017_v1 = vadd.f32 %v4016_v62, %v4015_v59 }
 0x4d3   : > { %v4238_v19 = vsel %vm2878_vm4, %v4208_v43, %v4237_v38  ;;  %v4539_v56 = vpack.c.bf16 %v3971_v54, %v3971_v54  ;;  %v3965_v12 = vadd.f32 %v3964_v35, %v3963_v40 }
 0x4d4   : > { %v4239_v41 = vsel %vm2880_vm5, %v4209_v4, %v4238_v19  ;;  %v4067_v15 = vadd.f32 %v4066_v10, %v4065_v32  ;;  %v4018_v2 = vrot.slane %v4017_v1, 1 }
 0x4d5   : > { %v4538_v46 = vpack.c.bf16 %v3965_v12, %v3965_v12  ;;  %v4211_v50 = vunpack.c.l.b16 %v4539_v56 }
 0x4d6   : > { %v4555_v52 = vpack.c.bf16 %v4067_v15, %v4067_v15  ;;  %v4019_v3 = vadd.f32 %v4018_v2, %v4017_v1 }
 0x4d7   : > { %v4210_v61 = vunpack.c.l.b16 %v4538_v46 }
 0x4d8   : > { %v4227_v25 = vunpack.c.l.b16 %v4555_v52  ;;  %v4547_v36 = vpack.c.bf16 %v4019_v3, %v4019_v3 }
 0x4d9   : > { %v4240_v42 = vsel %vm2882_vm6, %v4210_v61, %v4239_v41 }
 0x4da   : > { %v4241_v44 = vsel %vm2884_vm7, %v4211_v50, %v4240_v42  ;;  %v4255_v53 = vsel %vm2884_vm7, %v4227_v25, %v6566_v63  ;;  %v4219_v26 = vunpack.c.l.b16 %v4547_v36 }
 0x4db   : > { %v4257_v7 = vpack.c.b16 %v4241_v44, %v4241_v44  ;;  %v4259_v27 = vpack.c.b16 %v4255_v53, %v4255_v53 }
 0x4dc   : > { %v4248_v47 = vsel %vm2884_vm7, %v4219_v26, %v6528_v18 }
 0x4dd   : > { %4265 = vst [vmem:[%s6548_s13 + $0x4] sm:$0xf] %v4257_v7  ;;  %4267 = vst [vmem:[%s6548_s13 + $0xc] sm:$0xf] %v4259_v27  ;;  %v4258_v16 = vpack.c.b16 %v4248_v47, %v4248_v47 }
 0x4df   : > { %4266 = vst [vmem:[%s6548_s13 + $0x8] sm:$0xf] %v4258_v16 }
 0x4e0 PF: > { %s18_s29 = sadd.s32 1, %s4822_s29   ;;  %s6994_s27 = smov %s4818_s28 }
 0x4e1   : > { %p15_p5 = scmp.ge.s32.totalorder %s18_s29, 4   ;;  %s6995_s28 = smov %s6997_s30 }
 0x4e3   :  { %17 = sbr.rel (!%p15_p5) target bundleno = 2 (0x2), region = 88 }

</bundles_post_ra>
